<compile_context>
chip_gen: v7x
topology: tpu7x:2x2x1
jax: 0.10.0
libtpu: 0.0.40
codegen_flags: <defaults>
</compile_context>

<pallas_src>
import functools

import jax
import jax.numpy as jnp
from jax import lax
from jax.experimental import pallas as pl
from jax.experimental.pallas import tpu as pltpu  # noqa: F401  (TPU backend)


def _full(shape):
    # Whole-array single block resident in VMEM (all operands here are small).
    return pl.BlockSpec(shape, lambda: (0,) * len(shape))


# ---------------------------- Pallas kernels ----------------------------

def _conv_bn_relu_kernel(cols_ref, w_ref, g_ref, beta_ref, o_ref, *, inv_n, eps):
    """Conv-as-matmul + BatchNorm(batch stats, training mode) + ReLU.

    cols: (K, M) bf16, w: (Cout, K) bf16 -> f32 accumulator (Cout, M).
    No conv bias (exactly cancelled by the mean subtraction); stats are
    unmasked one-pass sums over the ragged (lane-masked) M extent.
    """
    acc = jnp.dot(w_ref[...], cols_ref[...], preferred_element_type=jnp.float32)
    s1 = jnp.sum(acc, axis=1, keepdims=True)
    s2 = jnp.sum(acc * acc, axis=1, keepdims=True)
    mean = s1 * inv_n
    var = s2 * inv_n - mean * mean               # biased, like torch BN training
    scale = lax.rsqrt(var + eps) * g_ref[...]    # gamma folded into the scale
    shift = beta_ref[...] - mean * scale
    o_ref[...] = jnp.maximum(acc * scale + shift, 0.0).astype(o_ref.dtype)


def _conv_sigmoid_kernel(cols_ref, w_ref, b_ref, o_ref):
    """Final layer: conv-as-matmul + bias + sigmoid (no BN)."""
    acc = jnp.dot(w_ref[...], cols_ref[...], preferred_element_type=jnp.float32)
    o_ref[...] = jax.nn.sigmoid(acc + b_ref[...])


def _latent_kernel(cols_ref, wm_ref, bm_ref, wv_ref, bv_ref, eps_ref,
                   wd1_ref, g_ref, beta_ref, mean_ref, std_ref, act_ref,
                   *, inv_n, bn_eps):
    """Fused e3 (latent heads) + reparameterization + d1 convT + BN + ReLU.

    cols: (B, 512) bf16 im2col of e3's single 1x1 output window.
    wd1:  (9, 32, 256) bf16 -- one (32, 256) matmul per d1 kernel tap.
    Outputs: mean (B,32) f32, std (B,32) f32, act (9, B, 256) bf16.
    """
    cols = cols_ref[...]
    mean = jnp.dot(cols, wm_ref[...], preferred_element_type=jnp.float32) + bm_ref[...]
    logvar = jnp.dot(cols, wv_ref[...], preferred_element_type=jnp.float32) + bv_ref[...]
    std = jnp.exp(0.5 * logvar)
    mean_ref[...] = mean
    std_ref[...] = std
    z = (mean + std * eps_ref[...]).astype(jnp.bfloat16)       # rsample
    # d1 ConvTranspose on a 1x1 input: out[b, co, tap] = z[b, :] @ w[:, co, tap]
    taps = [jnp.dot(z, wd1_ref[s], preferred_element_type=jnp.float32)
            for s in range(9)]
    s1 = sum(jnp.sum(t, axis=0, keepdims=True) for t in taps)        # (1, 256)
    s2 = sum(jnp.sum(t * t, axis=0, keepdims=True) for t in taps)    # (1, 256)
    m = s1 * inv_n
    v = s2 * inv_n - m * m
    scale = lax.rsqrt(v + bn_eps) * g_ref[...]
    shift = beta_ref[...] - m * scale
    for s in range(9):
        act_ref[s] = jnp.maximum(taps[s] * scale + shift, 0.0).astype(act_ref.dtype)


# ------------------------------ conv glue -------------------------------

_DN = ("CNHW", "OIHW", "CNHW")   # activations stay channel-major (CNHW)


def _patches_cnhw(x_cnhw, k, window_strides, lhs_dilation, padding):
    # x: (Cin, B, H, W) -> patches (Cin*k*k, B*Ho*Wo); K ordered (ci, kh, kw),
    # matching torch's weight.reshape(Cout, Cin*k*k).
    p = lax.conv_general_dilated_patches(
        x_cnhw, (k, k), window_strides, padding,
        lhs_dilation=lhs_dilation, dimension_numbers=_DN)
    K, B, Ho, Wo = p.shape
    return p.reshape(K, B * Ho * Wo), Ho, Wo


def _conv_bn_relu(x_cnhw, wm, gamma, beta, k, strides, lhs_dilation, padding,
                  eps=1e-5):
    B = x_cnhw.shape[1]
    cols, Ho, Wo = _patches_cnhw(x_cnhw, k, strides, lhs_dilation, padding)
    K, M = cols.shape
    Cout = wm.shape[0]
    out = pl.pallas_call(
        functools.partial(_conv_bn_relu_kernel, inv_n=1.0 / M, eps=eps),
        out_shape=jax.ShapeDtypeStruct((Cout, M), jnp.bfloat16),
        in_specs=[_full((K, M)), _full((Cout, K)), _full((Cout, 1)),
                  _full((Cout, 1))],
        out_specs=_full((Cout, M)),
    )(cols, wm, gamma, beta)
    return out.reshape(Cout, B, Ho, Wo)                       # stays CNHW


def _conv_sigmoid(x_cnhw, wm, bias, k, strides, lhs_dilation, padding):
    B = x_cnhw.shape[1]
    cols, Ho, Wo = _patches_cnhw(x_cnhw, k, strides, lhs_dilation, padding)
    K, M = cols.shape
    Cout = wm.shape[0]
    out = pl.pallas_call(
        _conv_sigmoid_kernel,
        out_shape=jax.ShapeDtypeStruct((Cout, M), jnp.float32),
        in_specs=[_full((K, M)), _full((Cout, K)), _full((Cout, 1))],
        out_specs=_full((Cout, M)),
    )(cols, wm, bias)
    return out.reshape(Cout, B, Ho, Wo)


def _latent_block(e2_out, prep, eps, bn_eps=1e-5):
    # e2_out: (32, B, 5, 5) bf16.  e3 (k=4, s=2) has exactly one 1x1 output
    # location, so its im2col is just the top-left 4x4 window.
    B = e2_out.shape[1]
    cols3 = jnp.transpose(e2_out[:, :, :4, :4], (1, 0, 2, 3)).reshape(B, 512)
    mean, std, act = pl.pallas_call(
        functools.partial(_latent_kernel, inv_n=1.0 / (9 * B), bn_eps=bn_eps),
        out_shape=(jax.ShapeDtypeStruct((B, 32), jnp.float32),
                   jax.ShapeDtypeStruct((B, 32), jnp.float32),
                   jax.ShapeDtypeStruct((9, B, 256), jnp.bfloat16)),
        in_specs=[_full((B, 512)), _full((512, 32)), _full((1, 32)),
                  _full((512, 32)), _full((1, 32)), _full((B, 32)),
                  _full((9, 32, 256)), _full((1, 256)), _full((1, 256))],
        out_specs=(_full((B, 32)), _full((B, 32)), _full((9, B, 256))),
    )(cols3, prep["e3_wm"], prep["e3_bm"], prep["e3_wv"], prep["e3_bv"],
      eps, prep["d1_w"], prep["d1_g"], prep["d1_beta"])
    # act: (kh*kw, B, co) -> CNHW (256, B, 3, 3) for the next layer's im2col.
    d1 = jnp.transpose(act.reshape(3, 3, B, 256), (3, 2, 0, 1))
    return mean, std, d1


# --------------------------- parameters / model --------------------------

def init_params(key):
    keys = jax.random.split(key, 8)
    n = lambda k, s: 0.05 * jax.random.normal(k, s, jnp.float32)
    p = {}
    # Encoder(im_chan=1, output_chan=32, hidden_dim=16)
    p["e1_w"], p["e1_b"] = n(keys[0], (16, 1, 4, 4)), jnp.zeros((16,), jnp.float32)
    p["e1_g"], p["e1_beta"] = jnp.ones((16,)), jnp.zeros((16,))
    p["e2_w"], p["e2_b"] = n(keys[1], (32, 16, 4, 4)), jnp.zeros((32,), jnp.float32)
    p["e2_g"], p["e2_beta"] = jnp.ones((32,)), jnp.zeros((32,))
    p["e3_w"], p["e3_b"] = n(keys[2], (64, 32, 4, 4)), jnp.zeros((64,), jnp.float32)
    # Decoder(z_dim=32, im_chan=1, hidden_dim=64)
    p["d1_w"], p["d1_b"] = n(keys[3], (32, 256, 3, 3)), jnp.zeros((256,), jnp.float32)
    p["d1_g"], p["d1_beta"] = jnp.ones((256,)), jnp.zeros((256,))
    p["d2_w"], p["d2_b"] = n(keys[4], (256, 128, 4, 4)), jnp.zeros((128,), jnp.float32)
    p["d2_g"], p["d2_beta"] = jnp.ones((128,)), jnp.zeros((128,))
    p["d3_w"], p["d3_b"] = n(keys[5], (128, 64, 3, 3)), jnp.zeros((64,), jnp.float32)
    p["d3_g"], p["d3_beta"] = jnp.ones((64,)), jnp.zeros((64,))
    p["d4_w"], p["d4_b"] = n(keys[6], (64, 1, 4, 4)), jnp.zeros((1,), jnp.float32)
    return p


def prepare_params(p):
    """One-time weight preprocessing (outside jit): layout, flips, bf16 cast.

    Conv biases inside BN blocks (e1, e2, d1, d2, d3) are dropped: batch-stat
    BatchNorm cancels a per-channel constant bias exactly.
    """
    f32, bf16 = jnp.float32, jnp.bfloat16

    def tconv_mat(w):
        # torch ConvTranspose2d weight (Cin, Cout, k, k) -> equivalent stride-1
        # correlation weight (Cout, Cin*k*k): flip spatially, swap in/out chans.
        w = jnp.transpose(jnp.flip(w, axis=(2, 3)), (1, 0, 2, 3))
        return w.reshape(w.shape[0], -1).astype(bf16)

    return {
        "e1_w": p["e1_w"].reshape(16, 16).astype(bf16),
        "e1_g": p["e1_g"].reshape(16, 1).astype(f32),
        "e1_beta": p["e1_beta"].reshape(16, 1).astype(f32),
        "e2_w": p["e2_w"].reshape(32, 256).astype(bf16),
        "e2_g": p["e2_g"].reshape(32, 1).astype(f32),
        "e2_beta": p["e2_beta"].reshape(32, 1).astype(f32),
        # e3 split into mean / logvar heads (weight (64, 32, 4, 4), bias kept)
        "e3_wm": p["e3_w"][:32].reshape(32, 512).T.astype(bf16),
        "e3_bm": p["e3_b"][:32].reshape(1, 32).astype(f32),
        "e3_wv": p["e3_w"][32:].reshape(32, 512).T.astype(bf16),
        "e3_bv": p["e3_b"][32:].reshape(1, 32).astype(f32),
        # d1: ConvTranspose on a 1x1 input == one (32, 256) matmul per tap
        "d1_w": jnp.transpose(p["d1_w"].reshape(32, 256, 9), (2, 0, 1)).astype(bf16),
        "d1_g": p["d1_g"].reshape(1, 256).astype(f32),
        "d1_beta": p["d1_beta"].reshape(1, 256).astype(f32),
        # d2..d4 realized as stride-1 correlations on dilated/padded inputs
        "d2_w": tconv_mat(p["d2_w"]),
        "d2_g": p["d2_g"].reshape(128, 1).astype(f32),
        "d2_beta": p["d2_beta"].reshape(128, 1).astype(f32),
        "d3_w": tconv_mat(p["d3_w"]),
        "d3_g": p["d3_g"].reshape(64, 1).astype(f32),
        "d3_beta": p["d3_beta"].reshape(64, 1).astype(f32),
        "d4_w": tconv_mat(p["d4_w"]),
        "d4_b": p["d4_b"].reshape(1, 1).astype(f32),
    }


def vae_forward(prep, images, eps):
    x = jnp.transpose(images.astype(jnp.bfloat16), (1, 0, 2, 3))   # NCHW -> CNHW
    # ---- Encoder ----
    h = _conv_bn_relu(x, prep["e1_w"], prep["e1_g"], prep["e1_beta"],
                      4, (2, 2), None, "VALID")                    # (16,B,13,13)
    h = _conv_bn_relu(h, prep["e2_w"], prep["e2_g"], prep["e2_beta"],
                      4, (2, 2), None, "VALID")                    # (32,B,5,5)
    # ---- fused e3 + reparameterization + d1 (+ BN + ReLU) ----
    mean, std, d = _latent_block(h, prep, eps)                     # d: (256,B,3,3)
    # ---- Decoder tail ----
    d = _conv_bn_relu(d, prep["d2_w"], prep["d2_g"], prep["d2_beta"],
                      4, (1, 1), (1, 1), [(3, 3), (3, 3)])         # (128,B,6,6)
    d = _conv_bn_relu(d, prep["d3_w"], prep["d3_g"], prep["d3_beta"],
                      3, (1, 1), (2, 2), [(2, 2), (2, 2)])         # (64,B,13,13)
    d = _conv_sigmoid(d, prep["d4_w"], prep["d4_b"],
                      4, (1, 1), (2, 2), [(3, 3), (3, 3)])         # (1,B,28,28)
    decoding = jnp.transpose(d, (1, 0, 2, 3))                      # -> NCHW f32
    return decoding, (mean, std)


if __name__ == "__main__":
    key = jax.random.PRNGKey(0)
    kp, kx, ke = jax.random.split(key, 3)
    params = init_params(kp)
    prep = prepare_params(params)          # weight preprocessing: once, outside jit
    # 28x28 single-channel images (required so the encoder flattens to 2*z_dim).
    images = jax.random.uniform(kx, (2, 1, 28, 28), jnp.float32)
    eps = jax.random.normal(ke, (2, 32), jnp.float32)

    fwd = jax.jit(vae_forward)
    decoding, (mean, std) = fwd(prep, images, eps)
    jax.block_until_ready((decoding, mean, std))

    assert decoding.shape == (2, 1, 28, 28)
    assert mean.shape == (2, 32) and std.shape == (2, 32)
    assert bool(jnp.all((decoding >= 0.0) & (decoding <= 1.0)))
    assert bool(jnp.all(std > 0.0))
    print("KERNEL_OK")
</pallas_src>

<mosaic_0001>
module attributes {stable_mosaic.version = 11 : i64} {
  func.func @_conv_bn_relu_kernel(%arg0: memref<16x338xbf16, #tpu.memory_space<vmem>>, %arg1: memref<16x16xbf16, #tpu.memory_space<vmem>>, %arg2: memref<16x1xf32, #tpu.memory_space<vmem>>, %arg3: memref<16x1xf32, #tpu.memory_space<vmem>>, %arg4: memref<16x338xbf16, #tpu.memory_space<vmem>>) attributes {dimension_semantics = [], scalar_prefetch = 0 : i64, scratch_operands = 0 : i64, tpu.core_type = #tpu.core_type<tc>} {
    %c0 = arith.constant 0 : index
    %c0_0 = arith.constant 0 : index
    %0 = vector.load %arg1[%c0, %c0_0] : memref<16x16xbf16, #tpu.memory_space<vmem>>, vector<16x16xbf16>
    %c0_1 = arith.constant 0 : index
    %c0_2 = arith.constant 0 : index
    %1 = vector.load %arg0[%c0_1, %c0_2] : memref<16x338xbf16, #tpu.memory_space<vmem>>, vector<16x338xbf16>
    %cst = arith.constant dense<0.000000e+00> : vector<16x338xf32>
    %2 = tpu.matmul %0, %1, %cst {dimension_numbers = #tpu.dot_dimension_numbers<[1], [0], [0], [1], [0, 0, 1, 1], [], []>} : vector<16x16xbf16>, vector<16x338xbf16>, vector<16x338xf32> -> vector<16x338xf32>
    %cst_3 = arith.constant dense<0.000000e+00> : vector<16xf32>
    %3 = vector.multi_reduction <add>, %2, %cst_3 [1] : vector<16x338xf32> to vector<16xf32>
    %4 = vector.shape_cast %3 : vector<16xf32> to vector<16x1xf32>
    %5 = arith.mulf %2, %2 : vector<16x338xf32>
    %cst_4 = arith.constant dense<0.000000e+00> : vector<16xf32>
    %6 = vector.multi_reduction <add>, %5, %cst_4 [1] : vector<16x338xf32> to vector<16xf32>
    %7 = vector.shape_cast %6 : vector<16xf32> to vector<16x1xf32>
    %cst_5 = arith.constant 2.958580e-03 : f32
    %8 = vector.broadcast %cst_5 : f32 to vector<16x1xf32>
    %9 = arith.mulf %4, %8 : vector<16x1xf32>
    %cst_6 = arith.constant 2.958580e-03 : f32
    %10 = vector.broadcast %cst_6 : f32 to vector<16x1xf32>
    %11 = arith.mulf %7, %10 : vector<16x1xf32>
    %12 = arith.mulf %9, %9 : vector<16x1xf32>
    %13 = arith.subf %11, %12 : vector<16x1xf32>
    %cst_7 = arith.constant 9.99999974E-6 : f32
    %14 = vector.broadcast %cst_7 : f32 to vector<16x1xf32>
    %15 = arith.addf %13, %14 : vector<16x1xf32>
    %16 = math.rsqrt %15 : vector<16x1xf32>
    %c0_8 = arith.constant 0 : index
    %c0_9 = arith.constant 0 : index
    %17 = vector.load %arg2[%c0_8, %c0_9] : memref<16x1xf32, #tpu.memory_space<vmem>>, vector<16x1xf32>
    %18 = arith.mulf %16, %17 : vector<16x1xf32>
    %c0_10 = arith.constant 0 : index
    %c0_11 = arith.constant 0 : index
    %19 = vector.load %arg3[%c0_10, %c0_11] : memref<16x1xf32, #tpu.memory_space<vmem>>, vector<16x1xf32>
    %20 = arith.mulf %9, %18 : vector<16x1xf32>
    %21 = arith.subf %19, %20 : vector<16x1xf32>
    %22 = vector.broadcast %18 : vector<16x1xf32> to vector<16x338xf32>
    %23 = arith.mulf %2, %22 : vector<16x338xf32>
    %24 = vector.broadcast %21 : vector<16x1xf32> to vector<16x338xf32>
    %25 = arith.addf %23, %24 : vector<16x338xf32>
    %cst_12 = arith.constant 0.000000e+00 : f32
    %26 = vector.broadcast %cst_12 : f32 to vector<16x338xf32>
    %27 = arith.maximumf %25, %26 : vector<16x338xf32>
    %28 = arith.truncf %27 : vector<16x338xf32> to vector<16x338xbf16>
    %c0_13 = arith.constant 0 : index
    %c0_14 = arith.constant 0 : index
    %29 = vector.load %arg4[%c0_13, %c0_14] : memref<16x338xbf16, #tpu.memory_space<vmem>>, vector<16x338xbf16>
    tpu.vector_store %arg4[%c0_13, %c0_14], %28 {strides = array<i32>} : memref<16x338xbf16, #tpu.memory_space<vmem>>, vector<16x338xbf16>,
    return
  }
}

module attributes {stable_mosaic.version = 11 : i64} {
  func.func @_conv_bn_relu_kernel(%arg0: memref<256x50xbf16, #tpu.memory_space<vmem>>, %arg1: memref<32x256xbf16, #tpu.memory_space<vmem>>, %arg2: memref<32x1xf32, #tpu.memory_space<vmem>>, %arg3: memref<32x1xf32, #tpu.memory_space<vmem>>, %arg4: memref<32x50xbf16, #tpu.memory_space<vmem>>) attributes {dimension_semantics = [], scalar_prefetch = 0 : i64, scratch_operands = 0 : i64, tpu.core_type = #tpu.core_type<tc>} {
    %c0 = arith.constant 0 : index
    %c0_0 = arith.constant 0 : index
    %0 = vector.load %arg1[%c0, %c0_0] : memref<32x256xbf16, #tpu.memory_space<vmem>>, vector<32x256xbf16>
    %c0_1 = arith.constant 0 : index
    %c0_2 = arith.constant 0 : index
    %1 = vector.load %arg0[%c0_1, %c0_2] : memref<256x50xbf16, #tpu.memory_space<vmem>>, vector<256x50xbf16>
    %cst = arith.constant dense<0.000000e+00> : vector<32x50xf32>
    %2 = tpu.matmul %0, %1, %cst {dimension_numbers = #tpu.dot_dimension_numbers<[1], [0], [0], [1], [0, 0, 1, 1], [], []>} : vector<32x256xbf16>, vector<256x50xbf16>, vector<32x50xf32> -> vector<32x50xf32>
    %cst_3 = arith.constant dense<0.000000e+00> : vector<32xf32>
    %3 = vector.multi_reduction <add>, %2, %cst_3 [1] : vector<32x50xf32> to vector<32xf32>
    %4 = vector.shape_cast %3 : vector<32xf32> to vector<32x1xf32>
    %5 = arith.mulf %2, %2 : vector<32x50xf32>
    %cst_4 = arith.constant dense<0.000000e+00> : vector<32xf32>
    %6 = vector.multi_reduction <add>, %5, %cst_4 [1] : vector<32x50xf32> to vector<32xf32>
    %7 = vector.shape_cast %6 : vector<32xf32> to vector<32x1xf32>
    %cst_5 = arith.constant 2.000000e-02 : f32
    %8 = vector.broadcast %cst_5 : f32 to vector<32x1xf32>
    %9 = arith.mulf %4, %8 : vector<32x1xf32>
    %cst_6 = arith.constant 2.000000e-02 : f32
    %10 = vector.broadcast %cst_6 : f32 to vector<32x1xf32>
    %11 = arith.mulf %7, %10 : vector<32x1xf32>
    %12 = arith.mulf %9, %9 : vector<32x1xf32>
    %13 = arith.subf %11, %12 : vector<32x1xf32>
    %cst_7 = arith.constant 9.99999974E-6 : f32
    %14 = vector.broadcast %cst_7 : f32 to vector<32x1xf32>
    %15 = arith.addf %13, %14 : vector<32x1xf32>
    %16 = math.rsqrt %15 : vector<32x1xf32>
    %c0_8 = arith.constant 0 : index
    %c0_9 = arith.constant 0 : index
    %17 = vector.load %arg2[%c0_8, %c0_9] : memref<32x1xf32, #tpu.memory_space<vmem>>, vector<32x1xf32>
    %18 = arith.mulf %16, %17 : vector<32x1xf32>
    %c0_10 = arith.constant 0 : index
    %c0_11 = arith.constant 0 : index
    %19 = vector.load %arg3[%c0_10, %c0_11] : memref<32x1xf32, #tpu.memory_space<vmem>>, vector<32x1xf32>
    %20 = arith.mulf %9, %18 : vector<32x1xf32>
    %21 = arith.subf %19, %20 : vector<32x1xf32>
    %22 = vector.broadcast %18 : vector<32x1xf32> to vector<32x50xf32>
    %23 = arith.mulf %2, %22 : vector<32x50xf32>
    %24 = vector.broadcast %21 : vector<32x1xf32> to vector<32x50xf32>
    %25 = arith.addf %23, %24 : vector<32x50xf32>
    %cst_12 = arith.constant 0.000000e+00 : f32
    %26 = vector.broadcast %cst_12 : f32 to vector<32x50xf32>
    %27 = arith.maximumf %25, %26 : vector<32x50xf32>
    %28 = arith.truncf %27 : vector<32x50xf32> to vector<32x50xbf16>
    %c0_13 = arith.constant 0 : index
    %c0_14 = arith.constant 0 : index
    %29 = vector.load %arg4[%c0_13, %c0_14] : memref<32x50xbf16, #tpu.memory_space<vmem>>, vector<32x50xbf16>
    tpu.vector_store %arg4[%c0_13, %c0_14], %28 {strides = array<i32>} : memref<32x50xbf16, #tpu.memory_space<vmem>>, vector<32x50xbf16>,
    return
  }
}

module attributes {stable_mosaic.version = 11 : i64} {
  func.func @_latent_kernel(%arg0: memref<2x512xbf16, #tpu.memory_space<vmem>>, %arg1: memref<512x32xbf16, #tpu.memory_space<vmem>>, %arg2: memref<1x32xf32, #tpu.memory_space<vmem>>, %arg3: memref<512x32xbf16, #tpu.memory_space<vmem>>, %arg4: memref<1x32xf32, #tpu.memory_space<vmem>>, %arg5: memref<2x32xf32, #tpu.memory_space<vmem>>, %arg6: memref<9x32x256xbf16, #tpu.memory_space<vmem>>, %arg7: memref<1x256xf32, #tpu.memory_space<vmem>>, %arg8: memref<1x256xf32, #tpu.memory_space<vmem>>, %arg9: memref<2x32xf32, #tpu.memory_space<vmem>>, %arg10: memref<2x32xf32, #tpu.memory_space<vmem>>, %arg11: memref<9x2x256xbf16, #tpu.memory_space<vmem>>) attributes {dimension_semantics = [], scalar_prefetch = 0 : i64, scratch_operands = 0 : i64, tpu.core_type = #tpu.core_type<tc>} {
    %c0 = arith.constant 0 : index
    %c0_0 = arith.constant 0 : index
    %0 = vector.load %arg0[%c0, %c0_0] : memref<2x512xbf16, #tpu.memory_space<vmem>>, vector<2x512xbf16>
    %c0_1 = arith.constant 0 : index
    %c0_2 = arith.constant 0 : index
    %1 = vector.load %arg1[%c0_1, %c0_2] : memref<512x32xbf16, #tpu.memory_space<vmem>>, vector<512x32xbf16>
    %cst = arith.constant dense<0.000000e+00> : vector<2x32xf32>
    %2 = tpu.matmul %0, %1, %cst {dimension_numbers = #tpu.dot_dimension_numbers<[1], [0], [0], [1], [0, 0, 1, 1], [], []>} : vector<2x512xbf16>, vector<512x32xbf16>, vector<2x32xf32> -> vector<2x32xf32>
    %c0_3 = arith.constant 0 : index
    %c0_4 = arith.constant 0 : index
    %3 = vector.load %arg2[%c0_3, %c0_4] : memref<1x32xf32, #tpu.memory_space<vmem>>, vector<1x32xf32>
    %4 = vector.broadcast %3 : vector<1x32xf32> to vector<2x32xf32>
    %5 = arith.addf %2, %4 : vector<2x32xf32>
    %c0_5 = arith.constant 0 : index
    %c0_6 = arith.constant 0 : index
    %6 = vector.load %arg3[%c0_5, %c0_6] : memref<512x32xbf16, #tpu.memory_space<vmem>>, vector<512x32xbf16>
    %cst_7 = arith.constant dense<0.000000e+00> : vector<2x32xf32>
    %7 = tpu.matmul %0, %6, %cst_7 {dimension_numbers = #tpu.dot_dimension_numbers<[1], [0], [0], [1], [0, 0, 1, 1], [], []>} : vector<2x512xbf16>, vector<512x32xbf16>, vector<2x32xf32> -> vector<2x32xf32>
    %c0_8 = arith.constant 0 : index
    %c0_9 = arith.constant 0 : index
    %8 = vector.load %arg4[%c0_8, %c0_9] : memref<1x32xf32, #tpu.memory_space<vmem>>, vector<1x32xf32>
    %9 = vector.broadcast %8 : vector<1x32xf32> to vector<2x32xf32>
    %10 = arith.addf %7, %9 : vector<2x32xf32>
    %cst_10 = arith.constant 5.000000e-01 : f32
    %11 = vector.broadcast %cst_10 : f32 to vector<2x32xf32>
    %12 = arith.mulf %11, %10 : vector<2x32xf32>
    %13 = math.exp %12 : vector<2x32xf32>
    %c0_11 = arith.constant 0 : index
    %c0_12 = arith.constant 0 : index
    %14 = vector.load %arg9[%c0_11, %c0_12] : memref<2x32xf32, #tpu.memory_space<vmem>>, vector<2x32xf32>
    tpu.vector_store %arg9[%c0_11, %c0_12], %5 {strides = array<i32>} : memref<2x32xf32, #tpu.memory_space<vmem>>, vector<2x32xf32>,
    %c0_13 = arith.constant 0 : index
    %c0_14 = arith.constant 0 : index
    %15 = vector.load %arg10[%c0_13, %c0_14] : memref<2x32xf32, #tpu.memory_space<vmem>>, vector<2x32xf32>
    tpu.vector_store %arg10[%c0_13, %c0_14], %13 {strides = array<i32>} : memref<2x32xf32, #tpu.memory_space<vmem>>, vector<2x32xf32>,
    %c0_15 = arith.constant 0 : index
    %c0_16 = arith.constant 0 : index
    %16 = vector.load %arg5[%c0_15, %c0_16] : memref<2x32xf32, #tpu.memory_space<vmem>>, vector<2x32xf32>
    %17 = arith.mulf %13, %16 : vector<2x32xf32>
    %18 = arith.addf %5, %17 : vector<2x32xf32>
    %19 = arith.truncf %18 : vector<2x32xf32> to vector<2x32xbf16>
    %c0_17 = arith.constant 0 : index
    %c0_18 = arith.constant 0 : index
    %c0_19 = arith.constant 0 : index
    %20 = vector.load %arg6[%c0_17, %c0_18, %c0_19] : memref<9x32x256xbf16, #tpu.memory_space<vmem>>, vector<1x32x256xbf16>
    %21 = vector.shape_cast %20 : vector<1x32x256xbf16> to vector<32x256xbf16>
    %cst_20 = arith.constant dense<0.000000e+00> : vector<2x256xf32>
    %22 = tpu.matmul %19, %21, %cst_20 {dimension_numbers = #tpu.dot_dimension_numbers<[1], [0], [0], [1], [0, 0, 1, 1], [], []>} : vector<2x32xbf16>, vector<32x256xbf16>, vector<2x256xf32> -> vector<2x256xf32>
    %c1 = arith.constant 1 : index
    %c0_21 = arith.constant 0 : index
    %c0_22 = arith.constant 0 : index
    %23 = vector.load %arg6[%c1, %c0_21, %c0_22] : memref<9x32x256xbf16, #tpu.memory_space<vmem>>, vector<1x32x256xbf16>
    %24 = vector.shape_cast %23 : vector<1x32x256xbf16> to vector<32x256xbf16>
    %cst_23 = arith.constant dense<0.000000e+00> : vector<2x256xf32>
    %25 = tpu.matmul %19, %24, %cst_23 {dimension_numbers = #tpu.dot_dimension_numbers<[1], [0], [0], [1], [0, 0, 1, 1], [], []>} : vector<2x32xbf16>, vector<32x256xbf16>, vector<2x256xf32> -> vector<2x256xf32>
    %c2 = arith.constant 2 : index
    %c0_24 = arith.constant 0 : index
    %c0_25 = arith.constant 0 : index
    %26 = vector.load %arg6[%c2, %c0_24, %c0_25] : memref<9x32x256xbf16, #tpu.memory_space<vmem>>, vector<1x32x256xbf16>
    %27 = vector.shape_cast %26 : vector<1x32x256xbf16> to vector<32x256xbf16>
    %cst_26 = arith.constant dense<0.000000e+00> : vector<2x256xf32>
    %28 = tpu.matmul %19, %27, %cst_26 {dimension_numbers = #tpu.dot_dimension_numbers<[1], [0], [0], [1], [0, 0, 1, 1], [], []>} : vector<2x32xbf16>, vector<32x256xbf16>, vector<2x256xf32> -> vector<2x256xf32>
    %c3 = arith.constant 3 : index
    %c0_27 = arith.constant 0 : index
    %c0_28 = arith.constant 0 : index
    %29 = vector.load %arg6[%c3, %c0_27, %c0_28] : memref<9x32x256xbf16, #tpu.memory_space<vmem>>, vector<1x32x256xbf16>
    %30 = vector.shape_cast %29 : vector<1x32x256xbf16> to vector<32x256xbf16>
    %cst_29 = arith.constant dense<0.000000e+00> : vector<2x256xf32>
    %31 = tpu.matmul %19, %30, %cst_29 {dimension_numbers = #tpu.dot_dimension_numbers<[1], [0], [0], [1], [0, 0, 1, 1], [], []>} : vector<2x32xbf16>, vector<32x256xbf16>, vector<2x256xf32> -> vector<2x256xf32>
    %c4 = arith.constant 4 : index
    %c0_30 = arith.constant 0 : index
    %c0_31 = arith.constant 0 : index
    %32 = vector.load %arg6[%c4, %c0_30, %c0_31] : memref<9x32x256xbf16, #tpu.memory_space<vmem>>, vector<1x32x256xbf16>
    %33 = vector.shape_cast %32 : vector<1x32x256xbf16> to vector<32x256xbf16>
    %cst_32 = arith.constant dense<0.000000e+00> : vector<2x256xf32>
    %34 = tpu.matmul %19, %33, %cst_32 {dimension_numbers = #tpu.dot_dimension_numbers<[1], [0], [0], [1], [0, 0, 1, 1], [], []>} : vector<2x32xbf16>, vector<32x256xbf16>, vector<2x256xf32> -> vector<2x256xf32>
    %c5 = arith.constant 5 : index
    %c0_33 = arith.constant 0 : index
    %c0_34 = arith.constant 0 : index
    %35 = vector.load %arg6[%c5, %c0_33, %c0_34] : memref<9x32x256xbf16, #tpu.memory_space<vmem>>, vector<1x32x256xbf16>
    %36 = vector.shape_cast %35 : vector<1x32x256xbf16> to vector<32x256xbf16>
    %cst_35 = arith.constant dense<0.000000e+00> : vector<2x256xf32>
    %37 = tpu.matmul %19, %36, %cst_35 {dimension_numbers = #tpu.dot_dimension_numbers<[1], [0], [0], [1], [0, 0, 1, 1], [], []>} : vector<2x32xbf16>, vector<32x256xbf16>, vector<2x256xf32> -> vector<2x256xf32>
    %c6 = arith.constant 6 : index
    %c0_36 = arith.constant 0 : index
    %c0_37 = arith.constant 0 : index
    %38 = vector.load %arg6[%c6, %c0_36, %c0_37] : memref<9x32x256xbf16, #tpu.memory_space<vmem>>, vector<1x32x256xbf16>
    %39 = vector.shape_cast %38 : vector<1x32x256xbf16> to vector<32x256xbf16>
    %cst_38 = arith.constant dense<0.000000e+00> : vector<2x256xf32>
    %40 = tpu.matmul %19, %39, %cst_38 {dimension_numbers = #tpu.dot_dimension_numbers<[1], [0], [0], [1], [0, 0, 1, 1], [], []>} : vector<2x32xbf16>, vector<32x256xbf16>, vector<2x256xf32> -> vector<2x256xf32>
    %c7 = arith.constant 7 : index
    %c0_39 = arith.constant 0 : index
    %c0_40 = arith.constant 0 : index
    %41 = vector.load %arg6[%c7, %c0_39, %c0_40] : memref<9x32x256xbf16, #tpu.memory_space<vmem>>, vector<1x32x256xbf16>
    %42 = vector.shape_cast %41 : vector<1x32x256xbf16> to vector<32x256xbf16>
    %cst_41 = arith.constant dense<0.000000e+00> : vector<2x256xf32>
    %43 = tpu.matmul %19, %42, %cst_41 {dimension_numbers = #tpu.dot_dimension_numbers<[1], [0], [0], [1], [0, 0, 1, 1], [], []>} : vector<2x32xbf16>, vector<32x256xbf16>, vector<2x256xf32> -> vector<2x256xf32>
    %c8 = arith.constant 8 : index
    %c0_42 = arith.constant 0 : index
    %c0_43 = arith.constant 0 : index
    %44 = vector.load %arg6[%c8, %c0_42, %c0_43] : memref<9x32x256xbf16, #tpu.memory_space<vmem>>, vector<1x32x256xbf16>
    %45 = vector.shape_cast %44 : vector<1x32x256xbf16> to vector<32x256xbf16>
    %cst_44 = arith.constant dense<0.000000e+00> : vector<2x256xf32>
    %46 = tpu.matmul %19, %45, %cst_44 {dimension_numbers = #tpu.dot_dimension_numbers<[1], [0], [0], [1], [0, 0, 1, 1], [], []>} : vector<2x32xbf16>, vector<32x256xbf16>, vector<2x256xf32> -> vector<2x256xf32>
    %cst_45 = arith.constant dense<0.000000e+00> : vector<256xf32>
    %47 = vector.multi_reduction <add>, %22, %cst_45 [0] : vector<2x256xf32> to vector<256xf32>
    %48 = vector.shape_cast %47 : vector<256xf32> to vector<1x256xf32>
    %cst_46 = arith.constant 0.000000e+00 : f32
    %49 = vector.broadcast %cst_46 : f32 to vector<1x256xf32>
    %50 = arith.addf %49, %48 : vector<1x256xf32>
    %cst_47 = arith.constant dense<0.000000e+00> : vector<256xf32>
    %51 = vector.multi_reduction <add>, %25, %cst_47 [0] : vector<2x256xf32> to vector<256xf32>
    %52 = vector.shape_cast %51 : vector<256xf32> to vector<1x256xf32>
    %53 = arith.addf %50, %52 : vector<1x256xf32>
    %cst_48 = arith.constant dense<0.000000e+00> : vector<256xf32>
    %54 = vector.multi_reduction <add>, %28, %cst_48 [0] : vector<2x256xf32> to vector<256xf32>
    %55 = vector.shape_cast %54 : vector<256xf32> to vector<1x256xf32>
    %56 = arith.addf %53, %55 : vector<1x256xf32>
    %cst_49 = arith.constant dense<0.000000e+00> : vector<256xf32>
    %57 = vector.multi_reduction <add>, %31, %cst_49 [0] : vector<2x256xf32> to vector<256xf32>
    %58 = vector.shape_cast %57 : vector<256xf32> to vector<1x256xf32>
    %59 = arith.addf %56, %58 : vector<1x256xf32>
    %cst_50 = arith.constant dense<0.000000e+00> : vector<256xf32>
    %60 = vector.multi_reduction <add>, %34, %cst_50 [0] : vector<2x256xf32> to vector<256xf32>
    %61 = vector.shape_cast %60 : vector<256xf32> to vector<1x256xf32>
    %62 = arith.addf %59, %61 : vector<1x256xf32>
    %cst_51 = arith.constant dense<0.000000e+00> : vector<256xf32>
    %63 = vector.multi_reduction <add>, %37, %cst_51 [0] : vector<2x256xf32> to vector<256xf32>
    %64 = vector.shape_cast %63 : vector<256xf32> to vector<1x256xf32>
    %65 = arith.addf %62, %64 : vector<1x256xf32>
    %cst_52 = arith.constant dense<0.000000e+00> : vector<256xf32>
    %66 = vector.multi_reduction <add>, %40, %cst_52 [0] : vector<2x256xf32> to vector<256xf32>
    %67 = vector.shape_cast %66 : vector<256xf32> to vector<1x256xf32>
    %68 = arith.addf %65, %67 : vector<1x256xf32>
    %cst_53 = arith.constant dense<0.000000e+00> : vector<256xf32>
    %69 = vector.multi_reduction <add>, %43, %cst_53 [0] : vector<2x256xf32> to vector<256xf32>
    %70 = vector.shape_cast %69 : vector<256xf32> to vector<1x256xf32>
    %71 = arith.addf %68, %70 : vector<1x256xf32>
    %cst_54 = arith.constant dense<0.000000e+00> : vector<256xf32>
    %72 = vector.multi_reduction <add>, %46, %cst_54 [0] : vector<2x256xf32> to vector<256xf32>
    %73 = vector.shape_cast %72 : vector<256xf32> to vector<1x256xf32>
    %74 = arith.addf %71, %73 : vector<1x256xf32>
    %75 = arith.mulf %22, %22 : vector<2x256xf32>
    %cst_55 = arith.constant dense<0.000000e+00> : vector<256xf32>
    %76 = vector.multi_reduction <add>, %75, %cst_55 [0] : vector<2x256xf32> to vector<256xf32>
    %77 = vector.shape_cast %76 : vector<256xf32> to vector<1x256xf32>
    %cst_56 = arith.constant 0.000000e+00 : f32
    %78 = vector.broadcast %cst_56 : f32 to vector<1x256xf32>
    %79 = arith.addf %78, %77 : vector<1x256xf32>
    %80 = arith.mulf %25, %25 : vector<2x256xf32>
    %cst_57 = arith.constant dense<0.000000e+00> : vector<256xf32>
    %81 = vector.multi_reduction <add>, %80, %cst_57 [0] : vector<2x256xf32> to vector<256xf32>
    %82 = vector.shape_cast %81 : vector<256xf32> to vector<1x256xf32>
    %83 = arith.addf %79, %82 : vector<1x256xf32>
    %84 = arith.mulf %28, %28 : vector<2x256xf32>
    %cst_58 = arith.constant dense<0.000000e+00> : vector<256xf32>
    %85 = vector.multi_reduction <add>, %84, %cst_58 [0] : vector<2x256xf32> to vector<256xf32>
    %86 = vector.shape_cast %85 : vector<256xf32> to vector<1x256xf32>
    %87 = arith.addf %83, %86 : vector<1x256xf32>
    %88 = arith.mulf %31, %31 : vector<2x256xf32>
    %cst_59 = arith.constant dense<0.000000e+00> : vector<256xf32>
    %89 = vector.multi_reduction <add>, %88, %cst_59 [0] : vector<2x256xf32> to vector<256xf32>
    %90 = vector.shape_cast %89 : vector<256xf32> to vector<1x256xf32>
    %91 = arith.addf %87, %90 : vector<1x256xf32>
    %92 = arith.mulf %34, %34 : vector<2x256xf32>
    %cst_60 = arith.constant dense<0.000000e+00> : vector<256xf32>
    %93 = vector.multi_reduction <add>, %92, %cst_60 [0] : vector<2x256xf32> to vector<256xf32>
    %94 = vector.shape_cast %93 : vector<256xf32> to vector<1x256xf32>
    %95 = arith.addf %91, %94 : vector<1x256xf32>
    %96 = arith.mulf %37, %37 : vector<2x256xf32>
    %cst_61 = arith.constant dense<0.000000e+00> : vector<256xf32>
    %97 = vector.multi_reduction <add>, %96, %cst_61 [0] : vector<2x256xf32> to vector<256xf32>
    %98 = vector.shape_cast %97 : vector<256xf32> to vector<1x256xf32>
    %99 = arith.addf %95, %98 : vector<1x256xf32>
    %100 = arith.mulf %40, %40 : vector<2x256xf32>
    %cst_62 = arith.constant dense<0.000000e+00> : vector<256xf32>
    %101 = vector.multi_reduction <add>, %100, %cst_62 [0] : vector<2x256xf32> to vector<256xf32>
    %102 = vector.shape_cast %101 : vector<256xf32> to vector<1x256xf32>
    %103 = arith.addf %99, %102 : vector<1x256xf32>
    %104 = arith.mulf %43, %43 : vector<2x256xf32>
    %cst_63 = arith.constant dense<0.000000e+00> : vector<256xf32>
    %105 = vector.multi_reduction <add>, %104, %cst_63 [0] : vector<2x256xf32> to vector<256xf32>
    %106 = vector.shape_cast %105 : vector<256xf32> to vector<1x256xf32>
    %107 = arith.addf %103, %106 : vector<1x256xf32>
    %108 = arith.mulf %46, %46 : vector<2x256xf32>
    %cst_64 = arith.constant dense<0.000000e+00> : vector<256xf32>
    %109 = vector.multi_reduction <add>, %108, %cst_64 [0] : vector<2x256xf32> to vector<256xf32>
    %110 = vector.shape_cast %109 : vector<256xf32> to vector<1x256xf32>
    %111 = arith.addf %107, %110 : vector<1x256xf32>
    %cst_65 = arith.constant 0.055555556 : f32
    %112 = vector.broadcast %cst_65 : f32 to vector<1x256xf32>
    %113 = arith.mulf %74, %112 : vector<1x256xf32>
    %cst_66 = arith.constant 0.055555556 : f32
    %114 = vector.broadcast %cst_66 : f32 to vector<1x256xf32>
    %115 = arith.mulf %111, %114 : vector<1x256xf32>
    %116 = arith.mulf %113, %113 : vector<1x256xf32>
    %117 = arith.subf %115, %116 : vector<1x256xf32>
    %cst_67 = arith.constant 9.99999974E-6 : f32
    %118 = vector.broadcast %cst_67 : f32 to vector<1x256xf32>
    %119 = arith.addf %117, %118 : vector<1x256xf32>
    %120 = math.rsqrt %119 : vector<1x256xf32>
    %c0_68 = arith.constant 0 : index
    %c0_69 = arith.constant 0 : index
    %121 = vector.load %arg7[%c0_68, %c0_69] : memref<1x256xf32, #tpu.memory_space<vmem>>, vector<1x256xf32>
    %122 = arith.mulf %120, %121 : vector<1x256xf32>
    %c0_70 = arith.constant 0 : index
    %c0_71 = arith.constant 0 : index
    %123 = vector.load %arg8[%c0_70, %c0_71] : memref<1x256xf32, #tpu.memory_space<vmem>>, vector<1x256xf32>
    %124 = arith.mulf %113, %122 : vector<1x256xf32>
    %125 = arith.subf %123, %124 : vector<1x256xf32>
    %126 = vector.broadcast %122 : vector<1x256xf32> to vector<2x256xf32>
    %127 = arith.mulf %22, %126 : vector<2x256xf32>
    %128 = vector.broadcast %125 : vector<1x256xf32> to vector<2x256xf32>
    %129 = arith.addf %127, %128 : vector<2x256xf32>
    %cst_72 = arith.constant 0.000000e+00 : f32
    %130 = vector.broadcast %cst_72 : f32 to vector<2x256xf32>
    %131 = arith.maximumf %129, %130 : vector<2x256xf32>
    %132 = arith.truncf %131 : vector<2x256xf32> to vector<2x256xbf16>
    %c0_73 = arith.constant 0 : index
    %c0_74 = arith.constant 0 : index
    %c0_75 = arith.constant 0 : index
    %133 = vector.load %arg11[%c0_73, %c0_74, %c0_75] : memref<9x2x256xbf16, #tpu.memory_space<vmem>>, vector<1x2x256xbf16>
    %134 = vector.shape_cast %133 : vector<1x2x256xbf16> to vector<2x256xbf16>
    %135 = vector.shape_cast %132 : vector<2x256xbf16> to vector<1x2x256xbf16>
    tpu.vector_store %arg11[%c0_73, %c0_74, %c0_75], %135 {strides = array<i32>} : memref<9x2x256xbf16, #tpu.memory_space<vmem>>, vector<1x2x256xbf16>,
    %136 = vector.broadcast %122 : vector<1x256xf32> to vector<2x256xf32>
    %137 = arith.mulf %25, %136 : vector<2x256xf32>
    %138 = vector.broadcast %125 : vector<1x256xf32> to vector<2x256xf32>
    %139 = arith.addf %137, %138 : vector<2x256xf32>
    %cst_76 = arith.constant 0.000000e+00 : f32
    %140 = vector.broadcast %cst_76 : f32 to vector<2x256xf32>
    %141 = arith.maximumf %139, %140 : vector<2x256xf32>
    %142 = arith.truncf %141 : vector<2x256xf32> to vector<2x256xbf16>
    %c1_77 = arith.constant 1 : index
    %c0_78 = arith.constant 0 : index
    %c0_79 = arith.constant 0 : index
    %143 = vector.load %arg11[%c1_77, %c0_78, %c0_79] : memref<9x2x256xbf16, #tpu.memory_space<vmem>>, vector<1x2x256xbf16>
    %144 = vector.shape_cast %143 : vector<1x2x256xbf16> to vector<2x256xbf16>
    %145 = vector.shape_cast %142 : vector<2x256xbf16> to vector<1x2x256xbf16>
    tpu.vector_store %arg11[%c1_77, %c0_78, %c0_79], %145 {strides = array<i32>} : memref<9x2x256xbf16, #tpu.memory_space<vmem>>, vector<1x2x256xbf16>,
    %146 = vector.broadcast %122 : vector<1x256xf32> to vector<2x256xf32>
    %147 = arith.mulf %28, %146 : vector<2x256xf32>
    %148 = vector.broadcast %125 : vector<1x256xf32> to vector<2x256xf32>
    %149 = arith.addf %147, %148 : vector<2x256xf32>
    %cst_80 = arith.constant 0.000000e+00 : f32
    %150 = vector.broadcast %cst_80 : f32 to vector<2x256xf32>
    %151 = arith.maximumf %149, %150 : vector<2x256xf32>
    %152 = arith.truncf %151 : vector<2x256xf32> to vector<2x256xbf16>
    %c2_81 = arith.constant 2 : index
    %c0_82 = arith.constant 0 : index
    %c0_83 = arith.constant 0 : index
    %153 = vector.load %arg11[%c2_81, %c0_82, %c0_83] : memref<9x2x256xbf16, #tpu.memory_space<vmem>>, vector<1x2x256xbf16>
    %154 = vector.shape_cast %153 : vector<1x2x256xbf16> to vector<2x256xbf16>
    %155 = vector.shape_cast %152 : vector<2x256xbf16> to vector<1x2x256xbf16>
    tpu.vector_store %arg11[%c2_81, %c0_82, %c0_83], %155 {strides = array<i32>} : memref<9x2x256xbf16, #tpu.memory_space<vmem>>, vector<1x2x256xbf16>,
    %156 = vector.broadcast %122 : vector<1x256xf32> to vector<2x256xf32>
    %157 = arith.mulf %31, %156 : vector<2x256xf32>
    %158 = vector.broadcast %125 : vector<1x256xf32> to vector<2x256xf32>
    %159 = arith.addf %157, %158 : vector<2x256xf32>
    %cst_84 = arith.constant 0.000000e+00 : f32
    %160 = vector.broadcast %cst_84 : f32 to vector<2x256xf32>
    %161 = arith.maximumf %159, %160 : vector<2x256xf32>
    %162 = arith.truncf %161 : vector<2x256xf32> to vector<2x256xbf16>
    %c3_85 = arith.constant 3 : index
    %c0_86 = arith.constant 0 : index
    %c0_87 = arith.constant 0 : index
    %163 = vector.load %arg11[%c3_85, %c0_86, %c0_87] : memref<9x2x256xbf16, #tpu.memory_space<vmem>>, vector<1x2x256xbf16>
    %164 = vector.shape_cast %163 : vector<1x2x256xbf16> to vector<2x256xbf16>
    %165 = vector.shape_cast %162 : vector<2x256xbf16> to vector<1x2x256xbf16>
    tpu.vector_store %arg11[%c3_85, %c0_86, %c0_87], %165 {strides = array<i32>} : memref<9x2x256xbf16, #tpu.memory_space<vmem>>, vector<1x2x256xbf16>,
    %166 = vector.broadcast %122 : vector<1x256xf32> to vector<2x256xf32>
    %167 = arith.mulf %34, %166 : vector<2x256xf32>
    %168 = vector.broadcast %125 : vector<1x256xf32> to vector<2x256xf32>
    %169 = arith.addf %167, %168 : vector<2x256xf32>
    %cst_88 = arith.constant 0.000000e+00 : f32
    %170 = vector.broadcast %cst_88 : f32 to vector<2x256xf32>
    %171 = arith.maximumf %169, %170 : vector<2x256xf32>
    %172 = arith.truncf %171 : vector<2x256xf32> to vector<2x256xbf16>
    %c4_89 = arith.constant 4 : index
    %c0_90 = arith.constant 0 : index
    %c0_91 = arith.constant 0 : index
    %173 = vector.load %arg11[%c4_89, %c0_90, %c0_91] : memref<9x2x256xbf16, #tpu.memory_space<vmem>>, vector<1x2x256xbf16>
    %174 = vector.shape_cast %173 : vector<1x2x256xbf16> to vector<2x256xbf16>
    %175 = vector.shape_cast %172 : vector<2x256xbf16> to vector<1x2x256xbf16>
    tpu.vector_store %arg11[%c4_89, %c0_90, %c0_91], %175 {strides = array<i32>} : memref<9x2x256xbf16, #tpu.memory_space<vmem>>, vector<1x2x256xbf16>,
    %176 = vector.broadcast %122 : vector<1x256xf32> to vector<2x256xf32>
    %177 = arith.mulf %37, %176 : vector<2x256xf32>
    %178 = vector.broadcast %125 : vector<1x256xf32> to vector<2x256xf32>
    %179 = arith.addf %177, %178 : vector<2x256xf32>
    %cst_92 = arith.constant 0.000000e+00 : f32
    %180 = vector.broadcast %cst_92 : f32 to vector<2x256xf32>
    %181 = arith.maximumf %179, %180 : vector<2x256xf32>
    %182 = arith.truncf %181 : vector<2x256xf32> to vector<2x256xbf16>
    %c5_93 = arith.constant 5 : index
    %c0_94 = arith.constant 0 : index
    %c0_95 = arith.constant 0 : index
    %183 = vector.load %arg11[%c5_93, %c0_94, %c0_95] : memref<9x2x256xbf16, #tpu.memory_space<vmem>>, vector<1x2x256xbf16>
    %184 = vector.shape_cast %183 : vector<1x2x256xbf16> to vector<2x256xbf16>
    %185 = vector.shape_cast %182 : vector<2x256xbf16> to vector<1x2x256xbf16>
    tpu.vector_store %arg11[%c5_93, %c0_94, %c0_95], %185 {strides = array<i32>} : memref<9x2x256xbf16, #tpu.memory_space<vmem>>, vector<1x2x256xbf16>,
    %186 = vector.broadcast %122 : vector<1x256xf32> to vector<2x256xf32>
    %187 = arith.mulf %40, %186 : vector<2x256xf32>
    %188 = vector.broadcast %125 : vector<1x256xf32> to vector<2x256xf32>
    %189 = arith.addf %187, %188 : vector<2x256xf32>
    %cst_96 = arith.constant 0.000000e+00 : f32
    %190 = vector.broadcast %cst_96 : f32 to vector<2x256xf32>
    %191 = arith.maximumf %189, %190 : vector<2x256xf32>
    %192 = arith.truncf %191 : vector<2x256xf32> to vector<2x256xbf16>
    %c6_97 = arith.constant 6 : index
    %c0_98 = arith.constant 0 : index
    %c0_99 = arith.constant 0 : index
    %193 = vector.load %arg11[%c6_97, %c0_98, %c0_99] : memref<9x2x256xbf16, #tpu.memory_space<vmem>>, vector<1x2x256xbf16>
    %194 = vector.shape_cast %193 : vector<1x2x256xbf16> to vector<2x256xbf16>
    %195 = vector.shape_cast %192 : vector<2x256xbf16> to vector<1x2x256xbf16>
    tpu.vector_store %arg11[%c6_97, %c0_98, %c0_99], %195 {strides = array<i32>} : memref<9x2x256xbf16, #tpu.memory_space<vmem>>, vector<1x2x256xbf16>,
    %196 = vector.broadcast %122 : vector<1x256xf32> to vector<2x256xf32>
    %197 = arith.mulf %43, %196 : vector<2x256xf32>
    %198 = vector.broadcast %125 : vector<1x256xf32> to vector<2x256xf32>
    %199 = arith.addf %197, %198 : vector<2x256xf32>
    %cst_100 = arith.constant 0.000000e+00 : f32
    %200 = vector.broadcast %cst_100 : f32 to vector<2x256xf32>
    %201 = arith.maximumf %199, %200 : vector<2x256xf32>
    %202 = arith.truncf %201 : vector<2x256xf32> to vector<2x256xbf16>
    %c7_101 = arith.constant 7 : index
    %c0_102 = arith.constant 0 : index
    %c0_103 = arith.constant 0 : index
    %203 = vector.load %arg11[%c7_101, %c0_102, %c0_103] : memref<9x2x256xbf16, #tpu.memory_space<vmem>>, vector<1x2x256xbf16>
    %204 = vector.shape_cast %203 : vector<1x2x256xbf16> to vector<2x256xbf16>
    %205 = vector.shape_cast %202 : vector<2x256xbf16> to vector<1x2x256xbf16>
    tpu.vector_store %arg11[%c7_101, %c0_102, %c0_103], %205 {strides = array<i32>} : memref<9x2x256xbf16, #tpu.memory_space<vmem>>, vector<1x2x256xbf16>,
    %206 = vector.broadcast %122 : vector<1x256xf32> to vector<2x256xf32>
    %207 = arith.mulf %46, %206 : vector<2x256xf32>
    %208 = vector.broadcast %125 : vector<1x256xf32> to vector<2x256xf32>
    %209 = arith.addf %207, %208 : vector<2x256xf32>
    %cst_104 = arith.constant 0.000000e+00 : f32
    %210 = vector.broadcast %cst_104 : f32 to vector<2x256xf32>
    %211 = arith.maximumf %209, %210 : vector<2x256xf32>
    %212 = arith.truncf %211 : vector<2x256xf32> to vector<2x256xbf16>
    %c8_105 = arith.constant 8 : index
    %c0_106 = arith.constant 0 : index
    %c0_107 = arith.constant 0 : index
    %213 = vector.load %arg11[%c8_105, %c0_106, %c0_107] : memref<9x2x256xbf16, #tpu.memory_space<vmem>>, vector<1x2x256xbf16>
    %214 = vector.shape_cast %213 : vector<1x2x256xbf16> to vector<2x256xbf16>
    %215 = vector.shape_cast %212 : vector<2x256xbf16> to vector<1x2x256xbf16>
    tpu.vector_store %arg11[%c8_105, %c0_106, %c0_107], %215 {strides = array<i32>} : memref<9x2x256xbf16, #tpu.memory_space<vmem>>, vector<1x2x256xbf16>,
    return
  }
}

module attributes {stable_mosaic.version = 11 : i64} {
  func.func @_conv_bn_relu_kernel(%arg0: memref<4096x72xbf16, #tpu.memory_space<vmem>>, %arg1: memref<128x4096xbf16, #tpu.memory_space<vmem>>, %arg2: memref<128x1xf32, #tpu.memory_space<vmem>>, %arg3: memref<128x1xf32, #tpu.memory_space<vmem>>, %arg4: memref<128x72xbf16, #tpu.memory_space<vmem>>) attributes {dimension_semantics = [], scalar_prefetch = 0 : i64, scratch_operands = 0 : i64, tpu.core_type = #tpu.core_type<tc>} {
    %c0 = arith.constant 0 : index
    %c0_0 = arith.constant 0 : index
    %0 = vector.load %arg1[%c0, %c0_0] : memref<128x4096xbf16, #tpu.memory_space<vmem>>, vector<128x4096xbf16>
    %c0_1 = arith.constant 0 : index
    %c0_2 = arith.constant 0 : index
    %1 = vector.load %arg0[%c0_1, %c0_2] : memref<4096x72xbf16, #tpu.memory_space<vmem>>, vector<4096x72xbf16>
    %cst = arith.constant dense<0.000000e+00> : vector<128x72xf32>
    %2 = tpu.matmul %0, %1, %cst {dimension_numbers = #tpu.dot_dimension_numbers<[1], [0], [0], [1], [0, 0, 1, 1], [], []>} : vector<128x4096xbf16>, vector<4096x72xbf16>, vector<128x72xf32> -> vector<128x72xf32>
    %cst_3 = arith.constant dense<0.000000e+00> : vector<128xf32>
    %3 = vector.multi_reduction <add>, %2, %cst_3 [1] : vector<128x72xf32> to vector<128xf32>
    %4 = vector.shape_cast %3 : vector<128xf32> to vector<128x1xf32>
    %5 = arith.mulf %2, %2 : vector<128x72xf32>
    %cst_4 = arith.constant dense<0.000000e+00> : vector<128xf32>
    %6 = vector.multi_reduction <add>, %5, %cst_4 [1] : vector<128x72xf32> to vector<128xf32>
    %7 = vector.shape_cast %6 : vector<128xf32> to vector<128x1xf32>
    %cst_5 = arith.constant 0.013888889 : f32
    %8 = vector.broadcast %cst_5 : f32 to vector<128x1xf32>
    %9 = arith.mulf %4, %8 : vector<128x1xf32>
    %cst_6 = arith.constant 0.013888889 : f32
    %10 = vector.broadcast %cst_6 : f32 to vector<128x1xf32>
    %11 = arith.mulf %7, %10 : vector<128x1xf32>
    %12 = arith.mulf %9, %9 : vector<128x1xf32>
    %13 = arith.subf %11, %12 : vector<128x1xf32>
    %cst_7 = arith.constant 9.99999974E-6 : f32
    %14 = vector.broadcast %cst_7 : f32 to vector<128x1xf32>
    %15 = arith.addf %13, %14 : vector<128x1xf32>
    %16 = math.rsqrt %15 : vector<128x1xf32>
    %c0_8 = arith.constant 0 : index
    %c0_9 = arith.constant 0 : index
    %17 = vector.load %arg2[%c0_8, %c0_9] : memref<128x1xf32, #tpu.memory_space<vmem>>, vector<128x1xf32>
    %18 = arith.mulf %16, %17 : vector<128x1xf32>
    %c0_10 = arith.constant 0 : index
    %c0_11 = arith.constant 0 : index
    %19 = vector.load %arg3[%c0_10, %c0_11] : memref<128x1xf32, #tpu.memory_space<vmem>>, vector<128x1xf32>
    %20 = arith.mulf %9, %18 : vector<128x1xf32>
    %21 = arith.subf %19, %20 : vector<128x1xf32>
    %22 = vector.broadcast %18 : vector<128x1xf32> to vector<128x72xf32>
    %23 = arith.mulf %2, %22 : vector<128x72xf32>
    %24 = vector.broadcast %21 : vector<128x1xf32> to vector<128x72xf32>
    %25 = arith.addf %23, %24 : vector<128x72xf32>
    %cst_12 = arith.constant 0.000000e+00 : f32
    %26 = vector.broadcast %cst_12 : f32 to vector<128x72xf32>
    %27 = arith.maximumf %25, %26 : vector<128x72xf32>
    %28 = arith.truncf %27 : vector<128x72xf32> to vector<128x72xbf16>
    %c0_13 = arith.constant 0 : index
    %c0_14 = arith.constant 0 : index
    %29 = vector.load %arg4[%c0_13, %c0_14] : memref<128x72xbf16, #tpu.memory_space<vmem>>, vector<128x72xbf16>
    tpu.vector_store %arg4[%c0_13, %c0_14], %28 {strides = array<i32>} : memref<128x72xbf16, #tpu.memory_space<vmem>>, vector<128x72xbf16>,
    return
  }
}

module attributes {stable_mosaic.version = 11 : i64} {
  func.func @_conv_bn_relu_kernel(%arg0: memref<1152x338xbf16, #tpu.memory_space<vmem>>, %arg1: memref<64x1152xbf16, #tpu.memory_space<vmem>>, %arg2: memref<64x1xf32, #tpu.memory_space<vmem>>, %arg3: memref<64x1xf32, #tpu.memory_space<vmem>>, %arg4: memref<64x338xbf16, #tpu.memory_space<vmem>>) attributes {dimension_semantics = [], scalar_prefetch = 0 : i64, scratch_operands = 0 : i64, tpu.core_type = #tpu.core_type<tc>} {
    %c0 = arith.constant 0 : index
    %c0_0 = arith.constant 0 : index
    %0 = vector.load %arg1[%c0, %c0_0] : memref<64x1152xbf16, #tpu.memory_space<vmem>>, vector<64x1152xbf16>
    %c0_1 = arith.constant 0 : index
    %c0_2 = arith.constant 0 : index
    %1 = vector.load %arg0[%c0_1, %c0_2] : memref<1152x338xbf16, #tpu.memory_space<vmem>>, vector<1152x338xbf16>
    %cst = arith.constant dense<0.000000e+00> : vector<64x338xf32>
    %2 = tpu.matmul %0, %1, %cst {dimension_numbers = #tpu.dot_dimension_numbers<[1], [0], [0], [1], [0, 0, 1, 1], [], []>} : vector<64x1152xbf16>, vector<1152x338xbf16>, vector<64x338xf32> -> vector<64x338xf32>
    %cst_3 = arith.constant dense<0.000000e+00> : vector<64xf32>
    %3 = vector.multi_reduction <add>, %2, %cst_3 [1] : vector<64x338xf32> to vector<64xf32>
    %4 = vector.shape_cast %3 : vector<64xf32> to vector<64x1xf32>
    %5 = arith.mulf %2, %2 : vector<64x338xf32>
    %cst_4 = arith.constant dense<0.000000e+00> : vector<64xf32>
    %6 = vector.multi_reduction <add>, %5, %cst_4 [1] : vector<64x338xf32> to vector<64xf32>
    %7 = vector.shape_cast %6 : vector<64xf32> to vector<64x1xf32>
    %cst_5 = arith.constant 2.958580e-03 : f32
    %8 = vector.broadcast %cst_5 : f32 to vector<64x1xf32>
    %9 = arith.mulf %4, %8 : vector<64x1xf32>
    %cst_6 = arith.constant 2.958580e-03 : f32
    %10 = vector.broadcast %cst_6 : f32 to vector<64x1xf32>
    %11 = arith.mulf %7, %10 : vector<64x1xf32>
    %12 = arith.mulf %9, %9 : vector<64x1xf32>
    %13 = arith.subf %11, %12 : vector<64x1xf32>
    %cst_7 = arith.constant 9.99999974E-6 : f32
    %14 = vector.broadcast %cst_7 : f32 to vector<64x1xf32>
    %15 = arith.addf %13, %14 : vector<64x1xf32>
    %16 = math.rsqrt %15 : vector<64x1xf32>
    %c0_8 = arith.constant 0 : index
    %c0_9 = arith.constant 0 : index
    %17 = vector.load %arg2[%c0_8, %c0_9] : memref<64x1xf32, #tpu.memory_space<vmem>>, vector<64x1xf32>
    %18 = arith.mulf %16, %17 : vector<64x1xf32>
    %c0_10 = arith.constant 0 : index
    %c0_11 = arith.constant 0 : index
    %19 = vector.load %arg3[%c0_10, %c0_11] : memref<64x1xf32, #tpu.memory_space<vmem>>, vector<64x1xf32>
    %20 = arith.mulf %9, %18 : vector<64x1xf32>
    %21 = arith.subf %19, %20 : vector<64x1xf32>
    %22 = vector.broadcast %18 : vector<64x1xf32> to vector<64x338xf32>
    %23 = arith.mulf %2, %22 : vector<64x338xf32>
    %24 = vector.broadcast %21 : vector<64x1xf32> to vector<64x338xf32>
    %25 = arith.addf %23, %24 : vector<64x338xf32>
    %cst_12 = arith.constant 0.000000e+00 : f32
    %26 = vector.broadcast %cst_12 : f32 to vector<64x338xf32>
    %27 = arith.maximumf %25, %26 : vector<64x338xf32>
    %28 = arith.truncf %27 : vector<64x338xf32> to vector<64x338xbf16>
    %c0_13 = arith.constant 0 : index
    %c0_14 = arith.constant 0 : index
    %29 = vector.load %arg4[%c0_13, %c0_14] : memref<64x338xbf16, #tpu.memory_space<vmem>>, vector<64x338xbf16>
    tpu.vector_store %arg4[%c0_13, %c0_14], %28 {strides = array<i32>} : memref<64x338xbf16, #tpu.memory_space<vmem>>, vector<64x338xbf16>,
    return
  }
}

module attributes {stable_mosaic.version = 11 : i64} {
  func.func @_conv_sigmoid_kernel(%arg0: memref<1024x1568xbf16, #tpu.memory_space<vmem>>, %arg1: memref<1x1024xbf16, #tpu.memory_space<vmem>>, %arg2: memref<1x1xf32, #tpu.memory_space<vmem>>, %arg3: memref<1x1568xf32, #tpu.memory_space<vmem>>) attributes {dimension_semantics = [], scalar_prefetch = 0 : i64, scratch_operands = 0 : i64, tpu.core_type = #tpu.core_type<tc>} {
    %c0 = arith.constant 0 : index
    %c0_0 = arith.constant 0 : index
    %0 = vector.load %arg1[%c0, %c0_0] : memref<1x1024xbf16, #tpu.memory_space<vmem>>, vector<1x1024xbf16>
    %c0_1 = arith.constant 0 : index
    %c0_2 = arith.constant 0 : index
    %1 = vector.load %arg0[%c0_1, %c0_2] : memref<1024x1568xbf16, #tpu.memory_space<vmem>>, vector<1024x1568xbf16>
    %cst = arith.constant dense<0.000000e+00> : vector<1x1568xf32>
    %2 = tpu.matmul %0, %1, %cst {dimension_numbers = #tpu.dot_dimension_numbers<[1], [0], [0], [1], [0, 0, 1, 1], [], []>} : vector<1x1024xbf16>, vector<1024x1568xbf16>, vector<1x1568xf32> -> vector<1x1568xf32>
    %c0_3 = arith.constant 0 : index
    %c0_4 = arith.constant 0 : index
    %3 = vector.load %arg2[%c0_3, %c0_4] : memref<1x1xf32, #tpu.memory_space<vmem>>, vector<1x1xf32>
    %4 = vector.broadcast %3 : vector<1x1xf32> to vector<1x1568xf32>
    %5 = arith.addf %2, %4 : vector<1x1568xf32>
    %6 = arith.negf %5 : vector<1x1568xf32>
    %7 = math.exp %6 : vector<1x1568xf32>
    %cst_5 = arith.constant 1.000000e+00 : f32
    %8 = vector.broadcast %cst_5 : f32 to vector<1x1568xf32>
    %9 = arith.addf %8, %7 : vector<1x1568xf32>
    %10 = arith.divf %8, %9 : vector<1x1568xf32>
    %c0_6 = arith.constant 0 : index
    %c0_7 = arith.constant 0 : index
    %11 = vector.load %arg3[%c0_6, %c0_7] : memref<1x1568xf32, #tpu.memory_space<vmem>>, vector<1x1568xf32>
    tpu.vector_store %arg3[%c0_6, %c0_7], %10 {strides = array<i32>} : memref<1x1568xf32, #tpu.memory_space<vmem>>, vector<1x1568xf32>,
    return
  }
}

</mosaic_0001>

<bundles_post_ra>
// kernel: vae_forward.6
= control target key start
LH: loop header
LB: loop body
LE: loop exit
PB: predicated region body
PF: predicated region fallthrough
CT: control target
= control target key end

     0   :  { %9 = vsyncpa [#allocation3], 0  ;;  %s327_s15 = smov [#allocation2]   ;;  %s425_s0 = inlined_call_operand.vmem [shape: bf16[16,338], index: 0, kind: input, shape index: {}]   ;;  %s426_s1 = inlined_call_operand.hbm [shape: bf16[16,16], index: 1, kind: input, shape index: {}]   ;;  %s427_s2 = inlined_call_operand.vmem [shape: f32[16,1], index: 2, kind: input, shape index: {}]   ;;  %s428_s3 = inlined_call_operand.vmem [shape: f32[16,1], index: 3, kind: input, shape index: {}]   ;;  %s429_s4 = inlined_call_operand.vmem [shape: bf16[16,338], index: 4, kind: output, shape index: {}]  }
   0x1   :  { %s17_s16 = sshll.u32 %s327_s15, 4  ;;  %s303_s19 = scalar_lea.hbm %s426_s1, 128  ;;  %s18_s16 = int_to_ptr.vmem [resolvable:$true] %s17_s16 }
   0x2   :  { %p304_p0 = scmp.ne.s32.totalorder %s426_s1, %s303_s19  ;;  %p307_p1 = scmp.lt.u32.totalorder %s303_s19, %s426_s1 }
   0x4   :  { %p309_p2 = pnand %p307_p1, %p304_p0 }
   0x6   :  { %312 = shalt.err (!%p309_p2)
}
   0x7   :  { %s313_s24 = scalar_lea.vmem %s18_s16, 128  ;;  %p318_p4 = scmp.lt.s32.totalorder %s18_s16, %s18_s16 }
   0x8   :  { %p314_p3 = scmp.ne.s32.totalorder %s18_s16, %s313_s24  ;;  %p319_p5 = scmp.lt.s32.totalorder %s313_s24, %s313_s24 }
   0xa   :  { %p320_p6 = por %p319_p5, %p318_p4 }
   0xc   :  { %p321_p7 = pnand %p320_p6, %p314_p3 }
   0xe   :  { %324 = shalt.err (!%p321_p7)
}
   0xf   :  { %s328_s25 = smov 64   ;;  %s329_s26 = smov 4  }
  0x10   :  { %23 = dma.hbm_to_vmem [thread:$0]  %s426_s1, 128, %s18_s16, [#allocation3], %s328_s25, %s328_s25, %s329_s26  }
  0x11   :  { %325 = dma.done.wait [#allocation3], 128  }
  0x12   :  { %326 = vsyncadd [#allocation3], 4294967168  ;;  %v330_v0 = vmov 0.0   ;;  %vm331_vm0 = vmmov 0   ;;  %v332_v1 = vmov 0   ;;  %v298_v5 = vld [vmem:[#allocation2] sm:$0xff]  }
  0x13   :  { %280 = vmatprep.subr.bf16.mxu1 %v330_v0  ;;  %282 = vmatprep.mubr.msk.bf16.mxu1 %vm331_vm0, %v330_v0  ;;  %v294_v2 = vld [vmem:[%s425_s0 + $0x4] ss:$12 sps:$4 sm:$0xff]   ;;  %v296_v3 = vld [vmem:[%s425_s0 + $0x8] ss:$12 sps:$4 sm:$0xff]   ;;  %v297_v4 = vld [vmem:[%s425_s0] ss:$12 sps:$4 sm:$0xff]  }
  0x14   :  { %95 = vmatprep.mubr.bf16.mxu0 %v332_v1  ;;  %292 = vset.pattern.permute.xlu0 %v332_v1  ;;  %vm59_vm1 = vcmask 130048   ;;  %vm148_vm2 = vcmask 670720   ;;  %v186_v46 = vld [vmem:[%s427_s2] sm:$0xff]  ;;  %v187_v49 = vld [vmem:[%s427_s2 + $0x8] sm:$0xff]  ;;  %vm255_vm3 = vcmask 666624  }
  0x15   :  { %293 = vset.pattern.permute.xlu1 %v332_v1  ;;  %63 = vmatprep.subr.bf16.mxu0 %v294_v2  ;;  %v190_v53 = vld [vmem:[%s428_s3] sm:$0xff]  ;;  %v191_v56 = vld [vmem:[%s428_s3 + $0x8] sm:$0xff] }
  0x16   :  { %281 = vmatpush3.bf16.msra.mxu1 %v296_v3  ;;  %64 = vmatpush1.bf16.msra.mxu0 %v297_v4 }
  0x19   :  { %283 = vmatmul.mubr.msk.bf16.vlgmr.msra.gmra.mrb[0].mxu1 %vm59_vm1, %v298_v5  ;;  %268 = vmatmul.mubr.msk.bf16.vlgmr.msra.gmra.mrb[0].mxu0 %vm59_vm1, %v298_v5 }
  0xec   :  { %v379_v6 = vpop.f32.mrb[0].mxu1  ;;  %v381_v7 = vpop.f32.mrb[0].mxu0 }
  0xed   :  { %v284_v8 = vpop.f32.mrb[1].mxu1  ;;  %v160_v9 = vmul.f32 %v379_v6, %v379_v6  ;;  %v158_v10 = vmul.f32 %v381_v7, %v381_v7  ;;  %v99_v11 = vpop.f32.mrb[1].mxu0  ;;  %v149_v13 = vsel %vm148_vm2, %v379_v6, 0.0 }
  0xee   :  { %v387_v12 = vpop.f32.mrb[2].mxu1  ;;  %v159_v14 = vmul.f32 %v99_v11, %v99_v11  ;;  %v101_v15 = vpop.f32.mrb[2].mxu0  ;;  %v147_v17 = vadd.f32 %v99_v11, %v381_v7 }
  0xef   :  { %v285_v16 = vpop.f32.mrb[3].mxu1  ;;  %v163_v18 = vmul.f32 %v387_v12, %v387_v12  ;;  %v161_v19 = vmul.f32 %v101_v15, %v101_v15  ;;  %v103_v20 = vpop.f32.mrb[3].mxu0  ;;  %v165_v21 = vsel %vm148_vm2, %v160_v9, 0.0  ;;  %v154_v26 = vsel %vm148_vm2, %v387_v12, 0.0 }
  0xf0   :  { %v153_v22 = vadd.f32 %v103_v20, %v101_v15  ;;  %v162_v23 = vmul.f32 %v103_v20, %v103_v20  ;;  %v150_v24 = vadd.f32 %v149_v13, %v147_v17  ;;  %v164_v25 = vadd.f32 %v159_v14, %v158_v10 }
  0xf1   :  { %v170_v30 = vsel %vm148_vm2, %v163_v18, 0.0 }
  0xf2   :  { %151 = vadd.xlane.f32.xlu0 %v150_v24  ;;  %v166_v27 = vadd.f32 %v165_v21, %v164_v25  ;;  %v155_v28 = vadd.f32 %v154_v26, %v153_v22  ;;  %v169_v29 = vadd.f32 %v162_v23, %v161_v19 }
  0xf4   :  { %167 = vadd.xlane.f32.xlu1 %v166_v27  ;;  %v171_v31 = vadd.f32 %v170_v30, %v169_v29 }
  0xf6   :  { %156 = vadd.xlane.f32.xlu0 %v155_v28 }
  0xf8   :  { %172 = vadd.xlane.f32.xlu1 %v171_v31 }
 0x17f   :  { %v152_v32 = vpop.xlane.xlu0 %151 }
 0x180   :  { %v174_v33 = vmul.f32 0.00295858, %v152_v32 }
 0x181   :  { %v168_v34 = vpop.xlane.xlu1 %167 }
 0x182   :  { %v178_v35 = vmul.f32 %v174_v33, %v174_v33  ;;  %v176_v36 = vmul.f32 0.00295858, %v168_v34 }
 0x183   :  { %v157_v37 = vpop.xlane.xlu0 %156 }
 0x184   :  { %v180_v38 = vsub.f32 %v176_v36, %v178_v35  ;;  %v175_v39 = vmul.f32 0.00295858, %v157_v37 }
 0x185   :  { %v173_v40 = vpop.xlane.xlu1 %172 }
 0x186   :  { %v182_v41 = vadd.f32 1e-05, %v180_v38  ;;  %v179_v42 = vmul.f32 %v175_v39, %v175_v39  ;;  %v177_v43 = vmul.f32 0.00295858, %v173_v40 }
 0x188   :  { %299 = vrsqrt.f32 %v182_v41  ;;  %v181_v44 = vsub.f32 %v177_v43, %v179_v42 }
 0x18a   :  { %v183_v45 = vadd.f32 1e-05, %v181_v44 }
 0x18c   :  { %301 = vrsqrt.f32 %v183_v45 }
 0x192   :  { %v300_v47 = vpop.eup %299 }
 0x193   :  { %v188_v48 = vmul.f32 %v300_v47, %v186_v46 }
 0x195   :  { %198 = vperm.xlu0 %292, %v188_v48   ;;  %v192_v52 = vmul.f32 %v188_v48, %v174_v33 }
 0x196   :  { %v302_v50 = vpop.eup %301 }
 0x197   :  { %v189_v51 = vmul.f32 %v302_v50, %v187_v49  ;;  %v194_v54 = vsub.f32 %v190_v53, %v192_v52 }
 0x199   :  { %203 = vperm.xlu1 %293, %v189_v51   ;;  %v193_v55 = vmul.f32 %v189_v51, %v175_v39 }
 0x19b   :  { %v195_v57 = vsub.f32 %v191_v56, %v193_v55 }
 0x19d   :  { %214 = vperm.xlu1 %293, %v194_v54  }
 0x1a1   :  { %219 = vperm.xlu1 %293, %v195_v57  }
 0x214   :  { %v199_v58 = vpop.permute.xlu0 %198 }
 0x215   :  { %v206_v60 = vmul.f32 %v199_v58, %v381_v7  ;;  %v207_v61 = vmul.f32 %v199_v58, %v99_v11  ;;  %v208_v62 = vmul.f32 %v199_v58, %v379_v6 }
 0x218   :  { %v204_v59 = vpop.permute.xlu1 %203 }
 0x219   :  { %v209_v3 = vmul.f32 %v204_v59, %v101_v15  ;;  %v210_v4 = vmul.f32 %v204_v59, %v103_v20  ;;  %v211_v10 = vmul.f32 %v204_v59, %v387_v12 }
 0x21c   :  { %v215_v63 = vpop.permute.xlu1 %214 }
 0x21d   :  { %v222_v0 = vadd.f32 %v215_v63, %v206_v60  ;;  %v223_v1 = vadd.f32 %v215_v63, %v207_v61  ;;  %v224_v2 = vadd.f32 %v215_v63, %v208_v62 }
 0x21f   :  { %v228_v5 = vmax.f32 %v222_v0, 0.0  ;;  %v229_v8 = vmax.f32 %v223_v1, 0.0  ;;  %v230_v9 = vmax.f32 %v224_v2, 0.0 }
 0x220   :  { %v220_v13 = vpop.permute.xlu1 %219 }
 0x221   :  { %v274_v14 = vpack.c.bf16 %v229_v8, %v228_v5  ;;  %v275_v16 = vpack.c.bf16 %v230_v9, %v230_v9  ;;  %v225_v17 = vadd.f32 %v220_v13, %v209_v3  ;;  %v226_v7 = vadd.f32 %v220_v13, %v210_v4 }
 0x222   :  { %v227_v11 = vadd.f32 %v220_v13, %v211_v10 }
 0x223   :  { %254 = vst [vmem:[%s429_s4] sm:$0xff] %v274_v14  ;;  %256 = vst.msk [vmem:[%s429_s4 + $0x8] sm:$0xf] %vm255_vm3, %v275_v16  ;;  %v231_v6 = vmax.f32 %v225_v17, 0.0  ;;  %v232_v15 = vmax.f32 %v226_v7, 0.0 }
 0x224   :  { %v233_v18 = vmax.f32 %v227_v11, 0.0 }
 0x225   :  { %v276_v19 = vpack.c.bf16 %v232_v15, %v231_v6 }
 0x226   :  { %v277_v12 = vpack.c.bf16 %v233_v18, %v233_v18 }
 0x227   :  { %257 = vst [vmem:[%s429_s4 + $0xc] sm:$0xff] %v276_v19 }
 0x228   :  { %258 = vst.msk [vmem:[%s429_s4 + $0x14] sm:$0xf] %vm255_vm3, %v277_v12 }
 0x229   :  { %263 = vsyncpa [#allocation3], 1 }

// kernel: vae_forward.7
= control target key start
LH: loop header
LB: loop body
LE: loop exit
PB: predicated region body
PF: predicated region fallthrough
CT: control target
= control target key end

     0   :  { %vm219_vm0 = vcmask 408576   ;;  %v474_v44 = vmov 0   ;;  %vm360_vm1 = vcmask 404480   ;;  %s632_s0 = inlined_call_operand.vmem [shape: bf16[256,50], index: 0, kind: input, shape index: {}]   ;;  %s633_s1 = inlined_call_operand.vmem [shape: bf16[32,256], index: 1, kind: input, shape index: {}]   ;;  %s634_s2 = inlined_call_operand.vmem [shape: f32[32,1], index: 2, kind: input, shape index: {}]   ;;  %s635_s3 = inlined_call_operand.vmem [shape: f32[32,1], index: 3, kind: input, shape index: {}]   ;;  %s636_s4 = inlined_call_operand.vmem [shape: bf16[32,50], index: 4, kind: output, shape index: {}]  }
   0x1   :  { %v444_v0 = vld [vmem:[%s632_s0 + $0x40] sm:$0xff]   ;;  %v446_v2 = vld [vmem:[%s632_s0 + $0x48] sm:$0xff]   ;;  %v448_v4 = vld [vmem:[%s632_s0 + $0x50] sm:$0xff]   ;;  %442 = vset.pattern.permute.xlu0 %v474_v44  ;;  %443 = vset.pattern.permute.xlu1 %v474_v44 }
   0x2   :  { %v445_v1 = vld [vmem:[%s632_s0] sm:$0xff]   ;;  %397 = vmatprep.subr.bf16.mxu0 %v444_v0  ;;  %425 = vmatprep.subr.bf16.mxu1 %v444_v0  ;;  %v447_v3 = vld [vmem:[%s632_s0 + $0x8] sm:$0xff]   ;;  %v449_v5 = vld [vmem:[%s632_s0 + $0x10] sm:$0xff]  }
   0x3   :  { %398 = vmatpush3.bf16.msra.mxu0 %v445_v1  ;;  %433 = vmatpush3.bf16.msra.mxu1 %v445_v1  ;;  %v450_v6 = vld [vmem:[%s632_s0 + $0x58] sm:$0xff]   ;;  %v452_v8 = vld [vmem:[%s632_s0 + $0x60] sm:$0xff]   ;;  %v454_v10 = vld [vmem:[%s632_s0 + $0x68] sm:$0xff]  }
   0x4   :  { %399 = vmatprep.subr.bf16.mxu0 %v446_v2  ;;  %426 = vmatprep.subr.bf16.mxu1 %v446_v2  ;;  %v451_v7 = vld [vmem:[%s632_s0 + $0x18] sm:$0xff]   ;;  %v453_v9 = vld [vmem:[%s632_s0 + $0x20] sm:$0xff]   ;;  %v455_v13 = vld [vmem:[%s632_s0 + $0x28] sm:$0xff]  }
   0x5   :  { %v462_v11 = vld [vmem:[%s633_s1 + $0x4] ss:$8 sps:$4 sm:$0xff]   ;;  %v465_v12 = vld [vmem:[%s633_s1 + $0x14] ss:$8 sps:$4 sm:$0xff]   ;;  %v460_v18 = vld [vmem:[%s633_s1] ss:$8 sps:$4 sm:$0xff]  }
   0x6   :  { %v456_v14 = vld [vmem:[%s632_s0 + $0x70] sm:$0xff]   ;;  %202 = vmatprep.mubr.bf16.mxu0 %v462_v11  ;;  %210 = vmatprep.mubr.bf16.mxu1 %v465_v12  ;;  %v458_v16 = vld [vmem:[%s632_s0 + $0x78] sm:$0xff]  }
   0x7   :  { %400 = vmatpush3.bf16.msra.mxu0 %v447_v3  ;;  %434 = vmatpush3.bf16.msra.mxu1 %v447_v3  ;;  %v457_v15 = vld [vmem:[%s632_s0 + $0x30] sm:$0xff]   ;;  %v459_v17 = vld [vmem:[%s632_s0 + $0x38] sm:$0xff]  }
   0x8   :  { %401 = vmatprep.subr.bf16.mxu0 %v448_v4  ;;  %427 = vmatprep.subr.bf16.mxu1 %v448_v4  ;;  %v463_v19 = vld [vmem:[%s633_s1 + $0x10] ss:$8 sps:$4 sm:$0xff]  }
   0x9   :  { %v274_v12 = vld [vmem:[%s634_s2 + $0x10] sm:$0xff] }
   0xb   :  { %402 = vmatpush3.bf16.msra.mxu0 %v449_v5  ;;  %435 = vmatpush3.bf16.msra.mxu1 %v449_v5 }
   0xc   :  { %403 = vmatprep.subr.bf16.mxu0 %v450_v6  ;;  %428 = vmatprep.subr.bf16.mxu1 %v450_v6 }
   0xf   :  { %404 = vmatpush3.bf16.msra.mxu0 %v451_v7  ;;  %436 = vmatpush3.bf16.msra.mxu1 %v451_v7 }
  0x10   :  { %405 = vmatprep.subr.bf16.mxu0 %v452_v8  ;;  %429 = vmatprep.subr.bf16.mxu1 %v452_v8 }
  0x13   :  { %406 = vmatpush3.bf16.msra.mxu0 %v453_v9  ;;  %437 = vmatpush3.bf16.msra.mxu1 %v453_v9  ;;  %v272_v9 = vld [vmem:[%s634_s2] sm:$0xff] }
  0x14   :  { %407 = vmatprep.subr.bf16.mxu0 %v454_v10  ;;  %430 = vmatprep.subr.bf16.mxu1 %v454_v10 }
  0x17   :  { %408 = vmatpush3.bf16.msra.mxu0 %v455_v13  ;;  %438 = vmatpush3.bf16.msra.mxu1 %v455_v13 }
  0x18   :  { %409 = vmatprep.subr.bf16.mxu0 %v456_v14  ;;  %431 = vmatprep.subr.bf16.mxu1 %v456_v14 }
  0x1b   :  { %410 = vmatpush3.bf16.msra.mxu0 %v457_v15  ;;  %439 = vmatpush3.bf16.msra.mxu1 %v457_v15 }
  0x1c   :  { %411 = vmatprep.subr.bf16.mxu0 %v458_v16  ;;  %432 = vmatprep.subr.bf16.mxu1 %v458_v16  ;;  %v273_v16 = vld [vmem:[%s634_s2 + $0x8] sm:$0xff] }
  0x1f   :  { %412 = vmatpush3.bf16.msra.mxu0 %v459_v17  ;;  %440 = vmatpush3.bf16.msra.mxu1 %v459_v17 }
  0x22   :  { %203 = vmatmul.mubr.bf16.vlgmr.msra.gmra.mrb[0].mxu0 %v460_v18  ;;  %211 = vmatmul.mubr.bf16.vlgmr.msra.gmra.mrb[0].mxu1 %v463_v19  ;;  %v275_v19 = vld [vmem:[%s634_s2 + $0x18] sm:$0xff] }
  0xf5   :  { %v413_v20 = vpop.f32.mrb[0].mxu0  ;;  %v419_v21 = vpop.f32.mrb[0].mxu1 }
  0xf6   :  { %v414_v22 = vpop.f32.mrb[1].mxu0  ;;  %v420_v23 = vpop.f32.mrb[1].mxu1 }
  0xf7   :  { %v560_v24 = vadd.f32 %v414_v22, %v413_v20  ;;  %v562_v25 = vadd.f32 %v420_v23, %v419_v21  ;;  %v416_v26 = vpop.f32.mrb[2].mxu0  ;;  %v422_v27 = vpop.f32.mrb[2].mxu1  ;;  %v280_v22 = vld [vmem:[%s635_s3] sm:$0xff] }
  0xf8   :  { %v417_v28 = vpop.f32.mrb[3].mxu0  ;;  %v423_v29 = vpop.f32.mrb[3].mxu1 }
  0xf9   :  { %v564_v30 = vadd.f32 %v417_v28, %v416_v26  ;;  %v566_v31 = vadd.f32 %v423_v29, %v422_v27  ;;  %v226_v32 = vsel %vm219_vm0, %v562_v25, 0.0  ;;  %v220_v33 = vsel %vm219_vm0, %v560_v24, 0.0  ;;  %v282_v27 = vld [vmem:[%s635_s3 + $0x10] sm:$0xff] }
  0xfa   :  { %227 = vadd.xlane.f32.xlu1 %v226_v32  ;;  %221 = vadd.xlane.f32.xlu0 %v220_v33  ;;  %v232_v37 = vmul.f32 %v560_v24, %v560_v24  ;;  %v234_v41 = vmul.f32 %v562_v25, %v562_v25  ;;  %v281_v32 = vld [vmem:[%s635_s3 + $0x8] sm:$0xff] }
  0xfb   :  { %v229_v34 = vsel %vm219_vm0, %v566_v31, 0.0  ;;  %v223_v35 = vsel %vm219_vm0, %v564_v30, 0.0  ;;  %v233_v36 = vmul.f32 %v564_v30, %v564_v30  ;;  %v235_v40 = vmul.f32 %v566_v31, %v566_v31 }
  0xfc   :  { %v236_v39 = vsel %vm219_vm0, %v232_v37, 0.0  ;;  %v242_v43 = vsel %vm219_vm0, %v234_v41, 0.0 }
  0xfd   :  { %v239_v38 = vsel %vm219_vm0, %v233_v36, 0.0  ;;  %v245_v42 = vsel %vm219_vm0, %v235_v40, 0.0 }
  0xfe   :  { %230 = vadd.xlane.f32.xlu1 %v229_v34  ;;  %224 = vadd.xlane.f32.xlu0 %v223_v35  ;;  %v283_v35 = vld [vmem:[%s635_s3 + $0x18] sm:$0xff] }
 0x102   :  { %240 = vadd.xlane.f32.xlu1 %v239_v38  ;;  %237 = vadd.xlane.f32.xlu0 %v236_v39 }
 0x106   :  { %246 = vadd.xlane.f32.xlu1 %v245_v42  ;;  %243 = vadd.xlane.f32.xlu0 %v242_v43 }
 0x187   :  { %v228_v45 = vpop.xlane.xlu1 %227  ;;  %v222_v46 = vpop.xlane.xlu0 %221 }
 0x188   :  { %v248_v49 = vmul.f32 0.02, %v222_v46  ;;  %v250_v55 = vmul.f32 0.02, %v228_v45 }
 0x18a   :  { %v256_v53 = vmul.f32 %v248_v49, %v248_v49  ;;  %v258_v63 = vmul.f32 %v250_v55, %v250_v55 }
 0x18b   :  { %v231_v47 = vpop.xlane.xlu1 %230  ;;  %v225_v48 = vpop.xlane.xlu0 %224 }
 0x18c   :  { %v249_v50 = vmul.f32 0.02, %v225_v48  ;;  %v251_v58 = vmul.f32 0.02, %v231_v47 }
 0x18e   :  { %v257_v59 = vmul.f32 %v249_v50, %v249_v50  ;;  %v259_v3 = vmul.f32 %v251_v58, %v251_v58 }
 0x18f   :  { %v241_v51 = vpop.xlane.xlu1 %240  ;;  %v238_v52 = vpop.xlane.xlu0 %237 }
 0x190   :  { %v252_v54 = vmul.f32 0.02, %v238_v52  ;;  %v253_v56 = vmul.f32 0.02, %v241_v51 }
 0x192   :  { %v260_v57 = vsub.f32 %v252_v54, %v256_v53  ;;  %v261_v0 = vsub.f32 %v253_v56, %v257_v59 }
 0x193   :  { %v247_v60 = vpop.xlane.xlu1 %246  ;;  %v244_v61 = vpop.xlane.xlu0 %243 }
 0x194   :  { %v264_v62 = vadd.f32 1e-05, %v260_v57  ;;  %v255_v1 = vmul.f32 0.02, %v247_v60  ;;  %v254_v2 = vmul.f32 0.02, %v244_v61 }
 0x195   :  { %v265_v5 = vadd.f32 1e-05, %v261_v0 }
 0x196   :  { %466 = vrsqrt.f32 %v264_v62  ;;  %v262_v4 = vsub.f32 %v254_v2, %v258_v63  ;;  %v263_v6 = vsub.f32 %v255_v1, %v259_v3 }
 0x198   :  { %v266_v7 = vadd.f32 1e-05, %v262_v4  ;;  %v267_v8 = vadd.f32 1e-05, %v263_v6 }
 0x19a   :  { %468 = vrsqrt.f32 %v266_v7 }
 0x19b   :  { %470 = vrsqrt.f32 %v265_v5 }
 0x19c   :  { %472 = vrsqrt.f32 %v267_v8 }
 0x1a0   :  { %v467_v10 = vpop.eup %466 }
 0x1a1   :  { %v276_v11 = vmul.f32 %v467_v10, %v272_v9 }
 0x1a3   :  { %294 = vperm.xlu0 %442, %v276_v11   ;;  %v284_v21 = vmul.f32 %v276_v11, %v248_v49 }
 0x1a4   :  { %v469_v13 = vpop.eup %468 }
 0x1a5   :  { %v278_v14 = vmul.f32 %v469_v13, %v274_v12  ;;  %v471_v15 = vpop.eup %470  ;;  %v288_v23 = vsub.f32 %v280_v22, %v284_v21 }
 0x1a6   :  { %v277_v17 = vmul.f32 %v471_v15, %v273_v16  ;;  %v473_v18 = vpop.eup %472 }
 0x1a7   :  { %304 = vperm.xlu1 %443, %v278_v14   ;;  %v279_v20 = vmul.f32 %v473_v18, %v275_v19  ;;  %v286_v26 = vmul.f32 %v278_v14, %v250_v55 }
 0x1a8   :  { %v285_v29 = vmul.f32 %v277_v17, %v249_v50 }
 0x1a9   :  { %v290_v28 = vsub.f32 %v282_v27, %v286_v26  ;;  %v287_v34 = vmul.f32 %v279_v20, %v251_v58 }
 0x1aa   :  { %v289_v33 = vsub.f32 %v281_v32, %v285_v29 }
 0x1ab   :  { %299 = vperm.xlu1 %443, %v277_v17   ;;  %v291_v36 = vsub.f32 %v283_v35, %v287_v34 }
 0x1af   :  { %309 = vperm.xlu1 %443, %v279_v20  }
 0x1b3   :  { %318 = vperm.xlu1 %443, %v288_v23  }
 0x1b7   :  { %328 = vperm.xlu1 %443, %v290_v28  }
 0x1bb   :  { %323 = vperm.xlu1 %443, %v289_v33  }
 0x1bf   :  { %333 = vperm.xlu1 %443, %v291_v36  }
 0x222   :  { %v295_v39 = vpop.permute.xlu0 %294 }
 0x223   :  { %v312_v41 = vmul.f32 %v560_v24, %v295_v39 }
 0x226   :  { %v305_v37 = vpop.permute.xlu1 %304 }
 0x227   :  { %v314_v44 = vmul.f32 %v562_v25, %v305_v37 }
 0x22a   :  { %v300_v38 = vpop.permute.xlu1 %299 }
 0x22b   :  { %v313_v49 = vmul.f32 %v564_v30, %v300_v38 }
 0x22e   :  { %v310_v40 = vpop.permute.xlu1 %309 }
 0x22f   :  { %v315_v53 = vmul.f32 %v566_v31, %v310_v40 }
 0x232   :  { %v319_v42 = vpop.permute.xlu1 %318 }
 0x233   :  { %v336_v43 = vadd.f32 %v319_v42, %v312_v41 }
 0x235   :  { %v340_v45 = vmax.f32 %v336_v43, 0.0 }
 0x236   :  { %v329_v46 = vpop.permute.xlu1 %328 }
 0x237   :  { %v393_v47 = vpack.c.bf16 %v340_v45, %v340_v45  ;;  %v338_v48 = vadd.f32 %v329_v46, %v314_v44 }
 0x239   :  { %361 = vst.msk [vmem:[%s636_s4] sm:$0xf] %vm360_vm1, %v393_v47  ;;  %v342_v50 = vmax.f32 %v338_v48, 0.0 }
 0x23a   :  { %v324_v51 = vpop.permute.xlu1 %323 }
 0x23b   :  { %v395_v52 = vpack.c.bf16 %v342_v50, %v342_v50  ;;  %v337_v24 = vadd.f32 %v324_v51, %v313_v49 }
 0x23d   :  { %363 = vst.msk [vmem:[%s636_s4 + $0x8] sm:$0xf] %vm360_vm1, %v395_v52  ;;  %v341_v25 = vmax.f32 %v337_v24, 0.0 }
 0x23e   :  { %v334_v54 = vpop.permute.xlu1 %333 }
 0x23f   :  { %v394_v55 = vpack.c.bf16 %v341_v25, %v341_v25  ;;  %v339_v30 = vadd.f32 %v334_v54, %v315_v53 }
 0x241   :  { %362 = vst.msk [vmem:[%s636_s4 + $0x4] sm:$0xf] %vm360_vm1, %v394_v55  ;;  %v343_v56 = vmax.f32 %v339_v30, 0.0 }
 0x243   :  { %v396_v57 = vpack.c.bf16 %v343_v56, %v343_v56 }
 0x245   :  { %364 = vst.msk [vmem:[%s636_s4 + $0xc] sm:$0xf] %vm360_vm1, %v396_v57 }

// kernel: vae_forward.8
= control target key start
LH: loop header
LB: loop body
LE: loop exit
PB: predicated region body
PF: predicated region fallthrough
CT: control target
= control target key end

     0   :  { %17 = vsyncpa [#allocation3], 0  ;;  %v122_v30 = vlaneseq  ;;  %v2452_v34 = vmov 1966171168   ;;  %s3109_s0 = inlined_call_operand.vmem [shape: bf16[2,512], index: 0, kind: input, shape index: {}]   ;;  %s3110_s1 = inlined_call_operand.vmem [shape: bf16[512,32], index: 1, kind: input, shape index: {}]   ;;  %s3111_s2 = inlined_call_operand.vmem [shape: f32[1,32], index: 2, kind: input, shape index: {}]   ;;  %s3112_s3 = inlined_call_operand.vmem [shape: bf16[512,32], index: 3, kind: input, shape index: {}]   ;;  %s3113_s4 = inlined_call_operand.vmem [shape: f32[1,32], index: 4, kind: input, shape index: {}]   ;;  %s3114_s5 = inlined_call_operand.vmem [shape: f32[2,32], index: 5, kind: input, shape index: {}]   ;;  %s3115_s6 = inlined_call_operand.vmem [shape: bf16[9,32,256], index: 6, kind: input, shape index: {}]   ;;  %s3116_s7 = inlined_call_operand.vmem [shape: f32[1,256], index: 7, kind: input, shape index: {}]   ;;  %s3117_s8 = inlined_call_operand.vmem [shape: f32[1,256], index: 8, kind: input, shape index: {}]   ;;  %s3118_s9 = inlined_call_operand.hbm [shape: f32[2,32], index: 9, kind: output, shape index: {0}]   ;;  %s3119_s10 = inlined_call_operand.hbm [shape: f32[2,32], index: 10, kind: output, shape index: {1}]   ;;  %s3120_s11 = inlined_call_operand.vmem [shape: bf16[9,2,256], index: 11, kind: output, shape index: {2}]  }
   0x1   :  { %v2280_v0 = vld [vmem:[%s3110_s1 + $0x40] sm:$0xff]   ;;  %v2284_v4 = vld [vmem:[%s3110_s1 + $0x48] sm:$0xff]   ;;  %v2288_v8 = vld [vmem:[%s3110_s1 + $0x50] sm:$0xff]   ;;  %v120_v35 = vunpack.c.l.s4 %v2452_v34 }
   0x2   :  { %v2281_v1 = vld [vmem:[%s3110_s1 + $0xc0] sm:$0xff]   ;;  %2188 = vmatprep.subr.bf16.mxu0 %v2280_v0  ;;  %v2285_v5 = vld [vmem:[%s3110_s1 + $0xc8] sm:$0xff]   ;;  %v2289_v9 = vld [vmem:[%s3110_s1 + $0xd0] sm:$0xff]   ;;  %v2615_v36 = vshrl.u32 %v122_v30, 7 }
   0x3   :  { %v2282_v2 = vld [vmem:[%s3110_s1] sm:$0xff]   ;;  %2210 = vmatprep.subr.bf16.mxu1 %v2281_v1  ;;  %v2286_v6 = vld [vmem:[%s3110_s1 + $0x8] sm:$0xff]   ;;  %v2290_v10 = vld [vmem:[%s3110_s1 + $0x10] sm:$0xff]   ;;  %v121_v40 = vunpack.c.0.s8 %v120_v35 }
   0x4   :  { %v2283_v3 = vld [vmem:[%s3110_s1 + $0x80] sm:$0xff]   ;;  %2189 = vmatpush3.bf16.msra.mxu0 %v2282_v2  ;;  %v2287_v7 = vld [vmem:[%s3110_s1 + $0x88] sm:$0xff]   ;;  %v2291_v11 = vld [vmem:[%s3110_s1 + $0x90] sm:$0xff]  }
   0x5   :  { %2211 = vmatpush3.bf16.msra.mxu1 %v2283_v3  ;;  %2190 = vmatprep.subr.bf16.mxu0 %v2284_v4  ;;  %v2292_v12 = vld [vmem:[%s3110_s1 + $0x58] sm:$0xff]   ;;  %v2296_v16 = vld [vmem:[%s3110_s1 + $0x60] sm:$0xff]   ;;  %v2300_v20 = vld [vmem:[%s3110_s1 + $0x68] sm:$0xff]   ;;  %v2624_v41 = vsub.s32 %v121_v40, %v2615_v36 }
   0x6   :  { %2212 = vmatprep.subr.bf16.mxu1 %v2285_v5  ;;  %v2293_v13 = vld [vmem:[%s3110_s1 + $0xd8] sm:$0xff]   ;;  %v2297_v17 = vld [vmem:[%s3110_s1 + $0xe0] sm:$0xff]   ;;  %v2301_v21 = vld [vmem:[%s3110_s1 + $0xe8] sm:$0xff]  }
   0x7   :  { %v2294_v14 = vld [vmem:[%s3110_s1 + $0x18] sm:$0xff]   ;;  %v2298_v18 = vld [vmem:[%s3110_s1 + $0x20] sm:$0xff]   ;;  %v2302_v22 = vld [vmem:[%s3110_s1 + $0x28] sm:$0xff]  }
   0x8   :  { %2191 = vmatpush3.bf16.msra.mxu0 %v2286_v6  ;;  %v2295_v15 = vld [vmem:[%s3110_s1 + $0x98] sm:$0xff]   ;;  %v2299_v19 = vld [vmem:[%s3110_s1 + $0xa0] sm:$0xff]   ;;  %v2303_v23 = vld [vmem:[%s3110_s1 + $0xa8] sm:$0xff]  }
   0x9   :  { %2213 = vmatpush3.bf16.msra.mxu1 %v2287_v7  ;;  %2192 = vmatprep.subr.bf16.mxu0 %v2288_v8  ;;  %v2304_v24 = vld [vmem:[%s3110_s1 + $0x70] sm:$0xff]   ;;  %v2308_v28 = vld [vmem:[%s3110_s1 + $0x78] sm:$0xff]   ;;  %v2019_v33 = vld.sshfl [vmem:[%s3109_s0] sm:$0x33 pattern:$0x75316420] }
   0xa   :  { %2214 = vmatprep.subr.bf16.mxu1 %v2289_v9  ;;  %v2305_v25 = vld [vmem:[%s3110_s1 + $0xf0] sm:$0xff]   ;;  %v2309_v29 = vld [vmem:[%s3110_s1 + $0xf8] sm:$0xff]   ;;  %v2312_v37 = vld [vmem:[%s3112_s3 + $0x40] sm:$0xff]   ;;  %v118_v39 = vcombine.high %v2019_v33, %v2019_v33  ;;  %v2631_v44 = vrot.slane %v2019_v33, %v2624_v41 }
   0xb   :  { %v2306_v26 = vld [vmem:[%s3110_s1 + $0x30] sm:$0xff]   ;;  %v2310_v31 = vld [vmem:[%s3110_s1 + $0x38] sm:$0xff]   ;;  %v2313_v38 = vld [vmem:[%s3112_s3 + $0xc0] sm:$0xff]  }
   0xc   :  { %2193 = vmatpush3.bf16.msra.mxu0 %v2290_v10  ;;  %v2307_v27 = vld [vmem:[%s3110_s1 + $0xb0] sm:$0xff]   ;;  %v2311_v32 = vld [vmem:[%s3110_s1 + $0xb8] sm:$0xff]   ;;  %v2314_v42 = vld [vmem:[%s3112_s3] sm:$0xff]   ;;  %v132_v43 = vrot.slane %v118_v39, %v2624_v41  ;;  %v2641_v48 = vcombine.high %v2631_v44, %v2631_v44 }
   0xd   :  { %2215 = vmatpush3.bf16.msra.mxu1 %v2291_v11  ;;  %2194 = vmatprep.subr.bf16.mxu0 %v2292_v12  ;;  %v2315_v45 = vld [vmem:[%s3112_s3 + $0x80] sm:$0xff]   ;;  %v2316_v46 = vld [vmem:[%s3112_s3 + $0x48] sm:$0xff]   ;;  %v2320_v52 = vld [vmem:[%s3112_s3 + $0x50] sm:$0xff]  }
   0xe   :  { %2216 = vmatprep.subr.bf16.mxu1 %v2293_v13  ;;  %363 = vmatprep.mubr.bf16.mxu0 %v132_v43  ;;  %v134_v47 = vcombine.high %v132_v43, %v132_v43  ;;  %v2317_v49 = vld [vmem:[%s3112_s3 + $0xc8] sm:$0xff]   ;;  %v2321_v53 = vld [vmem:[%s3112_s3 + $0xd0] sm:$0xff]   ;;  %v2324_v56 = vld [vmem:[%s3112_s3 + $0x58] sm:$0xff]  }
   0xf   :  { %v2318_v50 = vld [vmem:[%s3112_s3 + $0x8] sm:$0xff]   ;;  %v2322_v54 = vld [vmem:[%s3112_s3 + $0x10] sm:$0xff]   ;;  %v2325_v57 = vld [vmem:[%s3112_s3 + $0xd8] sm:$0xff]  }
  0x10   :  { %2195 = vmatpush3.bf16.msra.mxu0 %v2294_v14  ;;  %403 = vmatprep.mubr.bf16.mxu1 %v134_v47  ;;  %v2319_v51 = vld [vmem:[%s3112_s3 + $0x88] sm:$0xff]   ;;  %v2323_v55 = vld [vmem:[%s3112_s3 + $0x90] sm:$0xff]   ;;  %v2326_v58 = vld [vmem:[%s3112_s3 + $0x18] sm:$0xff]  }
  0x11   :  { %2217 = vmatpush3.bf16.msra.mxu1 %v2295_v15  ;;  %2196 = vmatprep.subr.bf16.mxu0 %v2296_v16  ;;  %v2327_v59 = vld [vmem:[%s3112_s3 + $0x98] sm:$0xff]   ;;  %v2328_v60 = vld [vmem:[%s3112_s3 + $0x60] sm:$0xff]   ;;  %v2332_v0 = vld [vmem:[%s3112_s3 + $0x68] sm:$0xff]  }
  0x12   :  { %2218 = vmatprep.subr.bf16.mxu1 %v2297_v17  ;;  %v2329_v61 = vld [vmem:[%s3112_s3 + $0xe0] sm:$0xff]   ;;  %v2333_v1 = vld [vmem:[%s3112_s3 + $0xe8] sm:$0xff]   ;;  %v2336_v4 = vld [vmem:[%s3112_s3 + $0x70] sm:$0xff]  }
  0x13   :  { %v2330_v62 = vld [vmem:[%s3112_s3 + $0x20] sm:$0xff]   ;;  %v2334_v2 = vld [vmem:[%s3112_s3 + $0x28] sm:$0xff]   ;;  %v2337_v5 = vld [vmem:[%s3112_s3 + $0xf0] sm:$0xff]  }
  0x14   :  { %2197 = vmatpush3.bf16.msra.mxu0 %v2298_v18  ;;  %v2331_v63 = vld [vmem:[%s3112_s3 + $0xa0] sm:$0xff]   ;;  %v2335_v3 = vld [vmem:[%s3112_s3 + $0xa8] sm:$0xff]   ;;  %v2338_v6 = vld [vmem:[%s3112_s3 + $0x30] sm:$0xff]  }
  0x15   :  { %2219 = vmatpush3.bf16.msra.mxu1 %v2299_v19  ;;  %2198 = vmatprep.subr.bf16.mxu0 %v2300_v20  ;;  %v2339_v7 = vld [vmem:[%s3112_s3 + $0xb0] sm:$0xff]   ;;  %v2340_v8 = vld [vmem:[%s3112_s3 + $0x78] sm:$0xff]  }
  0x16   :  { %2220 = vmatprep.subr.bf16.mxu1 %v2301_v21  ;;  %v2341_v9 = vld [vmem:[%s3112_s3 + $0xf8] sm:$0xff]  }
  0x17   :  { %v2342_v10 = vld [vmem:[%s3112_s3 + $0x38] sm:$0xff]  }
  0x18   :  { %2199 = vmatpush3.bf16.msra.mxu0 %v2302_v22  ;;  %v2343_v11 = vld [vmem:[%s3112_s3 + $0xb8] sm:$0xff]  }
  0x19   :  { %2221 = vmatpush3.bf16.msra.mxu1 %v2303_v23  ;;  %2200 = vmatprep.subr.bf16.mxu0 %v2304_v24 }
  0x1a   :  { %2222 = vmatprep.subr.bf16.mxu1 %v2305_v25 }
  0x1c   :  { %2201 = vmatpush3.bf16.msra.mxu0 %v2306_v26 }
  0x1d   :  { %2223 = vmatpush3.bf16.msra.mxu1 %v2307_v27  ;;  %2202 = vmatprep.subr.bf16.mxu0 %v2308_v28 }
  0x1e   :  { %2224 = vmatprep.subr.bf16.mxu1 %v2309_v29 }
  0x20   :  { %2203 = vmatpush3.bf16.msra.mxu0 %v2310_v31 }
  0x21   :  { %2225 = vmatpush3.bf16.msra.mxu1 %v2311_v32  ;;  %2232 = vmatprep.subr.bf16.mxu0 %v2312_v37 }
  0x22   :  { %2254 = vmatprep.subr.bf16.mxu1 %v2313_v38 }
  0x23   :  { %364 = vmatmul.mubr.bf16.vlgmr.msra.gmra.mrb[0].mxu0 %v2631_v44 }
  0x24   :  { %2233 = vmatpush3.bf16.msra.mxu0 %v2314_v42  ;;  %404 = vmatmul.mubr.bf16.vlgmr.msra.gmra.mrb[0].mxu1 %v2641_v48 }
  0x25   :  { %2234 = vmatprep.subr.bf16.mxu0 %v2316_v46  ;;  %2255 = vmatpush3.bf16.msra.mxu1 %v2315_v45 }
  0x26   :  { %706 = vmatprep.mubr.bf16.mxu0 %v132_v43  ;;  %2256 = vmatprep.subr.bf16.mxu1 %v2317_v49 }
  0x27   :  { %746 = vmatprep.mubr.bf16.mxu1 %v134_v47 }
  0x28   :  { %2235 = vmatpush3.bf16.msra.mxu0 %v2318_v50 }
  0x29   :  { %2236 = vmatprep.subr.bf16.mxu0 %v2320_v52  ;;  %2257 = vmatpush3.bf16.msra.mxu1 %v2319_v51 }
  0x2a   :  { %2258 = vmatprep.subr.bf16.mxu1 %v2321_v53 }
  0x2c   :  { %2237 = vmatpush3.bf16.msra.mxu0 %v2322_v54 }
  0x2d   :  { %2238 = vmatprep.subr.bf16.mxu0 %v2324_v56  ;;  %2259 = vmatpush3.bf16.msra.mxu1 %v2323_v55 }
  0x2e   :  { %2260 = vmatprep.subr.bf16.mxu1 %v2325_v57 }
  0x30   :  { %2239 = vmatpush3.bf16.msra.mxu0 %v2326_v58 }
  0x31   :  { %2240 = vmatprep.subr.bf16.mxu0 %v2328_v60  ;;  %2261 = vmatpush3.bf16.msra.mxu1 %v2327_v59 }
  0x32   :  { %2262 = vmatprep.subr.bf16.mxu1 %v2329_v61 }
  0x34   :  { %2241 = vmatpush3.bf16.msra.mxu0 %v2330_v62 }
  0x35   :  { %2242 = vmatprep.subr.bf16.mxu0 %v2332_v0  ;;  %2263 = vmatpush3.bf16.msra.mxu1 %v2331_v63 }
  0x36   :  { %2264 = vmatprep.subr.bf16.mxu1 %v2333_v1 }
  0x38   :  { %2243 = vmatpush3.bf16.msra.mxu0 %v2334_v2 }
  0x39   :  { %2244 = vmatprep.subr.bf16.mxu0 %v2336_v4  ;;  %2265 = vmatpush3.bf16.msra.mxu1 %v2335_v3 }
  0x3a   :  { %2266 = vmatprep.subr.bf16.mxu1 %v2337_v5 }
  0x3c   :  { %2245 = vmatpush3.bf16.msra.mxu0 %v2338_v6 }
  0x3d   :  { %2246 = vmatprep.subr.bf16.mxu0 %v2340_v8  ;;  %2267 = vmatpush3.bf16.msra.mxu1 %v2339_v7 }
  0x3e   :  { %2268 = vmatprep.subr.bf16.mxu1 %v2341_v9 }
  0x40   :  { %2247 = vmatpush3.bf16.msra.mxu0 %v2342_v10 }
  0x41   :  { %2269 = vmatpush3.bf16.msra.mxu1 %v2343_v11 }
  0x43   :  { %707 = vmatmul.mubr.bf16.vlgmr.msra.gmra.mrb[4].mxu0 %v2631_v44 }
  0x44   :  { %747 = vmatmul.mubr.bf16.vlgmr.msra.gmra.mrb[4].mxu1 %v2641_v48 }
  0x45   :  { %18 = vsyncpa [#allocation5], 0  ;;  %v2346_v12 = vld [vmem:[%s3115_s6 + $0x4] ss:$8 sps:$4 sm:$0xff]   ;;  %v2344_v14 = vld [vmem:[%s3115_s6] ss:$8 sps:$4 sm:$0xff]  }
  0x46   :  { %v2349_v13 = vld [vmem:[%s3115_s6 + $0x24] ss:$8 sps:$4 sm:$0xff]   ;;  %v2347_v15 = vld [vmem:[%s3115_s6 + $0x20] ss:$8 sps:$4 sm:$0xff]   ;;  %792 = vmatprep.subr.bf16.mxu0 %v2346_v12  ;;  %v2352_v16 = vld [vmem:[%s3115_s6 + $0x14] ss:$8 sps:$4 sm:$0xff]  }
  0x47   :  { %858 = vmatprep.subr.bf16.mxu1 %v2349_v13  ;;  %793 = vmatpush1.bf16.msra.mxu0 %v2344_v14  ;;  %v2355_v17 = vld [vmem:[%s3115_s6 + $0x34] ss:$8 sps:$4 sm:$0xff]   ;;  %v2350_v18 = vld [vmem:[%s3115_s6 + $0x10] ss:$8 sps:$4 sm:$0xff]   ;;  %v2358_v20 = vld [vmem:[%s3115_s6 + $0x44] ss:$8 sps:$4 sm:$0xff]  }
  0x48   :  { %859 = vmatpush1.bf16.msra.mxu1 %v2347_v15  ;;  %v2353_v19 = vld [vmem:[%s3115_s6 + $0x30] ss:$8 sps:$4 sm:$0xff]   ;;  %794 = vmatprep.subr.bf16.mxu0 %v2352_v16  ;;  %v2453_v21 = vmov 0   ;;  %v2361_v22 = vld [vmem:[%s3115_s6 + $0x64] ss:$8 sps:$4 sm:$0xff]   ;;  %vm757_vm0 = vcmask 254976  }
  0x49   :  { %860 = vmatprep.subr.bf16.mxu1 %v2355_v17  ;;  %824 = vmatprep.mubr.bf16.mxu0 %v2453_v21  ;;  %v2018_v24 = vld [vmem:[%s3111_s2] ss:$0 sm:$0xff]  ;;  %vm788_vm1 = vcmask 261120   ;;  %v2364_v60 = vld [vmem:[%s3115_s6 + $0x54] ss:$8 sps:$4 sm:$0xff]   ;;  %vm1361_vm2 = vcmask 1041408  }
  0x4a   :  { %890 = vmatprep.mubr.bf16.mxu1 %v2453_v21  ;;  %v2052_v38 = vld [vmem:[%s3113_s4] ss:$0 sm:$0xff]  ;;  %v2367_v61 = vld [vmem:[%s3115_s6 + $0x74] ss:$8 sps:$4 sm:$0xff]   ;;  %v2362_v62 = vld [vmem:[%s3115_s6 + $0x50] ss:$8 sps:$4 sm:$0xff]  }
  0x4b   :  { %795 = vmatpush1.bf16.msra.mxu0 %v2350_v18  ;;  %v760_v53 = vld [vmem:[%s3114_s5] sm:$0x3]  ;;  %v2365_v63 = vld [vmem:[%s3115_s6 + $0x70] ss:$8 sps:$4 sm:$0xff]   ;;  %v2370_v0 = vld [vmem:[%s3115_s6 + $0x84] ss:$8 sps:$4 sm:$0xff]  }
  0x4c   :  { %861 = vmatpush1.bf16.msra.mxu1 %v2353_v19  ;;  %924 = vmatprep.subr.bf16.mxu0 %v2358_v20  ;;  %v2356_v57 = vld [vmem:[%s3115_s6 + $0x40] ss:$8 sps:$4 sm:$0xff]   ;;  %v2373_v1 = vld [vmem:[%s3115_s6 + $0xa4] ss:$8 sps:$4 sm:$0xff]   ;;  %v2376_v4 = vld [vmem:[%s3115_s6 + $0x94] ss:$8 sps:$4 sm:$0xff]  }
  0x4d   :  { %990 = vmatprep.subr.bf16.mxu1 %v2361_v22  ;;  %v2359_v58 = vld [vmem:[%s3115_s6 + $0x60] ss:$8 sps:$4 sm:$0xff]   ;;  %v2379_v5 = vld [vmem:[%s3115_s6 + $0xb4] ss:$8 sps:$4 sm:$0xff]   ;;  %v2374_v6 = vld [vmem:[%s3115_s6 + $0x90] ss:$8 sps:$4 sm:$0xff]  }
  0x4e   :  { %v2368_v2 = vld [vmem:[%s3115_s6 + $0x80] ss:$8 sps:$4 sm:$0xff]   ;;  %v2377_v7 = vld [vmem:[%s3115_s6 + $0xb0] ss:$8 sps:$4 sm:$0xff]   ;;  %v2382_v8 = vld [vmem:[%s3115_s6 + $0xc4] ss:$8 sps:$4 sm:$0xff]  }
  0x4f   :  { %v2371_v3 = vld [vmem:[%s3115_s6 + $0xa0] ss:$8 sps:$4 sm:$0xff]   ;;  %v2385_v9 = vld [vmem:[%s3115_s6 + $0xe4] ss:$8 sps:$4 sm:$0xff]   ;;  %v2388_v12 = vld [vmem:[%s3115_s6 + $0xd4] ss:$8 sps:$4 sm:$0xff]  }
  0x50   :  { %v2380_v10 = vld [vmem:[%s3115_s6 + $0xc0] ss:$8 sps:$4 sm:$0xff]   ;;  %v2391_v13 = vld [vmem:[%s3115_s6 + $0xf4] ss:$8 sps:$4 sm:$0xff]   ;;  %v2386_v14 = vld [vmem:[%s3115_s6 + $0xd0] ss:$8 sps:$4 sm:$0xff]  }
  0x51   :  { %v2383_v11 = vld [vmem:[%s3115_s6 + $0xe0] ss:$8 sps:$4 sm:$0xff]   ;;  %v2389_v15 = vld [vmem:[%s3115_s6 + $0xf0] ss:$8 sps:$4 sm:$0xff]   ;;  %v2394_v16 = vld [vmem:[%s3115_s6 + $0x104] ss:$8 sps:$4 sm:$0xff]  }
  0x52   :  { %v2392_v17 = vld [vmem:[%s3115_s6 + $0x100] ss:$8 sps:$4 sm:$0xff]   ;;  %v2397_v18 = vld [vmem:[%s3115_s6 + $0x114] ss:$8 sps:$4 sm:$0xff]   ;;  %v2395_v19 = vld [vmem:[%s3115_s6 + $0x110] ss:$8 sps:$4 sm:$0xff]  }
  0x53   :  { %s2454_s6 = smov [#allocation2]   ;;  %s2455_s3 = smov [#allocation4]  }
  0x54   :  { %s1992_s1 = sshll.u32 %s2454_s6, 4  ;;  %s2002_s30 = sshll.u32 %s2455_s3, 4  ;;  %s1993_s1 = int_to_ptr.vmem [resolvable:$true] %s1992_s1  ;;  %s2903_s30 = int_to_ptr.vmem [resolvable:$true] %s2002_s30 }
  0x55   :  { %s2404_s12 = scalar_lea.vmem %s1993_s1, 32  ;;  %p2409_p1 = scmp.lt.s32.totalorder %s1993_s1, %s1993_s1 }
  0x56   :  { %p2405_p0 = scmp.ne.s32.totalorder %s1993_s1, %s2404_s12  ;;  %p2410_p2 = scmp.lt.s32.totalorder %s2404_s12, %s2404_s12 }
  0x58   :  { %p2411_p3 = por %p2410_p2, %p2409_p1 }
  0x5a   :  { %p2412_p4 = pnand %p2411_p3, %p2405_p0 }
  0xf6   :  { %v2204_v23 = vpop.f32.mrb[0].mxu0 }
  0xf7   :  { %v2205_v25 = vpop.f32.mrb[1].mxu0  ;;  %v2226_v26 = vpop.f32.mrb[0].mxu1 }
  0xf8   :  { %v2206_v27 = vadd.f32 %v2205_v25, %v2204_v23  ;;  %v2207_v28 = vpop.f32.mrb[2].mxu0  ;;  %v2227_v29 = vpop.f32.mrb[1].mxu1 }
  0xf9   :  { %v2208_v30 = vpop.f32.mrb[3].mxu0  ;;  %v2228_v32 = vadd.f32 %v2227_v29, %v2226_v26  ;;  %v2229_v33 = vpop.f32.mrb[2].mxu1 }
  0xfa   :  { %v366_v31 = vadd.f32 %v2206_v27, %v2018_v24  ;;  %v2230_v34 = vpop.f32.mrb[3].mxu1 }
  0xfc   :  { %v406_v35 = vadd.f32 %v2228_v32, %v366_v31 }
  0xfe   :  { %758 = vst.msk [vmem:[#allocation2] sm:$0x3] %vm757_vm0, %v406_v35 }
 0x116   :  { %v2248_v37 = vpop.f32.mrb[4].mxu0 }
 0x117   :  { %v2249_v39 = vpop.f32.mrb[5].mxu0  ;;  %v2270_v40 = vpop.f32.mrb[4].mxu1 }
 0x118   :  { %v2250_v42 = vadd.f32 %v2249_v39, %v2248_v37  ;;  %v2251_v43 = vpop.f32.mrb[6].mxu0  ;;  %v2271_v44 = vpop.f32.mrb[5].mxu1 }
 0x119   :  { %v2252_v45 = vpop.f32.mrb[7].mxu0  ;;  %v2272_v47 = vadd.f32 %v2271_v44, %v2270_v40  ;;  %v2273_v48 = vpop.f32.mrb[6].mxu1 }
 0x11a   :  { %v709_v46 = vadd.f32 %v2250_v42, %v2052_v38  ;;  %v2274_v49 = vpop.f32.mrb[7].mxu1 }
 0x11c   :  { %v749_v50 = vadd.f32 %v2272_v47, %v709_v46 }
 0x11e   :  { %v754_v51 = vmul.f32 0.5, %v749_v50 }
 0x120   :  { %v755_v52 = vmul.f32 1.442695, %v754_v51 }
 0x122   :  { %2398 = vpow2.f32 %v755_v52 }
 0x12c   :  { %v2399_v54 = vpop.eup %2398 }
 0x12d   :  { %v761_v55 = vmul.f32 %v2399_v54, %v760_v53  ;;  %759 = vst.msk [vmem:[#allocation4] sm:$0x3] %vm757_vm0, %v2399_v54 }
 0x12f   :  { %v762_v56 = vadd.f32 %v761_v55, %v406_v35 }
 0x131   :  { %v2777_v59 = vpack.c.bf16 %v762_v56, %v762_v56 }
 0x133   :  { %2089 = vmatmul.mubr.msk.bf16.vlgmr.msra.gmra.mrb[8].mxu0 %vm788_vm1, %v2777_v59  ;;  %2098 = vmatmul.mubr.msk.bf16.vlgmr.msra.gmra.mrb[8].mxu1 %vm788_vm1, %v2777_v59 }
 0x134   :  { %925 = vmatpush1.bf16.msra.mxu0 %v2356_v57  ;;  %991 = vmatpush1.bf16.msra.mxu1 %v2359_v58 }
 0x135   :  { %926 = vmatprep.subr.bf16.mxu0 %v2364_v60  ;;  %992 = vmatprep.subr.bf16.mxu1 %v2367_v61 }
 0x136   :  { %956 = vmatprep.mubr.bf16.mxu0 %v2453_v21  ;;  %1022 = vmatprep.mubr.bf16.mxu1 %v2453_v21 }
 0x138   :  { %927 = vmatpush1.bf16.msra.mxu0 %v2362_v62  ;;  %993 = vmatpush1.bf16.msra.mxu1 %v2365_v63 }
 0x139   :  { %1056 = vmatprep.subr.bf16.mxu0 %v2370_v0  ;;  %1122 = vmatprep.subr.bf16.mxu1 %v2373_v1 }
 0x13b   :  { %2107 = vmatmul.mubr.msk.bf16.vlgmr.msra.gmra.mrb[12].mxu0 %vm788_vm1, %v2777_v59  ;;  %2116 = vmatmul.mubr.msk.bf16.vlgmr.msra.gmra.mrb[12].mxu1 %vm788_vm1, %v2777_v59 }
 0x13c   :  { %1057 = vmatpush1.bf16.msra.mxu0 %v2368_v2  ;;  %1123 = vmatpush1.bf16.msra.mxu1 %v2371_v3 }
 0x13d   :  { %1058 = vmatprep.subr.bf16.mxu0 %v2376_v4  ;;  %1124 = vmatprep.subr.bf16.mxu1 %v2379_v5 }
 0x13e   :  { %1088 = vmatprep.mubr.bf16.mxu0 %v2453_v21  ;;  %1154 = vmatprep.mubr.bf16.mxu1 %v2453_v21 }
 0x140   :  { %1059 = vmatpush1.bf16.msra.mxu0 %v2374_v6  ;;  %1125 = vmatpush1.bf16.msra.mxu1 %v2377_v7 }
 0x141   :  { %1188 = vmatprep.subr.bf16.mxu0 %v2382_v8  ;;  %1254 = vmatprep.subr.bf16.mxu1 %v2385_v9 }
 0x143   :  { %2125 = vmatmul.mubr.msk.bf16.vlgmr.msra.gmra.mrb[16].mxu0 %vm788_vm1, %v2777_v59  ;;  %2134 = vmatmul.mubr.msk.bf16.vlgmr.msra.gmra.mrb[16].mxu1 %vm788_vm1, %v2777_v59 }
 0x144   :  { %1189 = vmatpush1.bf16.msra.mxu0 %v2380_v10  ;;  %1255 = vmatpush1.bf16.msra.mxu1 %v2383_v11 }
 0x145   :  { %1190 = vmatprep.subr.bf16.mxu0 %v2388_v12  ;;  %1256 = vmatprep.subr.bf16.mxu1 %v2391_v13 }
 0x146   :  { %1220 = vmatprep.mubr.bf16.mxu0 %v2453_v21  ;;  %1286 = vmatprep.mubr.bf16.mxu1 %v2453_v21 }
 0x148   :  { %1191 = vmatpush1.bf16.msra.mxu0 %v2386_v14  ;;  %1257 = vmatpush1.bf16.msra.mxu1 %v2389_v15 }
 0x149   :  { %1320 = vmatprep.subr.bf16.mxu0 %v2394_v16 }
 0x14b   :  { %2143 = vmatmul.mubr.msk.bf16.vlgmr.msra.gmra.mrb[20].mxu0 %vm788_vm1, %v2777_v59  ;;  %2152 = vmatmul.mubr.msk.bf16.vlgmr.msra.gmra.mrb[20].mxu1 %vm788_vm1, %v2777_v59 }
 0x14c   :  { %1321 = vmatpush1.bf16.msra.mxu0 %v2392_v17  ;;  %1352 = vmatprep.mubr.bf16.mxu0 %v2453_v21 }
 0x14d   :  { %1322 = vmatprep.subr.bf16.mxu0 %v2397_v18 }
 0x150   :  { %1323 = vmatpush1.bf16.msra.mxu0 %v2395_v19 }
 0x153   :  { %2161 = vmatmul.mubr.msk.bf16.vlgmr.msra.gmra.mrb[24].mxu0 %vm788_vm1, %v2777_v59 }
 0x206   :  { %v2876_v20 = vpop.f32.mrb[8].mxu0  ;;  %v2878_v22 = vpop.f32.mrb[8].mxu1 }
 0x207   :  { %v1362_v23 = vsel %vm1361_vm2, %v2876_v20, 0.0  ;;  %v1506_v24 = vmul.f32 %v2876_v20, %v2876_v20  ;;  %v1378_v25 = vsel %vm1361_vm2, %v2878_v22, 0.0  ;;  %v1524_v21 = vmul.f32 %v2878_v22, %v2878_v22  ;;  %v2888_v26 = vpop.f32.mrb[9].mxu0  ;;  %v2890_v27 = vpop.f32.mrb[9].mxu1 }
 0x208   :  { %v1363_v28 = vrot.slane %v1362_v23, 4  ;;  %v1379_v29 = vrot.slane %v1378_v25, 4  ;;  %v1369_v30 = vsel %vm1361_vm2, %v2888_v26, 0.0  ;;  %v1507_v31 = vmul.f32 %v2888_v26, %v2888_v26  ;;  %v830_v32 = vpop.f32.mrb[10].mxu0  ;;  %v896_v33 = vpop.f32.mrb[10].mxu1 }
 0x209   :  { %v1508_v34 = vsel %vm1361_vm2, %v1506_v24, 0.0  ;;  %v1526_v35 = vsel %vm1361_vm2, %v1524_v21, 0.0  ;;  %v1370_v37 = vrot.slane %v1369_v30, 4  ;;  %v1385_v38 = vsel %vm1361_vm2, %v2890_v27, 0.0  ;;  %v831_v39 = vpop.f32.mrb[11].mxu0  ;;  %v897_v40 = vpop.f32.mrb[11].mxu1 }
 0x20a   :  { %v1364_v42 = vadd.f32 %v1363_v28, %v1362_v23  ;;  %v1509_v43 = vrot.slane %v1508_v34, 4  ;;  %v1380_v44 = vadd.f32 %v1379_v29, %v1378_v25  ;;  %v1527_v45 = vrot.slane %v1526_v35, 4 }
 0x20b   :  { %v1371_v46 = vadd.f32 %v1370_v37, %v1369_v30  ;;  %v1515_v47 = vsel %vm1361_vm2, %v1507_v31, 0.0  ;;  %v1386_v48 = vrot.slane %v1385_v38, 4  ;;  %v1525_v49 = vmul.f32 %v2890_v27, %v2890_v27 }
 0x20c   :  { %v1365_v50 = vrot.slane %v1364_v42, 2  ;;  %v1510_v51 = vadd.f32 %v1509_v43, %v1508_v34  ;;  %v1381_v52 = vrot.slane %v1380_v44, 2  ;;  %v1528_v53 = vadd.f32 %v1527_v45, %v1526_v35 }
 0x20d   :  { %v1372_v54 = vrot.slane %v1371_v46, 2  ;;  %v1516_v55 = vrot.slane %v1515_v47, 4  ;;  %v1387_v56 = vadd.f32 %v1386_v48, %v1385_v38  ;;  %v1533_v57 = vsel %vm1361_vm2, %v1525_v49, 0.0 }
 0x20e   :  { %2415 = shalt.err (!%p2412_p4)
}
 0x20f   :  { %s2416_s14 = scalar_lea.hbm %s3118_s9, 32 }
 0x210   :  { %p2417_p5 = scmp.ne.s32.totalorder %s3118_s9, %s2416_s14  ;;  %p2420_p6 = scmp.lt.u32.totalorder %s2416_s14, %s3118_s9 }
 0x212   :  { %p2422_p7 = pnand %p2420_p6, %p2417_p5 }
 0x214   :  { %2425 = shalt.err (!%p2422_p7)
}
 0x215   :  { %1995 = dma.vmem_to_hbm [thread:$0]  %s1993_s1, 32, %s3118_s9, [#allocation3]   ;;  %v1366_v58 = vadd.f32 %v1365_v50, %v1364_v42  ;;  %v1511_v59 = vrot.slane %v1510_v51, 2  ;;  %v1382_v60 = vadd.f32 %v1381_v52, %v1380_v44  ;;  %v1529_v61 = vrot.slane %v1528_v53, 2  ;;  %v2918_v62 = vpop.f32.mrb[12].mxu0  ;;  %v2920_v63 = vpop.f32.mrb[12].mxu1 }
 0x216   :  { %s2426_s21 = scalar_lea.vmem %s2903_s30, 32  ;;  %p2431_p9 = scmp.lt.s32.totalorder %s2903_s30, %s2903_s30 }
 0x217   :  { %p2427_p8 = scmp.ne.s32.totalorder %s2903_s30, %s2426_s21  ;;  %p2432_p10 = scmp.lt.s32.totalorder %s2426_s21, %s2426_s21 }
 0x219   :  { %p2433_p11 = por %p2432_p10, %p2431_p9 }
 0x21b   :  { %p2434_p12 = pnand %p2433_p11, %p2427_p8 }
 0x21d   :  { %2437 = shalt.err (!%p2434_p12)
}
 0x21e   :  { %s2438_s9 = scalar_lea.hbm %s3119_s10, 32 }
 0x21f   :  { %p2439_p13 = scmp.ne.s32.totalorder %s3119_s10, %s2438_s9  ;;  %p2442_p0 = scmp.lt.u32.totalorder %s2438_s9, %s3119_s10 }
 0x221   :  { %p2444_p1 = pnand %p2442_p0, %p2439_p13 }
 0x223   :  { %2447 = shalt.err (!%p2444_p1)
}
 0x224   :  { %2005 = dma.vmem_to_hbm [thread:$0]  %s2903_s30, 32, %s3119_s10, [#allocation5]   ;;  %v1373_v0 = vadd.f32 %v1372_v54, %v1371_v46  ;;  %v1517_v1 = vadd.f32 %v1516_v55, %v1515_v47  ;;  %v1388_v2 = vrot.slane %v1387_v56, 2  ;;  %v1534_v3 = vrot.slane %v1533_v57, 4  ;;  %v2939_v4 = vpop.f32.mrb[13].mxu0  ;;  %v2941_v5 = vpop.f32.mrb[13].mxu1 }
 0x225   :  { %v1367_v6 = vrot.slane %v1366_v58, 1  ;;  %v1512_v7 = vadd.f32 %v1511_v59, %v1510_v51  ;;  %v1383_v8 = vrot.slane %v1382_v60, 1  ;;  %v1530_v9 = vadd.f32 %v1529_v61, %v1528_v53  ;;  %v962_v10 = vpop.f32.mrb[14].mxu0  ;;  %v1028_v11 = vpop.f32.mrb[14].mxu1 }
 0x226   :  { %v1374_v12 = vrot.slane %v1373_v0, 1  ;;  %v1518_v13 = vrot.slane %v1517_v1, 2  ;;  %v1389_v14 = vadd.f32 %v1388_v2, %v1387_v56  ;;  %v1535_v15 = vadd.f32 %v1534_v3, %v1533_v57  ;;  %v963_v16 = vpop.f32.mrb[15].mxu0  ;;  %v1029_v17 = vpop.f32.mrb[15].mxu1 }
 0x227   :  { %v1368_v18 = vadd.f32 %v1367_v6, %v1366_v58  ;;  %v1513_v19 = vrot.slane %v1512_v7, 1  ;;  %v1384_v23 = vadd.f32 %v1383_v8, %v1382_v60  ;;  %v1531_v24 = vrot.slane %v1530_v9, 1  ;;  %v2955_v44 = vpop.f32.mrb[16].mxu0  ;;  %v2957_v45 = vpop.f32.mrb[16].mxu1 }
 0x228   :  { %v1375_v25 = vadd.f32 %v1374_v12, %v1373_v0  ;;  %v1519_v21 = vadd.f32 %v1518_v13, %v1517_v1  ;;  %v1390_v28 = vrot.slane %v1389_v14, 1  ;;  %v1536_v29 = vrot.slane %v1535_v15, 2  ;;  %v2961_v50 = vpop.f32.mrb[17].mxu0  ;;  %v2963_v51 = vpop.f32.mrb[17].mxu1 }
 0x229   :  { %v1514_v30 = vadd.f32 %v1513_v19, %v1512_v7  ;;  %v2943_v31 = vadd.f32 %v1384_v23, %v1368_v18  ;;  %v1532_v32 = vadd.f32 %v1531_v24, %v1530_v9  ;;  %v1394_v33 = vsel %vm1361_vm2, %v2918_v62, 0.0  ;;  %v1094_v56 = vpop.f32.mrb[18].mxu0  ;;  %v1160_v57 = vpop.f32.mrb[18].mxu1 }
 0x22a   :  { %v1520_v34 = vrot.slane %v1519_v21, 1  ;;  %v1391_v35 = vadd.f32 %v1390_v28, %v1389_v14  ;;  %v1537_v37 = vadd.f32 %v1536_v29, %v1535_v15  ;;  %v1395_v38 = vrot.slane %v1394_v33, 4  ;;  %v1095_v0 = vpop.f32.mrb[19].mxu0  ;;  %v1161_v1 = vpop.f32.mrb[19].mxu1 }
 0x22b   :  { %v2947_v39 = vadd.f32 %v1532_v32, %v1514_v30  ;;  %v1542_v40 = vmul.f32 %v2918_v62, %v2918_v62  ;;  %v1410_v42 = vsel %vm1361_vm2, %v2920_v63, 0.0  ;;  %v1560_v43 = vmul.f32 %v2920_v63, %v2920_v63  ;;  %v2978_v28 = vpop.f32.mrb[20].mxu0  ;;  %v2980_v29 = vpop.f32.mrb[20].mxu1 }
 0x22c   :  { %v1521_v46 = vadd.f32 %v1520_v34, %v1519_v21  ;;  %v2959_v47 = vadd.f32 %v1391_v35, %v1375_v25  ;;  %v1538_v48 = vrot.slane %v1537_v37, 1  ;;  %v1396_v49 = vadd.f32 %v1395_v38, %v1394_v33  ;;  %v2982_v35 = vpop.f32.mrb[21].mxu0 }
 0x22d   :  { %v1544_v52 = vsel %vm1361_vm2, %v1542_v40, 0.0  ;;  %v1411_v53 = vrot.slane %v1410_v42, 4  ;;  %v1562_v54 = vsel %vm1361_vm2, %v1560_v43, 0.0  ;;  %v1401_v55 = vsel %vm1361_vm2, %v2939_v4, 0.0 }
 0x22e   :  { %v1539_v58 = vadd.f32 %v1538_v48, %v1537_v37  ;;  %v1397_v59 = vrot.slane %v1396_v49, 2  ;;  %v1545_v60 = vrot.slane %v1544_v52, 4  ;;  %v1563_v61 = vrot.slane %v1562_v54, 4  ;;  %v2984_v37 = vpop.f32.mrb[21].mxu1 }
 0x22f   :  { %v1412_v2 = vadd.f32 %v1411_v53, %v1410_v42  ;;  %v1402_v3 = vrot.slane %v1401_v55, 4  ;;  %v1543_v6 = vmul.f32 %v2939_v4, %v2939_v4  ;;  %v1417_v7 = vsel %vm1361_vm2, %v2941_v5, 0.0  ;;  %v1292_v48 = vpop.f32.mrb[22].mxu1 }
 0x230   :  { %v2973_v8 = vadd.f32 %v1539_v58, %v1521_v46  ;;  %v1398_v9 = vadd.f32 %v1397_v59, %v1396_v49  ;;  %v1546_v10 = vadd.f32 %v1545_v60, %v1544_v52  ;;  %v1564_v11 = vadd.f32 %v1563_v61, %v1562_v54  ;;  %v1226_v46 = vpop.f32.mrb[22].mxu0  ;;  %v1293_v56 = vpop.f32.mrb[23].mxu1 }
 0x231   :  { %v1413_v12 = vrot.slane %v1412_v2, 2  ;;  %v1403_v13 = vadd.f32 %v1402_v3, %v1401_v55  ;;  %v1551_v14 = vsel %vm1361_vm2, %v1543_v6, 0.0  ;;  %v1418_v15 = vrot.slane %v1417_v7, 4  ;;  %v1227_v55 = vpop.f32.mrb[23].mxu0 }
 0x232   :  { %v1399_v16 = vrot.slane %v1398_v9, 1  ;;  %v1547_v17 = vrot.slane %v1546_v10, 2  ;;  %v1565_v18 = vrot.slane %v1564_v11, 2  ;;  %v1552_v19 = vrot.slane %v1551_v14, 4 }
 0x233   :  { %v1414_v23 = vadd.f32 %v1413_v12, %v1412_v2  ;;  %v1404_v24 = vrot.slane %v1403_v13, 2  ;;  %v1419_v25 = vadd.f32 %v1418_v15, %v1417_v7  ;;  %v1561_v21 = vmul.f32 %v2941_v5, %v2941_v5 }
 0x234   :  { %v1400_v30 = vadd.f32 %v1399_v16, %v1398_v9  ;;  %v1548_v32 = vadd.f32 %v1547_v17, %v1546_v10  ;;  %v1566_v33 = vadd.f32 %v1565_v18, %v1564_v11  ;;  %v1553_v34 = vadd.f32 %v1552_v19, %v1551_v14  ;;  %v2996_v17 = vpop.f32.mrb[24].mxu0 }
 0x235   :  { %v1415_v38 = vrot.slane %v1414_v23, 1  ;;  %v1405_v40 = vadd.f32 %v1404_v24, %v1403_v13  ;;  %v1420_v42 = vrot.slane %v1419_v25, 2  ;;  %v1569_v43 = vsel %vm1361_vm2, %v1561_v21, 0.0 }
 0x236   :  { %v1408_v49 = vadd.f32 %v1400_v30, %v2943_v31  ;;  %v1549_v52 = vrot.slane %v1548_v32, 1  ;;  %v1567_v53 = vrot.slane %v1566_v33, 1  ;;  %v1554_v54 = vrot.slane %v1553_v34, 2 }
 0x237   :  { %v1416_v57 = vadd.f32 %v1415_v38, %v1414_v23  ;;  %v1406_v58 = vrot.slane %v1405_v40, 1  ;;  %v1421_v59 = vadd.f32 %v1420_v42, %v1419_v25  ;;  %v1570_v60 = vrot.slane %v1569_v43, 4 }
 0x238   :  { %v1550_v61 = vadd.f32 %v1549_v52, %v1548_v32  ;;  %v1568_v0 = vadd.f32 %v1567_v53, %v1566_v33  ;;  %v1555_v1 = vadd.f32 %v1554_v54, %v1553_v34  ;;  %v1426_v2 = vsel %vm1361_vm2, %v2955_v44, 0.0 }
 0x239   :  { %v1424_v3 = vadd.f32 %v1416_v57, %v1408_v49  ;;  %v1407_v6 = vadd.f32 %v1406_v58, %v1405_v40  ;;  %v1422_v7 = vrot.slane %v1421_v59, 1  ;;  %v1571_v9 = vadd.f32 %v1570_v60, %v1569_v43 }
 0x23a   :  { %v1558_v31 = vadd.f32 %v1550_v61, %v2947_v39  ;;  %v1556_v10 = vrot.slane %v1555_v1, 1  ;;  %v1427_v11 = vrot.slane %v1426_v2, 4  ;;  %v1578_v12 = vmul.f32 %v2955_v44, %v2955_v44  ;;  %v2999_v39 = vpop.f32.mrb[25].mxu0 }
 0x23b   :  { %v1409_v13 = vadd.f32 %v1407_v6, %v2959_v47  ;;  %v1423_v14 = vadd.f32 %v1422_v7, %v1421_v59  ;;  %v1572_v15 = vrot.slane %v1571_v9, 2  ;;  %v1442_v16 = vsel %vm1361_vm2, %v2957_v45, 0.0  ;;  %v1358_v33 = vpop.f32.mrb[26].mxu0 }
 0x23c   :  { %v1576_v18 = vadd.f32 %v1568_v0, %v1558_v31  ;;  %v1557_v19 = vadd.f32 %v1556_v10, %v1555_v1  ;;  %v1428_v23 = vadd.f32 %v1427_v11, %v1426_v2  ;;  %v1580_v24 = vsel %vm1361_vm2, %v1578_v12, 0.0  ;;  %v1359_v42 = vpop.f32.mrb[27].mxu0 }
 0x23d   :  { %v1425_v25 = vadd.f32 %v1423_v14, %v1409_v13  ;;  %v1573_v21 = vadd.f32 %v1572_v15, %v1571_v9  ;;  %v1581_v30 = vrot.slane %v1580_v24, 4  ;;  %v1443_v32 = vrot.slane %v1442_v16, 4 }
 0x23e   :  { %v1559_v47 = vadd.f32 %v1557_v19, %v2973_v8  ;;  %v1429_v34 = vrot.slane %v1428_v23, 2  ;;  %v1596_v38 = vmul.f32 %v2957_v45, %v2957_v45  ;;  %v1433_v40 = vsel %vm1361_vm2, %v2961_v50, 0.0 }
 0x23f   :  { %v1574_v43 = vrot.slane %v1573_v21, 1  ;;  %v1582_v46 = vadd.f32 %v1581_v30, %v1580_v24  ;;  %v1444_v48 = vadd.f32 %v1443_v32, %v1442_v16  ;;  %v1434_v49 = vrot.slane %v1433_v40, 4 }
 0x240   :  { %v1430_v52 = vadd.f32 %v1429_v34, %v1428_v23  ;;  %v1598_v53 = vsel %vm1361_vm2, %v1596_v38, 0.0  ;;  %v1579_v54 = vmul.f32 %v2961_v50, %v2961_v50  ;;  %v1449_v8 = vsel %vm1361_vm2, %v2963_v51, 0.0 }
 0x241   :  { %v1575_v55 = vadd.f32 %v1574_v43, %v1573_v21  ;;  %v1583_v56 = vrot.slane %v1582_v46, 2  ;;  %v1445_v57 = vrot.slane %v1444_v48, 2  ;;  %v1599_v58 = vrot.slane %v1598_v53, 4 }
 0x242   :  { %v1431_v59 = vrot.slane %v1430_v52, 1  ;;  %v1435_v60 = vadd.f32 %v1434_v49, %v1433_v40  ;;  %v1587_v61 = vsel %vm1361_vm2, %v1579_v54, 0.0  ;;  %v1450_v0 = vrot.slane %v1449_v8, 4 }
 0x243   :  { %v1577_v1 = vadd.f32 %v1575_v55, %v1559_v47  ;;  %v1584_v2 = vadd.f32 %v1583_v56, %v1582_v46  ;;  %v1446_v6 = vadd.f32 %v1445_v57, %v1444_v48  ;;  %v1600_v7 = vadd.f32 %v1599_v58, %v1598_v53 }
 0x244   :  { %v1432_v9 = vadd.f32 %v1431_v59, %v1430_v52  ;;  %v1436_v31 = vrot.slane %v1435_v60, 2  ;;  %v1588_v10 = vrot.slane %v1587_v61, 4  ;;  %v1451_v11 = vadd.f32 %v1450_v0, %v1449_v8 }
 0x245   :  { %v1585_v12 = vrot.slane %v1584_v2, 1  ;;  %v1447_v13 = vrot.slane %v1446_v6, 1  ;;  %v1601_v14 = vrot.slane %v1600_v7, 2  ;;  %v1597_v15 = vmul.f32 %v2963_v51, %v2963_v51 }
 0x246   :  { %v1440_v16 = vadd.f32 %v1432_v9, %v1424_v3  ;;  %v1437_v19 = vadd.f32 %v1436_v31, %v1435_v60  ;;  %v1589_v23 = vadd.f32 %v1588_v10, %v1587_v61  ;;  %v1452_v24 = vrot.slane %v1451_v11, 2 }
 0x247   :  { %v1586_v21 = vadd.f32 %v1585_v12, %v1584_v2  ;;  %v1448_v30 = vadd.f32 %v1447_v13, %v1446_v6  ;;  %v1602_v32 = vadd.f32 %v1601_v14, %v1600_v7  ;;  %v1605_v33 = vsel %vm1361_vm2, %v1597_v15, 0.0 }
 0x248   :  { %v1438_v47 = vrot.slane %v1437_v19, 1  ;;  %v1590_v34 = vrot.slane %v1589_v23, 2  ;;  %v1453_v38 = vadd.f32 %v1452_v24, %v1451_v11  ;;  %v1606_v40 = vrot.slane %v1605_v33, 4 }
 0x249   :  { %v1594_v42 = vadd.f32 %v1586_v21, %v1576_v18  ;;  %v1456_v43 = vadd.f32 %v1448_v30, %v1440_v16  ;;  %v1603_v46 = vrot.slane %v1602_v32, 1  ;;  %v1458_v48 = vsel %vm1361_vm2, %v2978_v28, 0.0 }
 0x24a   :  { %v1439_v49 = vadd.f32 %v1438_v47, %v1437_v19  ;;  %v1591_v3 = vadd.f32 %v1590_v34, %v1589_v23  ;;  %v1454_v52 = vrot.slane %v1453_v38, 1  ;;  %v1607_v53 = vadd.f32 %v1606_v40, %v1605_v33 }
 0x24b   :  { %v1604_v54 = vadd.f32 %v1603_v46, %v1602_v32  ;;  %v1459_v8 = vrot.slane %v1458_v48, 4  ;;  %v1614_v55 = vmul.f32 %v2978_v28, %v2978_v28  ;;  %v1474_v56 = vsel %vm1361_vm2, %v2980_v29, 0.0 }
 0x24c   :  { %v1441_v57 = vadd.f32 %v1439_v49, %v1425_v25  ;;  %v1592_v58 = vrot.slane %v1591_v3, 1  ;;  %v1455_v18 = vadd.f32 %v1454_v52, %v1453_v38  ;;  %v1608_v59 = vrot.slane %v1607_v53, 2 }
 0x24d   :  { %v1612_v60 = vadd.f32 %v1604_v54, %v1594_v42  ;;  %v1460_v61 = vadd.f32 %v1459_v8, %v1458_v48  ;;  %v1616_v0 = vsel %vm1361_vm2, %v1614_v55, 0.0  ;;  %v1475_v2 = vrot.slane %v1474_v56, 4 }
 0x24e   :  { %v1593_v6 = vadd.f32 %v1592_v58, %v1591_v3  ;;  %v1457_v7 = vadd.f32 %v1455_v18, %v1441_v57  ;;  %v1609_v9 = vadd.f32 %v1608_v59, %v1607_v53  ;;  %v1617_v31 = vrot.slane %v1616_v0, 4 }
 0x24f   :  { %v1461_v10 = vrot.slane %v1460_v61, 2  ;;  %v1476_v11 = vadd.f32 %v1475_v2, %v1474_v56  ;;  %v1632_v12 = vmul.f32 %v2980_v29, %v2980_v29  ;;  %v1465_v25 = vsel %vm1361_vm2, %v2982_v35, 0.0 }
 0x250   :  { %v1595_v13 = vadd.f32 %v1593_v6, %v1577_v1  ;;  %v1610_v14 = vrot.slane %v1609_v9, 1  ;;  %v1618_v15 = vadd.f32 %v1617_v31, %v1616_v0  ;;  %v1466_v16 = vrot.slane %v1465_v25, 4 }
 0x251   :  { %v1462_v19 = vadd.f32 %v1461_v10, %v1460_v61  ;;  %v1477_v23 = vrot.slane %v1476_v11, 2  ;;  %v1634_v24 = vsel %vm1361_vm2, %v1632_v12, 0.0  ;;  %v1615_v21 = vmul.f32 %v2982_v35, %v2982_v35 }
 0x252   :  { %v1611_v30 = vadd.f32 %v1610_v14, %v1609_v9  ;;  %v1619_v32 = vrot.slane %v1618_v15, 2  ;;  %v1635_v33 = vrot.slane %v1634_v24, 4  ;;  %v1467_v47 = vadd.f32 %v1466_v16, %v1465_v25 }
 0x253   :  { %v1463_v34 = vrot.slane %v1462_v19, 1  ;;  %v1478_v38 = vadd.f32 %v1477_v23, %v1476_v11  ;;  %v1623_v40 = vsel %vm1361_vm2, %v1615_v21, 0.0  ;;  %v1481_v1 = vsel %vm1361_vm2, %v2984_v37, 0.0 }
 0x254   :  { %v1613_v42 = vadd.f32 %v1611_v30, %v1595_v13  ;;  %v1620_v46 = vadd.f32 %v1619_v32, %v1618_v15  ;;  %v1636_v48 = vadd.f32 %v1635_v33, %v1634_v24  ;;  %v1468_v49 = vrot.slane %v1467_v47, 2 }
 0x255   :  { %v1464_v3 = vadd.f32 %v1463_v34, %v1462_v19  ;;  %v1479_v52 = vrot.slane %v1478_v38, 1  ;;  %v1624_v53 = vrot.slane %v1623_v40, 4  ;;  %v1482_v54 = vrot.slane %v1481_v1, 4 }
 0x256   :  { %v1621_v8 = vrot.slane %v1620_v46, 1  ;;  %v1637_v55 = vrot.slane %v1636_v48, 2  ;;  %v1469_v56 = vadd.f32 %v1468_v49, %v1467_v47  ;;  %v1633_v57 = vmul.f32 %v2984_v37, %v2984_v37 }
 0x257   :  { %v1472_v58 = vadd.f32 %v1464_v3, %v1456_v43  ;;  %v1480_v18 = vadd.f32 %v1479_v52, %v1478_v38  ;;  %v1625_v59 = vadd.f32 %v1624_v53, %v1623_v40  ;;  %v1483_v61 = vadd.f32 %v1482_v54, %v1481_v1 }
 0x258   :  { %v1622_v0 = vadd.f32 %v1621_v8, %v1620_v46  ;;  %v1638_v2 = vadd.f32 %v1637_v55, %v1636_v48  ;;  %v1470_v6 = vrot.slane %v1469_v56, 1  ;;  %v1641_v9 = vsel %vm1361_vm2, %v1633_v57, 0.0 }
 0x259   :  { %v1488_v31 = vadd.f32 %v1480_v18, %v1472_v58  ;;  %v1626_v10 = vrot.slane %v1625_v59, 2  ;;  %v1484_v11 = vrot.slane %v1483_v61, 2  ;;  %v1642_v12 = vrot.slane %v1641_v9, 4 }
 0x25a   :  { %v1630_v25 = vadd.f32 %v1622_v0, %v1612_v60  ;;  %v1639_v13 = vrot.slane %v1638_v2, 1  ;;  %v1471_v14 = vadd.f32 %v1470_v6, %v1469_v56  ;;  %v1490_v15 = vsel %vm1361_vm2, %v2996_v17, 0.0 }
 0x25b   :  { %v1627_v16 = vadd.f32 %v1626_v10, %v1625_v59  ;;  %v1485_v43 = vadd.f32 %v1484_v11, %v1483_v61  ;;  %v1643_v19 = vadd.f32 %v1642_v12, %v1641_v9  ;;  %v1491_v23 = vrot.slane %v1490_v15, 4 }
 0x25c   :  { %v1640_v24 = vadd.f32 %v1639_v13, %v1638_v2  ;;  %v1473_v21 = vadd.f32 %v1471_v14, %v1457_v7  ;;  %v1650_v30 = vmul.f32 %v2996_v17, %v2996_v17  ;;  %v1497_v32 = vsel %vm1361_vm2, %v2999_v39, 0.0 }
 0x25d   :  { %v1628_v33 = vrot.slane %v1627_v16, 1  ;;  %v1486_v47 = vrot.slane %v1485_v43, 1  ;;  %v1644_v60 = vrot.slane %v1643_v19, 2  ;;  %v1492_v34 = vadd.f32 %v1491_v23, %v1490_v15 }
 0x25e   :  { %v1648_v38 = vadd.f32 %v1640_v24, %v1630_v25  ;;  %v1652_v40 = vsel %vm1361_vm2, %v1650_v30, 0.0  ;;  %v1498_v1 = vrot.slane %v1497_v32, 4  ;;  %v1651_v46 = vmul.f32 %v2999_v39, %v2999_v39 }
 0x25f   :  { %v1629_v48 = vadd.f32 %v1628_v33, %v1627_v16  ;;  %v1487_v49 = vadd.f32 %v1486_v47, %v1485_v43  ;;  %v1645_v7 = vadd.f32 %v1644_v60, %v1643_v19  ;;  %v1493_v3 = vrot.slane %v1492_v34, 2 }
 0x260   :  { %v1653_v52 = vrot.slane %v1652_v40, 4  ;;  %v1499_v53 = vadd.f32 %v1498_v1, %v1497_v32  ;;  %v1659_v54 = vsel %vm1361_vm2, %v1651_v46, 0.0 }
 0x261   :  { %v1631_v8 = vadd.f32 %v1629_v48, %v1613_v42  ;;  %v1489_v55 = vadd.f32 %v1487_v49, %v1473_v21  ;;  %v1646_v56 = vrot.slane %v1645_v7, 1  ;;  %v1494_v57 = vadd.f32 %v1493_v3, %v1492_v34 }
 0x262   :  { %v1654_v58 = vadd.f32 %v1653_v52, %v1652_v40  ;;  %v1500_v18 = vrot.slane %v1499_v53, 2  ;;  %v1660_v59 = vrot.slane %v1659_v54, 4  ;;  %v1684_v49 = vsub.s32 0, %v2615_v36 }
 0x263   :  { %v1647_v61 = vadd.f32 %v1646_v56, %v1645_v7  ;;  %v1495_v0 = vrot.slane %v1494_v57, 1  ;;  %v1680_v7 = vld [vmem:[%s3116_s7] sm:$0x3] }
 0x264   :  { %v1655_v2 = vrot.slane %v1654_v58, 2  ;;  %v1501_v6 = vadd.f32 %v1500_v18, %v1499_v53  ;;  %v1661_v9 = vadd.f32 %v1660_v59, %v1659_v54  ;;  %v1685_v3 = vrot.slane %v1680_v7, %v1684_v49 }
 0x265   :  { %v1649_v10 = vadd.f32 %v1647_v61, %v1631_v8  ;;  %v1496_v11 = vadd.f32 %v1495_v0, %v1494_v57 }
 0x266   :  { %v1656_v12 = vadd.f32 %v1655_v2, %v1654_v58  ;;  %v1502_v25 = vrot.slane %v1501_v6, 1  ;;  %v1662_v13 = vrot.slane %v1661_v9, 2 }
 0x267   :  { %v1504_v14 = vadd.f32 %v1496_v11, %v1488_v31 }
 0x268   :  { %v1657_v15 = vrot.slane %v1656_v12, 1  ;;  %v1503_v16 = vadd.f32 %v1502_v25, %v1501_v6  ;;  %v1663_v42 = vadd.f32 %v1662_v13, %v1661_v9 }
 0x269   :  { %v1668_v43 = vmul.f32 0.055555556, %v1504_v14 }
 0x26a   :  { %v1658_v19 = vadd.f32 %v1657_v15, %v1656_v12  ;;  %v1505_v23 = vadd.f32 %v1503_v16, %v1489_v55  ;;  %v1664_v24 = vrot.slane %v1663_v42, 1 }
 0x26b   :  { %v1672_v30 = vmul.f32 %v1668_v43, %v1668_v43 }
 0x26c   :  { %v1666_v21 = vadd.f32 %v1658_v19, %v1648_v38  ;;  %v1665_v32 = vadd.f32 %v1664_v24, %v1663_v42  ;;  %v1669_v33 = vmul.f32 0.055555556, %v1505_v23  ;;  %v1688_v38 = vsub.s32 1, %v2615_v36 }
 0x26e   :  { %v1670_v47 = vmul.f32 0.055555556, %v1666_v21  ;;  %v1667_v60 = vadd.f32 %v1665_v32, %v1649_v10  ;;  %v1673_v34 = vmul.f32 %v1669_v33, %v1669_v33  ;;  %v1689_v52 = vrot.slane %v1680_v7, %v1688_v38 }
 0x270   :  { %v1674_v40 = vsub.f32 %v1670_v47, %v1672_v30  ;;  %v1671_v1 = vmul.f32 0.055555556, %v1667_v60 }
 0x272   :  { %v1676_v46 = vadd.f32 1e-05, %v1674_v40  ;;  %v1675_v48 = vsub.f32 %v1671_v1, %v1673_v34 }
 0x274   :  { %2400 = vrsqrt.f32 %v1676_v46  ;;  %v1677_v31 = vadd.f32 1e-05, %v1675_v48 }
 0x276   :  { %2402 = vrsqrt.f32 %v1677_v31 }
 0x27e   :  { %v2401_v53 = vpop.eup %2400 }
 0x27f   :  { %v1692_v54 = vmul.f32 %v2401_v53, %v1685_v3 }
 0x280   :  { %v2403_v8 = vpop.eup %2402 }
 0x281   :  { %v1695_v55 = vmul.f32 %v1692_v54, %v1668_v43  ;;  %v1719_v56 = vrot.slane %v1692_v54, %v1684_v49  ;;  %v1693_v57 = vmul.f32 %v2403_v8, %v1689_v52 }
 0x283   :  { %v1724_v58 = vmul.f32 %v1719_v56, %v2876_v20  ;;  %v1762_v18 = vmul.f32 %v1719_v56, %v2878_v22  ;;  %v1790_v59 = vmul.f32 %v1719_v56, %v2918_v62  ;;  %v1818_v61 = vmul.f32 %v1719_v56, %v2920_v63 }
 0x284   :  { %v1846_v0 = vmul.f32 %v1719_v56, %v2955_v44  ;;  %v1874_v36 = vmul.f32 %v1719_v56, %v2957_v45  ;;  %v1902_v2 = vmul.f32 %v1719_v56, %v2978_v28  ;;  %v1930_v6 = vmul.f32 %v1719_v56, %v2980_v29 }
 0x285   :  { %v1958_v9 = vmul.f32 %v1719_v56, %v2996_v17  ;;  %v1696_v10 = vmul.f32 %v1693_v57, %v1669_v33  ;;  %v1723_v11 = vrot.slane %v1693_v57, %v1684_v49 }
 0x287   :  { %v1699_v12 = vcombine.low %v1695_v55, %v1696_v10  ;;  %v1725_v20 = vmul.f32 %v1723_v11, %v2888_v26  ;;  %v1763_v22 = vmul.f32 %v1723_v11, %v2890_v27  ;;  %v1791_v62 = vmul.f32 %v1723_v11, %v2939_v4  ;;  %v1694_v26 = vld [vmem:[%s3117_s8] sm:$0x3] }
 0x288   :  { %v1819_v63 = vmul.f32 %v1723_v11, %v2941_v5  ;;  %v1847_v44 = vmul.f32 %v1723_v11, %v2961_v50  ;;  %v1875_v45 = vmul.f32 %v1723_v11, %v2963_v51  ;;  %v1903_v28 = vmul.f32 %v1723_v11, %v2982_v35 }
 0x289   :  { %v1706_v29 = vrot.slane %v1699_v12, %v2624_v41  ;;  %v1931_v17 = vmul.f32 %v1723_v11, %v2984_v37  ;;  %v1959_v25 = vmul.f32 %v1723_v11, %v2999_v39 }
 0x28b   :  { %v1713_v27 = vrot.slane %v1706_v29, %v2624_v41 }
 0x28d   :  { %v1715_v4 = vsub.f32 %v1694_v26, %v1713_v27 }
 0x28f   :  { %v1730_v5 = vrot.slane %v1715_v4, %v1684_v49  ;;  %v1734_v13 = vrot.slane %v1715_v4, %v1688_v38 }
 0x291   :  { %v1737_v50 = vadd.f32 %v1730_v5, %v1724_v58  ;;  %v1738_v14 = vadd.f32 %v1734_v13, %v1725_v20  ;;  %v1764_v51 = vadd.f32 %v1762_v18, %v1730_v5  ;;  %v1765_v15 = vadd.f32 %v1763_v22, %v1734_v13 }
 0x292   :  { %v1792_v35 = vadd.f32 %v1790_v59, %v1730_v5  ;;  %v1793_v16 = vadd.f32 %v1791_v62, %v1734_v13  ;;  %v1820_v42 = vadd.f32 %v1818_v61, %v1730_v5  ;;  %v1821_v43 = vadd.f32 %v1819_v63, %v1734_v13 }
 0x293   :  { %v1739_v37 = vmax.f32 %v1737_v50, 0.0  ;;  %v1740_v19 = vmax.f32 %v1738_v14, 0.0  ;;  %v1766_v39 = vmax.f32 %v1764_v51, 0.0  ;;  %v1767_v23 = vmax.f32 %v1765_v15, 0.0 }
 0x294   :  { %v1794_v24 = vmax.f32 %v1792_v35, 0.0  ;;  %v1795_v21 = vmax.f32 %v1793_v16, 0.0  ;;  %v1822_v30 = vmax.f32 %v1820_v42, 0.0  ;;  %v1823_v32 = vmax.f32 %v1821_v43, 0.0 }
 0x295   :  { %v2162_v33 = vpack.c.bf16 %v1740_v19, %v1739_v37  ;;  %v2164_v47 = vpack.c.bf16 %v1767_v23, %v1766_v39  ;;  %v1848_v60 = vadd.f32 %v1846_v0, %v1730_v5  ;;  %v1849_v34 = vadd.f32 %v1847_v44, %v1734_v13 }
 0x296   :  { %v2166_v40 = vpack.c.bf16 %v1795_v21, %v1794_v24  ;;  %v2168_v1 = vpack.c.bf16 %v1823_v32, %v1822_v30  ;;  %v1876_v46 = vadd.f32 %v1874_v36, %v1730_v5  ;;  %v1877_v48 = vadd.f32 %v1875_v45, %v1734_v13 }
 0x297   :  { %v1752_v31 = vrot.slane %v2162_v33, %v2624_v41  ;;  %v1779_v49 = vrot.slane %v2164_v47, %v2624_v41  ;;  %v1850_v7 = vmax.f32 %v1848_v60, 0.0  ;;  %v1851_v38 = vmax.f32 %v1849_v34, 0.0 }
 0x298   :  { %v1807_v3 = vrot.slane %v2166_v40, %v2624_v41  ;;  %v1835_v52 = vrot.slane %v2168_v1, %v2624_v41  ;;  %v1878_v53 = vmax.f32 %v1876_v46, 0.0  ;;  %v1879_v54 = vmax.f32 %v1877_v48, 0.0 }
 0x299   :  { %2163 = vst.sshfl [vmem:[%s3120_s11] sm:$0x5 pattern:$0x73625140] %v1752_v31  ;;  %v2170_v8 = vpack.c.bf16 %v1851_v38, %v1850_v7  ;;  %v1904_v55 = vadd.f32 %v1902_v2, %v1730_v5  ;;  %v1905_v56 = vadd.f32 %v1903_v28, %v1734_v13  ;;  %v1932_v57 = vadd.f32 %v1930_v6, %v1730_v5 }
 0x29a   :  { %2180 = vst.sshfl [vmem:[%s3120_s11 + $0x2] sm:$0x5 pattern:$0x73625140] %v1779_v49  ;;  %v2172_v58 = vpack.c.bf16 %v1879_v54, %v1878_v53  ;;  %v1933_v18 = vadd.f32 %v1931_v17, %v1734_v13  ;;  %v1960_v59 = vadd.f32 %v1958_v9, %v1730_v5  ;;  %v1961_v61 = vadd.f32 %v1959_v25, %v1734_v13 }
 0x29b   :  { %2181 = vst.sshfl [vmem:[%s3120_s11 + $0x4] sm:$0x5 pattern:$0x73625140] %v1807_v3  ;;  %v1863_v0 = vrot.slane %v2170_v8, %v2624_v41  ;;  %v1906_v36 = vmax.f32 %v1904_v55, 0.0  ;;  %v1907_v10 = vmax.f32 %v1905_v56, 0.0 }
 0x29c   :  { %2182 = vst.sshfl [vmem:[%s3120_s11 + $0x6] sm:$0x5 pattern:$0x73625140] %v1835_v52  ;;  %v1934_v11 = vmax.f32 %v1932_v57, 0.0  ;;  %v1891_v2 = vrot.slane %v2172_v58, %v2624_v41  ;;  %v1935_v6 = vmax.f32 %v1933_v18, 0.0 }
 0x29d   :  { %v1962_v12 = vmax.f32 %v1960_v59, 0.0  ;;  %v1963_v20 = vmax.f32 %v1961_v61, 0.0  ;;  %2183 = vst.sshfl [vmem:[%s3120_s11 + $0x8] sm:$0x5 pattern:$0x73625140] %v1863_v0  ;;  %v2174_v22 = vpack.c.bf16 %v1907_v10, %v1906_v36 }
 0x29e   :  { %2184 = vst.sshfl [vmem:[%s3120_s11 + $0xa] sm:$0x5 pattern:$0x73625140] %v1891_v2  ;;  %v2176_v9 = vpack.c.bf16 %v1935_v6, %v1934_v11 }
 0x29f   :  { %v2178_v62 = vpack.c.bf16 %v1963_v20, %v1962_v12  ;;  %v1919_v63 = vrot.slane %v2174_v22, %v2624_v41 }
 0x2a0   :  { %v1947_v44 = vrot.slane %v2176_v9, %v2624_v41 }
 0x2a1   :  { %v1975_v45 = vrot.slane %v2178_v62, %v2624_v41  ;;  %2185 = vst.sshfl [vmem:[%s3120_s11 + $0xc] sm:$0x5 pattern:$0x73625140] %v1919_v63 }
 0x2a2   :  { %2186 = vst.sshfl [vmem:[%s3120_s11 + $0xe] sm:$0x5 pattern:$0x73625140] %v1947_v44 }
 0x2a3   :  { %2187 = vst.sshfl [vmem:[%s3120_s11 + $0x10] sm:$0x5 pattern:$0x73625140] %v1975_v45 }
 0x2a4   :  { %2448 = dma.done.wait [#allocation3], 32  }
 0x2a5   :  { %2449 = vsyncadd [#allocation3], 4294967264 }
 0x2a6   :  { %2450 = dma.done.wait [#allocation5], 32  }
 0x2a7   :  { %2451 = vsyncadd [#allocation5], 4294967264 }
 0x2a8   :  { %2016 = vsyncpa [#allocation3], 1 }
 0x2a9   :  { %2017 = vsyncpa [#allocation5], 1 }

// kernel: vae_forward.9
= control target key start
LH: loop header
LB: loop body
LE: loop exit
PB: predicated region body
PF: predicated region fallthrough
CT: control target
= control target key end

     0   :  { %vm5154_vm0 = vcmask 588800   ;;  %vm5715_vm1 = vcmask 584704   ;;  %s10103_s0 = inlined_call_operand.vmem [shape: bf16[4096,72], index: 0, kind: input, shape index: {}]   ;;  %s10104_s1 = inlined_call_operand.vmem [shape: bf16[128,4096], index: 1, kind: input, shape index: {}]   ;;  %s10105_s2 = inlined_call_operand.vmem [shape: f32[128,1], index: 2, kind: input, shape index: {}]   ;;  %s10106_s3 = inlined_call_operand.vmem [shape: f32[128,1], index: 3, kind: input, shape index: {}]   ;;  %s10107_s4 = inlined_call_operand.vmem [shape: bf16[128,72], index: 4, kind: output, shape index: {}]  }
   0x1   :  { %v7307_v0 = vld [vmem:[%s10103_s0 + $0x40] sm:$0xff]   ;;  %v7311_v4 = vld [vmem:[%s10103_s0 + $0x48] sm:$0xff]   ;;  %v7315_v8 = vld [vmem:[%s10103_s0 + $0x50] sm:$0xff]  }
   0x2   :  { %v7308_v1 = vld [vmem:[%s10103_s0 + $0xc0] sm:$0xff]   ;;  %6280 = vmatprep.subr.bf16.mxu0 %v7307_v0  ;;  %v7312_v5 = vld [vmem:[%s10103_s0 + $0xc8] sm:$0xff]   ;;  %v7316_v9 = vld [vmem:[%s10103_s0 + $0xd0] sm:$0xff]  }
   0x3   :  { %v7309_v2 = vld [vmem:[%s10103_s0] sm:$0xff]   ;;  %6344 = vmatprep.subr.bf16.mxu1 %v7308_v1  ;;  %v7313_v6 = vld [vmem:[%s10103_s0 + $0x8] sm:$0xff]   ;;  %v7317_v10 = vld [vmem:[%s10103_s0 + $0x10] sm:$0xff]  }
   0x4   :  { %v7310_v3 = vld [vmem:[%s10103_s0 + $0x80] sm:$0xff]   ;;  %6281 = vmatpush3.bf16.msra.mxu0 %v7309_v2  ;;  %v7314_v7 = vld [vmem:[%s10103_s0 + $0x88] sm:$0xff]   ;;  %v7318_v11 = vld [vmem:[%s10103_s0 + $0x90] sm:$0xff]  }
   0x5   :  { %6345 = vmatpush3.bf16.msra.mxu1 %v7310_v3  ;;  %6282 = vmatprep.subr.bf16.mxu0 %v7311_v4  ;;  %v7319_v12 = vld [vmem:[%s10103_s0 + $0x58] sm:$0xff]   ;;  %v7323_v16 = vld [vmem:[%s10103_s0 + $0x60] sm:$0xff]   ;;  %v7327_v20 = vld [vmem:[%s10103_s0 + $0x68] sm:$0xff]  }
   0x6   :  { %6346 = vmatprep.subr.bf16.mxu1 %v7312_v5  ;;  %v7320_v13 = vld [vmem:[%s10103_s0 + $0xd8] sm:$0xff]   ;;  %v7324_v17 = vld [vmem:[%s10103_s0 + $0xe0] sm:$0xff]   ;;  %v7328_v21 = vld [vmem:[%s10103_s0 + $0xe8] sm:$0xff]  }
   0x7   :  { %v7321_v14 = vld [vmem:[%s10103_s0 + $0x18] sm:$0xff]   ;;  %v7325_v18 = vld [vmem:[%s10103_s0 + $0x20] sm:$0xff]   ;;  %v7329_v22 = vld [vmem:[%s10103_s0 + $0x28] sm:$0xff]  }
   0x8   :  { %6283 = vmatpush3.bf16.msra.mxu0 %v7313_v6  ;;  %v7322_v15 = vld [vmem:[%s10103_s0 + $0x98] sm:$0xff]   ;;  %v7326_v19 = vld [vmem:[%s10103_s0 + $0xa0] sm:$0xff]   ;;  %v7330_v23 = vld [vmem:[%s10103_s0 + $0xa8] sm:$0xff]  }
   0x9   :  { %6347 = vmatpush3.bf16.msra.mxu1 %v7314_v7  ;;  %6284 = vmatprep.subr.bf16.mxu0 %v7315_v8  ;;  %v7331_v24 = vld [vmem:[%s10103_s0 + $0x70] sm:$0xff]   ;;  %v7335_v28 = vld [vmem:[%s10103_s0 + $0x78] sm:$0xff]   ;;  %v18_v32 = vld [vmem:[%s10104_s1] sm:$0xff] }
   0xa   :  { %6348 = vmatprep.subr.bf16.mxu1 %v7316_v9  ;;  %v7332_v25 = vld [vmem:[%s10103_s0 + $0xf0] sm:$0xff]   ;;  %v7336_v29 = vld [vmem:[%s10103_s0 + $0xf8] sm:$0xff]   ;;  %v34_v33 = vld [vmem:[%s10104_s1 + $0x80] sm:$0xff] }
   0xb   :  { %v7333_v26 = vld [vmem:[%s10103_s0 + $0x30] sm:$0xff]   ;;  %v7337_v30 = vld [vmem:[%s10103_s0 + $0x38] sm:$0xff]   ;;  %v19_v34 = vld [vmem:[%s10104_s1 + $0x8] sm:$0xff]  ;;  %v5736_v35 = vcombine.low %v18_v32, %v34_v33  ;;  %v5737_v36 = vcombine.high %v18_v32, %v34_v33 }
   0xc   :  { %6285 = vmatpush3.bf16.msra.mxu0 %v7317_v10  ;;  %v7334_v27 = vld [vmem:[%s10103_s0 + $0xb0] sm:$0xff]   ;;  %v7338_v31 = vld [vmem:[%s10103_s0 + $0xb8] sm:$0xff]   ;;  %v35_v37 = vld [vmem:[%s10104_s1 + $0x88] sm:$0xff] }
   0xd   :  { %6349 = vmatpush3.bf16.msra.mxu1 %v7318_v11  ;;  %6286 = vmatprep.subr.bf16.mxu0 %v7319_v12  ;;  %v5738_v38 = vcombine.low %v19_v34, %v35_v37  ;;  %v5739_v39 = vcombine.high %v19_v34, %v35_v37  ;;  %v7339_v40 = vld [vmem:[%s10103_s0 + $0x140] sm:$0xff]   ;;  %v51_v47 = vld [vmem:[%s10104_s1 + $0x108] sm:$0xff]  ;;  %v7347_v62 = vld [vmem:[%s10103_s0 + $0x150] sm:$0xff]  }
   0xe   :  { %6350 = vmatprep.subr.bf16.mxu1 %v7320_v13  ;;  %3634 = vmatprep.mubr.bf16.mxu0 %v5737_v36  ;;  %v7340_v41 = vld [vmem:[%s10103_s0 + $0x100] sm:$0xff]   ;;  %v67_v48 = vld [vmem:[%s10104_s1 + $0x188] sm:$0xff]  ;;  %v7348_v63 = vld [vmem:[%s10103_s0 + $0x110] sm:$0xff]  }
   0xf   :  { %3731 = vmatprep.mubr.bf16.mxu1 %v5739_v39  ;;  %v7341_v42 = vld [vmem:[%s10103_s0 + $0x1c0] sm:$0xff]   ;;  %v5771_v49 = vcombine.high %v51_v47, %v67_v48  ;;  %v7343_v50 = vld [vmem:[%s10103_s0 + $0x148] sm:$0xff]   ;;  %v5770_v53 = vcombine.low %v51_v47, %v67_v48  ;;  %v7349_v0 = vld [vmem:[%s10103_s0 + $0x1d0] sm:$0xff]  }
  0x10   :  { %6287 = vmatpush3.bf16.msra.mxu0 %v7321_v14  ;;  %v7342_v43 = vld [vmem:[%s10103_s0 + $0x180] sm:$0xff]   ;;  %v7344_v52 = vld [vmem:[%s10103_s0 + $0x108] sm:$0xff]   ;;  %v7350_v1 = vld [vmem:[%s10103_s0 + $0x190] sm:$0xff]  }
  0x11   :  { %6351 = vmatpush3.bf16.msra.mxu1 %v7322_v15  ;;  %6288 = vmatprep.subr.bf16.mxu0 %v7323_v16  ;;  %v50_v44 = vld [vmem:[%s10104_s1 + $0x100] sm:$0xff]  ;;  %v7345_v54 = vld [vmem:[%s10103_s0 + $0x1c8] sm:$0xff]   ;;  %v7351_v10 = vld [vmem:[%s10103_s0 + $0x158] sm:$0xff]  }
  0x12   :  { %6352 = vmatprep.subr.bf16.mxu1 %v7324_v17  ;;  %v66_v45 = vld [vmem:[%s10104_s1 + $0x180] sm:$0xff]  ;;  %v7346_v55 = vld [vmem:[%s10103_s0 + $0x188] sm:$0xff]   ;;  %v7352_v11 = vld [vmem:[%s10103_s0 + $0x118] sm:$0xff]  }
  0x13   :  { %v5769_v46 = vcombine.high %v50_v44, %v66_v45  ;;  %v5768_v51 = vcombine.low %v50_v44, %v66_v45  ;;  %v82_v56 = vld [vmem:[%s10104_s1 + $0x200] sm:$0xff]  ;;  %v83_v58 = vld [vmem:[%s10104_s1 + $0x208] sm:$0xff]  ;;  %v7353_v12 = vld [vmem:[%s10103_s0 + $0x1d8] sm:$0xff]  }
  0x14   :  { %6289 = vmatpush3.bf16.msra.mxu0 %v7325_v18  ;;  %v98_v57 = vld [vmem:[%s10104_s1 + $0x280] sm:$0xff]  ;;  %v99_v59 = vld [vmem:[%s10104_s1 + $0x288] sm:$0xff]  ;;  %v7354_v13 = vld [vmem:[%s10103_s0 + $0x198] sm:$0xff]  }
  0x15   :  { %6353 = vmatpush3.bf16.msra.mxu1 %v7326_v19  ;;  %6290 = vmatprep.subr.bf16.mxu0 %v7327_v20  ;;  %v5801_v60 = vcombine.high %v82_v56, %v98_v57  ;;  %v5803_v61 = vcombine.high %v83_v58, %v99_v59  ;;  %v5800_v2 = vcombine.low %v82_v56, %v98_v57  ;;  %v114_v3 = vld [vmem:[%s10104_s1 + $0x300] sm:$0xff]  ;;  %v115_v5 = vld [vmem:[%s10104_s1 + $0x308] sm:$0xff]  ;;  %v7364_v39 = vld [vmem:[%s10103_s0 + $0x130] sm:$0xff]  }
  0x16   :  { %6354 = vmatprep.subr.bf16.mxu1 %v7328_v21  ;;  %v130_v4 = vld [vmem:[%s10104_s1 + $0x380] sm:$0xff]  ;;  %v5802_v6 = vcombine.low %v83_v58, %v99_v59  ;;  %v131_v8 = vld [vmem:[%s10104_s1 + $0x388] sm:$0xff]  ;;  %v7368_v48 = vld [vmem:[%s10103_s0 + $0x138] sm:$0xff]  }
  0x17   :  { %v5833_v7 = vcombine.high %v114_v3, %v130_v4  ;;  %v5835_v9 = vcombine.high %v115_v5, %v131_v8  ;;  %v146_v14 = vld [vmem:[%s10104_s1 + $0x400] sm:$0xff]  ;;  %v147_v16 = vld [vmem:[%s10104_s1 + $0x408] sm:$0xff]  ;;  %v5832_v19 = vcombine.low %v114_v3, %v130_v4  ;;  %v5834_v21 = vcombine.low %v115_v5, %v131_v8  ;;  %v37_v3 = vld [vmem:[%s10104_s1 + $0x98] sm:$0xff] }
  0x18   :  { %6291 = vmatpush3.bf16.msra.mxu0 %v7329_v22  ;;  %v162_v15 = vld [vmem:[%s10104_s1 + $0x480] sm:$0xff]  ;;  %v163_v17 = vld [vmem:[%s10104_s1 + $0x488] sm:$0xff]  ;;  %v52_v8 = vld [vmem:[%s10104_s1 + $0x110] sm:$0xff] }
  0x19   :  { %6355 = vmatpush3.bf16.msra.mxu1 %v7330_v23  ;;  %6292 = vmatprep.subr.bf16.mxu0 %v7331_v24  ;;  %v7355_v18 = vld [vmem:[%s10103_s0 + $0x160] sm:$0xff]   ;;  %v5865_v22 = vcombine.high %v146_v14, %v162_v15  ;;  %v5867_v24 = vcombine.high %v147_v16, %v163_v17  ;;  %v7361_v32 = vld [vmem:[%s10103_s0 + $0x1e8] sm:$0xff]   ;;  %v5864_v34 = vcombine.low %v146_v14, %v162_v15 }
  0x1a   :  { %6356 = vmatprep.subr.bf16.mxu1 %v7332_v25  ;;  %v7356_v20 = vld [vmem:[%s10103_s0 + $0x120] sm:$0xff]   ;;  %v7362_v33 = vld [vmem:[%s10103_s0 + $0x1a8] sm:$0xff]  }
  0x1b   :  { %v7357_v23 = vld [vmem:[%s10103_s0 + $0x1e0] sm:$0xff]   ;;  %v211_v44 = vld [vmem:[%s10104_s1 + $0x608] sm:$0xff] }
  0x1c   :  { %6293 = vmatpush3.bf16.msra.mxu0 %v7333_v26  ;;  %v7358_v25 = vld [vmem:[%s10103_s0 + $0x1a0] sm:$0xff]   ;;  %v227_v45 = vld [vmem:[%s10104_s1 + $0x688] sm:$0xff] }
  0x1d   :  { %6357 = vmatpush3.bf16.msra.mxu1 %v7334_v27  ;;  %6294 = vmatprep.subr.bf16.mxu0 %v7335_v28  ;;  %v178_v26 = vld [vmem:[%s10104_s1 + $0x500] sm:$0xff]  ;;  %v7359_v28 = vld [vmem:[%s10103_s0 + $0x168] sm:$0xff]  }
  0x1e   :  { %6358 = vmatprep.subr.bf16.mxu1 %v7336_v29  ;;  %v194_v27 = vld [vmem:[%s10104_s1 + $0x580] sm:$0xff]  ;;  %v179_v29 = vld [vmem:[%s10104_s1 + $0x508] sm:$0xff] }
  0x1f   :  { %v5897_v36 = vcombine.high %v178_v26, %v194_v27  ;;  %v5896_v47 = vcombine.low %v178_v26, %v194_v27  ;;  %v7371_v56 = vld [vmem:[%s10103_s0 + $0x240] sm:$0xff]   ;;  %v243_v57 = vld [vmem:[%s10104_s1 + $0x708] sm:$0xff]  ;;  %v7379_v26 = vld [vmem:[%s10103_s0 + $0x250] sm:$0xff]  }
  0x20   :  { %6295 = vmatpush3.bf16.msra.mxu0 %v7337_v30  ;;  %v195_v30 = vld [vmem:[%s10104_s1 + $0x588] sm:$0xff]  ;;  %v7373_v58 = vld [vmem:[%s10103_s0 + $0x2c0] sm:$0xff]   ;;  %v7381_v27 = vld [vmem:[%s10103_s0 + $0x2d0] sm:$0xff]  }
  0x21   :  { %6359 = vmatpush3.bf16.msra.mxu1 %v7338_v31  ;;  %6408 = vmatprep.subr.bf16.mxu0 %v7339_v40  ;;  %v7360_v31 = vld [vmem:[%s10103_s0 + $0x128] sm:$0xff]   ;;  %v5899_v37 = vcombine.high %v179_v29, %v195_v30  ;;  %v7365_v40 = vld [vmem:[%s10103_s0 + $0x1f0] sm:$0xff]   ;;  %v7374_v15 = vld [vmem:[%s10103_s0 + $0x280] sm:$0xff]  }
  0x22   :  { %6472 = vmatprep.subr.bf16.mxu1 %v7341_v42  ;;  %v226_v42 = vld [vmem:[%s10104_s1 + $0x680] sm:$0xff]  ;;  %v259_v59 = vld [vmem:[%s10104_s1 + $0x788] sm:$0xff] }
  0x23   :  { %3635 = vmatmul.mubr.bf16.vlgmr.msra.gmra.mrb[0].mxu0 %v5736_v35  ;;  %v5866_v35 = vcombine.low %v147_v16, %v163_v17  ;;  %v5962_v5 = vcombine.low %v243_v57, %v259_v59  ;;  %v7375_v17 = vld [vmem:[%s10103_s0 + $0x248] sm:$0xff]  }
  0x24   :  { %3732 = vmatmul.mubr.bf16.vlgmr.msra.gmra.mrb[0].mxu1 %v5738_v38  ;;  %6409 = vmatpush3.bf16.msra.mxu0 %v7340_v41  ;;  %v7363_v38 = vld [vmem:[%s10103_s0 + $0x170] sm:$0xff]   ;;  %v210_v41 = vld [vmem:[%s10104_s1 + $0x600] sm:$0xff] }
  0x25   :  { %6473 = vmatpush3.bf16.msra.mxu1 %v7342_v43  ;;  %3642 = vmatprep.mubr.bf16.mxu0 %v5769_v46  ;;  %v7366_v43 = vld [vmem:[%s10103_s0 + $0x1b0] sm:$0xff]   ;;  %v7367_v46 = vld [vmem:[%s10103_s0 + $0x178] sm:$0xff]  }
  0x26   :  { %3739 = vmatprep.mubr.bf16.mxu1 %v5771_v49  ;;  %6410 = vmatprep.subr.bf16.mxu0 %v7343_v50  ;;  %v5898_v49 = vcombine.low %v179_v29, %v195_v30  ;;  %v5929_v50 = vcombine.high %v210_v41, %v226_v42 }
  0x27   :  { %6474 = vmatprep.subr.bf16.mxu1 %v7345_v54  ;;  %v242_v54 = vld [vmem:[%s10104_s1 + $0x700] sm:$0xff] }
  0x28   :  { %6411 = vmatpush3.bf16.msra.mxu0 %v7344_v52  ;;  %v5931_v52 = vcombine.high %v211_v44, %v227_v45 }
  0x29   :  { %6475 = vmatpush3.bf16.msra.mxu1 %v7346_v55  ;;  %6412 = vmatprep.subr.bf16.mxu0 %v7347_v62  ;;  %v258_v55 = vld [vmem:[%s10104_s1 + $0x780] sm:$0xff] }
  0x2a   :  { %6476 = vmatprep.subr.bf16.mxu1 %v7349_v0  ;;  %v5961_v62 = vcombine.high %v242_v54, %v258_v55  ;;  %v20_v0 = vld [vmem:[%s10104_s1 + $0x10] sm:$0xff]  ;;  %v5960_v4 = vcombine.low %v242_v54, %v258_v55  ;;  %v149_v54 = vld [vmem:[%s10104_s1 + $0x418] sm:$0xff] }
  0x2b   :  { %3643 = vmatmul.mubr.bf16.gmra.mrb[4].mxu0 %v5768_v51  ;;  %v7369_v51 = vld [vmem:[%s10103_s0 + $0x1f8] sm:$0xff]  }
  0x2c   :  { %3740 = vmatmul.mubr.bf16.gmra.mrb[4].mxu1 %v5770_v53  ;;  %3650 = vmatprep.mubr.bf16.mxu0 %v5801_v60  ;;  %v7370_v53 = vld [vmem:[%s10103_s0 + $0x1b8] sm:$0xff]   ;;  %v5928_v60 = vcombine.low %v210_v41, %v226_v42  ;;  %v7387_v42 = vld [vmem:[%s10103_s0 + $0x260] sm:$0xff]  }
  0x2d   :  { %3747 = vmatprep.mubr.bf16.mxu1 %v5803_v61  ;;  %6413 = vmatpush3.bf16.msra.mxu0 %v7348_v63  ;;  %v5930_v61 = vcombine.low %v211_v44, %v227_v45  ;;  %v5963_v63 = vcombine.high %v243_v57, %v259_v59  ;;  %v7386_v41 = vld [vmem:[%s10103_s0 + $0x298] sm:$0xff]   ;;  %v7389_v44 = vld [vmem:[%s10103_s0 + $0x2e0] sm:$0xff]   ;;  %v7394_v57 = vld [vmem:[%s10103_s0 + $0x2a8] sm:$0xff]  }
  0x2e   :  { %6477 = vmatpush3.bf16.msra.mxu1 %v7350_v1  ;;  %6414 = vmatprep.subr.bf16.mxu0 %v7351_v10  ;;  %v36_v1 = vld [vmem:[%s10104_s1 + $0x90] sm:$0xff]  ;;  %v165_v55 = vld [vmem:[%s10104_s1 + $0x498] sm:$0xff] }
  0x2f   :  { %6478 = vmatprep.subr.bf16.mxu1 %v7353_v12  ;;  %v5740_v10 = vcombine.low %v20_v0, %v36_v1  ;;  %v53_v12 = vld [vmem:[%s10104_s1 + $0x118] sm:$0xff] }
  0x31   :  { %6415 = vmatpush3.bf16.msra.mxu0 %v7352_v11  ;;  %v7372_v11 = vld [vmem:[%s10103_s0 + $0x200] sm:$0xff]  }
  0x32   :  { %6479 = vmatpush3.bf16.msra.mxu1 %v7354_v13  ;;  %6416 = vmatprep.subr.bf16.mxu0 %v7355_v18  ;;  %v69_v13 = vld [vmem:[%s10104_s1 + $0x198] sm:$0xff] }
  0x33   :  { %3651 = vmatmul.mubr.bf16.gmra.mrb[8].mxu0 %v5800_v2  ;;  %6480 = vmatprep.subr.bf16.mxu1 %v7357_v23  ;;  %v21_v2 = vld [vmem:[%s10104_s1 + $0x18] sm:$0xff]  ;;  %v5775_v18 = vcombine.high %v53_v12, %v69_v13  ;;  %v100_v23 = vld [vmem:[%s10104_s1 + $0x290] sm:$0xff]  ;;  %v5774_v29 = vcombine.low %v53_v12, %v69_v13  ;;  %v7405_v12 = vld [vmem:[%s10103_s0 + $0x3c0] sm:$0xff]   ;;  %v5870_v13 = vcombine.low %v149_v54, %v165_v55 }
  0x34   :  { %3748 = vmatmul.mubr.bf16.gmra.mrb[8].mxu1 %v5802_v6  ;;  %3658 = vmatprep.mubr.bf16.mxu0 %v5833_v7  ;;  %v5741_v6 = vcombine.high %v20_v0, %v36_v1  ;;  %v5743_v7 = vcombine.high %v21_v2, %v37_v3  ;;  %v5742_v14 = vcombine.low %v21_v2, %v37_v3  ;;  %v7396_v0 = vld [vmem:[%s10103_s0 + $0x230] sm:$0xff]   ;;  %v7399_v2 = vld [vmem:[%s10103_s0 + $0x278] sm:$0xff]  }
  0x35   :  { %3755 = vmatprep.mubr.bf16.mxu1 %v5835_v9  ;;  %6417 = vmatpush3.bf16.msra.mxu0 %v7356_v20  ;;  %v68_v9 = vld [vmem:[%s10104_s1 + $0x190] sm:$0xff]  ;;  %v7377_v20 = vld [vmem:[%s10103_s0 + $0x2c8] sm:$0xff]  }
  0x36   :  { %6481 = vmatpush3.bf16.msra.mxu1 %v7358_v25  ;;  %6418 = vmatprep.subr.bf16.mxu0 %v7359_v28  ;;  %v5773_v16 = vcombine.high %v52_v8, %v68_v9  ;;  %v101_v25 = vld [vmem:[%s10104_s1 + $0x298] sm:$0xff]  ;;  %v5772_v28 = vcombine.low %v52_v8, %v68_v9  ;;  %v7398_v1 = vld [vmem:[%s10103_s0 + $0x2b0] sm:$0xff]  }
  0x37   :  { %6482 = vmatprep.subr.bf16.mxu1 %v7361_v32  ;;  %v7380_v32 = vld [vmem:[%s10103_s0 + $0x210] sm:$0xff]   ;;  %v7400_v8 = vld [vmem:[%s10103_s0 + $0x238] sm:$0xff]  }
  0x38   :  { %v180_v3 = vld [vmem:[%s10104_s1 + $0x510] sm:$0xff]  ;;  %v7402_v9 = vld [vmem:[%s10103_s0 + $0x2b8] sm:$0xff]  }
  0x39   :  { %6419 = vmatpush3.bf16.msra.mxu0 %v7360_v31 }
  0x3a   :  { %6483 = vmatpush3.bf16.msra.mxu1 %v7362_v33  ;;  %6420 = vmatprep.subr.bf16.mxu0 %v7363_v38  ;;  %v7382_v33 = vld [vmem:[%s10103_s0 + $0x290] sm:$0xff]   ;;  %v117_v38 = vld [vmem:[%s10104_s1 + $0x318] sm:$0xff] }
  0x3b   :  { %3659 = vmatmul.mubr.bf16.gmra.mrb[12].mxu0 %v5832_v19  ;;  %6484 = vmatprep.subr.bf16.mxu1 %v7365_v40  ;;  %v7376_v19 = vld [vmem:[%s10103_s0 + $0x208] sm:$0xff]   ;;  %v7384_v40 = vld [vmem:[%s10103_s0 + $0x218] sm:$0xff]  }
  0x3c   :  { %3756 = vmatmul.mubr.bf16.gmra.mrb[12].mxu1 %v5834_v21  ;;  %3666 = vmatprep.mubr.bf16.mxu0 %v5865_v22  ;;  %v7378_v21 = vld [vmem:[%s10103_s0 + $0x288] sm:$0xff]   ;;  %v84_v22 = vld [vmem:[%s10104_s1 + $0x210] sm:$0xff] }
  0x3d   :  { %3763 = vmatprep.mubr.bf16.mxu1 %v5867_v24  ;;  %6421 = vmatpush3.bf16.msra.mxu0 %v7364_v39  ;;  %v85_v24 = vld [vmem:[%s10104_s1 + $0x218] sm:$0xff]  ;;  %v5805_v30 = vcombine.high %v84_v22, %v100_v23 }
  0x3e   :  { %6485 = vmatpush3.bf16.msra.mxu1 %v7366_v43  ;;  %6422 = vmatprep.subr.bf16.mxu0 %v7367_v46  ;;  %v5807_v31 = vcombine.high %v85_v24, %v101_v25  ;;  %v133_v39 = vld [vmem:[%s10104_s1 + $0x398] sm:$0xff]  ;;  %v5804_v43 = vcombine.low %v84_v22, %v100_v23  ;;  %v5806_v45 = vcombine.low %v85_v24, %v101_v25  ;;  %v244_v24 = vld [vmem:[%s10104_s1 + $0x710] sm:$0xff] }
  0x3f   :  { %6486 = vmatprep.subr.bf16.mxu1 %v7369_v51  ;;  %v148_v51 = vld [vmem:[%s10104_s1 + $0x410] sm:$0xff] }
  0x40   :  { %v260_v25 = vld [vmem:[%s10104_s1 + $0x790] sm:$0xff] }
  0x41   :  { %6423 = vmatpush3.bf16.msra.mxu0 %v7368_v48  ;;  %v5839_v48 = vcombine.high %v117_v38, %v133_v39 }
  0x42   :  { %6487 = vmatpush3.bf16.msra.mxu1 %v7370_v53  ;;  %6536 = vmatprep.subr.bf16.mxu0 %v7371_v56  ;;  %v164_v53 = vld [vmem:[%s10104_s1 + $0x490] sm:$0xff]  ;;  %v7392_v56 = vld [vmem:[%s10103_s0 + $0x228] sm:$0xff]  }
  0x43   :  { %3667 = vmatmul.mubr.bf16.gmra.mrb[16].mxu0 %v5864_v34  ;;  %6600 = vmatprep.subr.bf16.mxu1 %v7373_v58  ;;  %v7383_v34 = vld [vmem:[%s10103_s0 + $0x258] sm:$0xff]   ;;  %v7395_v58 = vld [vmem:[%s10103_s0 + $0x270] sm:$0xff]  }
  0x44   :  { %3764 = vmatmul.mubr.bf16.gmra.mrb[16].mxu1 %v5866_v35  ;;  %3674 = vmatprep.mubr.bf16.mxu0 %v5897_v36  ;;  %v116_v35 = vld [vmem:[%s10104_s1 + $0x310] sm:$0xff] }
  0x45   :  { %3771 = vmatprep.mubr.bf16.mxu1 %v5899_v37  ;;  %v132_v36 = vld [vmem:[%s10104_s1 + $0x390] sm:$0xff]  ;;  %v7385_v37 = vld [vmem:[%s10103_s0 + $0x2d8] sm:$0xff]  }
  0x46   :  { %v5837_v46 = vcombine.high %v116_v35, %v132_v36  ;;  %v5836_v59 = vcombine.low %v116_v35, %v132_v36  ;;  %v39_v35 = vld [vmem:[%s10104_s1 + $0xa8] sm:$0xff]  ;;  %v5964_v36 = vcombine.low %v244_v24, %v260_v25 }
  0x4b   :  { %3675 = vmatmul.mubr.bf16.gmra.mrb[20].mxu0 %v5896_v47  ;;  %v7388_v47 = vld [vmem:[%s10103_s0 + $0x220] sm:$0xff]  }
  0x4c   :  { %3772 = vmatmul.mubr.bf16.gmra.mrb[20].mxu1 %v5898_v49  ;;  %3682 = vmatprep.mubr.bf16.mxu0 %v5929_v50  ;;  %v7390_v49 = vld [vmem:[%s10103_s0 + $0x2a0] sm:$0xff]   ;;  %v7391_v50 = vld [vmem:[%s10103_s0 + $0x268] sm:$0xff]  }
  0x4d   :  { %3779 = vmatprep.mubr.bf16.mxu1 %v5931_v52  ;;  %v7393_v52 = vld [vmem:[%s10103_s0 + $0x2e8] sm:$0xff]  }
  0x53   :  { %3683 = vmatmul.mubr.bf16.gmra.mrb[24].mxu0 %v5928_v60  ;;  %v7397_v60 = vld [vmem:[%s10103_s0 + $0x2f0] sm:$0xff]  }
  0x54   :  { %3780 = vmatmul.mubr.bf16.gmra.mrb[24].mxu1 %v5930_v61  ;;  %3690 = vmatprep.mubr.bf16.mxu0 %v5961_v62  ;;  %v5838_v61 = vcombine.low %v117_v38, %v133_v39  ;;  %v5869_v62 = vcombine.high %v148_v51, %v164_v53 }
  0x55   :  { %3787 = vmatprep.mubr.bf16.mxu1 %v5963_v63  ;;  %v5871_v63 = vcombine.high %v149_v54, %v165_v55  ;;  %v86_v54 = vld [vmem:[%s10104_s1 + $0x220] sm:$0xff] }
  0x56   :  { %v102_v55 = vld [vmem:[%s10104_s1 + $0x2a0] sm:$0xff] }
  0x5b   :  { %3691 = vmatmul.mubr.bf16.gmra.mrb[28].mxu0 %v5960_v4  ;;  %v196_v4 = vld [vmem:[%s10104_s1 + $0x590] sm:$0xff] }
  0x5c   :  { %3788 = vmatmul.mubr.bf16.gmra.mrb[28].mxu1 %v5962_v5  ;;  %3828 = vmatprep.mubr.bf16.mxu0 %v5741_v6  ;;  %v7401_v5 = vld [vmem:[%s10103_s0 + $0x2f8] sm:$0xff]  }
  0x5d   :  { %3925 = vmatprep.mubr.bf16.mxu1 %v5743_v7  ;;  %v181_v6 = vld [vmem:[%s10104_s1 + $0x518] sm:$0xff] }
  0x5e   :  { %v197_v7 = vld [vmem:[%s10104_s1 + $0x598] sm:$0xff] }
  0x63   :  { %3829 = vmatmul.mubr.bf16.vlgmr.msra.gmra.mrb[32].mxu0 %v5740_v10  ;;  %v7403_v10 = vld [vmem:[%s10103_s0 + $0x340] sm:$0xff]  }
  0x64   :  { %3926 = vmatmul.mubr.bf16.vlgmr.msra.gmra.mrb[32].mxu1 %v5742_v14  ;;  %6537 = vmatpush3.bf16.msra.mxu0 %v7372_v11  ;;  %v5868_v11 = vcombine.low %v148_v51, %v164_v53  ;;  %v5901_v14 = vcombine.high %v180_v3, %v196_v4  ;;  %v7408_v51 = vld [vmem:[%s10103_s0 + $0x308] sm:$0xff]  }
  0x65   :  { %6601 = vmatpush3.bf16.msra.mxu1 %v7374_v15  ;;  %3836 = vmatprep.mubr.bf16.mxu0 %v5773_v16  ;;  %v5903_v15 = vcombine.high %v181_v6, %v197_v7  ;;  %v212_v16 = vld [vmem:[%s10104_s1 + $0x610] sm:$0xff]  ;;  %v7410_v53 = vld [vmem:[%s10103_s0 + $0x388] sm:$0xff]  }
  0x66   :  { %3933 = vmatprep.mubr.bf16.mxu1 %v5775_v18  ;;  %6538 = vmatprep.subr.bf16.mxu0 %v7375_v17  ;;  %v228_v17 = vld [vmem:[%s10104_s1 + $0x690] sm:$0xff]  ;;  %v213_v18 = vld [vmem:[%s10104_s1 + $0x618] sm:$0xff] }
  0x67   :  { %6602 = vmatprep.subr.bf16.mxu1 %v7377_v20  ;;  %v5900_v20 = vcombine.low %v180_v3, %v196_v4  ;;  %v5933_v22 = vcombine.high %v212_v16, %v228_v17  ;;  %v118_v3 = vld [vmem:[%s10104_s1 + $0x320] sm:$0xff] }
  0x68   :  { %6539 = vmatpush3.bf16.msra.mxu0 %v7376_v19  ;;  %v229_v19 = vld [vmem:[%s10104_s1 + $0x698] sm:$0xff]  ;;  %v134_v4 = vld [vmem:[%s10104_s1 + $0x3a0] sm:$0xff] }
  0x69   :  { %6603 = vmatpush3.bf16.msra.mxu1 %v7378_v21  ;;  %6540 = vmatprep.subr.bf16.mxu0 %v7379_v26  ;;  %v5902_v21 = vcombine.low %v181_v6, %v197_v7  ;;  %v5935_v23 = vcombine.high %v213_v18, %v229_v19  ;;  %v245_v26 = vld [vmem:[%s10104_s1 + $0x718] sm:$0xff]  ;;  %v119_v6 = vld [vmem:[%s10104_s1 + $0x328] sm:$0xff] }
  0x6a   :  { %6604 = vmatprep.subr.bf16.mxu1 %v7381_v27  ;;  %v261_v27 = vld [vmem:[%s10104_s1 + $0x798] sm:$0xff]  ;;  %v135_v7 = vld [vmem:[%s10104_s1 + $0x3a8] sm:$0xff] }
  0x6b   :  { %3837 = vmatmul.mubr.bf16.gmra.mrb[36].mxu0 %v5772_v28  ;;  %v5932_v28 = vcombine.low %v212_v16, %v228_v17  ;;  %v5843_v16 = vcombine.high %v119_v6, %v135_v7  ;;  %v7422_v17 = vld [vmem:[%s10103_s0 + $0x3a0] sm:$0xff]  }
  0x6c   :  { %3934 = vmatmul.mubr.bf16.gmra.mrb[36].mxu1 %v5774_v29  ;;  %3844 = vmatprep.mubr.bf16.mxu0 %v5805_v30  ;;  %v5934_v29 = vcombine.low %v213_v18, %v229_v19  ;;  %v5965_v30 = vcombine.high %v244_v24, %v260_v25  ;;  %v7423_v18 = vld [vmem:[%s10103_s0 + $0x368] sm:$0xff]   ;;  %v150_v19 = vld [vmem:[%s10104_s1 + $0x420] sm:$0xff] }
  0x6d   :  { %3941 = vmatprep.mubr.bf16.mxu1 %v5807_v31  ;;  %6541 = vmatpush3.bf16.msra.mxu0 %v7380_v32  ;;  %v5967_v31 = vcombine.high %v245_v26, %v261_v27  ;;  %v22_v32 = vld [vmem:[%s10104_s1 + $0x20] sm:$0xff]  ;;  %v7424_v24 = vld [vmem:[%s10103_s0 + $0x328] sm:$0xff]  }
  0x6e   :  { %6605 = vmatpush3.bf16.msra.mxu1 %v7382_v33  ;;  %6542 = vmatprep.subr.bf16.mxu0 %v7383_v34  ;;  %v38_v33 = vld [vmem:[%s10104_s1 + $0xa0] sm:$0xff]  ;;  %v23_v34 = vld [vmem:[%s10104_s1 + $0x28] sm:$0xff] }
  0x6f   :  { %6606 = vmatprep.subr.bf16.mxu1 %v7385_v37  ;;  %v5966_v37 = vcombine.low %v245_v26, %v261_v27  ;;  %v5745_v38 = vcombine.high %v22_v32, %v38_v33  ;;  %v5747_v39 = vcombine.high %v23_v34, %v39_v35  ;;  %v7426_v25 = vld [vmem:[%s10103_s0 + $0x3a8] sm:$0xff]   ;;  %v7427_v26 = vld [vmem:[%s10103_s0 + $0x370] sm:$0xff]   ;;  %v5840_v27 = vcombine.low %v118_v3, %v134_v4 }
  0x71   :  { %6543 = vmatpush3.bf16.msra.mxu0 %v7384_v40  ;;  %v54_v40 = vld [vmem:[%s10104_s1 + $0x120] sm:$0xff] }
  0x72   :  { %6607 = vmatpush3.bf16.msra.mxu1 %v7386_v41  ;;  %6544 = vmatprep.subr.bf16.mxu0 %v7387_v42  ;;  %v70_v41 = vld [vmem:[%s10104_s1 + $0x1a0] sm:$0xff]  ;;  %v5744_v42 = vcombine.low %v22_v32, %v38_v33  ;;  %v7428_v32 = vld [vmem:[%s10103_s0 + $0x330] sm:$0xff]  }
  0x73   :  { %3845 = vmatmul.mubr.bf16.gmra.mrb[40].mxu0 %v5804_v43  ;;  %6608 = vmatprep.subr.bf16.mxu1 %v7389_v44  ;;  %v7404_v43 = vld [vmem:[%s10103_s0 + $0x300] sm:$0xff]   ;;  %v55_v44 = vld [vmem:[%s10104_s1 + $0x128] sm:$0xff]  ;;  %v7430_v33 = vld [vmem:[%s10103_s0 + $0x3b0] sm:$0xff]  }
  0x74   :  { %3942 = vmatmul.mubr.bf16.gmra.mrb[40].mxu1 %v5806_v45  ;;  %3852 = vmatprep.mubr.bf16.mxu0 %v5837_v46  ;;  %v71_v45 = vld [vmem:[%s10104_s1 + $0x1a8] sm:$0xff]  ;;  %v5746_v46 = vcombine.low %v23_v34, %v39_v35  ;;  %v7431_v34 = vld [vmem:[%s10103_s0 + $0x378] sm:$0xff]   ;;  %v182_v35 = vld [vmem:[%s10104_s1 + $0x520] sm:$0xff] }
  0x75   :  { %3949 = vmatprep.mubr.bf16.mxu1 %v5839_v48  ;;  %6545 = vmatpush3.bf16.msra.mxu0 %v7388_v47  ;;  %v7406_v47 = vld [vmem:[%s10103_s0 + $0x380] sm:$0xff]   ;;  %v5777_v48 = vcombine.high %v54_v40, %v70_v41 }
  0x76   :  { %6609 = vmatpush3.bf16.msra.mxu1 %v7390_v49  ;;  %6546 = vmatprep.subr.bf16.mxu0 %v7391_v50  ;;  %v7407_v49 = vld [vmem:[%s10103_s0 + $0x348] sm:$0xff]   ;;  %v5779_v50 = vcombine.high %v55_v44, %v71_v45 }
  0x77   :  { %6610 = vmatprep.subr.bf16.mxu1 %v7393_v52  ;;  %v7409_v52 = vld [vmem:[%s10103_s0 + $0x3c8] sm:$0xff]  }
  0x79   :  { %6547 = vmatpush3.bf16.msra.mxu0 %v7392_v56  ;;  %v87_v56 = vld [vmem:[%s10104_s1 + $0x228] sm:$0xff] }
  0x7a   :  { %6611 = vmatpush3.bf16.msra.mxu1 %v7394_v57  ;;  %6548 = vmatprep.subr.bf16.mxu0 %v7395_v58  ;;  %v103_v57 = vld [vmem:[%s10104_s1 + $0x2a8] sm:$0xff]  ;;  %v7411_v58 = vld [vmem:[%s10103_s0 + $0x350] sm:$0xff]  }
  0x7b   :  { %3853 = vmatmul.mubr.bf16.gmra.mrb[44].mxu0 %v5836_v59  ;;  %6612 = vmatprep.subr.bf16.mxu1 %v7397_v60  ;;  %v7413_v59 = vld [vmem:[%s10103_s0 + $0x3d0] sm:$0xff]   ;;  %v5776_v60 = vcombine.low %v54_v40, %v70_v41  ;;  %v7432_v40 = vld [vmem:[%s10103_s0 + $0x338] sm:$0xff]  }
  0x7c   :  { %3950 = vmatmul.mubr.bf16.gmra.mrb[44].mxu1 %v5838_v61  ;;  %3860 = vmatprep.mubr.bf16.mxu0 %v5869_v62  ;;  %v5778_v61 = vcombine.low %v55_v44, %v71_v45  ;;  %v5809_v62 = vcombine.high %v86_v54, %v102_v55  ;;  %v7434_v41 = vld [vmem:[%s10103_s0 + $0x3b8] sm:$0xff]   ;;  %v7437_v44 = vld [vmem:[%s10103_s0 + $0x4c0] sm:$0xff]  }
  0x7d   :  { %3957 = vmatprep.mubr.bf16.mxu1 %v5871_v63  ;;  %6549 = vmatpush3.bf16.msra.mxu0 %v7396_v0  ;;  %v5811_v63 = vcombine.high %v87_v56, %v103_v57  ;;  %v7412_v0 = vld [vmem:[%s10103_s0 + $0x310] sm:$0xff]  }
  0x7e   :  { %6613 = vmatpush3.bf16.msra.mxu1 %v7398_v1  ;;  %6550 = vmatprep.subr.bf16.mxu0 %v7399_v2  ;;  %v7414_v1 = vld [vmem:[%s10103_s0 + $0x390] sm:$0xff]   ;;  %v7415_v2 = vld [vmem:[%s10103_s0 + $0x358] sm:$0xff]  }
  0x7f   :  { %6614 = vmatprep.subr.bf16.mxu1 %v7401_v5  ;;  %v7417_v5 = vld [vmem:[%s10103_s0 + $0x3d8] sm:$0xff]  }
  0x81   :  { %6551 = vmatpush3.bf16.msra.mxu0 %v7400_v8  ;;  %v7416_v8 = vld [vmem:[%s10103_s0 + $0x318] sm:$0xff]  }
  0x82   :  { %6615 = vmatpush3.bf16.msra.mxu1 %v7402_v9  ;;  %6664 = vmatprep.subr.bf16.mxu0 %v7403_v10  ;;  %v7418_v9 = vld [vmem:[%s10103_s0 + $0x398] sm:$0xff]   ;;  %v7419_v10 = vld [vmem:[%s10103_s0 + $0x360] sm:$0xff]  }
  0x83   :  { %3861 = vmatmul.mubr.bf16.gmra.mrb[48].mxu0 %v5868_v11  ;;  %6728 = vmatprep.subr.bf16.mxu1 %v7405_v12  ;;  %v5808_v11 = vcombine.low %v86_v54, %v102_v55  ;;  %v7421_v12 = vld [vmem:[%s10103_s0 + $0x3e0] sm:$0xff]  }
  0x84   :  { %3958 = vmatmul.mubr.bf16.gmra.mrb[48].mxu1 %v5870_v13  ;;  %3868 = vmatprep.mubr.bf16.mxu0 %v5901_v14  ;;  %v5810_v13 = vcombine.low %v87_v56, %v103_v57  ;;  %v5841_v14 = vcombine.high %v118_v3, %v134_v4  ;;  %v246_v56 = vld [vmem:[%s10104_s1 + $0x720] sm:$0xff]  ;;  %v41_v3 = vld [vmem:[%s10104_s1 + $0xb8] sm:$0xff] }
  0x85   :  { %3965 = vmatprep.mubr.bf16.mxu1 %v5903_v15  ;;  %v7420_v15 = vld [vmem:[%s10103_s0 + $0x320] sm:$0xff]  }
  0x86   :  { %v262_v57 = vld [vmem:[%s10104_s1 + $0x7a0] sm:$0xff] }
  0x87   :  { %v5968_v4 = vcombine.low %v246_v56, %v262_v57 }
  0x8b   :  { %3869 = vmatmul.mubr.bf16.gmra.mrb[52].mxu0 %v5900_v20  ;;  %v7425_v20 = vld [vmem:[%s10103_s0 + $0x3e8] sm:$0xff]  }
  0x8c   :  { %3966 = vmatmul.mubr.bf16.gmra.mrb[52].mxu1 %v5902_v21  ;;  %3876 = vmatprep.mubr.bf16.mxu0 %v5933_v22  ;;  %v166_v21 = vld [vmem:[%s10104_s1 + $0x4a0] sm:$0xff]  ;;  %v151_v22 = vld [vmem:[%s10104_s1 + $0x428] sm:$0xff] }
  0x8d   :  { %3973 = vmatprep.mubr.bf16.mxu1 %v5935_v23  ;;  %v167_v23 = vld [vmem:[%s10104_s1 + $0x4a8] sm:$0xff] }
  0x8e   :  { %v5874_v45 = vcombine.low %v151_v22, %v167_v23 }
  0x93   :  { %3877 = vmatmul.mubr.bf16.gmra.mrb[56].mxu0 %v5932_v28  ;;  %v7429_v28 = vld [vmem:[%s10103_s0 + $0x3f0] sm:$0xff]  }
  0x94   :  { %3974 = vmatmul.mubr.bf16.gmra.mrb[56].mxu1 %v5934_v29  ;;  %3884 = vmatprep.mubr.bf16.mxu0 %v5965_v30  ;;  %v5842_v29 = vcombine.low %v119_v6, %v135_v7  ;;  %v5873_v30 = vcombine.high %v150_v19, %v166_v21 }
  0x95   :  { %3981 = vmatprep.mubr.bf16.mxu1 %v5967_v31  ;;  %v5875_v31 = vcombine.high %v151_v22, %v167_v23  ;;  %v88_v22 = vld [vmem:[%s10104_s1 + $0x230] sm:$0xff] }
  0x96   :  { %v104_v23 = vld [vmem:[%s10104_s1 + $0x2b0] sm:$0xff] }
  0x9b   :  { %3885 = vmatmul.mubr.bf16.gmra.mrb[60].mxu0 %v5964_v36  ;;  %v198_v36 = vld [vmem:[%s10104_s1 + $0x5a0] sm:$0xff] }
  0x9c   :  { %3982 = vmatmul.mubr.bf16.gmra.mrb[60].mxu1 %v5966_v37  ;;  %4022 = vmatprep.mubr.bf16.mxu0 %v5745_v38  ;;  %v7433_v37 = vld [vmem:[%s10103_s0 + $0x3f8] sm:$0xff]   ;;  %v183_v38 = vld [vmem:[%s10104_s1 + $0x528] sm:$0xff] }
  0x9d   :  { %4119 = vmatprep.mubr.bf16.mxu1 %v5747_v39  ;;  %v199_v39 = vld [vmem:[%s10104_s1 + $0x5a8] sm:$0xff] }
  0xa3   :  { %4023 = vmatmul.mubr.bf16.vlgmr.msra.gmra.mrb[64].mxu0 %v5744_v42  ;;  %v7435_v42 = vld [vmem:[%s10103_s0 + $0x440] sm:$0xff]  }
  0xa4   :  { %4120 = vmatmul.mubr.bf16.vlgmr.msra.gmra.mrb[64].mxu1 %v5746_v46  ;;  %6665 = vmatpush3.bf16.msra.mxu0 %v7404_v43  ;;  %v5872_v43 = vcombine.low %v150_v19, %v166_v21  ;;  %v5905_v46 = vcombine.high %v182_v35, %v198_v36  ;;  %v7440_v19 = vld [vmem:[%s10103_s0 + $0x408] sm:$0xff]  }
  0xa5   :  { %6729 = vmatpush3.bf16.msra.mxu1 %v7406_v47  ;;  %4030 = vmatprep.mubr.bf16.mxu0 %v5777_v48  ;;  %v5907_v47 = vcombine.high %v183_v38, %v199_v39  ;;  %v214_v48 = vld [vmem:[%s10104_s1 + $0x620] sm:$0xff]  ;;  %v7442_v21 = vld [vmem:[%s10103_s0 + $0x488] sm:$0xff]  }
  0xa6   :  { %4127 = vmatprep.mubr.bf16.mxu1 %v5779_v50  ;;  %6666 = vmatprep.subr.bf16.mxu0 %v7407_v49  ;;  %v230_v49 = vld [vmem:[%s10104_s1 + $0x6a0] sm:$0xff]  ;;  %v215_v50 = vld [vmem:[%s10104_s1 + $0x628] sm:$0xff] }
  0xa7   :  { %6730 = vmatprep.subr.bf16.mxu1 %v7409_v52  ;;  %v5904_v52 = vcombine.low %v182_v35, %v198_v36  ;;  %v5937_v54 = vcombine.high %v214_v48, %v230_v49  ;;  %v8371_v35 = vld [vmem:[%s10104_s1 + $0x330] sm:$0xff] }
  0xa8   :  { %6667 = vmatpush3.bf16.msra.mxu0 %v7408_v51  ;;  %v231_v51 = vld [vmem:[%s10104_s1 + $0x6a8] sm:$0xff]  ;;  %v8376_v36 = vld [vmem:[%s10104_s1 + $0x3b0] sm:$0xff] }
  0xa9   :  { %6731 = vmatpush3.bf16.msra.mxu1 %v7410_v53  ;;  %6668 = vmatprep.subr.bf16.mxu0 %v7411_v58  ;;  %v5906_v53 = vcombine.low %v183_v38, %v199_v39  ;;  %v5939_v55 = vcombine.high %v215_v50, %v231_v51  ;;  %v247_v58 = vld [vmem:[%s10104_s1 + $0x728] sm:$0xff]  ;;  %v8384_v38 = vld [vmem:[%s10104_s1 + $0x338] sm:$0xff] }
  0xaa   :  { %6732 = vmatprep.subr.bf16.mxu1 %v7413_v59  ;;  %v263_v59 = vld [vmem:[%s10104_s1 + $0x7a8] sm:$0xff]  ;;  %v8389_v39 = vld [vmem:[%s10104_s1 + $0x3b8] sm:$0xff] }
  0xab   :  { %4031 = vmatmul.mubr.bf16.gmra.mrb[68].mxu0 %v5776_v60  ;;  %v5936_v60 = vcombine.low %v214_v48, %v230_v49  ;;  %v5847_v48 = vcombine.high %v8384_v38, %v8389_v39  ;;  %v7454_v49 = vld [vmem:[%s10103_s0 + $0x4a0] sm:$0xff]  }
  0xac   :  { %4128 = vmatmul.mubr.bf16.gmra.mrb[68].mxu1 %v5778_v61  ;;  %4038 = vmatprep.mubr.bf16.mxu0 %v5809_v62  ;;  %v5938_v61 = vcombine.low %v215_v50, %v231_v51  ;;  %v5969_v62 = vcombine.high %v246_v56, %v262_v57  ;;  %v7455_v50 = vld [vmem:[%s10103_s0 + $0x468] sm:$0xff]   ;;  %v8419_v51 = vld [vmem:[%s10104_s1 + $0x430] sm:$0xff] }
  0xad   :  { %4135 = vmatprep.mubr.bf16.mxu1 %v5811_v63  ;;  %6669 = vmatpush3.bf16.msra.mxu0 %v7412_v0  ;;  %v5971_v63 = vcombine.high %v247_v58, %v263_v59  ;;  %v24_v0 = vld [vmem:[%s10104_s1 + $0x30] sm:$0xff]  ;;  %v7456_v56 = vld [vmem:[%s10103_s0 + $0x428] sm:$0xff]  }
  0xae   :  { %6733 = vmatpush3.bf16.msra.mxu1 %v7414_v1  ;;  %6670 = vmatprep.subr.bf16.mxu0 %v7415_v2  ;;  %v40_v1 = vld [vmem:[%s10104_s1 + $0xb0] sm:$0xff]  ;;  %v25_v2 = vld [vmem:[%s10104_s1 + $0x38] sm:$0xff]  ;;  %v7458_v57 = vld [vmem:[%s10103_s0 + $0x4a8] sm:$0xff]  }
  0xaf   :  { %6734 = vmatprep.subr.bf16.mxu1 %v7417_v5  ;;  %v5970_v5 = vcombine.low %v247_v58, %v263_v59  ;;  %v5749_v6 = vcombine.high %v24_v0, %v40_v1  ;;  %v5751_v7 = vcombine.high %v25_v2, %v41_v3  ;;  %v7459_v59 = vld [vmem:[%s10103_s0 + $0x470] sm:$0xff]  }
  0xb1   :  { %6671 = vmatpush3.bf16.msra.mxu0 %v7416_v8  ;;  %v56_v8 = vld [vmem:[%s10104_s1 + $0x130] sm:$0xff] }
  0xb2   :  { %6735 = vmatpush3.bf16.msra.mxu1 %v7418_v9  ;;  %6672 = vmatprep.subr.bf16.mxu0 %v7419_v10  ;;  %v72_v9 = vld [vmem:[%s10104_s1 + $0x1b0] sm:$0xff]  ;;  %v5748_v10 = vcombine.low %v24_v0, %v40_v1 }
  0xb3   :  { %4039 = vmatmul.mubr.bf16.gmra.mrb[72].mxu0 %v5808_v11  ;;  %6736 = vmatprep.subr.bf16.mxu1 %v7421_v12  ;;  %v7436_v11 = vld [vmem:[%s10103_s0 + $0x400] sm:$0xff]   ;;  %v57_v12 = vld [vmem:[%s10104_s1 + $0x138] sm:$0xff]  ;;  %v7461_v0 = vld [vmem:[%s10103_s0 + $0x4f0] sm:$0xff]  }
  0xb4   :  { %4136 = vmatmul.mubr.bf16.gmra.mrb[72].mxu1 %v5810_v13  ;;  %4046 = vmatprep.mubr.bf16.mxu0 %v5841_v14  ;;  %v73_v13 = vld [vmem:[%s10104_s1 + $0x1b8] sm:$0xff]  ;;  %v5750_v14 = vcombine.low %v25_v2, %v41_v3 }
  0xb5   :  { %4143 = vmatprep.mubr.bf16.mxu1 %v5843_v16  ;;  %6673 = vmatpush3.bf16.msra.mxu0 %v7420_v15  ;;  %v7438_v15 = vld [vmem:[%s10103_s0 + $0x480] sm:$0xff]   ;;  %v5781_v16 = vcombine.high %v56_v8, %v72_v9 }
  0xb6   :  { %6737 = vmatpush3.bf16.msra.mxu1 %v7422_v17  ;;  %6674 = vmatprep.subr.bf16.mxu0 %v7423_v18  ;;  %v7439_v17 = vld [vmem:[%s10103_s0 + $0x448] sm:$0xff]   ;;  %v5783_v18 = vcombine.high %v57_v12, %v73_v13 }
  0xb7   :  { %6738 = vmatprep.subr.bf16.mxu1 %v7425_v20  ;;  %v7441_v20 = vld [vmem:[%s10103_s0 + $0x4c8] sm:$0xff]  }
  0xb9   :  { %6675 = vmatpush3.bf16.msra.mxu0 %v7424_v24  ;;  %v89_v24 = vld [vmem:[%s10104_s1 + $0x238] sm:$0xff] }
  0xba   :  { %6739 = vmatpush3.bf16.msra.mxu1 %v7426_v25  ;;  %6676 = vmatprep.subr.bf16.mxu0 %v7427_v26  ;;  %v105_v25 = vld [vmem:[%s10104_s1 + $0x2b8] sm:$0xff]  ;;  %v7443_v26 = vld [vmem:[%s10103_s0 + $0x450] sm:$0xff]  }
  0xbb   :  { %4047 = vmatmul.mubr.bf16.gmra.mrb[76].mxu0 %v5840_v27  ;;  %6740 = vmatprep.subr.bf16.mxu1 %v7429_v28  ;;  %v7445_v27 = vld [vmem:[%s10103_s0 + $0x4d0] sm:$0xff]   ;;  %v5780_v28 = vcombine.low %v56_v8, %v72_v9 }
  0xbc   :  { %4144 = vmatmul.mubr.bf16.gmra.mrb[76].mxu1 %v5842_v29  ;;  %4054 = vmatprep.mubr.bf16.mxu0 %v5873_v30  ;;  %v5782_v29 = vcombine.low %v57_v12, %v73_v13  ;;  %v5813_v30 = vcombine.high %v88_v22, %v104_v23  ;;  %v7462_v12 = vld [vmem:[%s10103_s0 + $0x4b0] sm:$0xff]   ;;  %v7463_v13 = vld [vmem:[%s10103_s0 + $0x478] sm:$0xff]  }
  0xbd   :  { %4151 = vmatprep.mubr.bf16.mxu1 %v5875_v31  ;;  %6677 = vmatpush3.bf16.msra.mxu0 %v7428_v32  ;;  %v5815_v31 = vcombine.high %v89_v24, %v105_v25  ;;  %v7444_v32 = vld [vmem:[%s10103_s0 + $0x410] sm:$0xff]  }
  0xbe   :  { %6741 = vmatpush3.bf16.msra.mxu1 %v7430_v33  ;;  %6678 = vmatprep.subr.bf16.mxu0 %v7431_v34  ;;  %v7446_v33 = vld [vmem:[%s10103_s0 + $0x490] sm:$0xff]   ;;  %v7447_v34 = vld [vmem:[%s10103_s0 + $0x458] sm:$0xff]  }
  0xbf   :  { %6742 = vmatprep.subr.bf16.mxu1 %v7433_v37  ;;  %v7449_v37 = vld [vmem:[%s10103_s0 + $0x4d8] sm:$0xff]  }
  0xc1   :  { %6679 = vmatpush3.bf16.msra.mxu0 %v7432_v40  ;;  %v7448_v40 = vld [vmem:[%s10103_s0 + $0x418] sm:$0xff]  }
  0xc2   :  { %6743 = vmatpush3.bf16.msra.mxu1 %v7434_v41  ;;  %6792 = vmatprep.subr.bf16.mxu0 %v7435_v42  ;;  %v7450_v41 = vld [vmem:[%s10103_s0 + $0x498] sm:$0xff]   ;;  %v7451_v42 = vld [vmem:[%s10103_s0 + $0x460] sm:$0xff]  }
  0xc3   :  { %4055 = vmatmul.mubr.bf16.gmra.mrb[80].mxu0 %v5872_v43  ;;  %6856 = vmatprep.subr.bf16.mxu1 %v7437_v44  ;;  %v5812_v43 = vcombine.low %v88_v22, %v104_v23  ;;  %v7453_v44 = vld [vmem:[%s10103_s0 + $0x4e0] sm:$0xff]   ;;  %v7466_v23 = vld [vmem:[%s10103_s0 + $0x4b8] sm:$0xff]  }
  0xc4   :  { %4152 = vmatmul.mubr.bf16.gmra.mrb[80].mxu1 %v5874_v45  ;;  %4062 = vmatprep.mubr.bf16.mxu0 %v5905_v46  ;;  %v5814_v45 = vcombine.low %v89_v24, %v105_v25  ;;  %v5845_v46 = vcombine.high %v8371_v35, %v8376_v36  ;;  %v7467_v25 = vld [vmem:[%s10103_s0 + $0x540] sm:$0xff]  }
  0xc5   :  { %4159 = vmatprep.mubr.bf16.mxu1 %v5907_v47  ;;  %v7452_v47 = vld [vmem:[%s10103_s0 + $0x420] sm:$0xff]  }
  0xcb   :  { %4063 = vmatmul.mubr.bf16.gmra.mrb[84].mxu0 %v5904_v52  ;;  %v7457_v52 = vld [vmem:[%s10103_s0 + $0x4e8] sm:$0xff]  }
  0xcc   :  { %4160 = vmatmul.mubr.bf16.gmra.mrb[84].mxu1 %v5906_v53  ;;  %4070 = vmatprep.mubr.bf16.mxu0 %v5937_v54  ;;  %v8427_v53 = vld [vmem:[%s10104_s1 + $0x4b0] sm:$0xff]  ;;  %v8432_v54 = vld [vmem:[%s10104_s1 + $0x438] sm:$0xff] }
  0xcd   :  { %4167 = vmatprep.mubr.bf16.mxu1 %v5939_v55  ;;  %v8437_v55 = vld [vmem:[%s10104_s1 + $0x4b8] sm:$0xff] }
  0xce   :  { %v5879_v9 = vcombine.high %v8432_v54, %v8437_v55 }
  0xd3   :  { %4071 = vmatmul.mubr.bf16.gmra.mrb[88].mxu0 %v5936_v60 }
  0xd4   :  { %4168 = vmatmul.mubr.bf16.gmra.mrb[88].mxu1 %v5938_v61  ;;  %4078 = vmatprep.mubr.bf16.mxu0 %v5969_v62  ;;  %v5844_v62 = vcombine.low %v8371_v35, %v8376_v36 }
  0xd5   :  { %4175 = vmatprep.mubr.bf16.mxu1 %v5971_v63  ;;  %v7460_v63 = vld [vmem:[%s10103_s0 + $0x430] sm:$0xff]  }
  0xdb   :  { %4079 = vmatmul.mubr.bf16.gmra.mrb[92].mxu0 %v5968_v4  ;;  %v5846_v4 = vcombine.low %v8384_v38, %v8389_v39 }
  0xdc   :  { %4176 = vmatmul.mubr.bf16.gmra.mrb[92].mxu1 %v5970_v5  ;;  %4216 = vmatprep.mubr.bf16.mxu0 %v5749_v6  ;;  %v5877_v5 = vcombine.high %v8419_v51, %v8427_v53 }
  0xdd   :  { %4313 = vmatprep.mubr.bf16.mxu1 %v5751_v7 }
  0xe3   :  { %4217 = vmatmul.mubr.bf16.vlgmr.msra.gmra.mrb[96].mxu0 %v5748_v10 }
  0xe4   :  { %4314 = vmatmul.mubr.bf16.vlgmr.msra.gmra.mrb[96].mxu1 %v5750_v14  ;;  %6793 = vmatpush3.bf16.msra.mxu0 %v7436_v11 }
  0xe5   :  { %6857 = vmatpush3.bf16.msra.mxu1 %v7438_v15  ;;  %4224 = vmatprep.mubr.bf16.mxu0 %v5781_v16  ;;  %v8473_v16 = vld [vmem:[%s10104_s1 + $0x530] sm:$0xff] }
  0xe6   :  { %4321 = vmatprep.mubr.bf16.mxu1 %v5783_v18  ;;  %6794 = vmatprep.subr.bf16.mxu0 %v7439_v17  ;;  %v8478_v17 = vld [vmem:[%s10104_s1 + $0x5b0] sm:$0xff]  ;;  %v7465_v18 = vld [vmem:[%s10103_s0 + $0x4f8] sm:$0xff]  }
  0xe7   :  { %6858 = vmatprep.subr.bf16.mxu1 %v7441_v20  ;;  %v201_v20 = vld [vmem:[%s10104_s1 + $0x5b8] sm:$0xff] }
  0xe8   :  { %6795 = vmatpush3.bf16.msra.mxu0 %v7440_v19  ;;  %v185_v19 = vld [vmem:[%s10104_s1 + $0x538] sm:$0xff] }
  0xe9   :  { %6859 = vmatpush3.bf16.msra.mxu1 %v7442_v21  ;;  %6796 = vmatprep.subr.bf16.mxu0 %v7443_v26  ;;  %v7464_v21 = vld [vmem:[%s10103_s0 + $0x438] sm:$0xff]   ;;  %v5911_v38 = vcombine.high %v185_v19, %v201_v20 }
  0xea   :  { %6860 = vmatprep.subr.bf16.mxu1 %v7445_v27 }
  0xeb   :  { %4225 = vmatmul.mubr.bf16.gmra.mrb[100].mxu0 %v5780_v28  ;;  %v5876_v28 = vcombine.low %v8419_v51, %v8427_v53  ;;  %v5908_v51 = vcombine.low %v8473_v16, %v8478_v17 }
  0xec   :  { %4322 = vmatmul.mubr.bf16.gmra.mrb[100].mxu1 %v5782_v29  ;;  %4232 = vmatprep.mubr.bf16.mxu0 %v5813_v30  ;;  %v7469_v29 = vld [vmem:[%s10103_s0 + $0x5c0] sm:$0xff]  }
  0xed   :  { %4329 = vmatprep.mubr.bf16.mxu1 %v5815_v31  ;;  %6797 = vmatpush3.bf16.msra.mxu0 %v7444_v32 }
  0xee   :  { %6861 = vmatpush3.bf16.msra.mxu1 %v7446_v33  ;;  %6798 = vmatprep.subr.bf16.mxu0 %v7447_v34  ;;  %v5878_v33 = vcombine.low %v8432_v54, %v8437_v55  ;;  %v5909_v34 = vcombine.high %v8473_v16, %v8478_v17  ;;  %v5910_v55 = vcombine.low %v185_v19, %v201_v20 }
  0xef   :  { %6862 = vmatprep.subr.bf16.mxu1 %v7449_v37 }
  0xf1   :  { %6799 = vmatpush3.bf16.msra.mxu0 %v7448_v40 }
  0xf2   :  { %6863 = vmatpush3.bf16.msra.mxu1 %v7450_v41  ;;  %6800 = vmatprep.subr.bf16.mxu0 %v7451_v42 }
  0xf3   :  { %4233 = vmatmul.mubr.bf16.gmra.mrb[104].mxu0 %v5812_v43  ;;  %6864 = vmatprep.subr.bf16.mxu1 %v7453_v44  ;;  %v216_v44 = vld [vmem:[%s10104_s1 + $0x630] sm:$0xff] }
  0xf4   :  { %4330 = vmatmul.mubr.bf16.gmra.mrb[104].mxu1 %v5814_v45  ;;  %4240 = vmatprep.mubr.bf16.mxu0 %v5845_v46  ;;  %v232_v45 = vld [vmem:[%s10104_s1 + $0x6b0] sm:$0xff] }
  0xf5   :  { %4337 = vmatprep.mubr.bf16.mxu1 %v5847_v48  ;;  %6801 = vmatpush3.bf16.msra.mxu0 %v7452_v47  ;;  %v217_v47 = vld [vmem:[%s10104_s1 + $0x638] sm:$0xff] }
  0xf6   :  { %v6296_v58 = vpop.f32.mrb[0].mxu0  ;;  %6865 = vmatpush3.bf16.msra.mxu1 %v7454_v49  ;;  %6802 = vmatprep.subr.bf16.mxu0 %v7455_v50  ;;  %v233_v48 = vld [vmem:[%s10104_s1 + $0x6b8] sm:$0xff] }
  0xf7   :  { %v6360_v60 = vpop.f32.mrb[0].mxu1  ;;  %v6297_v61 = vpop.f32.mrb[1].mxu0  ;;  %6866 = vmatprep.subr.bf16.mxu1 %v7457_v52 }
  0xf8   :  { %v6298_v1 = vadd.f32 %v6297_v61, %v6296_v58  ;;  %v6361_v2 = vpop.f32.mrb[1].mxu1  ;;  %v6299_v3 = vpop.f32.mrb[2].mxu0 }
  0xf9   :  { %v6362_v6 = vadd.f32 %v6361_v2, %v6360_v60  ;;  %v6363_v7 = vpop.f32.mrb[2].mxu1  ;;  %v6300_v8 = vpop.f32.mrb[3].mxu0  ;;  %6803 = vmatpush3.bf16.msra.mxu0 %v7456_v56  ;;  %v5941_v56 = vcombine.high %v216_v44, %v232_v45  ;;  %v5943_v60 = vcombine.high %v217_v47, %v233_v48  ;;  %v264_v2 = vld [vmem:[%s10104_s1 + $0x7b0] sm:$0xff] }
  0xfa   :  { %v6301_v10 = vadd.f32 %v6300_v8, %v6299_v3  ;;  %v6364_v11 = vpop.f32.mrb[3].mxu1  ;;  %6867 = vmatpush3.bf16.msra.mxu1 %v7458_v57  ;;  %6804 = vmatprep.subr.bf16.mxu0 %v7459_v59 }
  0xfb   :  { %v8468_v14 = vadd.f32 %v6362_v6, %v6298_v1  ;;  %v6365_v15 = vadd.f32 %v6364_v11, %v6363_v7  ;;  %4241 = vmatmul.mubr.bf16.gmra.mrb[108].mxu0 %v5844_v62  ;;  %6868 = vmatprep.subr.bf16.mxu1 %v7461_v0  ;;  %v248_v1 = vld [vmem:[%s10104_s1 + $0x730] sm:$0xff]  ;;  %v265_v6 = vld [vmem:[%s10104_s1 + $0x7b8] sm:$0xff] }
  0xfc   :  { %4338 = vmatmul.mubr.bf16.gmra.mrb[108].mxu1 %v5846_v4  ;;  %4248 = vmatprep.mubr.bf16.mxu0 %v5877_v5  ;;  %v249_v4 = vld [vmem:[%s10104_s1 + $0x738] sm:$0xff] }
  0xfd   :  { %v8492_v22 = vadd.f32 %v6365_v15, %v6301_v10  ;;  %4345 = vmatprep.mubr.bf16.mxu1 %v5879_v9  ;;  %6805 = vmatpush3.bf16.msra.mxu0 %v7460_v63  ;;  %v5940_v9 = vcombine.low %v216_v44, %v232_v45  ;;  %v5973_v15 = vcombine.high %v248_v1, %v264_v2 }
  0xfe   :  { %v6302_v24 = vpop.f32.mrb[4].mxu0  ;;  %6869 = vmatpush3.bf16.msra.mxu1 %v7462_v12  ;;  %6806 = vmatprep.subr.bf16.mxu0 %v7463_v13  ;;  %v5942_v13 = vcombine.low %v217_v47, %v233_v48  ;;  %v5975_v19 = vcombine.high %v249_v4, %v265_v6 }
  0xff   :  { %v6366_v26 = vpop.f32.mrb[4].mxu1  ;;  %v6303_v27 = vpop.f32.mrb[5].mxu0  ;;  %6870 = vmatprep.subr.bf16.mxu1 %v7465_v18 }
 0x100   :  { %v6304_v30 = vadd.f32 %v6303_v27, %v6302_v24  ;;  %v6367_v31 = vpop.f32.mrb[5].mxu1  ;;  %v6305_v32 = vpop.f32.mrb[6].mxu0  ;;  %v42_v27 = vld [vmem:[%s10104_s1 + $0xc0] sm:$0xff] }
 0x101   :  { %v6368_v35 = vadd.f32 %v6367_v31, %v6366_v26  ;;  %v6369_v36 = vpop.f32.mrb[6].mxu1  ;;  %v6306_v37 = vpop.f32.mrb[7].mxu0  ;;  %6807 = vmatpush3.bf16.msra.mxu0 %v7464_v21 }
 0x102   :  { %v6307_v39 = vadd.f32 %v6306_v37, %v6305_v32  ;;  %v6370_v40 = vpop.f32.mrb[7].mxu1  ;;  %6871 = vmatpush3.bf16.msra.mxu1 %v7466_v23  ;;  %6920 = vmatprep.subr.bf16.mxu0 %v7467_v25  ;;  %v26_v25 = vld [vmem:[%s10104_s1 + $0x40] sm:$0xff]  ;;  %v5974_v37 = vcombine.low %v249_v4, %v265_v6 }
 0x103   :  { %v8509_v41 = vadd.f32 %v6368_v35, %v6304_v30  ;;  %v6371_v42 = vadd.f32 %v6370_v40, %v6369_v36  ;;  %4249 = vmatmul.mubr.bf16.gmra.mrb[112].mxu0 %v5876_v28  ;;  %6984 = vmatprep.subr.bf16.mxu1 %v7469_v29  ;;  %v27_v29 = vld [vmem:[%s10104_s1 + $0x48] sm:$0xff]  ;;  %v7470_v4 = vld [vmem:[%s10103_s0 + $0x580] sm:$0xff]  }
 0x104   :  { %4346 = vmatmul.mubr.bf16.gmra.mrb[112].mxu1 %v5878_v33  ;;  %4256 = vmatprep.mubr.bf16.mxu0 %v5909_v34  ;;  %v43_v30 = vld [vmem:[%s10104_s1 + $0xc8] sm:$0xff]  ;;  %v5972_v33 = vcombine.low %v248_v1, %v264_v2 }
 0x105   :  { %v8511_v43 = vadd.f32 %v6371_v42, %v6307_v39  ;;  %4353 = vmatprep.mubr.bf16.mxu1 %v5911_v38  ;;  %v5753_v38 = vcombine.high %v26_v25, %v42_v27  ;;  %v5755_v44 = vcombine.high %v27_v29, %v43_v30 }
 0x106   :  { %v6308_v46 = vpop.f32.mrb[8].mxu0 }
 0x107   :  { %v6372_v49 = vpop.f32.mrb[8].mxu1  ;;  %v6309_v50 = vpop.f32.mrb[9].mxu0 }
 0x108   :  { %v6310_v52 = vadd.f32 %v6309_v50, %v6308_v46  ;;  %v6373_v53 = vpop.f32.mrb[9].mxu1  ;;  %v6311_v54 = vpop.f32.mrb[10].mxu0  ;;  %v8566_v50 = vld [vmem:[%s10104_s1 + $0x140] sm:$0xff] }
 0x109   :  { %v6374_v57 = vadd.f32 %v6373_v53, %v6372_v49  ;;  %v6375_v58 = vpop.f32.mrb[10].mxu1  ;;  %v6312_v59 = vpop.f32.mrb[11].mxu0  ;;  %v8574_v53 = vld [vmem:[%s10104_s1 + $0x1c0] sm:$0xff] }
 0x10a   :  { %v6313_v61 = vadd.f32 %v6312_v59, %v6311_v54  ;;  %v6376_v62 = vpop.f32.mrb[11].mxu1 }
 0x10b   :  { %v8527_v63 = vadd.f32 %v6374_v57, %v6310_v52  ;;  %v6377_v0 = vadd.f32 %v6376_v62, %v6375_v58  ;;  %4257 = vmatmul.mubr.bf16.gmra.mrb[116].mxu0 %v5908_v51  ;;  %v7468_v52 = vld [vmem:[%s10103_s0 + $0x500] sm:$0xff]   ;;  %v8579_v57 = vld [vmem:[%s10104_s1 + $0x148] sm:$0xff]  ;;  %v5754_v62 = vcombine.low %v27_v29, %v43_v30  ;;  %v5784_v29 = vcombine.low %v8566_v50, %v8574_v53 }
 0x10c   :  { %4354 = vmatmul.mubr.bf16.gmra.mrb[116].mxu1 %v5910_v55  ;;  %4264 = vmatprep.mubr.bf16.mxu0 %v5941_v56  ;;  %v5752_v56 = vcombine.low %v26_v25, %v42_v27  ;;  %v8584_v58 = vld [vmem:[%s10104_s1 + $0x1c8] sm:$0xff]  ;;  %v7477_v25 = vld [vmem:[%s10103_s0 + $0x5d0] sm:$0xff]  }
 0x10d   :  { %v8535_v3 = vadd.f32 %v6377_v0, %v6313_v61  ;;  %4361 = vmatprep.mubr.bf16.mxu1 %v5943_v60 }
 0x10e   :  { %v6314_v5 = vpop.f32.mrb[12].mxu0 }
 0x10f   :  { %v6378_v7 = vpop.f32.mrb[12].mxu1  ;;  %v6315_v8 = vpop.f32.mrb[13].mxu0 }
 0x110   :  { %v6316_v10 = vadd.f32 %v6315_v8, %v6314_v5  ;;  %v6379_v11 = vpop.f32.mrb[13].mxu1  ;;  %v6317_v12 = vpop.f32.mrb[14].mxu0  ;;  %v5785_v5 = vcombine.high %v8566_v50, %v8574_v53  ;;  %v5787_v8 = vcombine.high %v8579_v57, %v8584_v58  ;;  %v7480_v53 = vld [vmem:[%s10103_s0 + $0x518] sm:$0xff]  }
 0x111   :  { %v6380_v16 = vadd.f32 %v6379_v11, %v6378_v7  ;;  %v6381_v17 = vpop.f32.mrb[14].mxu1  ;;  %v6318_v18 = vpop.f32.mrb[15].mxu0  ;;  %v7473_v11 = vld [vmem:[%s10103_s0 + $0x5c8] sm:$0xff]  }
 0x112   :  { %v6319_v20 = vadd.f32 %v6318_v18, %v6317_v12  ;;  %v6382_v21 = vpop.f32.mrb[15].mxu1  ;;  %v7475_v18 = vld [vmem:[%s10103_s0 + $0x550] sm:$0xff]  }
 0x113   :  { %v8543_v23 = vadd.f32 %v6380_v16, %v6316_v10  ;;  %v6383_v24 = vadd.f32 %v6382_v21, %v6381_v17  ;;  %4265 = vmatmul.mubr.bf16.gmra.mrb[120].mxu0 %v5940_v9  ;;  %v7471_v9 = vld [vmem:[%s10103_s0 + $0x548] sm:$0xff]   ;;  %v8610_v16 = vld [vmem:[%s10104_s1 + $0x240] sm:$0xff] }
 0x114   :  { %4362 = vmatmul.mubr.bf16.gmra.mrb[120].mxu1 %v5942_v13  ;;  %4272 = vmatprep.mubr.bf16.mxu0 %v5973_v15  ;;  %v7472_v10 = vld [vmem:[%s10103_s0 + $0x508] sm:$0xff]   ;;  %v8615_v17 = vld [vmem:[%s10104_s1 + $0x2c0] sm:$0xff] }
 0x115   :  { %v8548_v26 = vadd.f32 %v6383_v24, %v6319_v20  ;;  %4369 = vmatprep.mubr.bf16.mxu1 %v5975_v19  ;;  %v7474_v15 = vld [vmem:[%s10103_s0 + $0x588] sm:$0xff]  }
 0x116   :  { %v6320_v28 = vpop.f32.mrb[16].mxu0  ;;  %v8625_v21 = vld [vmem:[%s10104_s1 + $0x248] sm:$0xff] }
 0x117   :  { %v6384_v31 = vpop.f32.mrb[16].mxu1  ;;  %v6321_v32 = vpop.f32.mrb[17].mxu0  ;;  %v8630_v24 = vld [vmem:[%s10104_s1 + $0x2c8] sm:$0xff] }
 0x118   :  { %v6322_v34 = vadd.f32 %v6321_v32, %v6320_v28  ;;  %v6385_v35 = vpop.f32.mrb[17].mxu1  ;;  %v6323_v36 = vpop.f32.mrb[18].mxu0 }
 0x119   :  { %v6386_v39 = vadd.f32 %v6385_v35, %v6384_v31  ;;  %v6387_v40 = vpop.f32.mrb[18].mxu1  ;;  %v6324_v42 = vpop.f32.mrb[19].mxu0  ;;  %v7476_v35 = vld [vmem:[%s10103_s0 + $0x510] sm:$0xff]  }
 0x11a   :  { %v6325_v45 = vadd.f32 %v6324_v42, %v6323_v36  ;;  %v6388_v46 = vpop.f32.mrb[19].mxu1  ;;  %v7479_v42 = vld [vmem:[%s10103_s0 + $0x558] sm:$0xff]  }
 0x11b   :  { %v8559_v47 = vadd.f32 %v6386_v39, %v6322_v34  ;;  %v6389_v48 = vadd.f32 %v6388_v46, %v6387_v40  ;;  %4273 = vmatmul.mubr.bf16.gmra.mrb[124].mxu0 %v5972_v33  ;;  %v5786_v33 = vcombine.low %v8579_v57, %v8584_v58  ;;  %v5817_v34 = vcombine.high %v8610_v16, %v8615_v17  ;;  %v7478_v40 = vld [vmem:[%s10103_s0 + $0x590] sm:$0xff]   ;;  %v7481_v46 = vld [vmem:[%s10103_s0 + $0x5d8] sm:$0xff]   ;;  %v8680_v57 = vld [vmem:[%s10104_s1 + $0x3c8] sm:$0xff] }
 0x11c   :  { %4370 = vmatmul.mubr.bf16.gmra.mrb[124].mxu1 %v5974_v37  ;;  %4410 = vmatprep.mubr.bf16.mxu0 %v5753_v38  ;;  %v5819_v39 = vcombine.high %v8625_v21, %v8630_v24  ;;  %v7482_v58 = vld [vmem:[%s10103_s0 + $0x598] sm:$0xff]  }
 0x11d   :  { %v8561_v49 = vadd.f32 %v6389_v48, %v6325_v45  ;;  %4507 = vmatprep.mubr.bf16.mxu1 %v5755_v44 }
 0x11e   :  { %v6326_v51 = vpop.f32.mrb[20].mxu0 }
 0x11f   :  { %v6390_v54 = vpop.f32.mrb[20].mxu1  ;;  %v6327_v55 = vpop.f32.mrb[21].mxu0 }
 0x120   :  { %v6328_v59 = vadd.f32 %v6327_v55, %v6326_v51  ;;  %v6391_v60 = vpop.f32.mrb[21].mxu1  ;;  %v6329_v61 = vpop.f32.mrb[22].mxu0  ;;  %v8660_v51 = vld [vmem:[%s10104_s1 + $0x340] sm:$0xff] }
 0x121   :  { %v6392_v0 = vadd.f32 %v6391_v60, %v6390_v54  ;;  %v6393_v1 = vpop.f32.mrb[22].mxu1  ;;  %v6330_v2 = vpop.f32.mrb[23].mxu0  ;;  %v8673_v54 = vld [vmem:[%s10104_s1 + $0x348] sm:$0xff] }
 0x122   :  { %v6331_v6 = vadd.f32 %v6330_v2, %v6329_v61  ;;  %v6394_v7 = vpop.f32.mrb[23].mxu1 }
 0x123   :  { %v8602_v12 = vadd.f32 %v6392_v0, %v6328_v59  ;;  %v6395_v13 = vadd.f32 %v6394_v7, %v6393_v1  ;;  %4411 = vmatmul.mubr.bf16.vlgmr.msra.gmra.mrb[128].mxu0 %v5752_v56  ;;  %v7483_v59 = vld [vmem:[%s10103_s0 + $0x560] sm:$0xff]  }
 0x124   :  { %4508 = vmatmul.mubr.bf16.vlgmr.msra.gmra.mrb[128].mxu1 %v5754_v62  ;;  %6921 = vmatpush3.bf16.msra.mxu0 %v7468_v52  ;;  %v8665_v52 = vld [vmem:[%s10104_s1 + $0x3c0] sm:$0xff]  ;;  %v5816_v62 = vcombine.low %v8610_v16, %v8615_v17 }
 0x125   :  { %v8620_v19 = vadd.f32 %v6395_v13, %v6331_v6  ;;  %6985 = vmatpush3.bf16.msra.mxu1 %v7470_v4  ;;  %4418 = vmatprep.mubr.bf16.mxu0 %v5785_v5  ;;  %v7485_v0 = vld [vmem:[%s10103_s0 + $0x5e0] sm:$0xff]   ;;  %v5818_v5 = vcombine.low %v8625_v21, %v8630_v24  ;;  %v5849_v6 = vcombine.high %v8660_v51, %v8665_v52 }
 0x126   :  { %v6332_v20 = vpop.f32.mrb[24].mxu0  ;;  %4515 = vmatprep.mubr.bf16.mxu1 %v5787_v8  ;;  %6922 = vmatprep.subr.bf16.mxu0 %v7471_v9  ;;  %v7484_v7 = vld [vmem:[%s10103_s0 + $0x520] sm:$0xff]  }
 0x127   :  { %v6396_v27 = vpop.f32.mrb[24].mxu1  ;;  %v6333_v28 = vpop.f32.mrb[25].mxu0  ;;  %6986 = vmatprep.subr.bf16.mxu1 %v7473_v11  ;;  %v5851_v11 = vcombine.high %v8673_v54, %v8680_v57  ;;  %v7486_v13 = vld [vmem:[%s10103_s0 + $0x5a0] sm:$0xff]  }
 0x128   :  { %v6334_v30 = vadd.f32 %v6333_v28, %v6332_v20  ;;  %v6397_v31 = vpop.f32.mrb[25].mxu1  ;;  %v6335_v32 = vpop.f32.mrb[26].mxu0  ;;  %6923 = vmatpush3.bf16.msra.mxu0 %v7472_v10  ;;  %v8716_v24 = vld [vmem:[%s10104_s1 + $0x440] sm:$0xff]  ;;  %v8729_v28 = vld [vmem:[%s10104_s1 + $0x448] sm:$0xff] }
 0x129   :  { %v6398_v36 = vadd.f32 %v6397_v31, %v6396_v27  ;;  %v6399_v37 = vpop.f32.mrb[26].mxu1  ;;  %v6336_v38 = vpop.f32.mrb[27].mxu0  ;;  %6987 = vmatpush3.bf16.msra.mxu1 %v7474_v15  ;;  %6924 = vmatprep.subr.bf16.mxu0 %v7475_v18  ;;  %v7487_v15 = vld [vmem:[%s10103_s0 + $0x568] sm:$0xff]  }
 0x12a   :  { %v6337_v44 = vadd.f32 %v6336_v38, %v6335_v32  ;;  %v6400_v45 = vpop.f32.mrb[27].mxu1  ;;  %6988 = vmatprep.subr.bf16.mxu1 %v7477_v25  ;;  %v7489_v18 = vld [vmem:[%s10103_s0 + $0x5e8] sm:$0xff]   ;;  %v8721_v25 = vld [vmem:[%s10104_s1 + $0x4c0] sm:$0xff] }
 0x12b   :  { %v8655_v48 = vadd.f32 %v6398_v36, %v6334_v30  ;;  %v6401_v50 = vadd.f32 %v6400_v45, %v6399_v37  ;;  %4419 = vmatmul.mubr.bf16.gmra.mrb[132].mxu0 %v5784_v29  ;;  %v7488_v27 = vld [vmem:[%s10103_s0 + $0x528] sm:$0xff]   ;;  %v5848_v36 = vcombine.low %v8660_v51, %v8665_v52  ;;  %v7493_v37 = vld [vmem:[%s10103_s0 + $0x5f0] sm:$0xff]  }
 0x12c   :  { %4516 = vmatmul.mubr.bf16.gmra.mrb[132].mxu1 %v5786_v33  ;;  %4426 = vmatprep.mubr.bf16.mxu0 %v5817_v34  ;;  %v8736_v31 = vld [vmem:[%s10104_s1 + $0x4c8] sm:$0xff]  ;;  %v7491_v33 = vld [vmem:[%s10103_s0 + $0x570] sm:$0xff]  }
 0x12d   :  { %v8675_v55 = vadd.f32 %v6401_v50, %v6337_v44  ;;  %4523 = vmatprep.mubr.bf16.mxu1 %v5819_v39  ;;  %6925 = vmatpush3.bf16.msra.mxu0 %v7476_v35  ;;  %v7490_v32 = vld [vmem:[%s10103_s0 + $0x5a8] sm:$0xff]   ;;  %v5881_v44 = vcombine.high %v8716_v24, %v8721_v25  ;;  %v7492_v45 = vld [vmem:[%s10103_s0 + $0x530] sm:$0xff]   ;;  %v5883_v52 = vcombine.high %v8729_v28, %v8736_v31 }
 0x12e   :  { %v6338_v56 = vpop.f32.mrb[28].mxu0  ;;  %6989 = vmatpush3.bf16.msra.mxu1 %v7478_v40  ;;  %6926 = vmatprep.subr.bf16.mxu0 %v7479_v42  ;;  %v5850_v42 = vcombine.low %v8673_v54, %v8680_v57  ;;  %v7495_v54 = vld [vmem:[%s10103_s0 + $0x578] sm:$0xff]  }
 0x12f   :  { %v6402_v60 = vpop.f32.mrb[28].mxu1  ;;  %v6339_v61 = vpop.f32.mrb[29].mxu0  ;;  %6990 = vmatprep.subr.bf16.mxu1 %v7481_v46 }
 0x130   :  { %v6340_v1 = vadd.f32 %v6339_v61, %v6338_v56  ;;  %v6403_v2 = vpop.f32.mrb[29].mxu1  ;;  %v6341_v4 = vpop.f32.mrb[30].mxu0  ;;  %v8771_v61 = vld [vmem:[%s10104_s1 + $0x540] sm:$0xff] }
 0x131   :  { %v6404_v8 = vadd.f32 %v6403_v2, %v6402_v60  ;;  %v6405_v9 = vpop.f32.mrb[30].mxu1  ;;  %v6342_v10 = vpop.f32.mrb[31].mxu0  ;;  %6927 = vmatpush3.bf16.msra.mxu0 %v7480_v53  ;;  %v7494_v53 = vld [vmem:[%s10103_s0 + $0x5b0] sm:$0xff]   ;;  %v8787_v2 = vld [vmem:[%s10104_s1 + $0x548] sm:$0xff] }
 0x132   :  { %v6343_v16 = vadd.f32 %v6342_v10, %v6341_v4  ;;  %v6406_v17 = vpop.f32.mrb[31].mxu1  ;;  %6991 = vmatpush3.bf16.msra.mxu1 %v7482_v58  ;;  %6928 = vmatprep.subr.bf16.mxu0 %v7483_v59  ;;  %v7497_v59 = vld [vmem:[%s10103_s0 + $0x5f8] sm:$0xff]   ;;  %v5880_v10 = vcombine.low %v8716_v24, %v8721_v25 }
 0x133   :  { %v8711_v20 = vadd.f32 %v6404_v8, %v6340_v1  ;;  %v6407_v21 = vadd.f32 %v6406_v17, %v6405_v9  ;;  %4427 = vmatmul.mubr.bf16.gmra.mrb[136].mxu0 %v5816_v62  ;;  %6992 = vmatprep.subr.bf16.mxu1 %v7485_v0  ;;  %v8776_v62 = vld [vmem:[%s10104_s1 + $0x5c0] sm:$0xff]  ;;  %v5882_v17 = vcombine.low %v8729_v28, %v8736_v31 }
 0x134   :  { %4524 = vmatmul.mubr.bf16.gmra.mrb[136].mxu1 %v5818_v5  ;;  %4434 = vmatprep.mubr.bf16.mxu0 %v5849_v6  ;;  %v203_v6 = vld [vmem:[%s10104_s1 + $0x5c8] sm:$0xff]  ;;  %v218_v28 = vld [vmem:[%s10104_s1 + $0x640] sm:$0xff] }
 0x135   :  { %v8731_v29 = vadd.f32 %v6407_v21, %v6343_v16  ;;  %4531 = vmatprep.mubr.bf16.mxu1 %v5851_v11  ;;  %6929 = vmatpush3.bf16.msra.mxu0 %v7484_v7  ;;  %v7499_v7 = vld [vmem:[%s10103_s0 + $0x640] sm:$0xff]  }
 0x136   :  { %v6424_v30 = vpop.f32.mrb[32].mxu0  ;;  %6993 = vmatpush3.bf16.msra.mxu1 %v7486_v13  ;;  %6930 = vmatprep.subr.bf16.mxu0 %v7487_v15  ;;  %v7501_v11 = vld [vmem:[%s10103_s0 + $0x6c0] sm:$0xff]  }
 0x137   :  { %v6488_v34 = vpop.f32.mrb[32].mxu1  ;;  %v6425_v35 = vpop.f32.mrb[33].mxu0  ;;  %6994 = vmatprep.subr.bf16.mxu1 %v7489_v18  ;;  %v5913_v18 = vcombine.high %v8771_v61, %v8776_v62  ;;  %v234_v31 = vld [vmem:[%s10104_s1 + $0x6c0] sm:$0xff] }
 0x138   :  { %v6426_v38 = vadd.f32 %v6425_v35, %v6424_v30  ;;  %v6489_v39 = vpop.f32.mrb[33].mxu1  ;;  %v6427_v40 = vpop.f32.mrb[34].mxu0 }
 0x139   :  { %v6490_v46 = vadd.f32 %v6489_v39, %v6488_v34  ;;  %v6491_v50 = vpop.f32.mrb[34].mxu1  ;;  %v6428_v51 = vpop.f32.mrb[35].mxu0  ;;  %6931 = vmatpush3.bf16.msra.mxu0 %v7488_v27  ;;  %v235_v39 = vld [vmem:[%s10104_s1 + $0x6c8] sm:$0xff] }
 0x13a   :  { %v3831_v56 = vadd.f32 %v6426_v38, %v8468_v14  ;;  %v6429_v57 = vadd.f32 %v6428_v51, %v6427_v40  ;;  %v6492_v58 = vpop.f32.mrb[35].mxu1  ;;  %6995 = vmatpush3.bf16.msra.mxu1 %v7490_v32  ;;  %6932 = vmatprep.subr.bf16.mxu0 %v7491_v33  ;;  %v7496_v14 = vld [vmem:[%s10103_s0 + $0x538] sm:$0xff]   ;;  %v5915_v32 = vcombine.high %v8787_v2, %v203_v6  ;;  %v219_v38 = vld [vmem:[%s10104_s1 + $0x648] sm:$0xff] }
 0x13b   :  { %v6493_v60 = vadd.f32 %v6492_v58, %v6491_v50  ;;  %4435 = vmatmul.mubr.bf16.gmra.mrb[140].mxu0 %v5848_v36  ;;  %6996 = vmatprep.subr.bf16.mxu1 %v7493_v37  ;;  %v5914_v50 = vcombine.low %v8787_v2, %v203_v6  ;;  %v5945_v51 = vcombine.high %v218_v28, %v234_v31 }
 0x13c   :  { %v8781_v0 = vadd.f32 %v6490_v46, %v3831_v56  ;;  %v3834_v1 = vadd.f32 %v6429_v57, %v8492_v22  ;;  %4532 = vmatmul.mubr.bf16.gmra.mrb[140].mxu1 %v5850_v42  ;;  %4442 = vmatprep.mubr.bf16.mxu0 %v5881_v44  ;;  %v7498_v22 = vld [vmem:[%s10103_s0 + $0x5b8] sm:$0xff]   ;;  %v5912_v44 = vcombine.low %v8771_v61, %v8776_v62  ;;  %v250_v62 = vld [vmem:[%s10104_s1 + $0x740] sm:$0xff] }
 0x13d   :  { %4539 = vmatprep.mubr.bf16.mxu1 %v5883_v52  ;;  %6933 = vmatpush3.bf16.msra.mxu0 %v7492_v45  ;;  %v5947_v56 = vcombine.high %v219_v38, %v235_v39 }
 0x13e   :  { %v8789_v4 = vadd.f32 %v6493_v60, %v3834_v1  ;;  %v6430_v5 = vpop.f32.mrb[36].mxu0  ;;  %6997 = vmatpush3.bf16.msra.mxu1 %v7494_v53  ;;  %6934 = vmatprep.subr.bf16.mxu0 %v7495_v54  ;;  %v266_v1 = vld [vmem:[%s10104_s1 + $0x7c0] sm:$0xff] }
 0x13f   :  { %v6494_v8 = vpop.f32.mrb[36].mxu1  ;;  %v6431_v9 = vpop.f32.mrb[37].mxu0  ;;  %6998 = vmatprep.subr.bf16.mxu1 %v7497_v59 }
 0x140   :  { %v6432_v13 = vadd.f32 %v6431_v9, %v6430_v5  ;;  %v6495_v15 = vpop.f32.mrb[37].mxu1  ;;  %v6433_v16 = vpop.f32.mrb[38].mxu0  ;;  %v251_v5 = vld [vmem:[%s10104_s1 + $0x748] sm:$0xff] }
 0x141   :  { %v6496_v21 = vadd.f32 %v6495_v15, %v6494_v8  ;;  %v6497_v27 = vpop.f32.mrb[38].mxu1  ;;  %v6434_v30 = vpop.f32.mrb[39].mxu0  ;;  %6935 = vmatpush3.bf16.msra.mxu0 %v7496_v14 }
 0x142   :  { %v3839_v24 = vadd.f32 %v6432_v13, %v8509_v41  ;;  %v6435_v25 = vadd.f32 %v6434_v30, %v6433_v16  ;;  %v6498_v33 = vpop.f32.mrb[39].mxu1  ;;  %6999 = vmatpush3.bf16.msra.mxu1 %v7498_v22  ;;  %7048 = vmatprep.subr.bf16.mxu0 %v7499_v7  ;;  %v5944_v7 = vcombine.low %v218_v28, %v234_v31  ;;  %v29_v31 = vld [vmem:[%s10104_s1 + $0x58] sm:$0xff] }
 0x143   :  { %v6499_v34 = vadd.f32 %v6498_v33, %v6497_v27  ;;  %4443 = vmatmul.mubr.bf16.gmra.mrb[144].mxu0 %v5880_v10  ;;  %7112 = vmatprep.subr.bf16.mxu1 %v7501_v11  ;;  %v5946_v11 = vcombine.low %v219_v38, %v235_v39  ;;  %v5977_v13 = vcombine.high %v250_v62, %v266_v1  ;;  %v28_v33 = vld [vmem:[%s10104_s1 + $0x50] sm:$0xff] }
 0x144   :  { %v8817_v35 = vadd.f32 %v6496_v21, %v3839_v24  ;;  %v3842_v36 = vadd.f32 %v6435_v25, %v8511_v43  ;;  %4540 = vmatmul.mubr.bf16.gmra.mrb[144].mxu1 %v5882_v17  ;;  %4450 = vmatprep.mubr.bf16.mxu0 %v5913_v18  ;;  %v5976_v38 = vcombine.low %v250_v62, %v266_v1 }
 0x145   :  { %4547 = vmatprep.mubr.bf16.mxu1 %v5915_v32 }
 0x146   :  { %v8820_v41 = vadd.f32 %v6499_v34, %v3842_v36  ;;  %v6436_v37 = vpop.f32.mrb[40].mxu0  ;;  %v44_v34 = vld [vmem:[%s10104_s1 + $0xd0] sm:$0xff] }
 0x147   :  { %v6500_v40 = vpop.f32.mrb[40].mxu1  ;;  %v6437_v42 = vpop.f32.mrb[41].mxu0 }
 0x148   :  { %v6438_v43 = vadd.f32 %v6437_v42, %v6436_v37  ;;  %v6501_v45 = vpop.f32.mrb[41].mxu1  ;;  %v6439_v46 = vpop.f32.mrb[42].mxu0 }
 0x149   :  { %v6502_v52 = vadd.f32 %v6501_v45, %v6500_v40  ;;  %v6503_v53 = vpop.f32.mrb[42].mxu1  ;;  %v6440_v54 = vpop.f32.mrb[43].mxu0 }
 0x14a   :  { %v3847_v57 = vadd.f32 %v6438_v43, %v8527_v63  ;;  %v6441_v58 = vadd.f32 %v6440_v54, %v6439_v46  ;;  %v6504_v59 = vpop.f32.mrb[43].mxu1  ;;  %v5757_v43 = vcombine.high %v28_v33, %v44_v34 }
 0x14b   :  { %v6505_v60 = vadd.f32 %v6504_v59, %v6503_v53  ;;  %4451 = vmatmul.mubr.bf16.gmra.mrb[148].mxu0 %v5912_v44 }
 0x14c   :  { %v8832_v14 = vadd.f32 %v6502_v52, %v3847_v57  ;;  %v3850_v61 = vadd.f32 %v6441_v58, %v8535_v3  ;;  %4548 = vmatmul.mubr.bf16.gmra.mrb[148].mxu1 %v5914_v50  ;;  %4458 = vmatprep.mubr.bf16.mxu0 %v5945_v51  ;;  %v267_v3 = vld [vmem:[%s10104_s1 + $0x7c8] sm:$0xff] }
 0x14d   :  { %4555 = vmatprep.mubr.bf16.mxu1 %v5947_v56  ;;  %v5979_v18 = vcombine.high %v251_v5, %v267_v3  ;;  %v5978_v44 = vcombine.low %v251_v5, %v267_v3  ;;  %v8891_v5 = vld [vmem:[%s10104_s1 + $0x1d8] sm:$0xff] }
 0x14e   :  { %v8841_v63 = vadd.f32 %v6505_v60, %v3850_v61  ;;  %v6442_v2 = vpop.f32.mrb[44].mxu0  ;;  %v8876_v61 = vld [vmem:[%s10104_s1 + $0x150] sm:$0xff] }
 0x14f   :  { %v6506_v6 = vpop.f32.mrb[44].mxu1  ;;  %v6443_v22 = vpop.f32.mrb[45].mxu0 }
 0x150   :  { %v6444_v8 = vadd.f32 %v6443_v22, %v6442_v2  ;;  %v6507_v9 = vpop.f32.mrb[45].mxu1  ;;  %v6445_v10 = vpop.f32.mrb[46].mxu0  ;;  %v5756_v2 = vcombine.low %v28_v33, %v44_v34  ;;  %v7506_v34 = vld [vmem:[%s10103_s0 + $0x688] sm:$0xff]  }
 0x151   :  { %v6508_v15 = vadd.f32 %v6507_v9, %v6506_v6  ;;  %v6509_v16 = vpop.f32.mrb[46].mxu1  ;;  %v6446_v17 = vpop.f32.mrb[47].mxu0 }
 0x152   :  { %v3855_v21 = vadd.f32 %v6444_v8, %v8543_v23  ;;  %v6447_v27 = vadd.f32 %v6446_v17, %v6445_v10  ;;  %v6510_v30 = vpop.f32.mrb[47].mxu1  ;;  %v7500_v8 = vld [vmem:[%s10103_s0 + $0x600] sm:$0xff]  }
 0x153   :  { %v6511_v32 = vadd.f32 %v6510_v30, %v6509_v16  ;;  %4459 = vmatmul.mubr.bf16.gmra.mrb[152].mxu0 %v5944_v7 }
 0x154   :  { %v8850_v24 = vadd.f32 %v6508_v15, %v3855_v21  ;;  %v3858_v25 = vadd.f32 %v6447_v27, %v8548_v26  ;;  %4556 = vmatmul.mubr.bf16.gmra.mrb[152].mxu1 %v5946_v11  ;;  %4466 = vmatprep.mubr.bf16.mxu0 %v5977_v13  ;;  %v45_v26 = vld [vmem:[%s10104_s1 + $0xd8] sm:$0xff]  ;;  %v7502_v13 = vld [vmem:[%s10103_s0 + $0x680] sm:$0xff]   ;;  %v7503_v27 = vld [vmem:[%s10103_s0 + $0x648] sm:$0xff]  }
 0x155   :  { %4563 = vmatprep.mubr.bf16.mxu1 %v5979_v18  ;;  %v5759_v51 = vcombine.high %v29_v31, %v45_v26  ;;  %v5758_v7 = vcombine.low %v29_v31, %v45_v26  ;;  %v7507_v31 = vld [vmem:[%s10103_s0 + $0x650] sm:$0xff]  }
 0x156   :  { %v8859_v23 = vadd.f32 %v6511_v32, %v3858_v25  ;;  %v6448_v28 = vpop.f32.mrb[48].mxu0  ;;  %v7505_v32 = vld [vmem:[%s10103_s0 + $0x6c8] sm:$0xff]  }
 0x157   :  { %v6512_v36 = vpop.f32.mrb[48].mxu1  ;;  %v6449_v37 = vpop.f32.mrb[49].mxu0 }
 0x158   :  { %v6450_v39 = vadd.f32 %v6449_v37, %v6448_v28  ;;  %v6513_v40 = vpop.f32.mrb[49].mxu1  ;;  %v6451_v42 = vpop.f32.mrb[50].mxu0  ;;  %v8922_v28 = vld [vmem:[%s10104_s1 + $0x250] sm:$0xff]  ;;  %v8937_v37 = vld [vmem:[%s10104_s1 + $0x258] sm:$0xff] }
 0x159   :  { %v6514_v45 = vadd.f32 %v6513_v40, %v6512_v36  ;;  %v6515_v46 = vpop.f32.mrb[50].mxu1  ;;  %v6452_v50 = vpop.f32.mrb[51].mxu0 }
 0x15a   :  { %v3863_v52 = vadd.f32 %v6450_v39, %v8559_v47  ;;  %v6453_v53 = vadd.f32 %v6452_v50, %v6451_v42  ;;  %v6516_v54 = vpop.f32.mrb[51].mxu1  ;;  %v8881_v47 = vld [vmem:[%s10104_s1 + $0x1d0] sm:$0xff] }
 0x15b   :  { %v6517_v56 = vadd.f32 %v6516_v54, %v6515_v46  ;;  %4467 = vmatmul.mubr.bf16.gmra.mrb[156].mxu0 %v5976_v38  ;;  %v5789_v15 = vcombine.high %v8876_v61, %v8881_v47  ;;  %v8942_v38 = vld [vmem:[%s10104_s1 + $0x2d8] sm:$0xff]  ;;  %v7509_v39 = vld [vmem:[%s10103_s0 + $0x6d0] sm:$0xff]  }
 0x15c   :  { %v8868_v57 = vadd.f32 %v6514_v45, %v3863_v52  ;;  %v3866_v58 = vadd.f32 %v6453_v53, %v8561_v49  ;;  %4564 = vmatmul.mubr.bf16.gmra.mrb[156].mxu1 %v5978_v44  ;;  %4604 = vmatprep.mubr.bf16.mxu0 %v5757_v43  ;;  %v8886_v49 = vld [vmem:[%s10104_s1 + $0x158] sm:$0xff]  ;;  %v5788_v44 = vcombine.low %v8876_v61, %v8881_v47 }
 0x15d   :  { %4701 = vmatprep.mubr.bf16.mxu1 %v5759_v51  ;;  %v5791_v21 = vcombine.high %v8886_v49, %v8891_v5  ;;  %v5790_v50 = vcombine.low %v8886_v49, %v8891_v5  ;;  %v7513_v49 = vld [vmem:[%s10103_s0 + $0x6d8] sm:$0xff]  }
 0x15e   :  { %v8871_v59 = vadd.f32 %v6517_v56, %v3866_v58  ;;  %v6454_v60 = vpop.f32.mrb[52].mxu0  ;;  %v5823_v56 = vcombine.high %v8937_v37, %v8942_v38  ;;  %v7508_v58 = vld [vmem:[%s10103_s0 + $0x610] sm:$0xff]  }
 0x15f   :  { %v6518_v62 = vpop.f32.mrb[52].mxu1  ;;  %v6455_v1 = vpop.f32.mrb[53].mxu0 }
 0x160   :  { %v6456_v3 = vadd.f32 %v6455_v1, %v6454_v60  ;;  %v6519_v6 = vpop.f32.mrb[53].mxu1  ;;  %v6457_v22 = vpop.f32.mrb[54].mxu0  ;;  %v7511_v1 = vld [vmem:[%s10103_s0 + $0x658] sm:$0xff]  }
 0x161   :  { %v6520_v9 = vadd.f32 %v6519_v6, %v6518_v62  ;;  %v6521_v10 = vpop.f32.mrb[54].mxu1  ;;  %v6458_v11 = vpop.f32.mrb[55].mxu0  ;;  %v7510_v62 = vld [vmem:[%s10103_s0 + $0x690] sm:$0xff]  }
 0x162   :  { %v3871_v16 = vadd.f32 %v6456_v3, %v8602_v12  ;;  %v6459_v17 = vadd.f32 %v6458_v11, %v6457_v22  ;;  %v6522_v18 = vpop.f32.mrb[55].mxu1  ;;  %v7504_v12 = vld [vmem:[%s10103_s0 + $0x608] sm:$0xff]   ;;  %v8974_v3 = vld [vmem:[%s10104_s1 + $0x350] sm:$0xff]  ;;  %v8984_v22 = vld [vmem:[%s10104_s1 + $0x358] sm:$0xff] }
 0x163   :  { %v6523_v30 = vadd.f32 %v6522_v18, %v6521_v10  ;;  %4605 = vmatmul.mubr.bf16.vlgmr.msra.gmra.mrb[160].mxu0 %v5756_v2  ;;  %v8979_v6 = vld [vmem:[%s10104_s1 + $0x3d0] sm:$0xff]  ;;  %v7514_v10 = vld [vmem:[%s10103_s0 + $0x698] sm:$0xff]   ;;  %v7515_v11 = vld [vmem:[%s10103_s0 + $0x660] sm:$0xff]  }
 0x164   :  { %v8910_v25 = vadd.f32 %v6520_v9, %v3871_v16  ;;  %v3874_v33 = vadd.f32 %v6459_v17, %v8620_v19  ;;  %4702 = vmatmul.mubr.bf16.vlgmr.msra.gmra.mrb[160].mxu1 %v5758_v7  ;;  %7049 = vmatpush3.bf16.msra.mxu0 %v7500_v8  ;;  %v8927_v19 = vld [vmem:[%s10104_s1 + $0x2d0] sm:$0xff]  ;;  %v8994_v9 = vld [vmem:[%s10104_s1 + $0x3d8] sm:$0xff]  ;;  %v7517_v17 = vld [vmem:[%s10103_s0 + $0x6e0] sm:$0xff]  }
 0x165   :  { %7113 = vmatpush3.bf16.msra.mxu1 %v7502_v13  ;;  %4612 = vmatprep.mubr.bf16.mxu0 %v5789_v15  ;;  %v5821_v51 = vcombine.high %v8922_v28, %v8927_v19  ;;  %v5820_v16 = vcombine.low %v8922_v28, %v8927_v19  ;;  %v5855_v28 = vcombine.high %v8984_v22, %v8994_v9  ;;  %v7516_v19 = vld [vmem:[%s10103_s0 + $0x620] sm:$0xff]  }
 0x166   :  { %v8932_v26 = vadd.f32 %v6523_v30, %v3874_v33  ;;  %v6460_v36 = vpop.f32.mrb[56].mxu0  ;;  %4709 = vmatprep.mubr.bf16.mxu1 %v5791_v21  ;;  %7050 = vmatprep.subr.bf16.mxu0 %v7503_v27  ;;  %v5822_v30 = vcombine.low %v8937_v37, %v8942_v38  ;;  %v7518_v37 = vld [vmem:[%s10103_s0 + $0x6a0] sm:$0xff]   ;;  %v7519_v38 = vld [vmem:[%s10103_s0 + $0x668] sm:$0xff]  }
 0x167   :  { %v6524_v40 = vpop.f32.mrb[56].mxu1  ;;  %v6461_v42 = vpop.f32.mrb[57].mxu0  ;;  %7114 = vmatprep.subr.bf16.mxu1 %v7505_v32  ;;  %v5853_v32 = vcombine.high %v8974_v3, %v8979_v6 }
 0x168   :  { %v6462_v43 = vadd.f32 %v6461_v42, %v6460_v36  ;;  %v6525_v45 = vpop.f32.mrb[57].mxu1  ;;  %v6463_v46 = vpop.f32.mrb[58].mxu0  ;;  %7051 = vmatpush3.bf16.msra.mxu0 %v7504_v12  ;;  %v7521_v42 = vld [vmem:[%s10103_s0 + $0x6e8] sm:$0xff]  }
 0x169   :  { %v6526_v52 = vadd.f32 %v6525_v45, %v6524_v40  ;;  %v6527_v53 = vpop.f32.mrb[58].mxu1  ;;  %v6464_v54 = vpop.f32.mrb[59].mxu0  ;;  %7115 = vmatpush3.bf16.msra.mxu1 %v7506_v34  ;;  %7052 = vmatprep.subr.bf16.mxu0 %v7507_v31  ;;  %v9037_v45 = vld [vmem:[%s10104_s1 + $0x4d0] sm:$0xff] }
 0x16a   :  { %v3879_v60 = vadd.f32 %v6462_v43, %v8655_v48  ;;  %v6465_v61 = vadd.f32 %v6464_v54, %v6463_v46  ;;  %v6528_v47 = vpop.f32.mrb[59].mxu1  ;;  %7116 = vmatprep.subr.bf16.mxu1 %v7509_v39  ;;  %v9032_v43 = vld [vmem:[%s10104_s1 + $0x450] sm:$0xff]  ;;  %v9042_v46 = vld [vmem:[%s10104_s1 + $0x458] sm:$0xff] }
 0x16b   :  { %v6529_v2 = vadd.f32 %v6528_v47, %v6527_v53  ;;  %4613 = vmatmul.mubr.bf16.gmra.mrb[164].mxu0 %v5788_v44  ;;  %v7522_v53 = vld [vmem:[%s10103_s0 + $0x6a8] sm:$0xff]   ;;  %v7523_v54 = vld [vmem:[%s10103_s0 + $0x670] sm:$0xff]  }
 0x16c   :  { %v8968_v5 = vadd.f32 %v6526_v52, %v3879_v60  ;;  %v3882_v48 = vadd.f32 %v6465_v61, %v8675_v55  ;;  %4710 = vmatmul.mubr.bf16.gmra.mrb[164].mxu1 %v5790_v50  ;;  %4620 = vmatprep.mubr.bf16.mxu0 %v5821_v51  ;;  %v7512_v55 = vld [vmem:[%s10103_s0 + $0x618] sm:$0xff]   ;;  %v5852_v60 = vcombine.low %v8974_v3, %v8979_v6  ;;  %v7525_v61 = vld [vmem:[%s10103_s0 + $0x6f0] sm:$0xff]  }
 0x16d   :  { %4717 = vmatprep.mubr.bf16.mxu1 %v5823_v56  ;;  %7053 = vmatpush3.bf16.msra.mxu0 %v7508_v58  ;;  %v9052_v52 = vld [vmem:[%s10104_s1 + $0x4d8] sm:$0xff]  ;;  %v7524_v6 = vld [vmem:[%s10103_s0 + $0x630] sm:$0xff]  }
 0x16e   :  { %v8989_v7 = vadd.f32 %v6529_v2, %v3882_v48  ;;  %v6466_v8 = vpop.f32.mrb[60].mxu0  ;;  %7117 = vmatpush3.bf16.msra.mxu1 %v7510_v62  ;;  %7054 = vmatprep.subr.bf16.mxu0 %v7511_v1  ;;  %v5854_v2 = vcombine.low %v8984_v22, %v8994_v9  ;;  %v5887_v3 = vcombine.high %v9042_v46, %v9052_v52  ;;  %v7526_v22 = vld [vmem:[%s10103_s0 + $0x6b0] sm:$0xff]   ;;  %v7527_v9 = vld [vmem:[%s10103_s0 + $0x678] sm:$0xff]  }
 0x16f   :  { %v6530_v13 = vpop.f32.mrb[60].mxu1  ;;  %v6467_v15 = vpop.f32.mrb[61].mxu0  ;;  %7118 = vmatprep.subr.bf16.mxu1 %v7513_v49  ;;  %v5885_v49 = vcombine.high %v9032_v43, %v9037_v45 }
 0x170   :  { %v6468_v18 = vadd.f32 %v6467_v15, %v6466_v8  ;;  %v6531_v21 = vpop.f32.mrb[61].mxu1  ;;  %v6469_v27 = vpop.f32.mrb[62].mxu0 }
 0x171   :  { %v6532_v33 = vadd.f32 %v6531_v21, %v6530_v13  ;;  %v6533_v12 = vpop.f32.mrb[62].mxu1  ;;  %v6470_v34 = vpop.f32.mrb[63].mxu0  ;;  %7055 = vmatpush3.bf16.msra.mxu0 %v7512_v55  ;;  %v204_v21 = vld [vmem:[%s10104_s1 + $0x5d0] sm:$0xff] }
 0x172   :  { %v3887_v31 = vadd.f32 %v6468_v18, %v8711_v20  ;;  %v6471_v36 = vadd.f32 %v6470_v34, %v6469_v27  ;;  %v6534_v39 = vpop.f32.mrb[63].mxu1  ;;  %7119 = vmatpush3.bf16.msra.mxu1 %v7514_v10  ;;  %7056 = vmatprep.subr.bf16.mxu0 %v7515_v11  ;;  %v9090_v18 = vld [vmem:[%s10104_s1 + $0x550] sm:$0xff]  ;;  %v9098_v27 = vld [vmem:[%s10104_s1 + $0x558] sm:$0xff]  ;;  %v7531_v34 = vld [vmem:[%s10103_s0 + $0x740] sm:$0xff]  }
 0x173   :  { %v6535_v40 = vadd.f32 %v6534_v39, %v6533_v12  ;;  %4621 = vmatmul.mubr.bf16.gmra.mrb[168].mxu0 %v5820_v16  ;;  %7120 = vmatprep.subr.bf16.mxu1 %v7517_v17  ;;  %v7529_v16 = vld [vmem:[%s10103_s0 + $0x6f8] sm:$0xff]  }
 0x174   :  { %v9026_v20 = vadd.f32 %v6532_v33, %v3887_v31  ;;  %v3890_v44 = vadd.f32 %v6471_v36, %v8731_v29  ;;  %4718 = vmatmul.mubr.bf16.gmra.mrb[168].mxu1 %v5822_v30  ;;  %4628 = vmatprep.mubr.bf16.mxu0 %v5853_v32  ;;  %v7520_v29 = vld [vmem:[%s10103_s0 + $0x628] sm:$0xff]   ;;  %v205_v33 = vld [vmem:[%s10104_s1 + $0x5d8] sm:$0xff]  ;;  %v5884_v31 = vcombine.low %v9032_v43, %v9037_v45  ;;  %v7533_v36 = vld [vmem:[%s10103_s0 + $0x7c0] sm:$0xff]  }
 0x175   :  { %4725 = vmatprep.mubr.bf16.mxu1 %v5855_v28  ;;  %7057 = vmatpush3.bf16.msra.mxu0 %v7516_v19  ;;  %v7530_v12 = vld [vmem:[%s10103_s0 + $0x6b8] sm:$0xff]  }
 0x176   :  { %v9047_v50 = vadd.f32 %v6535_v40, %v3890_v44  ;;  %v6552_v51 = vpop.f32.mrb[64].mxu0  ;;  %7121 = vmatpush3.bf16.msra.mxu1 %v7518_v37  ;;  %7058 = vmatprep.subr.bf16.mxu0 %v7519_v38  ;;  %v5886_v40 = vcombine.low %v9042_v46, %v9052_v52  ;;  %v220_v52 = vld [vmem:[%s10104_s1 + $0x650] sm:$0xff] }
 0x177   :  { %v6616_v56 = vpop.f32.mrb[64].mxu1  ;;  %v6553_v58 = vpop.f32.mrb[65].mxu0  ;;  %7122 = vmatprep.subr.bf16.mxu1 %v7521_v42  ;;  %v5917_v42 = vcombine.high %v9090_v18, %v204_v21 }
 0x178   :  { %v6554_v47 = vadd.f32 %v6553_v58, %v6552_v51  ;;  %v6617_v62 = vpop.f32.mrb[65].mxu1  ;;  %v6555_v1 = vpop.f32.mrb[66].mxu0 }
 0x179   :  { %v6618_v48 = vadd.f32 %v6617_v62, %v6616_v56  ;;  %v6619_v55 = vpop.f32.mrb[66].mxu1  ;;  %v6556_v8 = vpop.f32.mrb[67].mxu0  ;;  %7059 = vmatpush3.bf16.msra.mxu0 %v7520_v29 }
 0x17a   :  { %v4025_v10 = vadd.f32 %v6554_v47, %v8781_v0  ;;  %v6557_v11 = vadd.f32 %v6556_v8, %v6555_v1  ;;  %v6620_v13 = vpop.f32.mrb[67].mxu1  ;;  %7123 = vmatpush3.bf16.msra.mxu1 %v7522_v53  ;;  %7060 = vmatprep.subr.bf16.mxu0 %v7523_v54  ;;  %v5919_v53 = vcombine.high %v9098_v27, %v205_v33  ;;  %v221_v47 = vld [vmem:[%s10104_s1 + $0x658] sm:$0xff] }
 0x17b   :  { %v6621_v15 = vadd.f32 %v6620_v13, %v6619_v55  ;;  %4629 = vmatmul.mubr.bf16.gmra.mrb[172].mxu0 %v5852_v60  ;;  %7124 = vmatprep.subr.bf16.mxu1 %v7525_v61  ;;  %v5918_v8 = vcombine.low %v9098_v27, %v205_v33  ;;  %v268_v27 = vld [vmem:[%s10104_s1 + $0x7d0] sm:$0xff] }
 0x17c   :  { %v9084_v0 = vadd.f32 %v6618_v48, %v4025_v10  ;;  %v4028_v17 = vadd.f32 %v6557_v11, %v8789_v4  ;;  %4726 = vmatmul.mubr.bf16.gmra.mrb[172].mxu1 %v5854_v2  ;;  %4636 = vmatprep.mubr.bf16.mxu0 %v5885_v49  ;;  %v7528_v4 = vld [vmem:[%s10103_s0 + $0x638] sm:$0xff]   ;;  %v5916_v2 = vcombine.low %v9090_v18, %v204_v21  ;;  %v252_v21 = vld [vmem:[%s10104_s1 + $0x750] sm:$0xff] }
 0x17d   :  { %4733 = vmatprep.mubr.bf16.mxu1 %v5887_v3  ;;  %7061 = vmatpush3.bf16.msra.mxu0 %v7524_v6 }
 0x17e   :  { %v9103_v30 = vadd.f32 %v6621_v15, %v4028_v17  ;;  %v6558_v32 = vpop.f32.mrb[68].mxu0  ;;  %7125 = vmatpush3.bf16.msra.mxu1 %v7526_v22  ;;  %7062 = vmatprep.subr.bf16.mxu0 %v7527_v9 }
 0x17f   :  { %v6622_v28 = vpop.f32.mrb[68].mxu1  ;;  %v6559_v19 = vpop.f32.mrb[69].mxu0  ;;  %7126 = vmatprep.subr.bf16.mxu1 %v7529_v16 }
 0x180   :  { %v6560_v39 = vadd.f32 %v6559_v19, %v6558_v32  ;;  %v6623_v37 = vpop.f32.mrb[69].mxu1  ;;  %v6561_v38 = vpop.f32.mrb[70].mxu0  ;;  %v253_v32 = vld [vmem:[%s10104_s1 + $0x758] sm:$0xff] }
 0x181   :  { %v6624_v44 = vadd.f32 %v6623_v37, %v6622_v28  ;;  %v6625_v29 = vpop.f32.mrb[70].mxu1  ;;  %v6562_v51 = vpop.f32.mrb[71].mxu0  ;;  %7063 = vmatpush3.bf16.msra.mxu0 %v7528_v4 }
 0x182   :  { %v4033_v43 = vadd.f32 %v6560_v39, %v8817_v35  ;;  %v6563_v45 = vadd.f32 %v6562_v51, %v6561_v38  ;;  %v6626_v54 = vpop.f32.mrb[71].mxu1  ;;  %7127 = vmatpush3.bf16.msra.mxu1 %v7530_v12  ;;  %7176 = vmatprep.subr.bf16.mxu0 %v7531_v34  ;;  %v236_v35 = vld [vmem:[%s10104_s1 + $0x6d0] sm:$0xff]  ;;  %v5981_v39 = vcombine.high %v252_v21, %v268_v27 }
 0x183   :  { %v6627_v56 = vadd.f32 %v6626_v54, %v6625_v29  ;;  %4637 = vmatmul.mubr.bf16.gmra.mrb[176].mxu0 %v5884_v31  ;;  %7240 = vmatprep.subr.bf16.mxu1 %v7533_v36  ;;  %v5949_v3 = vcombine.high %v220_v52, %v236_v35  ;;  %v5948_v34 = vcombine.low %v220_v52, %v236_v35  ;;  %v30_v54 = vld [vmem:[%s10104_s1 + $0x60] sm:$0xff]  ;;  %v31_v52 = vld [vmem:[%s10104_s1 + $0x68] sm:$0xff] }
 0x184   :  { %v9124_v58 = vadd.f32 %v6624_v44, %v4033_v43  ;;  %v4036_v46 = vadd.f32 %v6563_v45, %v8820_v41  ;;  %4734 = vmatmul.mubr.bf16.gmra.mrb[176].mxu1 %v5886_v40  ;;  %4644 = vmatprep.mubr.bf16.mxu0 %v5917_v42  ;;  %v237_v41 = vld [vmem:[%s10104_s1 + $0x6d8] sm:$0xff] }
 0x185   :  { %4741 = vmatprep.mubr.bf16.mxu1 %v5919_v53  ;;  %v5951_v13 = vcombine.high %v221_v47, %v237_v41  ;;  %v5950_v36 = vcombine.low %v221_v47, %v237_v41  ;;  %v5980_v47 = vcombine.low %v252_v21, %v268_v27 }
 0x186   :  { %v9133_v60 = vadd.f32 %v6627_v56, %v4036_v46  ;;  %v6564_v61 = vpop.f32.mrb[72].mxu0  ;;  %v46_v56 = vld [vmem:[%s10104_s1 + $0xe0] sm:$0xff] }
 0x187   :  { %v6628_v62 = vpop.f32.mrb[72].mxu1  ;;  %v6565_v1 = vpop.f32.mrb[73].mxu0 }
 0x188   :  { %v6566_v49 = vadd.f32 %v6565_v1, %v6564_v61  ;;  %v6629_v48 = vpop.f32.mrb[73].mxu1  ;;  %v6567_v55 = vpop.f32.mrb[74].mxu0 }
 0x189   :  { %v6630_v6 = vadd.f32 %v6629_v48, %v6628_v62  ;;  %v6631_v10 = vpop.f32.mrb[74].mxu1  ;;  %v6568_v11 = vpop.f32.mrb[75].mxu0 }
 0x18a   :  { %v4041_v22 = vadd.f32 %v6566_v49, %v8832_v14  ;;  %v6569_v9 = vadd.f32 %v6568_v11, %v6567_v55  ;;  %v6632_v15 = vpop.f32.mrb[75].mxu1  ;;  %v5761_v49 = vcombine.high %v30_v54, %v46_v56 }
 0x18b   :  { %v6633_v16 = vadd.f32 %v6632_v15, %v6631_v10  ;;  %4645 = vmatmul.mubr.bf16.gmra.mrb[180].mxu0 %v5916_v2 }
 0x18c   :  { %v9144_v17 = vadd.f32 %v6630_v6, %v4041_v22  ;;  %v4044_v18 = vadd.f32 %v6569_v9, %v8841_v63  ;;  %4742 = vmatmul.mubr.bf16.gmra.mrb[180].mxu1 %v5918_v8  ;;  %4652 = vmatprep.mubr.bf16.mxu0 %v5949_v3  ;;  %v269_v63 = vld [vmem:[%s10104_s1 + $0x7d8] sm:$0xff] }
 0x18d   :  { %4749 = vmatprep.mubr.bf16.mxu1 %v5951_v13  ;;  %v5983_v42 = vcombine.high %v253_v32, %v269_v63  ;;  %v5982_v2 = vcombine.low %v253_v32, %v269_v63  ;;  %v9203_v32 = vld [vmem:[%s10104_s1 + $0x1e8] sm:$0xff] }
 0x18e   :  { %v9153_v14 = vadd.f32 %v6633_v16, %v4044_v18  ;;  %v6570_v4 = vpop.f32.mrb[76].mxu0  ;;  %v9188_v18 = vld [vmem:[%s10104_s1 + $0x160] sm:$0xff] }
 0x18f   :  { %v6634_v33 = vpop.f32.mrb[76].mxu1  ;;  %v6571_v12 = vpop.f32.mrb[77].mxu0 }
 0x190   :  { %v6572_v28 = vadd.f32 %v6571_v12, %v6570_v4  ;;  %v6635_v19 = vpop.f32.mrb[77].mxu1  ;;  %v6573_v31 = vpop.f32.mrb[78].mxu0  ;;  %v5760_v4 = vcombine.low %v30_v54, %v46_v56  ;;  %v7538_v56 = vld [vmem:[%s10103_s0 + $0x788] sm:$0xff]  }
 0x191   :  { %v6636_v37 = vadd.f32 %v6635_v19, %v6634_v33  ;;  %v6637_v38 = vpop.f32.mrb[78].mxu1  ;;  %v6574_v40 = vpop.f32.mrb[79].mxu0 }
 0x192   :  { %v4049_v44 = vadd.f32 %v6572_v28, %v8850_v24  ;;  %v6575_v29 = vadd.f32 %v6574_v40, %v6573_v31  ;;  %v6638_v51 = vpop.f32.mrb[79].mxu1  ;;  %v7532_v28 = vld [vmem:[%s10103_s0 + $0x700] sm:$0xff]  }
 0x193   :  { %v6639_v53 = vadd.f32 %v6638_v51, %v6637_v38  ;;  %4653 = vmatmul.mubr.bf16.gmra.mrb[184].mxu0 %v5948_v34 }
 0x194   :  { %v9162_v43 = vadd.f32 %v6636_v37, %v4049_v44  ;;  %v4052_v45 = vadd.f32 %v6575_v29, %v8859_v23  ;;  %4750 = vmatmul.mubr.bf16.gmra.mrb[184].mxu1 %v5950_v36  ;;  %4660 = vmatprep.mubr.bf16.mxu0 %v5981_v39  ;;  %v47_v23 = vld [vmem:[%s10104_s1 + $0xe8] sm:$0xff]  ;;  %v7534_v39 = vld [vmem:[%s10103_s0 + $0x780] sm:$0xff]  }
 0x195   :  { %4757 = vmatprep.mubr.bf16.mxu1 %v5983_v42  ;;  %v5763_v3 = vcombine.high %v31_v52, %v47_v23  ;;  %v5762_v34 = vcombine.low %v31_v52, %v47_v23  ;;  %v7535_v29 = vld [vmem:[%s10103_s0 + $0x748] sm:$0xff]   ;;  %v7539_v52 = vld [vmem:[%s10103_s0 + $0x750] sm:$0xff]  }
 0x196   :  { %v9171_v24 = vadd.f32 %v6639_v53, %v4052_v45  ;;  %v6576_v46 = vpop.f32.mrb[80].mxu0  ;;  %v7537_v53 = vld [vmem:[%s10103_s0 + $0x7c8] sm:$0xff]  }
 0x197   :  { %v6640_v35 = vpop.f32.mrb[80].mxu1  ;;  %v6577_v61 = vpop.f32.mrb[81].mxu0 }
 0x198   :  { %v6578_v41 = vadd.f32 %v6577_v61, %v6576_v46  ;;  %v6641_v62 = vpop.f32.mrb[81].mxu1  ;;  %v6579_v1 = vpop.f32.mrb[82].mxu0  ;;  %v9234_v46 = vld [vmem:[%s10104_s1 + $0x260] sm:$0xff]  ;;  %v9249_v61 = vld [vmem:[%s10104_s1 + $0x268] sm:$0xff] }
 0x199   :  { %v6642_v48 = vadd.f32 %v6641_v62, %v6640_v35  ;;  %v6643_v55 = vpop.f32.mrb[82].mxu1  ;;  %v6580_v8 = vpop.f32.mrb[83].mxu0 }
 0x19a   :  { %v4057_v6 = vadd.f32 %v6578_v41, %v8868_v57  ;;  %v6581_v10 = vadd.f32 %v6580_v8, %v6579_v1  ;;  %v6644_v11 = vpop.f32.mrb[83].mxu1  ;;  %v9193_v57 = vld [vmem:[%s10104_s1 + $0x1e0] sm:$0xff]  ;;  %v7541_v41 = vld [vmem:[%s10103_s0 + $0x7d0] sm:$0xff]  }
 0x19b   :  { %v6645_v13 = vadd.f32 %v6644_v11, %v6643_v55  ;;  %4661 = vmatmul.mubr.bf16.gmra.mrb[188].mxu0 %v5980_v47  ;;  %v5793_v37 = vcombine.high %v9188_v18, %v9193_v57  ;;  %v9254_v47 = vld [vmem:[%s10104_s1 + $0x2e8] sm:$0xff] }
 0x19c   :  { %v9180_v22 = vadd.f32 %v6642_v48, %v4057_v6  ;;  %v4060_v9 = vadd.f32 %v6581_v10, %v8871_v59  ;;  %4758 = vmatmul.mubr.bf16.gmra.mrb[188].mxu1 %v5982_v2  ;;  %4798 = vmatprep.mubr.bf16.mxu0 %v5761_v49  ;;  %v9198_v59 = vld [vmem:[%s10104_s1 + $0x168] sm:$0xff]  ;;  %v5792_v2 = vcombine.low %v9188_v18, %v9193_v57 }
 0x19d   :  { %4895 = vmatprep.mubr.bf16.mxu1 %v5763_v3  ;;  %v5795_v44 = vcombine.high %v9198_v59, %v9203_v32  ;;  %v5794_v8 = vcombine.low %v9198_v59, %v9203_v32  ;;  %v7545_v59 = vld [vmem:[%s10103_s0 + $0x7d8] sm:$0xff]  }
 0x19e   :  { %v9183_v15 = vadd.f32 %v6645_v13, %v4060_v9  ;;  %v6582_v16 = vpop.f32.mrb[84].mxu0  ;;  %v5827_v13 = vcombine.high %v9249_v61, %v9254_v47  ;;  %v7540_v9 = vld [vmem:[%s10103_s0 + $0x710] sm:$0xff]  }
 0x19f   :  { %v6646_v21 = vpop.f32.mrb[84].mxu1  ;;  %v6583_v27 = vpop.f32.mrb[85].mxu0 }
 0x1a0   :  { %v6584_v63 = vadd.f32 %v6583_v27, %v6582_v16  ;;  %v6647_v33 = vpop.f32.mrb[85].mxu1  ;;  %v6585_v12 = vpop.f32.mrb[86].mxu0  ;;  %v7543_v27 = vld [vmem:[%s10103_s0 + $0x758] sm:$0xff]  }
 0x1a1   :  { %v6648_v19 = vadd.f32 %v6647_v33, %v6646_v21  ;;  %v6649_v31 = vpop.f32.mrb[86].mxu1  ;;  %v6586_v36 = vpop.f32.mrb[87].mxu0  ;;  %v7542_v21 = vld [vmem:[%s10103_s0 + $0x790] sm:$0xff]   ;;  %v9291_v33 = vld [vmem:[%s10104_s1 + $0x3e0] sm:$0xff] }
 0x1a2   :  { %v4065_v38 = vadd.f32 %v6584_v63, %v8910_v25  ;;  %v6587_v40 = vadd.f32 %v6586_v36, %v6585_v12  ;;  %v6650_v42 = vpop.f32.mrb[87].mxu1  ;;  %v7536_v25 = vld [vmem:[%s10103_s0 + $0x708] sm:$0xff]   ;;  %v9286_v63 = vld [vmem:[%s10104_s1 + $0x360] sm:$0xff] }
 0x1a3   :  { %v6651_v51 = vadd.f32 %v6650_v42, %v6649_v31  ;;  %4799 = vmatmul.mubr.bf16.vlgmr.msra.gmra.mrb[192].mxu0 %v5760_v4  ;;  %v9296_v12 = vld [vmem:[%s10104_s1 + $0x368] sm:$0xff]  ;;  %v7546_v31 = vld [vmem:[%s10103_s0 + $0x798] sm:$0xff]   ;;  %v7547_v36 = vld [vmem:[%s10103_s0 + $0x760] sm:$0xff]  }
 0x1a4   :  { %v9222_v45 = vadd.f32 %v6648_v19, %v4065_v38  ;;  %v4068_v54 = vadd.f32 %v6587_v40, %v8932_v26  ;;  %4896 = vmatmul.mubr.bf16.vlgmr.msra.gmra.mrb[192].mxu1 %v5762_v34  ;;  %7177 = vmatpush3.bf16.msra.mxu0 %v7532_v28  ;;  %v9239_v26 = vld [vmem:[%s10104_s1 + $0x2e0] sm:$0xff]  ;;  %v9306_v19 = vld [vmem:[%s10104_s1 + $0x3e8] sm:$0xff] }
 0x1a5   :  { %7241 = vmatpush3.bf16.msra.mxu1 %v7534_v39  ;;  %4806 = vmatprep.mubr.bf16.mxu0 %v5793_v37  ;;  %v5825_v3 = vcombine.high %v9234_v46, %v9239_v26  ;;  %v5824_v38 = vcombine.low %v9234_v46, %v9239_v26  ;;  %v7549_v40 = vld [vmem:[%s10103_s0 + $0x7e0] sm:$0xff]   ;;  %v5859_v46 = vcombine.high %v9296_v12, %v9306_v19 }
 0x1a6   :  { %v9244_v23 = vadd.f32 %v6651_v51, %v4068_v54  ;;  %v6588_v35 = vpop.f32.mrb[88].mxu0  ;;  %4903 = vmatprep.mubr.bf16.mxu1 %v5795_v44  ;;  %7178 = vmatprep.subr.bf16.mxu0 %v7535_v29  ;;  %v5826_v51 = vcombine.low %v9249_v61, %v9254_v47  ;;  %v7548_v26 = vld [vmem:[%s10103_s0 + $0x720] sm:$0xff]   ;;  %v7551_v47 = vld [vmem:[%s10103_s0 + $0x768] sm:$0xff]  }
 0x1a7   :  { %v6652_v62 = vpop.f32.mrb[88].mxu1  ;;  %v6589_v1 = vpop.f32.mrb[89].mxu0  ;;  %7242 = vmatprep.subr.bf16.mxu1 %v7537_v53  ;;  %v5857_v53 = vcombine.high %v9286_v63, %v9291_v33  ;;  %v7550_v61 = vld [vmem:[%s10103_s0 + $0x7a0] sm:$0xff]  }
 0x1a8   :  { %v6590_v49 = vadd.f32 %v6589_v1, %v6588_v35  ;;  %v6653_v48 = vpop.f32.mrb[89].mxu1  ;;  %v6591_v55 = vpop.f32.mrb[90].mxu0  ;;  %7179 = vmatpush3.bf16.msra.mxu0 %v7536_v25  ;;  %v7553_v1 = vld [vmem:[%s10103_s0 + $0x7e8] sm:$0xff]  }
 0x1a9   :  { %v6654_v6 = vadd.f32 %v6653_v48, %v6652_v62  ;;  %v6655_v10 = vpop.f32.mrb[90].mxu1  ;;  %v6592_v11 = vpop.f32.mrb[91].mxu0  ;;  %7243 = vmatpush3.bf16.msra.mxu1 %v7538_v56  ;;  %7180 = vmatprep.subr.bf16.mxu0 %v7539_v52  ;;  %v9349_v48 = vld [vmem:[%s10104_s1 + $0x4e0] sm:$0xff] }
 0x1aa   :  { %v4073_v16 = vadd.f32 %v6590_v49, %v8968_v5  ;;  %v6593_v18 = vadd.f32 %v6592_v11, %v6591_v55  ;;  %v6656_v57 = vpop.f32.mrb[91].mxu1  ;;  %7244 = vmatprep.subr.bf16.mxu1 %v7541_v41  ;;  %v9344_v49 = vld [vmem:[%s10104_s1 + $0x460] sm:$0xff]  ;;  %v9354_v55 = vld [vmem:[%s10104_s1 + $0x468] sm:$0xff]  ;;  %v7555_v11 = vld [vmem:[%s10103_s0 + $0x770] sm:$0xff]  }
 0x1ab   :  { %v6657_v4 = vadd.f32 %v6656_v57, %v6655_v10  ;;  %4807 = vmatmul.mubr.bf16.gmra.mrb[196].mxu0 %v5792_v2  ;;  %v7554_v10 = vld [vmem:[%s10103_s0 + $0x7a8] sm:$0xff]  }
 0x1ac   :  { %v9280_v32 = vadd.f32 %v6654_v6, %v4073_v16  ;;  %v4076_v5 = vadd.f32 %v6593_v18, %v8989_v7  ;;  %4904 = vmatmul.mubr.bf16.gmra.mrb[196].mxu1 %v5794_v8  ;;  %4814 = vmatprep.mubr.bf16.mxu0 %v5825_v3  ;;  %v7544_v7 = vld [vmem:[%s10103_s0 + $0x718] sm:$0xff]   ;;  %v9364_v6 = vld [vmem:[%s10104_s1 + $0x4e8] sm:$0xff]  ;;  %v5856_v16 = vcombine.low %v9286_v63, %v9291_v33  ;;  %v7557_v18 = vld [vmem:[%s10103_s0 + $0x7f0] sm:$0xff]  }
 0x1ad   :  { %4911 = vmatprep.mubr.bf16.mxu1 %v5827_v13  ;;  %7181 = vmatpush3.bf16.msra.mxu0 %v7540_v9  ;;  %v5891_v63 = vcombine.high %v9354_v55, %v9364_v6  ;;  %v7556_v33 = vld [vmem:[%s10103_s0 + $0x730] sm:$0xff]  }
 0x1ae   :  { %v9301_v34 = vadd.f32 %v6657_v4, %v4076_v5  ;;  %v6594_v28 = vpop.f32.mrb[92].mxu0  ;;  %7245 = vmatpush3.bf16.msra.mxu1 %v7542_v21  ;;  %7182 = vmatprep.subr.bf16.mxu0 %v7543_v27  ;;  %v5858_v4 = vcombine.low %v9296_v12, %v9306_v19  ;;  %v7558_v12 = vld [vmem:[%s10103_s0 + $0x7b0] sm:$0xff]   ;;  %v7559_v19 = vld [vmem:[%s10103_s0 + $0x778] sm:$0xff]  }
 0x1af   :  { %v6658_v39 = vpop.f32.mrb[92].mxu1  ;;  %v6595_v37 = vpop.f32.mrb[93].mxu0  ;;  %7246 = vmatprep.subr.bf16.mxu1 %v7545_v59  ;;  %v5889_v59 = vcombine.high %v9344_v49, %v9349_v48 }
 0x1b0   :  { %v6596_v42 = vadd.f32 %v6595_v37, %v6594_v28  ;;  %v6659_v44 = vpop.f32.mrb[93].mxu1  ;;  %v6597_v29 = vpop.f32.mrb[94].mxu0 }
 0x1b1   :  { %v6660_v54 = vadd.f32 %v6659_v44, %v6658_v39  ;;  %v6661_v25 = vpop.f32.mrb[94].mxu1  ;;  %v6598_v56 = vpop.f32.mrb[95].mxu0  ;;  %7183 = vmatpush3.bf16.msra.mxu0 %v7544_v7  ;;  %v206_v44 = vld [vmem:[%s10104_s1 + $0x5e0] sm:$0xff] }
 0x1b2   :  { %v4081_v52 = vadd.f32 %v6596_v42, %v9026_v20  ;;  %v6599_v35 = vadd.f32 %v6598_v56, %v6597_v29  ;;  %v6662_v41 = vpop.f32.mrb[95].mxu1  ;;  %7247 = vmatpush3.bf16.msra.mxu1 %v7546_v31  ;;  %7184 = vmatprep.subr.bf16.mxu0 %v7547_v36  ;;  %v190_v42 = vld [vmem:[%s10104_s1 + $0x560] sm:$0xff]  ;;  %v7560_v29 = vld [vmem:[%s10103_s0 + $0x738] sm:$0xff]  }
 0x1b3   :  { %v6663_v62 = vadd.f32 %v6662_v41, %v6661_v25  ;;  %4815 = vmatmul.mubr.bf16.gmra.mrb[200].mxu0 %v5824_v38  ;;  %7248 = vmatprep.subr.bf16.mxu1 %v7549_v40  ;;  %v7561_v38 = vld [vmem:[%s10103_s0 + $0x7f8] sm:$0xff]  }
 0x1b4   :  { %v9338_v20 = vadd.f32 %v6660_v54, %v4081_v52  ;;  %v4084_v2 = vadd.f32 %v6599_v35, %v9047_v50  ;;  %4912 = vmatmul.mubr.bf16.gmra.mrb[200].mxu1 %v5826_v51  ;;  %4822 = vmatprep.mubr.bf16.mxu0 %v5857_v53  ;;  %v7552_v50 = vld [vmem:[%s10103_s0 + $0x728] sm:$0xff]   ;;  %v7562_v25 = vld [vmem:[%s10103_s0 + $0x7b8] sm:$0xff]  }
 0x1b5   :  { %4919 = vmatprep.mubr.bf16.mxu1 %v5859_v46  ;;  %7185 = vmatpush3.bf16.msra.mxu0 %v7548_v26  ;;  %v207_v54 = vld [vmem:[%s10104_s1 + $0x5e8] sm:$0xff]  ;;  %v5888_v26 = vcombine.low %v9344_v49, %v9349_v48 }
 0x1b6   :  { %v9359_v8 = vadd.f32 %v6663_v62, %v4084_v2  ;;  %v6680_v3 = vpop.f32.mrb[96].mxu0  ;;  %7249 = vmatpush3.bf16.msra.mxu1 %v7550_v61  ;;  %7186 = vmatprep.subr.bf16.mxu0 %v7551_v47  ;;  %v5890_v61 = vcombine.low %v9354_v55, %v9364_v6  ;;  %v5921_v47 = vcombine.high %v190_v42, %v206_v44  ;;  %v222_v55 = vld [vmem:[%s10104_s1 + $0x660] sm:$0xff] }
 0x1b7   :  { %v6744_v13 = vpop.f32.mrb[96].mxu1  ;;  %v6681_v9 = vpop.f32.mrb[97].mxu0  ;;  %7250 = vmatprep.subr.bf16.mxu1 %v7553_v1 }
 0x1b8   :  { %v6682_v57 = vadd.f32 %v6681_v9, %v6680_v3  ;;  %v6745_v21 = vpop.f32.mrb[97].mxu1  ;;  %v6683_v27 = vpop.f32.mrb[98].mxu0 }
 0x1b9   :  { %v6746_v5 = vadd.f32 %v6745_v21, %v6744_v13  ;;  %v6747_v7 = vpop.f32.mrb[98].mxu1  ;;  %v6684_v28 = vpop.f32.mrb[99].mxu0  ;;  %7187 = vmatpush3.bf16.msra.mxu0 %v7552_v50  ;;  %v5920_v21 = vcombine.low %v190_v42, %v206_v44  ;;  %v270_v42 = vld [vmem:[%s10104_s1 + $0x7e0] sm:$0xff] }
 0x1ba   :  { %v4219_v31 = vadd.f32 %v6682_v57, %v9084_v0  ;;  %v6685_v36 = vadd.f32 %v6684_v28, %v6683_v27  ;;  %v6748_v39 = vpop.f32.mrb[99].mxu1  ;;  %7251 = vmatpush3.bf16.msra.mxu1 %v7554_v10  ;;  %7188 = vmatprep.subr.bf16.mxu0 %v7555_v11 }
 0x1bb   :  { %v6749_v37 = vadd.f32 %v6748_v39, %v6747_v7  ;;  %4823 = vmatmul.mubr.bf16.gmra.mrb[204].mxu0 %v5856_v16  ;;  %7252 = vmatprep.subr.bf16.mxu1 %v7557_v18  ;;  %v223_v16 = vld [vmem:[%s10104_s1 + $0x668] sm:$0xff] }
 0x1bc   :  { %v9396_v0 = vadd.f32 %v6746_v5, %v4219_v31  ;;  %v4222_v40 = vadd.f32 %v6685_v36, %v9103_v30  ;;  %4920 = vmatmul.mubr.bf16.gmra.mrb[204].mxu1 %v5858_v4  ;;  %4830 = vmatprep.mubr.bf16.mxu0 %v5889_v59  ;;  %v191_v30 = vld [vmem:[%s10104_s1 + $0x568] sm:$0xff] }
 0x1bd   :  { %4927 = vmatprep.mubr.bf16.mxu1 %v5891_v63  ;;  %7189 = vmatpush3.bf16.msra.mxu0 %v7556_v33  ;;  %v5923_v50 = vcombine.high %v191_v30, %v207_v54  ;;  %v5922_v5 = vcombine.low %v191_v30, %v207_v54 }
 0x1be   :  { %v9408_v51 = vadd.f32 %v6749_v37, %v4222_v40  ;;  %v6686_v53 = vpop.f32.mrb[100].mxu0  ;;  %7253 = vmatpush3.bf16.msra.mxu1 %v7558_v12  ;;  %7190 = vmatprep.subr.bf16.mxu0 %v7559_v19  ;;  %v254_v40 = vld [vmem:[%s10104_s1 + $0x760] sm:$0xff] }
 0x1bf   :  { %v6750_v56 = vpop.f32.mrb[100].mxu1  ;;  %v6687_v46 = vpop.f32.mrb[101].mxu0  ;;  %7254 = vmatprep.subr.bf16.mxu1 %v7561_v38 }
 0x1c0   :  { %v6688_v52 = vadd.f32 %v6687_v46, %v6686_v53  ;;  %v6751_v35 = vpop.f32.mrb[101].mxu1  ;;  %v6689_v41 = vpop.f32.mrb[102].mxu0 }
 0x1c1   :  { %v6752_v62 = vadd.f32 %v6751_v35, %v6750_v56  ;;  %v6753_v1 = vpop.f32.mrb[102].mxu1  ;;  %v6690_v2 = vpop.f32.mrb[103].mxu0  ;;  %7191 = vmatpush3.bf16.msra.mxu0 %v7560_v29  ;;  %v255_v29 = vld [vmem:[%s10104_s1 + $0x768] sm:$0xff] }
 0x1c2   :  { %v4227_v3 = vadd.f32 %v6688_v52, %v9124_v58  ;;  %v6691_v10 = vadd.f32 %v6690_v2, %v6689_v41  ;;  %v6754_v11 = vpop.f32.mrb[103].mxu1  ;;  %7255 = vmatpush3.bf16.msra.mxu1 %v7562_v25  ;;  %v238_v58 = vld [vmem:[%s10104_s1 + $0x6e0] sm:$0xff]  ;;  %v5985_v52 = vcombine.high %v254_v40, %v270_v42 }
 0x1c3   :  { %v6755_v13 = vadd.f32 %v6754_v11, %v6753_v1  ;;  %4831 = vmatmul.mubr.bf16.gmra.mrb[208].mxu0 %v5888_v26  ;;  %v5953_v7 = vcombine.high %v222_v55, %v238_v58  ;;  %v5952_v54 = vcombine.low %v222_v55, %v238_v58  ;;  %v32_v11 = vld [vmem:[%s10104_s1 + $0x70] sm:$0xff]  ;;  %v33_v55 = vld [vmem:[%s10104_s1 + $0x78] sm:$0xff] }
 0x1c4   :  { %v9424_v49 = vadd.f32 %v6752_v62, %v4227_v3  ;;  %v4230_v48 = vadd.f32 %v6691_v10, %v9133_v60  ;;  %4928 = vmatmul.mubr.bf16.gmra.mrb[208].mxu1 %v5890_v61  ;;  %4838 = vmatprep.mubr.bf16.mxu0 %v5921_v47  ;;  %v239_v60 = vld [vmem:[%s10104_s1 + $0x6e8] sm:$0xff] }
 0x1c5   :  { %4935 = vmatprep.mubr.bf16.mxu1 %v5923_v50  ;;  %v5955_v31 = vcombine.high %v223_v16, %v239_v60  ;;  %v5954_v26 = vcombine.low %v223_v16, %v239_v60  ;;  %v5984_v16 = vcombine.low %v254_v40, %v270_v42  ;;  %v65_v40 = vld [vmem:[%s10104_s1 + $0x178] sm:$0xff] }
 0x1c6   :  { %v9433_v6 = vadd.f32 %v6755_v13, %v4230_v48  ;;  %v6692_v9 = vpop.f32.mrb[104].mxu0  ;;  %v48_v13 = vld [vmem:[%s10104_s1 + $0xf0] sm:$0xff] }
 0x1c7   :  { %v6756_v18 = vpop.f32.mrb[104].mxu1  ;;  %v6693_v57 = vpop.f32.mrb[105].mxu0 }
 0x1c8   :  { %v6694_v27 = vadd.f32 %v6693_v57, %v6692_v9  ;;  %v6757_v4 = vpop.f32.mrb[105].mxu1  ;;  %v6695_v59 = vpop.f32.mrb[106].mxu0 }
 0x1c9   :  { %v6758_v28 = vadd.f32 %v6757_v4, %v6756_v18  ;;  %v6759_v63 = vpop.f32.mrb[106].mxu1  ;;  %v6696_v33 = vpop.f32.mrb[107].mxu0 }
 0x1ca   :  { %v4235_v36 = vadd.f32 %v6694_v27, %v9144_v17  ;;  %v6697_v39 = vadd.f32 %v6696_v33, %v6695_v59  ;;  %v6760_v12 = vpop.f32.mrb[107].mxu1  ;;  %v5765_v27 = vcombine.high %v32_v11, %v48_v13 }
 0x1cb   :  { %v6761_v19 = vadd.f32 %v6760_v12, %v6759_v63  ;;  %4839 = vmatmul.mubr.bf16.gmra.mrb[212].mxu0 %v5920_v21  ;;  %v64_v12 = vld [vmem:[%s10104_s1 + $0x170] sm:$0xff] }
 0x1cc   :  { %v9442_v37 = vadd.f32 %v6758_v28, %v4235_v36  ;;  %v4238_v38 = vadd.f32 %v6697_v39, %v9153_v14  ;;  %4936 = vmatmul.mubr.bf16.gmra.mrb[212].mxu1 %v5922_v5  ;;  %4846 = vmatprep.mubr.bf16.mxu0 %v5953_v7  ;;  %v271_v14 = vld [vmem:[%s10104_s1 + $0x7e8] sm:$0xff] }
 0x1cd   :  { %4943 = vmatprep.mubr.bf16.mxu1 %v5955_v31  ;;  %v5987_v47 = vcombine.high %v255_v29, %v271_v14  ;;  %v5986_v21 = vcombine.low %v255_v29, %v271_v14  ;;  %v5764_v29 = vcombine.low %v32_v11, %v48_v13  ;;  %v97_v11 = vld [vmem:[%s10104_s1 + $0x278] sm:$0xff] }
 0x1ce   :  { %v9451_v17 = vadd.f32 %v6761_v19, %v4238_v38  ;;  %v6698_v44 = vpop.f32.mrb[108].mxu0  ;;  %v80_v19 = vld [vmem:[%s10104_s1 + $0x1f0] sm:$0xff] }
 0x1cf   :  { %v6762_v53 = vpop.f32.mrb[108].mxu1  ;;  %v6699_v30 = vpop.f32.mrb[109].mxu0 }
 0x1d0   :  { %v6700_v25 = vadd.f32 %v6699_v30, %v6698_v44  ;;  %v6763_v56 = vpop.f32.mrb[109].mxu1  ;;  %v6701_v46 = vpop.f32.mrb[110].mxu0 }
 0x1d1   :  { %v6764_v35 = vadd.f32 %v6763_v56, %v6762_v53  ;;  %v6765_v41 = vpop.f32.mrb[110].mxu1  ;;  %v6702_v61 = vpop.f32.mrb[111].mxu0 }
 0x1d2   :  { %v4243_v62 = vadd.f32 %v6700_v25, %v9162_v43  ;;  %v6703_v1 = vadd.f32 %v6702_v61, %v6701_v46  ;;  %v6766_v2 = vpop.f32.mrb[111].mxu1  ;;  %v5797_v25 = vcombine.high %v64_v12, %v80_v19 }
 0x1d3   :  { %v6767_v50 = vadd.f32 %v6766_v2, %v6765_v41  ;;  %4847 = vmatmul.mubr.bf16.gmra.mrb[216].mxu0 %v5952_v54  ;;  %v96_v2 = vld [vmem:[%s10104_s1 + $0x270] sm:$0xff] }
 0x1d4   :  { %v9460_v3 = vadd.f32 %v6764_v35, %v4243_v62  ;;  %v4246_v10 = vadd.f32 %v6703_v1, %v9171_v24  ;;  %4944 = vmatmul.mubr.bf16.gmra.mrb[216].mxu1 %v5954_v26  ;;  %4854 = vmatprep.mubr.bf16.mxu0 %v5985_v52  ;;  %v49_v24 = vld [vmem:[%s10104_s1 + $0xf8] sm:$0xff] }
 0x1d5   :  { %4951 = vmatprep.mubr.bf16.mxu1 %v5987_v47  ;;  %v5767_v7 = vcombine.high %v33_v55, %v49_v24  ;;  %v5766_v54 = vcombine.low %v33_v55, %v49_v24  ;;  %v5796_v55 = vcombine.low %v64_v12, %v80_v19  ;;  %v129_v12 = vld [vmem:[%s10104_s1 + $0x378] sm:$0xff] }
 0x1d6   :  { %v9469_v43 = vadd.f32 %v6767_v50, %v4246_v10  ;;  %v6704_v48 = vpop.f32.mrb[112].mxu0  ;;  %v112_v50 = vld [vmem:[%s10104_s1 + $0x2f0] sm:$0xff] }
 0x1d7   :  { %v6768_v58 = vpop.f32.mrb[112].mxu1  ;;  %v6705_v9 = vpop.f32.mrb[113].mxu0 }
 0x1d8   :  { %v6706_v60 = vadd.f32 %v6705_v9, %v6704_v48  ;;  %v6769_v18 = vpop.f32.mrb[113].mxu1  ;;  %v6707_v57 = vpop.f32.mrb[114].mxu0 }
 0x1d9   :  { %v6770_v4 = vadd.f32 %v6769_v18, %v6768_v58  ;;  %v6771_v59 = vpop.f32.mrb[114].mxu1  ;;  %v6708_v5 = vpop.f32.mrb[115].mxu0 }
 0x1da   :  { %v4251_v28 = vadd.f32 %v6706_v60, %v9180_v22  ;;  %v6709_v63 = vadd.f32 %v6708_v5, %v6707_v57  ;;  %v6772_v33 = vpop.f32.mrb[115].mxu1  ;;  %v5829_v60 = vcombine.high %v96_v2, %v112_v50 }
 0x1db   :  { %v6773_v31 = vadd.f32 %v6772_v33, %v6771_v59  ;;  %4855 = vmatmul.mubr.bf16.gmra.mrb[220].mxu0 %v5984_v16  ;;  %v128_v33 = vld [vmem:[%s10104_s1 + $0x370] sm:$0xff] }
 0x1dc   :  { %v9478_v36 = vadd.f32 %v6770_v4, %v4251_v28  ;;  %v4254_v39 = vadd.f32 %v6709_v63, %v9183_v15  ;;  %4952 = vmatmul.mubr.bf16.gmra.mrb[220].mxu1 %v5986_v21  ;;  %4992 = vmatprep.mubr.bf16.mxu0 %v5765_v27  ;;  %v81_v15 = vld [vmem:[%s10104_s1 + $0x1f8] sm:$0xff] }
 0x1dd   :  { %5089 = vmatprep.mubr.bf16.mxu1 %v5767_v7  ;;  %v5799_v52 = vcombine.high %v65_v40, %v81_v15  ;;  %v5798_v16 = vcombine.low %v65_v40, %v81_v15  ;;  %v5828_v40 = vcombine.low %v96_v2, %v112_v50  ;;  %v161_v2 = vld [vmem:[%s10104_s1 + $0x478] sm:$0xff] }
 0x1de   :  { %v9487_v22 = vadd.f32 %v6773_v31, %v4254_v39  ;;  %v6710_v38 = vpop.f32.mrb[116].mxu0  ;;  %v144_v31 = vld [vmem:[%s10104_s1 + $0x3f0] sm:$0xff] }
 0x1df   :  { %v6774_v42 = vpop.f32.mrb[116].mxu1  ;;  %v6711_v44 = vpop.f32.mrb[117].mxu0 }
 0x1e0   :  { %v6712_v14 = vadd.f32 %v6711_v44, %v6710_v38  ;;  %v6775_v53 = vpop.f32.mrb[117].mxu1  ;;  %v6713_v30 = vpop.f32.mrb[118].mxu0 }
 0x1e1   :  { %v6776_v56 = vadd.f32 %v6775_v53, %v6774_v42  ;;  %v6777_v46 = vpop.f32.mrb[118].mxu1  ;;  %v6714_v26 = vpop.f32.mrb[119].mxu0 }
 0x1e2   :  { %v4259_v35 = vadd.f32 %v6712_v14, %v9222_v45  ;;  %v6715_v41 = vadd.f32 %v6714_v26, %v6713_v30  ;;  %v6778_v61 = vpop.f32.mrb[119].mxu1  ;;  %v5861_v14 = vcombine.high %v128_v33, %v144_v31 }
 0x1e3   :  { %v6779_v47 = vadd.f32 %v6778_v61, %v6777_v46  ;;  %4993 = vmatmul.mubr.bf16.vlgmr.msra.gmra.mrb[224].mxu0 %v5764_v29  ;;  %v160_v61 = vld [vmem:[%s10104_s1 + $0x470] sm:$0xff] }
 0x1e4   :  { %v9496_v62 = vadd.f32 %v6776_v56, %v4259_v35  ;;  %v4262_v1 = vadd.f32 %v6715_v41, %v9244_v23  ;;  %5090 = vmatmul.mubr.bf16.vlgmr.msra.gmra.mrb[224].mxu1 %v5766_v54  ;;  %5000 = vmatprep.mubr.bf16.mxu0 %v5797_v25  ;;  %v113_v23 = vld [vmem:[%s10104_s1 + $0x2f8] sm:$0xff] }
 0x1e5   :  { %5097 = vmatprep.mubr.bf16.mxu1 %v5799_v52  ;;  %v5831_v27 = vcombine.high %v97_v11, %v113_v23  ;;  %v5830_v29 = vcombine.low %v97_v11, %v113_v23  ;;  %v5860_v11 = vcombine.low %v128_v33, %v144_v31  ;;  %v193_v33 = vld [vmem:[%s10104_s1 + $0x578] sm:$0xff] }
 0x1e6   :  { %v9505_v45 = vadd.f32 %v6779_v47, %v4262_v1  ;;  %v6716_v10 = vpop.f32.mrb[120].mxu0  ;;  %v176_v47 = vld [vmem:[%s10104_s1 + $0x4f0] sm:$0xff] }
 0x1e7   :  { %v6780_v13 = vpop.f32.mrb[120].mxu1  ;;  %v6717_v48 = vpop.f32.mrb[121].mxu0 }
 0x1e8   :  { %v6718_v24 = vadd.f32 %v6717_v48, %v6716_v10  ;;  %v6781_v58 = vpop.f32.mrb[121].mxu1  ;;  %v6719_v9 = vpop.f32.mrb[122].mxu0 }
 0x1e9   :  { %v6782_v18 = vadd.f32 %v6781_v58, %v6780_v13  ;;  %v6783_v57 = vpop.f32.mrb[122].mxu1  ;;  %v6720_v21 = vpop.f32.mrb[123].mxu0 }
 0x1ea   :  { %v4267_v4 = vadd.f32 %v6718_v24, %v9280_v32  ;;  %v6721_v59 = vadd.f32 %v6720_v21, %v6719_v9  ;;  %v6784_v5 = vpop.f32.mrb[123].mxu1  ;;  %v5893_v24 = vcombine.high %v160_v61, %v176_v47 }
 0x1eb   :  { %v6785_v7 = vadd.f32 %v6784_v5, %v6783_v57  ;;  %5001 = vmatmul.mubr.bf16.gmra.mrb[228].mxu0 %v5796_v55  ;;  %v192_v5 = vld [vmem:[%s10104_s1 + $0x570] sm:$0xff] }
 0x1ec   :  { %v9514_v28 = vadd.f32 %v6782_v18, %v4267_v4  ;;  %v4270_v63 = vadd.f32 %v6721_v59, %v9301_v34  ;;  %5098 = vmatmul.mubr.bf16.gmra.mrb[228].mxu1 %v5798_v16  ;;  %5008 = vmatprep.mubr.bf16.mxu0 %v5829_v60  ;;  %v145_v34 = vld [vmem:[%s10104_s1 + $0x3f8] sm:$0xff] }
 0x1ed   :  { %5105 = vmatprep.mubr.bf16.mxu1 %v5831_v27  ;;  %v5863_v25 = vcombine.high %v129_v12, %v145_v34  ;;  %v5862_v55 = vcombine.low %v129_v12, %v145_v34  ;;  %v5892_v12 = vcombine.low %v160_v61, %v176_v47  ;;  %v225_v61 = vld [vmem:[%s10104_s1 + $0x678] sm:$0xff] }
 0x1ee   :  { %v9523_v32 = vadd.f32 %v6785_v7, %v4270_v63  ;;  %v6722_v39 = vpop.f32.mrb[124].mxu0  ;;  %v208_v7 = vld [vmem:[%s10104_s1 + $0x5f0] sm:$0xff] }
 0x1ef   :  { %v6786_v19 = vpop.f32.mrb[124].mxu1  ;;  %v6723_v38 = vpop.f32.mrb[125].mxu0 }
 0x1f0   :  { %v6724_v15 = vadd.f32 %v6723_v38, %v6722_v39  ;;  %v6787_v42 = vpop.f32.mrb[125].mxu1  ;;  %v6725_v44 = vpop.f32.mrb[126].mxu0 }
 0x1f1   :  { %v6788_v53 = vadd.f32 %v6787_v42, %v6786_v19  ;;  %v6789_v30 = vpop.f32.mrb[126].mxu1  ;;  %v6726_v54 = vpop.f32.mrb[127].mxu0 }
 0x1f2   :  { %v4275_v56 = vadd.f32 %v6724_v15, %v9338_v20  ;;  %v6727_v46 = vadd.f32 %v6726_v54, %v6725_v44  ;;  %v6790_v26 = vpop.f32.mrb[127].mxu1  ;;  %v5925_v15 = vcombine.high %v192_v5, %v208_v7 }
 0x1f3   :  { %v6791_v52 = vadd.f32 %v6790_v26, %v6789_v30  ;;  %5009 = vmatmul.mubr.bf16.gmra.mrb[232].mxu0 %v5828_v40  ;;  %v224_v26 = vld [vmem:[%s10104_s1 + $0x670] sm:$0xff] }
 0x1f4   :  { %v9532_v35 = vadd.f32 %v6788_v53, %v4275_v56  ;;  %v4278_v41 = vadd.f32 %v6727_v46, %v9359_v8  ;;  %5106 = vmatmul.mubr.bf16.gmra.mrb[232].mxu1 %v5830_v29  ;;  %5016 = vmatprep.mubr.bf16.mxu0 %v5861_v14  ;;  %v177_v8 = vld [vmem:[%s10104_s1 + $0x4f8] sm:$0xff] }
 0x1f5   :  { %5113 = vmatprep.mubr.bf16.mxu1 %v5863_v25  ;;  %v5895_v60 = vcombine.high %v161_v2, %v177_v8  ;;  %v5894_v40 = vcombine.low %v161_v2, %v177_v8  ;;  %v5924_v2 = vcombine.low %v192_v5, %v208_v7  ;;  %v257_v5 = vld [vmem:[%s10104_s1 + $0x778] sm:$0xff] }
 0x1f6   :  { %v9541_v20 = vadd.f32 %v6791_v52, %v4278_v41  ;;  %v6808_v1 = vpop.f32.mrb[128].mxu0  ;;  %v240_v52 = vld [vmem:[%s10104_s1 + $0x6f0] sm:$0xff] }
 0x1f7   :  { %v6872_v50 = vpop.f32.mrb[128].mxu1  ;;  %v6809_v10 = vpop.f32.mrb[129].mxu0 }
 0x1f8   :  { %v6810_v23 = vadd.f32 %v6809_v10, %v6808_v1  ;;  %v6873_v13 = vpop.f32.mrb[129].mxu1  ;;  %v6811_v48 = vpop.f32.mrb[130].mxu0 }
 0x1f9   :  { %v6874_v58 = vadd.f32 %v6873_v13, %v6872_v50  ;;  %v6875_v9 = vpop.f32.mrb[130].mxu1  ;;  %v6812_v16 = vpop.f32.mrb[131].mxu0 }
 0x1fa   :  { %v4413_v18 = vadd.f32 %v6810_v23, %v9396_v0  ;;  %v6813_v57 = vadd.f32 %v6812_v16, %v6811_v48  ;;  %v6876_v21 = vpop.f32.mrb[131].mxu1  ;;  %v5957_v23 = vcombine.high %v224_v26, %v240_v52 }
 0x1fb   :  { %v6877_v27 = vadd.f32 %v6876_v21, %v6875_v9  ;;  %5017 = vmatmul.mubr.bf16.gmra.mrb[236].mxu0 %v5860_v11  ;;  %v256_v21 = vld [vmem:[%s10104_s1 + $0x770] sm:$0xff] }
 0x1fc   :  { %v9550_v4 = vadd.f32 %v6874_v58, %v4413_v18  ;;  %v4416_v59 = vadd.f32 %v6813_v57, %v9408_v51  ;;  %5114 = vmatmul.mubr.bf16.gmra.mrb[236].mxu1 %v5862_v55  ;;  %5024 = vmatprep.mubr.bf16.mxu0 %v5893_v24  ;;  %v209_v51 = vld [vmem:[%s10104_s1 + $0x5f8] sm:$0xff] }
 0x1fd   :  { %5121 = vmatprep.mubr.bf16.mxu1 %v5895_v60  ;;  %v5927_v14 = vcombine.high %v193_v33, %v209_v51  ;;  %v5926_v11 = vcombine.low %v193_v33, %v209_v51  ;;  %v5956_v33 = vcombine.low %v224_v26, %v240_v52 }
 0x1fe   :  { %v9559_v0 = vadd.f32 %v6877_v27, %v4416_v59  ;;  %v6814_v63 = vpop.f32.mrb[132].mxu0  ;;  %v272_v27 = vld [vmem:[%s10104_s1 + $0x7f0] sm:$0xff] }
 0x1ff   :  { %v6878_v31 = vpop.f32.mrb[132].mxu1  ;;  %v6815_v39 = vpop.f32.mrb[133].mxu0  ;;  %v5988_v52 = vcombine.low %v256_v21, %v272_v27 }
 0x200   :  { %v6816_v34 = vadd.f32 %v6815_v39, %v6814_v63  ;;  %v6879_v19 = vpop.f32.mrb[133].mxu1  ;;  %v6817_v38 = vpop.f32.mrb[134].mxu0 }
 0x201   :  { %v6880_v42 = vadd.f32 %v6879_v19, %v6878_v31  ;;  %v6881_v44 = vpop.f32.mrb[134].mxu1  ;;  %v6818_v29 = vpop.f32.mrb[135].mxu0 }
 0x202   :  { %v4421_v53 = vadd.f32 %v6816_v34, %v9424_v49  ;;  %v6819_v30 = vadd.f32 %v6818_v29, %v6817_v38  ;;  %v6882_v54 = vpop.f32.mrb[135].mxu1  ;;  %v5989_v34 = vcombine.high %v256_v21, %v272_v27 }
 0x203   :  { %v6883_v25 = vadd.f32 %v6882_v54, %v6881_v44  ;;  %5025 = vmatmul.mubr.bf16.gmra.mrb[240].mxu0 %v5892_v12 }
 0x204   :  { %v9568_v56 = vadd.f32 %v6880_v42, %v4421_v53  ;;  %v4424_v46 = vadd.f32 %v6819_v30, %v9433_v6  ;;  %5122 = vmatmul.mubr.bf16.gmra.mrb[240].mxu1 %v5894_v40  ;;  %5032 = vmatprep.mubr.bf16.mxu0 %v5925_v15  ;;  %v241_v6 = vld [vmem:[%s10104_s1 + $0x6f8] sm:$0xff] }
 0x205   :  { %5129 = vmatprep.mubr.bf16.mxu1 %v5927_v14  ;;  %v5959_v24 = vcombine.high %v225_v61, %v241_v6  ;;  %v5958_v12 = vcombine.low %v225_v61, %v241_v6 }
 0x206   :  { %v9577_v49 = vadd.f32 %v6883_v25, %v4424_v46  ;;  %v6820_v41 = vpop.f32.mrb[136].mxu0 }
 0x207   :  { %v6884_v47 = vpop.f32.mrb[136].mxu1  ;;  %v6821_v1 = vpop.f32.mrb[137].mxu0 }
 0x208   :  { %v6822_v8 = vadd.f32 %v6821_v1, %v6820_v41  ;;  %v6885_v50 = vpop.f32.mrb[137].mxu1  ;;  %v6823_v10 = vpop.f32.mrb[138].mxu0 }
 0x209   :  { %v6886_v13 = vadd.f32 %v6885_v50, %v6884_v47  ;;  %v6887_v48 = vpop.f32.mrb[138].mxu1  ;;  %v6824_v55 = vpop.f32.mrb[139].mxu0 }
 0x20a   :  { %v4429_v58 = vadd.f32 %v6822_v8, %v9442_v37  ;;  %v6825_v9 = vadd.f32 %v6824_v55, %v6823_v10  ;;  %v6888_v16 = vpop.f32.mrb[139].mxu1 }
 0x20b   :  { %v6889_v60 = vadd.f32 %v6888_v16, %v6887_v48  ;;  %5033 = vmatmul.mubr.bf16.gmra.mrb[244].mxu0 %v5924_v2 }
 0x20c   :  { %v9586_v18 = vadd.f32 %v6886_v13, %v4429_v58  ;;  %v4432_v57 = vadd.f32 %v6825_v9, %v9451_v17  ;;  %5130 = vmatmul.mubr.bf16.gmra.mrb[244].mxu1 %v5926_v11  ;;  %5040 = vmatprep.mubr.bf16.mxu0 %v5957_v23  ;;  %v273_v17 = vld [vmem:[%s10104_s1 + $0x7f8] sm:$0xff] }
 0x20d   :  { %5137 = vmatprep.mubr.bf16.mxu1 %v5959_v24  ;;  %v5991_v15 = vcombine.high %v257_v5, %v273_v17  ;;  %v5990_v6 = vcombine.low %v257_v5, %v273_v17 }
 0x20e   :  { %v9595_v37 = vadd.f32 %v6889_v60, %v4432_v57  ;;  %v6826_v59 = vpop.f32.mrb[140].mxu0 }
 0x20f   :  { %v6890_v7 = vpop.f32.mrb[140].mxu1  ;;  %v6827_v63 = vpop.f32.mrb[141].mxu0 }
 0x210   :  { %v6828_v51 = vadd.f32 %v6827_v63, %v6826_v59  ;;  %v6891_v31 = vpop.f32.mrb[141].mxu1  ;;  %v6829_v39 = vpop.f32.mrb[142].mxu0 }
 0x211   :  { %v6892_v19 = vadd.f32 %v6891_v31, %v6890_v7  ;;  %v6893_v38 = vpop.f32.mrb[142].mxu1  ;;  %v6830_v40 = vpop.f32.mrb[143].mxu0 }
 0x212   :  { %v4437_v42 = vadd.f32 %v6828_v51, %v9460_v3  ;;  %v6831_v44 = vadd.f32 %v6830_v40, %v6829_v39  ;;  %v6894_v29 = vpop.f32.mrb[143].mxu1 }
 0x213   :  { %v6895_v14 = vadd.f32 %v6894_v29, %v6893_v38  ;;  %5041 = vmatmul.mubr.bf16.gmra.mrb[248].mxu0 %v5956_v33 }
 0x214   :  { %v9604_v53 = vadd.f32 %v6892_v19, %v4437_v42  ;;  %v4440_v30 = vadd.f32 %v6831_v44, %v9469_v43  ;;  %5138 = vmatmul.mubr.bf16.gmra.mrb[248].mxu1 %v5958_v12  ;;  %5048 = vmatprep.mubr.bf16.mxu0 %v5989_v34 }
 0x215   :  { %5145 = vmatprep.mubr.bf16.mxu1 %v5991_v15 }
 0x216   :  { %v9607_v54 = vadd.f32 %v6895_v14, %v4440_v30  ;;  %v6832_v25 = vpop.f32.mrb[144].mxu0 }
 0x217   :  { %v6896_v46 = vpop.f32.mrb[144].mxu1  ;;  %v6833_v26 = vpop.f32.mrb[145].mxu0 }
 0x218   :  { %v6834_v41 = vadd.f32 %v6833_v26, %v6832_v25  ;;  %v6897_v61 = vpop.f32.mrb[145].mxu1  ;;  %v6835_v3 = vpop.f32.mrb[146].mxu0 }
 0x219   :  { %v6898_v47 = vadd.f32 %v6897_v61, %v6896_v46  ;;  %v6899_v1 = vpop.f32.mrb[146].mxu1  ;;  %v6836_v2 = vpop.f32.mrb[147].mxu0 }
 0x21a   :  { %v4445_v8 = vadd.f32 %v6834_v41, %v9478_v36  ;;  %v6837_v50 = vadd.f32 %v6836_v2, %v6835_v3  ;;  %v6900_v43 = vpop.f32.mrb[147].mxu1 }
 0x21b   :  { %v6901_v10 = vadd.f32 %v6900_v43, %v6899_v1  ;;  %5049 = vmatmul.mubr.bf16.gmra.mrb[252].mxu0 %v5988_v52 }
 0x21c   :  { %v9610_v11 = vadd.f32 %v6898_v47, %v4445_v8  ;;  %v4448_v23 = vadd.f32 %v6837_v50, %v9487_v22  ;;  %5146 = vmatmul.mubr.bf16.gmra.mrb[252].mxu1 %v5990_v6 }
 0x21e   :  { %v9613_v13 = vadd.f32 %v6901_v10, %v4448_v23  ;;  %v6838_v48 = vpop.f32.mrb[148].mxu0 }
 0x21f   :  { %v6902_v55 = vpop.f32.mrb[148].mxu1  ;;  %v6839_v24 = vpop.f32.mrb[149].mxu0 }
 0x220   :  { %v6840_v58 = vadd.f32 %v6839_v24, %v6838_v48  ;;  %v6903_v9 = vpop.f32.mrb[149].mxu1  ;;  %v6841_v16 = vpop.f32.mrb[150].mxu0 }
 0x221   :  { %v6904_v60 = vadd.f32 %v6903_v9, %v6902_v55  ;;  %v6905_v57 = vpop.f32.mrb[150].mxu1  ;;  %v6842_v36 = vpop.f32.mrb[151].mxu0 }
 0x222   :  { %v4453_v21 = vadd.f32 %v6840_v58, %v9496_v62  ;;  %v6843_v27 = vadd.f32 %v6842_v36, %v6841_v16  ;;  %v6906_v59 = vpop.f32.mrb[151].mxu1 }
 0x223   :  { %v6907_v5 = vadd.f32 %v6906_v59, %v6905_v57 }
 0x224   :  { %v9616_v17 = vadd.f32 %v6904_v60, %v4453_v21  ;;  %v4456_v22 = vadd.f32 %v6843_v27, %v9505_v45 }
 0x226   :  { %v9619_v7 = vadd.f32 %v6907_v5, %v4456_v22  ;;  %v6844_v63 = vpop.f32.mrb[152].mxu0 }
 0x227   :  { %v6908_v33 = vpop.f32.mrb[152].mxu1  ;;  %v6845_v51 = vpop.f32.mrb[153].mxu0 }
 0x228   :  { %v6846_v31 = vadd.f32 %v6845_v51, %v6844_v63  ;;  %v6909_v39 = vpop.f32.mrb[153].mxu1  ;;  %v6847_v12 = vpop.f32.mrb[154].mxu0 }
 0x229   :  { %v6910_v34 = vadd.f32 %v6909_v39, %v6908_v33  ;;  %v6911_v19 = vpop.f32.mrb[154].mxu1  ;;  %v6848_v38 = vpop.f32.mrb[155].mxu0 }
 0x22a   :  { %v4461_v62 = vadd.f32 %v6846_v31, %v9514_v28  ;;  %v6849_v40 = vadd.f32 %v6848_v38, %v6847_v12  ;;  %v6912_v15 = vpop.f32.mrb[155].mxu1 }
 0x22b   :  { %v6913_v42 = vadd.f32 %v6912_v15, %v6911_v19 }
 0x22c   :  { %v9622_v44 = vadd.f32 %v6910_v34, %v4461_v62  ;;  %v4464_v45 = vadd.f32 %v6849_v40, %v9523_v32 }
 0x22e   :  { %v9625_v29 = vadd.f32 %v6913_v42, %v4464_v45  ;;  %v6850_v14 = vpop.f32.mrb[156].mxu0 }
 0x22f   :  { %v6914_v30 = vpop.f32.mrb[156].mxu1  ;;  %v6851_v25 = vpop.f32.mrb[157].mxu0 }
 0x230   :  { %v6852_v46 = vadd.f32 %v6851_v25, %v6850_v14  ;;  %v6915_v26 = vpop.f32.mrb[157].mxu1  ;;  %v6853_v52 = vpop.f32.mrb[158].mxu0 }
 0x231   :  { %v6916_v41 = vadd.f32 %v6915_v26, %v6914_v30  ;;  %v6917_v61 = vpop.f32.mrb[158].mxu1  ;;  %v6854_v3 = vpop.f32.mrb[159].mxu0 }
 0x232   :  { %v4469_v28 = vadd.f32 %v6852_v46, %v9532_v35  ;;  %v6855_v6 = vadd.f32 %v6854_v3, %v6853_v52  ;;  %v6918_v47 = vpop.f32.mrb[159].mxu1 }
 0x233   :  { %v6919_v1 = vadd.f32 %v6918_v47, %v6917_v61 }
 0x234   :  { %v9628_v2 = vadd.f32 %v6916_v41, %v4469_v28  ;;  %v4472_v32 = vadd.f32 %v6855_v6, %v9541_v20 }
 0x236   :  { %v9631_v8 = vadd.f32 %v6919_v1, %v4472_v32  ;;  %v6936_v50 = vpop.f32.mrb[160].mxu0 }
 0x237   :  { %v7000_v43 = vpop.f32.mrb[160].mxu1  ;;  %v6937_v10 = vpop.f32.mrb[161].mxu0 }
 0x238   :  { %v6938_v23 = vadd.f32 %v6937_v10, %v6936_v50  ;;  %v7001_v48 = vpop.f32.mrb[161].mxu1  ;;  %v6939_v55 = vpop.f32.mrb[162].mxu0 }
 0x239   :  { %v7002_v24 = vadd.f32 %v7001_v48, %v7000_v43  ;;  %v7003_v58 = vpop.f32.mrb[162].mxu1  ;;  %v6940_v9 = vpop.f32.mrb[163].mxu0 }
 0x23a   :  { %v4607_v35 = vadd.f32 %v6938_v23, %v9550_v4  ;;  %v6941_v16 = vadd.f32 %v6940_v9, %v6939_v55  ;;  %v7004_v60 = vpop.f32.mrb[163].mxu1 }
 0x23b   :  { %v7005_v57 = vadd.f32 %v7004_v60, %v7003_v58 }
 0x23c   :  { %v9634_v36 = vadd.f32 %v7002_v24, %v4607_v35  ;;  %v4610_v20 = vadd.f32 %v6941_v16, %v9559_v0 }
 0x23e   :  { %v9637_v21 = vadd.f32 %v7005_v57, %v4610_v20  ;;  %v6942_v27 = vpop.f32.mrb[164].mxu0 }
 0x23f   :  { %v7006_v59 = vpop.f32.mrb[164].mxu1  ;;  %v6943_v5 = vpop.f32.mrb[165].mxu0 }
 0x240   :  { %v6944_v22 = vadd.f32 %v6943_v5, %v6942_v27  ;;  %v7007_v63 = vpop.f32.mrb[165].mxu1  ;;  %v6945_v33 = vpop.f32.mrb[166].mxu0 }
 0x241   :  { %v7008_v51 = vadd.f32 %v7007_v63, %v7006_v59  ;;  %v7009_v31 = vpop.f32.mrb[166].mxu1  ;;  %v6946_v39 = vpop.f32.mrb[167].mxu0 }
 0x242   :  { %v4615_v4 = vadd.f32 %v6944_v22, %v9568_v56  ;;  %v6947_v12 = vadd.f32 %v6946_v39, %v6945_v33  ;;  %v7010_v34 = vpop.f32.mrb[167].mxu1 }
 0x243   :  { %v7011_v19 = vadd.f32 %v7010_v34, %v7009_v31 }
 0x244   :  { %v9640_v38 = vadd.f32 %v7008_v51, %v4615_v4  ;;  %v4618_v0 = vadd.f32 %v6947_v12, %v9577_v49 }
 0x246   :  { %v9643_v62 = vadd.f32 %v7011_v19, %v4618_v0  ;;  %v6948_v40 = vpop.f32.mrb[168].mxu0 }
 0x247   :  { %v7012_v15 = vpop.f32.mrb[168].mxu1  ;;  %v6949_v42 = vpop.f32.mrb[169].mxu0 }
 0x248   :  { %v6950_v45 = vadd.f32 %v6949_v42, %v6948_v40  ;;  %v7013_v14 = vpop.f32.mrb[169].mxu1  ;;  %v6951_v30 = vpop.f32.mrb[170].mxu0 }
 0x249   :  { %v7014_v25 = vadd.f32 %v7013_v14, %v7012_v15  ;;  %v7015_v46 = vpop.f32.mrb[170].mxu1  ;;  %v6952_v26 = vpop.f32.mrb[171].mxu0 }
 0x24a   :  { %v4623_v56 = vadd.f32 %v6950_v45, %v9586_v18  ;;  %v6953_v52 = vadd.f32 %v6952_v26, %v6951_v30  ;;  %v7016_v41 = vpop.f32.mrb[171].mxu1 }
 0x24b   :  { %v7017_v61 = vadd.f32 %v7016_v41, %v7015_v46 }
 0x24c   :  { %v9646_v3 = vadd.f32 %v7014_v25, %v4623_v56  ;;  %v4626_v49 = vadd.f32 %v6953_v52, %v9595_v37 }
 0x24e   :  { %v9649_v28 = vadd.f32 %v7017_v61, %v4626_v49  ;;  %v6954_v6 = vpop.f32.mrb[172].mxu0 }
 0x24f   :  { %v7018_v47 = vpop.f32.mrb[172].mxu1  ;;  %v6955_v1 = vpop.f32.mrb[173].mxu0 }
 0x250   :  { %v6956_v32 = vadd.f32 %v6955_v1, %v6954_v6  ;;  %v7019_v50 = vpop.f32.mrb[173].mxu1  ;;  %v6957_v43 = vpop.f32.mrb[174].mxu0 }
 0x251   :  { %v7020_v10 = vadd.f32 %v7019_v50, %v7018_v47  ;;  %v7021_v23 = vpop.f32.mrb[174].mxu1  ;;  %v6958_v48 = vpop.f32.mrb[175].mxu0 }
 0x252   :  { %v4631_v18 = vadd.f32 %v6956_v32, %v9604_v53  ;;  %v6959_v55 = vadd.f32 %v6958_v48, %v6957_v43  ;;  %v7022_v24 = vpop.f32.mrb[175].mxu1 }
 0x253   :  { %v7023_v58 = vadd.f32 %v7022_v24, %v7021_v23 }
 0x254   :  { %v9652_v9 = vadd.f32 %v7020_v10, %v4631_v18  ;;  %v4634_v37 = vadd.f32 %v6959_v55, %v9607_v54 }
 0x256   :  { %v9655_v35 = vadd.f32 %v7023_v58, %v4634_v37  ;;  %v6960_v16 = vpop.f32.mrb[176].mxu0 }
 0x257   :  { %v7024_v60 = vpop.f32.mrb[176].mxu1  ;;  %v6961_v57 = vpop.f32.mrb[177].mxu0 }
 0x258   :  { %v6962_v20 = vadd.f32 %v6961_v57, %v6960_v16  ;;  %v7025_v27 = vpop.f32.mrb[177].mxu1  ;;  %v6963_v59 = vpop.f32.mrb[178].mxu0 }
 0x259   :  { %v7026_v5 = vadd.f32 %v7025_v27, %v7024_v60  ;;  %v7027_v22 = vpop.f32.mrb[178].mxu1  ;;  %v6964_v63 = vpop.f32.mrb[179].mxu0 }
 0x25a   :  { %v4639_v53 = vadd.f32 %v6962_v20, %v9610_v11  ;;  %v6965_v33 = vadd.f32 %v6964_v63, %v6963_v59  ;;  %v7028_v51 = vpop.f32.mrb[179].mxu1 }
 0x25b   :  { %v7029_v31 = vadd.f32 %v7028_v51, %v7027_v22 }
 0x25c   :  { %v9658_v39 = vadd.f32 %v7026_v5, %v4639_v53  ;;  %v4642_v54 = vadd.f32 %v6965_v33, %v9613_v13 }
 0x25e   :  { %v9661_v4 = vadd.f32 %v7029_v31, %v4642_v54  ;;  %v6966_v12 = vpop.f32.mrb[180].mxu0 }
 0x25f   :  { %v7030_v34 = vpop.f32.mrb[180].mxu1  ;;  %v6967_v19 = vpop.f32.mrb[181].mxu0 }
 0x260   :  { %v6968_v0 = vadd.f32 %v6967_v19, %v6966_v12  ;;  %v7031_v40 = vpop.f32.mrb[181].mxu1  ;;  %v6969_v15 = vpop.f32.mrb[182].mxu0 }
 0x261   :  { %v7032_v42 = vadd.f32 %v7031_v40, %v7030_v34  ;;  %v7033_v45 = vpop.f32.mrb[182].mxu1  ;;  %v6970_v14 = vpop.f32.mrb[183].mxu0 }
 0x262   :  { %v4647_v11 = vadd.f32 %v6968_v0, %v9616_v17  ;;  %v6971_v30 = vadd.f32 %v6970_v14, %v6969_v15  ;;  %v7034_v25 = vpop.f32.mrb[183].mxu1 }
 0x263   :  { %v7035_v46 = vadd.f32 %v7034_v25, %v7033_v45 }
 0x264   :  { %v9664_v26 = vadd.f32 %v7032_v42, %v4647_v11  ;;  %v4650_v13 = vadd.f32 %v6971_v30, %v9619_v7 }
 0x266   :  { %v9667_v56 = vadd.f32 %v7035_v46, %v4650_v13  ;;  %v6972_v52 = vpop.f32.mrb[184].mxu0 }
 0x267   :  { %v7036_v41 = vpop.f32.mrb[184].mxu1  ;;  %v6973_v61 = vpop.f32.mrb[185].mxu0 }
 0x268   :  { %v6974_v49 = vadd.f32 %v6973_v61, %v6972_v52  ;;  %v7037_v6 = vpop.f32.mrb[185].mxu1  ;;  %v6975_v47 = vpop.f32.mrb[186].mxu0 }
 0x269   :  { %v7038_v1 = vadd.f32 %v7037_v6, %v7036_v41  ;;  %v7039_v32 = vpop.f32.mrb[186].mxu1  ;;  %v6976_v50 = vpop.f32.mrb[187].mxu0 }
 0x26a   :  { %v4655_v17 = vadd.f32 %v6974_v49, %v9622_v44  ;;  %v6977_v43 = vadd.f32 %v6976_v50, %v6975_v47  ;;  %v7040_v10 = vpop.f32.mrb[187].mxu1 }
 0x26b   :  { %v7041_v23 = vadd.f32 %v7040_v10, %v7039_v32 }
 0x26c   :  { %v9670_v48 = vadd.f32 %v7038_v1, %v4655_v17  ;;  %v4658_v7 = vadd.f32 %v6977_v43, %v9625_v29 }
 0x26e   :  { %v9673_v18 = vadd.f32 %v7041_v23, %v4658_v7  ;;  %v6978_v55 = vpop.f32.mrb[188].mxu0 }
 0x26f   :  { %v7042_v24 = vpop.f32.mrb[188].mxu1  ;;  %v6979_v58 = vpop.f32.mrb[189].mxu0 }
 0x270   :  { %v6980_v37 = vadd.f32 %v6979_v58, %v6978_v55  ;;  %v7043_v16 = vpop.f32.mrb[189].mxu1  ;;  %v6981_v60 = vpop.f32.mrb[190].mxu0 }
 0x271   :  { %v7044_v57 = vadd.f32 %v7043_v16, %v7042_v24  ;;  %v7045_v20 = vpop.f32.mrb[190].mxu1  ;;  %v6982_v27 = vpop.f32.mrb[191].mxu0 }
 0x272   :  { %v4663_v44 = vadd.f32 %v6980_v37, %v9628_v2  ;;  %v6983_v59 = vadd.f32 %v6982_v27, %v6981_v60  ;;  %v7046_v5 = vpop.f32.mrb[191].mxu1 }
 0x273   :  { %v7047_v22 = vadd.f32 %v7046_v5, %v7045_v20 }
 0x274   :  { %v9676_v63 = vadd.f32 %v7044_v57, %v4663_v44  ;;  %v4666_v29 = vadd.f32 %v6983_v59, %v9631_v8 }
 0x276   :  { %v9679_v53 = vadd.f32 %v7047_v22, %v4666_v29  ;;  %v7064_v33 = vpop.f32.mrb[192].mxu0 }
 0x277   :  { %v7128_v51 = vpop.f32.mrb[192].mxu1  ;;  %v7065_v31 = vpop.f32.mrb[193].mxu0 }
 0x278   :  { %v7066_v54 = vadd.f32 %v7065_v31, %v7064_v33  ;;  %v7129_v12 = vpop.f32.mrb[193].mxu1  ;;  %v7067_v34 = vpop.f32.mrb[194].mxu0 }
 0x279   :  { %v7130_v19 = vadd.f32 %v7129_v12, %v7128_v51  ;;  %v7131_v0 = vpop.f32.mrb[194].mxu1  ;;  %v7068_v40 = vpop.f32.mrb[195].mxu0 }
 0x27a   :  { %v4801_v2 = vadd.f32 %v7066_v54, %v9634_v36  ;;  %v7069_v15 = vadd.f32 %v7068_v40, %v7067_v34  ;;  %v7132_v42 = vpop.f32.mrb[195].mxu1 }
 0x27b   :  { %v7133_v45 = vadd.f32 %v7132_v42, %v7131_v0 }
 0x27c   :  { %v9682_v14 = vadd.f32 %v7130_v19, %v4801_v2  ;;  %v4804_v8 = vadd.f32 %v7069_v15, %v9637_v21 }
 0x27e   :  { %v9685_v11 = vadd.f32 %v7133_v45, %v4804_v8  ;;  %v7070_v30 = vpop.f32.mrb[196].mxu0 }
 0x27f   :  { %v7134_v25 = vpop.f32.mrb[196].mxu1  ;;  %v7071_v46 = vpop.f32.mrb[197].mxu0 }
 0x280   :  { %v7072_v13 = vadd.f32 %v7071_v46, %v7070_v30  ;;  %v7135_v52 = vpop.f32.mrb[197].mxu1  ;;  %v7073_v41 = vpop.f32.mrb[198].mxu0 }
 0x281   :  { %v7136_v61 = vadd.f32 %v7135_v52, %v7134_v25  ;;  %v7137_v49 = vpop.f32.mrb[198].mxu1  ;;  %v7074_v6 = vpop.f32.mrb[199].mxu0 }
 0x282   :  { %v4809_v36 = vadd.f32 %v7072_v13, %v9640_v38  ;;  %v7075_v47 = vadd.f32 %v7074_v6, %v7073_v41  ;;  %v7138_v1 = vpop.f32.mrb[199].mxu1 }
 0x283   :  { %v7139_v32 = vadd.f32 %v7138_v1, %v7137_v49 }
 0x284   :  { %v9688_v50 = vadd.f32 %v7136_v61, %v4809_v36  ;;  %v4812_v21 = vadd.f32 %v7075_v47, %v9643_v62 }
 0x286   :  { %v9691_v17 = vadd.f32 %v7139_v32, %v4812_v21  ;;  %v7076_v43 = vpop.f32.mrb[200].mxu0 }
 0x287   :  { %v7140_v10 = vpop.f32.mrb[200].mxu1  ;;  %v7077_v23 = vpop.f32.mrb[201].mxu0 }
 0x288   :  { %v7078_v7 = vadd.f32 %v7077_v23, %v7076_v43  ;;  %v7141_v55 = vpop.f32.mrb[201].mxu1  ;;  %v7079_v24 = vpop.f32.mrb[202].mxu0 }
 0x289   :  { %v7142_v58 = vadd.f32 %v7141_v55, %v7140_v10  ;;  %v7143_v37 = vpop.f32.mrb[202].mxu1  ;;  %v7080_v16 = vpop.f32.mrb[203].mxu0 }
 0x28a   :  { %v4817_v38 = vadd.f32 %v7078_v7, %v9646_v3  ;;  %v7081_v60 = vadd.f32 %v7080_v16, %v7079_v24  ;;  %v7144_v57 = vpop.f32.mrb[203].mxu1 }
 0x28b   :  { %v7145_v20 = vadd.f32 %v7144_v57, %v7143_v37 }
 0x28c   :  { %v9694_v27 = vadd.f32 %v7142_v58, %v4817_v38  ;;  %v4820_v62 = vadd.f32 %v7081_v60, %v9649_v28 }
 0x28e   :  { %v9697_v44 = vadd.f32 %v7145_v20, %v4820_v62  ;;  %v7082_v59 = vpop.f32.mrb[204].mxu0 }
 0x28f   :  { %v7146_v5 = vpop.f32.mrb[204].mxu1  ;;  %v7083_v22 = vpop.f32.mrb[205].mxu0 }
 0x290   :  { %v7084_v29 = vadd.f32 %v7083_v22, %v7082_v59  ;;  %v7147_v33 = vpop.f32.mrb[205].mxu1  ;;  %v7085_v51 = vpop.f32.mrb[206].mxu0 }
 0x291   :  { %v7148_v31 = vadd.f32 %v7147_v33, %v7146_v5  ;;  %v7149_v54 = vpop.f32.mrb[206].mxu1  ;;  %v7086_v12 = vpop.f32.mrb[207].mxu0 }
 0x292   :  { %v4825_v3 = vadd.f32 %v7084_v29, %v9652_v9  ;;  %v7087_v34 = vadd.f32 %v7086_v12, %v7085_v51  ;;  %v7150_v19 = vpop.f32.mrb[207].mxu1 }
 0x293   :  { %v7151_v0 = vadd.f32 %v7150_v19, %v7149_v54 }
 0x294   :  { %v9700_v40 = vadd.f32 %v7148_v31, %v4825_v3  ;;  %v4828_v28 = vadd.f32 %v7087_v34, %v9655_v35 }
 0x296   :  { %v9703_v2 = vadd.f32 %v7151_v0, %v4828_v28  ;;  %v7088_v15 = vpop.f32.mrb[208].mxu0 }
 0x297   :  { %v7152_v42 = vpop.f32.mrb[208].mxu1  ;;  %v7089_v45 = vpop.f32.mrb[209].mxu0 }
 0x298   :  { %v7090_v8 = vadd.f32 %v7089_v45, %v7088_v15  ;;  %v7153_v30 = vpop.f32.mrb[209].mxu1  ;;  %v7091_v25 = vpop.f32.mrb[210].mxu0 }
 0x299   :  { %v7154_v46 = vadd.f32 %v7153_v30, %v7152_v42  ;;  %v7155_v13 = vpop.f32.mrb[210].mxu1  ;;  %v7092_v52 = vpop.f32.mrb[211].mxu0 }
 0x29a   :  { %v4833_v9 = vadd.f32 %v7090_v8, %v9658_v39  ;;  %v7093_v41 = vadd.f32 %v7092_v52, %v7091_v25  ;;  %v7156_v61 = vpop.f32.mrb[211].mxu1 }
 0x29b   :  { %v7157_v49 = vadd.f32 %v7156_v61, %v7155_v13 }
 0x29c   :  { %v9706_v6 = vadd.f32 %v7154_v46, %v4833_v9  ;;  %v4836_v35 = vadd.f32 %v7093_v41, %v9661_v4 }
 0x29e   :  { %v9709_v36 = vadd.f32 %v7157_v49, %v4836_v35  ;;  %v7094_v47 = vpop.f32.mrb[212].mxu0 }
 0x29f   :  { %v7158_v1 = vpop.f32.mrb[212].mxu1  ;;  %v7095_v32 = vpop.f32.mrb[213].mxu0 }
 0x2a0   :  { %v7096_v21 = vadd.f32 %v7095_v32, %v7094_v47  ;;  %v7159_v43 = vpop.f32.mrb[213].mxu1  ;;  %v7097_v10 = vpop.f32.mrb[214].mxu0 }
 0x2a1   :  { %v7160_v23 = vadd.f32 %v7159_v43, %v7158_v1  ;;  %v7161_v7 = vpop.f32.mrb[214].mxu1  ;;  %v7098_v55 = vpop.f32.mrb[215].mxu0 }
 0x2a2   :  { %v4841_v39 = vadd.f32 %v7096_v21, %v9664_v26  ;;  %v7099_v24 = vadd.f32 %v7098_v55, %v7097_v10  ;;  %v7162_v58 = vpop.f32.mrb[215].mxu1 }
 0x2a3   :  { %v7163_v37 = vadd.f32 %v7162_v58, %v7161_v7 }
 0x2a4   :  { %v9712_v16 = vadd.f32 %v7160_v23, %v4841_v39  ;;  %v4844_v4 = vadd.f32 %v7099_v24, %v9667_v56 }
 0x2a6   :  { %v9715_v38 = vadd.f32 %v7163_v37, %v4844_v4  ;;  %v7100_v60 = vpop.f32.mrb[216].mxu0 }
 0x2a7   :  { %v7164_v57 = vpop.f32.mrb[216].mxu1  ;;  %v7101_v20 = vpop.f32.mrb[217].mxu0 }
 0x2a8   :  { %v7102_v62 = vadd.f32 %v7101_v20, %v7100_v60  ;;  %v7165_v59 = vpop.f32.mrb[217].mxu1  ;;  %v7103_v5 = vpop.f32.mrb[218].mxu0 }
 0x2a9   :  { %v7166_v22 = vadd.f32 %v7165_v59, %v7164_v57  ;;  %v7167_v29 = vpop.f32.mrb[218].mxu1  ;;  %v7104_v33 = vpop.f32.mrb[219].mxu0 }
 0x2aa   :  { %v4849_v26 = vadd.f32 %v7102_v62, %v9670_v48  ;;  %v7105_v51 = vadd.f32 %v7104_v33, %v7103_v5  ;;  %v7168_v31 = vpop.f32.mrb[219].mxu1 }
 0x2ab   :  { %v7169_v54 = vadd.f32 %v7168_v31, %v7167_v29 }
 0x2ac   :  { %v9718_v12 = vadd.f32 %v7166_v22, %v4849_v26  ;;  %v4852_v56 = vadd.f32 %v7105_v51, %v9673_v18 }
 0x2ae   :  { %v9721_v3 = vadd.f32 %v7169_v54, %v4852_v56  ;;  %v7106_v34 = vpop.f32.mrb[220].mxu0 }
 0x2af   :  { %v7170_v19 = vpop.f32.mrb[220].mxu1  ;;  %v7107_v0 = vpop.f32.mrb[221].mxu0 }
 0x2b0   :  { %v7108_v28 = vadd.f32 %v7107_v0, %v7106_v34  ;;  %v7171_v15 = vpop.f32.mrb[221].mxu1  ;;  %v7109_v42 = vpop.f32.mrb[222].mxu0 }
 0x2b1   :  { %v7172_v45 = vadd.f32 %v7171_v15, %v7170_v19  ;;  %v7173_v8 = vpop.f32.mrb[222].mxu1  ;;  %v7110_v30 = vpop.f32.mrb[223].mxu0 }
 0x2b2   :  { %v4857_v48 = vadd.f32 %v7108_v28, %v9676_v63  ;;  %v7111_v25 = vadd.f32 %v7110_v30, %v7109_v42  ;;  %v7174_v46 = vpop.f32.mrb[223].mxu1 }
 0x2b3   :  { %v7175_v13 = vadd.f32 %v7174_v46, %v7173_v8 }
 0x2b4   :  { %v9724_v52 = vadd.f32 %v7172_v45, %v4857_v48  ;;  %v4860_v18 = vadd.f32 %v7111_v25, %v9679_v53 }
 0x2b6   :  { %v9727_v9 = vadd.f32 %v7175_v13, %v4860_v18  ;;  %v7192_v41 = vpop.f32.mrb[224].mxu0 }
 0x2b7   :  { %v7256_v61 = vpop.f32.mrb[224].mxu1  ;;  %v7193_v49 = vpop.f32.mrb[225].mxu0 }
 0x2b8   :  { %v7194_v35 = vadd.f32 %v7193_v49, %v7192_v41  ;;  %v7257_v47 = vpop.f32.mrb[225].mxu1  ;;  %v7195_v1 = vpop.f32.mrb[226].mxu0 }
 0x2b9   :  { %v7258_v32 = vadd.f32 %v7257_v47, %v7256_v61  ;;  %v7259_v21 = vpop.f32.mrb[226].mxu1  ;;  %v7196_v43 = vpop.f32.mrb[227].mxu0 }
 0x2ba   :  { %v4995_v63 = vadd.f32 %v7194_v35, %v9682_v14  ;;  %v7197_v10 = vadd.f32 %v7196_v43, %v7195_v1  ;;  %v7260_v23 = vpop.f32.mrb[227].mxu1 }
 0x2bb   :  { %v7261_v7 = vadd.f32 %v7260_v23, %v7259_v21 }
 0x2bc   :  { %v9730_v55 = vadd.f32 %v7258_v32, %v4995_v63  ;;  %v4998_v53 = vadd.f32 %v7197_v10, %v9685_v11 }
 0x2be   :  { %v9733_v39 = vadd.f32 %v7261_v7, %v4998_v53  ;;  %v7198_v24 = vpop.f32.mrb[228].mxu0  ;;  %v5155_v58 = vsel %vm5154_vm0, %v9730_v55, 0.0  ;;  %v5203_v11 = vmul.f32 %v9730_v55, %v9730_v55 }
 0x2bf   :  { %v7199_v37 = vpop.f32.mrb[229].mxu0  ;;  %5156 = vadd.xlane.f32.xlu0 %v5155_v58  ;;  %v7262_v4 = vpop.f32.mrb[228].mxu1 }
 0x2c0   :  { %v7200_v60 = vadd.f32 %v7199_v37, %v7198_v24  ;;  %v7201_v57 = vpop.f32.mrb[230].mxu0  ;;  %v7263_v14 = vpop.f32.mrb[229].mxu1  ;;  %v5204_v20 = vmul.f32 %v9733_v39, %v9733_v39  ;;  %v5158_v51 = vsel %vm5154_vm0, %v9733_v39, 0.0  ;;  %v5219_v0 = vsel %vm5154_vm0, %v5203_v11, 0.0 }
 0x2c1   :  { %v7202_v62 = vpop.f32.mrb[231].mxu0  ;;  %v7264_v59 = vadd.f32 %v7263_v14, %v7262_v4  ;;  %v7265_v5 = vpop.f32.mrb[230].mxu1 }
 0x2c2   :  { %v5003_v22 = vadd.f32 %v7200_v60, %v9688_v50  ;;  %v7203_v29 = vadd.f32 %v7202_v62, %v7201_v57  ;;  %v7266_v33 = vpop.f32.mrb[231].mxu1  ;;  %v5222_v26 = vsel %vm5154_vm0, %v5204_v20, 0.0 }
 0x2c3   :  { %v7267_v31 = vadd.f32 %v7266_v33, %v7265_v5  ;;  %5223 = vadd.xlane.f32.xlu1 %v5222_v26  ;;  %5159 = vadd.xlane.f32.xlu0 %v5158_v51 }
 0x2c4   :  { %v5006_v54 = vadd.f32 %v7203_v29, %v9691_v17  ;;  %v9746_v56 = vadd.f32 %v7264_v59, %v5003_v22 }
 0x2c6   :  { %v9748_v34 = vadd.f32 %v7267_v31, %v5006_v54  ;;  %v7204_v19 = vpop.f32.mrb[232].mxu0  ;;  %v5161_v50 = vsel %vm5154_vm0, %v9746_v56, 0.0  ;;  %v5205_v28 = vmul.f32 %v9746_v56, %v9746_v56 }
 0x2c7   :  { %v7205_v15 = vpop.f32.mrb[233].mxu0  ;;  %5162 = vadd.xlane.f32.xlu1 %v5161_v50  ;;  %5220 = vadd.xlane.f32.xlu0 %v5219_v0  ;;  %v7268_v42 = vpop.f32.mrb[232].mxu1 }
 0x2c8   :  { %v7206_v45 = vadd.f32 %v7205_v15, %v7204_v19  ;;  %v7207_v8 = vpop.f32.mrb[234].mxu0  ;;  %v7269_v17 = vpop.f32.mrb[233].mxu1  ;;  %v5164_v46 = vsel %vm5154_vm0, %v9748_v34, 0.0  ;;  %v5225_v61 = vsel %vm5154_vm0, %v5205_v28, 0.0  ;;  %v5206_v49 = vmul.f32 %v9748_v34, %v9748_v34 }
 0x2c9   :  { %v7208_v30 = vpop.f32.mrb[235].mxu0  ;;  %v7270_v48 = vadd.f32 %v7269_v17, %v7268_v42  ;;  %v7271_v25 = vpop.f32.mrb[234].mxu1 }
 0x2ca   :  { %v5011_v13 = vadd.f32 %v7206_v45, %v9694_v27  ;;  %v7209_v18 = vadd.f32 %v7208_v30, %v7207_v8  ;;  %v7272_v41 = vpop.f32.mrb[235].mxu1  ;;  %v5228_v43 = vsel %vm5154_vm0, %v5206_v49, 0.0 }
 0x2cb   :  { %v7273_v35 = vadd.f32 %v7272_v41, %v7271_v25  ;;  %5165 = vadd.xlane.f32.xlu1 %v5164_v46  ;;  %5226 = vadd.xlane.f32.xlu0 %v5225_v61 }
 0x2cc   :  { %v5014_v47 = vadd.f32 %v7209_v18, %v9697_v44  ;;  %v9762_v1 = vadd.f32 %v7270_v48, %v5011_v13 }
 0x2ce   :  { %v9764_v32 = vadd.f32 %v7273_v35, %v5014_v47  ;;  %v7210_v21 = vpop.f32.mrb[236].mxu0  ;;  %v5167_v27 = vsel %vm5154_vm0, %v9762_v1, 0.0  ;;  %v5207_v63 = vmul.f32 %v9762_v1, %v9762_v1 }
 0x2cf   :  { %v7211_v10 = vpop.f32.mrb[237].mxu0  ;;  %5229 = vadd.xlane.f32.xlu1 %v5228_v43  ;;  %5168 = vadd.xlane.f32.xlu0 %v5167_v27  ;;  %v7274_v23 = vpop.f32.mrb[236].mxu1 }
 0x2d0   :  { %v7212_v7 = vadd.f32 %v7211_v10, %v7210_v21  ;;  %v7213_v53 = vpop.f32.mrb[238].mxu0  ;;  %v7275_v44 = vpop.f32.mrb[237].mxu1  ;;  %v5170_v4 = vsel %vm5154_vm0, %v9764_v32, 0.0  ;;  %v5231_v20 = vsel %vm5154_vm0, %v5207_v63, 0.0  ;;  %v5208_v62 = vmul.f32 %v9764_v32, %v9764_v32 }
 0x2d1   :  { %v7214_v24 = vpop.f32.mrb[239].mxu0  ;;  %v7276_v58 = vadd.f32 %v7275_v44, %v7274_v23  ;;  %v7277_v37 = vpop.f32.mrb[238].mxu1 }
 0x2d2   :  { %v5019_v60 = vadd.f32 %v7212_v7, %v9700_v40  ;;  %v7215_v57 = vadd.f32 %v7214_v24, %v7213_v53  ;;  %v7278_v14 = vpop.f32.mrb[239].mxu1  ;;  %v5234_v33 = vsel %vm5154_vm0, %v5208_v62, 0.0  ;;  %v7595_v62 = vmov 0  }
 0x2d3   :  { %v7279_v59 = vadd.f32 %v7278_v14, %v7277_v37  ;;  %5171 = vadd.xlane.f32.xlu1 %v5170_v4  ;;  %5232 = vadd.xlane.f32.xlu0 %v5231_v20 }
 0x2d4   :  { %v5022_v5 = vadd.f32 %v7215_v57, %v9703_v2  ;;  %v9778_v11 = vadd.f32 %v7276_v58, %v5019_v60  ;;  %7306 = vset.pattern.permute.xlu1 %v7595_v62  ;;  %7305 = vset.pattern.permute.xlu0 %v7595_v62 }
 0x2d6   :  { %v9780_v22 = vadd.f32 %v7279_v59, %v5022_v5  ;;  %v7216_v29 = vpop.f32.mrb[240].mxu0  ;;  %v5173_v40 = vsel %vm5154_vm0, %v9778_v11, 0.0  ;;  %v5209_v26 = vmul.f32 %v9778_v11, %v9778_v11 }
 0x2d7   :  { %v7217_v51 = vpop.f32.mrb[241].mxu0  ;;  %5235 = vadd.xlane.f32.xlu1 %v5234_v33  ;;  %5174 = vadd.xlane.f32.xlu0 %v5173_v40  ;;  %v7280_v31 = vpop.f32.mrb[240].mxu1 }
 0x2d8   :  { %v7218_v54 = vadd.f32 %v7217_v51, %v7216_v29  ;;  %v7219_v19 = vpop.f32.mrb[242].mxu0  ;;  %v7281_v2 = vpop.f32.mrb[241].mxu1  ;;  %v5176_v15 = vsel %vm5154_vm0, %v9780_v22, 0.0  ;;  %v5237_v17 = vsel %vm5154_vm0, %v5209_v26, 0.0  ;;  %v5210_v30 = vmul.f32 %v9780_v22, %v9780_v22 }
 0x2d9   :  { %v7220_v50 = vpop.f32.mrb[243].mxu0  ;;  %v7282_v0 = vadd.f32 %v7281_v2, %v7280_v31  ;;  %v7283_v28 = vpop.f32.mrb[242].mxu1 }
 0x2da   :  { %v5027_v42 = vadd.f32 %v7218_v54, %v9706_v6  ;;  %v7221_v45 = vadd.f32 %v7220_v50, %v7219_v19  ;;  %v7284_v8 = vpop.f32.mrb[243].mxu1  ;;  %v5240_v41 = vsel %vm5154_vm0, %v5210_v30, 0.0 }
 0x2db   :  { %v7285_v48 = vadd.f32 %v7284_v8, %v7283_v28  ;;  %5177 = vadd.xlane.f32.xlu1 %v5176_v15  ;;  %5238 = vadd.xlane.f32.xlu0 %v5237_v17 }
 0x2dc   :  { %v5030_v25 = vadd.f32 %v7221_v45, %v9709_v36  ;;  %v9794_v46 = vadd.f32 %v7282_v0, %v5027_v42 }
 0x2de   :  { %v9796_v13 = vadd.f32 %v7285_v48, %v5030_v25  ;;  %v7222_v18 = vpop.f32.mrb[244].mxu0  ;;  %v5179_v6 = vsel %vm5154_vm0, %v9794_v46, 0.0  ;;  %v5211_v61 = vmul.f32 %v9794_v46, %v9794_v46 }
 0x2df   :  { %v7223_v49 = vpop.f32.mrb[245].mxu0  ;;  %5241 = vadd.xlane.f32.xlu1 %v5240_v41  ;;  %5180 = vadd.xlane.f32.xlu0 %v5179_v6  ;;  %v7286_v35 = vpop.f32.mrb[244].mxu1 }
 0x2e0   :  { %v7224_v47 = vadd.f32 %v7223_v49, %v7222_v18  ;;  %v7225_v21 = vpop.f32.mrb[246].mxu0  ;;  %v7287_v36 = vpop.f32.mrb[245].mxu1  ;;  %v5182_v10 = vsel %vm5154_vm0, %v9796_v13, 0.0  ;;  %v5243_v44 = vsel %vm5154_vm0, %v5211_v61, 0.0  ;;  %v5212_v24 = vmul.f32 %v9796_v13, %v9796_v13 }
 0x2e1   :  { %v7226_v43 = vpop.f32.mrb[247].mxu0  ;;  %v7288_v27 = vadd.f32 %v7287_v36, %v7286_v35  ;;  %v7289_v63 = vpop.f32.mrb[246].mxu1 }
 0x2e2   :  { %v5035_v23 = vadd.f32 %v7224_v47, %v9712_v16  ;;  %v7227_v7 = vadd.f32 %v7226_v43, %v7225_v21  ;;  %v7290_v53 = vpop.f32.mrb[247].mxu1  ;;  %v5246_v14 = vsel %vm5154_vm0, %v5212_v24, 0.0 }
 0x2e3   :  { %v7291_v58 = vadd.f32 %v7290_v53, %v7289_v63  ;;  %5183 = vadd.xlane.f32.xlu1 %v5182_v10  ;;  %5244 = vadd.xlane.f32.xlu0 %v5243_v44 }
 0x2e4   :  { %v5038_v37 = vadd.f32 %v7227_v7, %v9715_v38  ;;  %v9810_v4 = vadd.f32 %v7288_v27, %v5035_v23 }
 0x2e6   :  { %v9812_v60 = vadd.f32 %v7291_v58, %v5038_v37  ;;  %v7228_v57 = vpop.f32.mrb[248].mxu0  ;;  %v5185_v16 = vsel %vm5154_vm0, %v9810_v4, 0.0  ;;  %v5213_v20 = vmul.f32 %v9810_v4, %v9810_v4 }
 0x2e7   :  { %v7229_v59 = vpop.f32.mrb[249].mxu0  ;;  %5247 = vadd.xlane.f32.xlu1 %v5246_v14  ;;  %5186 = vadd.xlane.f32.xlu0 %v5185_v16  ;;  %v7292_v38 = vpop.f32.mrb[248].mxu1 }
 0x2e8   :  { %v7230_v5 = vadd.f32 %v7229_v59, %v7228_v57  ;;  %v7231_v29 = vpop.f32.mrb[250].mxu0  ;;  %v7293_v33 = vpop.f32.mrb[249].mxu1  ;;  %v5188_v31 = vsel %vm5154_vm0, %v9812_v60, 0.0  ;;  %v5249_v50 = vsel %vm5154_vm0, %v5213_v20, 0.0  ;;  %v5214_v0 = vmul.f32 %v9812_v60, %v9812_v60 }
 0x2e9   :  { %v7232_v40 = vpop.f32.mrb[251].mxu0  ;;  %v7294_v26 = vadd.f32 %v7293_v33, %v7292_v38  ;;  %v7295_v51 = vpop.f32.mrb[250].mxu1 }
 0x2ea   :  { %v5043_v54 = vadd.f32 %v7230_v5, %v9718_v12  ;;  %v7233_v19 = vadd.f32 %v7232_v40, %v7231_v29  ;;  %v7296_v2 = vpop.f32.mrb[251].mxu1  ;;  %v5252_v17 = vsel %vm5154_vm0, %v5214_v0, 0.0 }
 0x2eb   :  { %v7297_v28 = vadd.f32 %v7296_v2, %v7295_v51  ;;  %5189 = vadd.xlane.f32.xlu1 %v5188_v31  ;;  %5250 = vadd.xlane.f32.xlu0 %v5249_v50 }
 0x2ec   :  { %v5046_v15 = vadd.f32 %v7233_v19, %v9721_v3  ;;  %v9826_v42 = vadd.f32 %v7294_v26, %v5043_v54 }
 0x2ee   :  { %v9828_v45 = vadd.f32 %v7297_v28, %v5046_v15  ;;  %v7234_v8 = vpop.f32.mrb[252].mxu0  ;;  %v5191_v12 = vsel %vm5154_vm0, %v9826_v42, 0.0  ;;  %v5215_v30 = vmul.f32 %v9826_v42, %v9826_v42 }
 0x2ef   :  { %v7235_v48 = vpop.f32.mrb[253].mxu0  ;;  %5253 = vadd.xlane.f32.xlu1 %v5252_v17  ;;  %5192 = vadd.xlane.f32.xlu0 %v5191_v12  ;;  %v7298_v25 = vpop.f32.mrb[252].mxu1 }
 0x2f0   :  { %v7236_v18 = vadd.f32 %v7235_v48, %v7234_v8  ;;  %v7237_v41 = vpop.f32.mrb[254].mxu0  ;;  %v7299_v3 = vpop.f32.mrb[253].mxu1  ;;  %v5194_v35 = vsel %vm5154_vm0, %v9828_v45, 0.0  ;;  %v5255_v43 = vsel %vm5154_vm0, %v5215_v30, 0.0  ;;  %v5216_v27 = vmul.f32 %v9828_v45, %v9828_v45 }
 0x2f1   :  { %v7238_v6 = vpop.f32.mrb[255].mxu0  ;;  %v7300_v61 = vadd.f32 %v7299_v3, %v7298_v25  ;;  %v7301_v49 = vpop.f32.mrb[254].mxu1  ;;  %v5364_v3 = vld [vmem:[%s10105_s2 + $0x8] sm:$0xff] }
 0x2f2   :  { %v5051_v47 = vadd.f32 %v7236_v18, %v9724_v52  ;;  %v7239_v21 = vadd.f32 %v7238_v6, %v7237_v41  ;;  %v7302_v36 = vpop.f32.mrb[255].mxu1  ;;  %v5258_v53 = vsel %vm5154_vm0, %v5216_v27, 0.0 }
 0x2f3   :  { %v7303_v63 = vadd.f32 %v7302_v36, %v7301_v49  ;;  %5195 = vadd.xlane.f32.xlu1 %v5194_v35  ;;  %5256 = vadd.xlane.f32.xlu0 %v5255_v43  ;;  %v5363_v43 = vld [vmem:[%s10105_s2] sm:$0xff] }
 0x2f4   :  { %v5054_v10 = vadd.f32 %v7239_v21, %v9727_v9  ;;  %v9842_v23 = vadd.f32 %v7300_v61, %v5051_v47 }
 0x2f6   :  { %v9844_v7 = vadd.f32 %v7303_v63, %v5054_v10  ;;  %v5197_v52 = vsel %vm5154_vm0, %v9842_v23, 0.0  ;;  %v5217_v44 = vmul.f32 %v9842_v23, %v9842_v23 }
 0x2f7   :  { %5259 = vadd.xlane.f32.xlu1 %v5258_v53  ;;  %5198 = vadd.xlane.f32.xlu0 %v5197_v52 }
 0x2f8   :  { %v5200_v24 = vsel %vm5154_vm0, %v9844_v7, 0.0  ;;  %v5261_v58 = vsel %vm5154_vm0, %v5217_v44, 0.0  ;;  %v5218_v9 = vmul.f32 %v9844_v7, %v9844_v7 }
 0x2fa   :  { %v5264_v37 = vsel %vm5154_vm0, %v5218_v9, 0.0 }
 0x2fb   :  { %5201 = vadd.xlane.f32.xlu1 %v5200_v24  ;;  %5262 = vadd.xlane.f32.xlu0 %v5261_v58 }
 0x2ff   :  { %5265 = vadd.xlane.f32.xlu1 %v5264_v37 }
 0x34c   :  { %v5157_v57 = vpop.xlane.xlu0 %5156 }
 0x34d   :  { %v5267_v20 = vmul.f32 0.013888889, %v5157_v57  ;;  %v5396_v57 = vld [vmem:[%s10106_s3 + $0x8] sm:$0xff] }
 0x34f   :  { %v5299_v33 = vmul.f32 %v5267_v20, %v5267_v20 }
 0x350   :  { %v5224_v14 = vpop.xlane.xlu1 %5223  ;;  %v5160_v16 = vpop.xlane.xlu0 %5159 }
 0x351   :  { %v5268_v62 = vmul.f32 0.013888889, %v5160_v16  ;;  %v5284_v59 = vmul.f32 0.013888889, %v5224_v14  ;;  %v5395_v14 = vld [vmem:[%s10106_s3] sm:$0xff] }
 0x353   :  { %v5300_v38 = vmul.f32 %v5268_v62, %v5268_v62 }
 0x354   :  { %v5163_v5 = vpop.xlane.xlu1 %5162  ;;  %v5221_v29 = vpop.xlane.xlu0 %5220 }
 0x355   :  { %v5316_v40 = vsub.f32 %v5284_v59, %v5300_v38  ;;  %v9857_v26 = vmul.f32 0.013888889, %v5163_v5  ;;  %v5283_v51 = vmul.f32 0.013888889, %v5221_v29 }
 0x357   :  { %v5332_v31 = vadd.f32 1e-05, %v5316_v40  ;;  %v5315_v54 = vsub.f32 %v5283_v51, %v5299_v33  ;;  %v5301_v19 = vmul.f32 %v9857_v26, %v9857_v26 }
 0x358   :  { %v5166_v2 = vpop.xlane.xlu1 %5165  ;;  %v5227_v50 = vpop.xlane.xlu0 %5226 }
 0x359   :  { %7563 = vrsqrt.f32 %v5332_v31  ;;  %v5331_v0 = vadd.f32 1e-05, %v5315_v54  ;;  %v9861_v28 = vmul.f32 0.013888889, %v5166_v2  ;;  %v5285_v15 = vmul.f32 0.013888889, %v5227_v50 }
 0x35a   :  { %v5365_v54 = vld [vmem:[%s10105_s2 + $0x10] sm:$0xff] }
 0x35b   :  { %7565 = vrsqrt.f32 %v5331_v0  ;;  %v5317_v8 = vsub.f32 %v5285_v15, %v5301_v19  ;;  %v5302_v30 = vmul.f32 %v9861_v28, %v9861_v28  ;;  %v5366_v19 = vld [vmem:[%s10105_s2 + $0x18] sm:$0xff] }
 0x35c   :  { %v5230_v17 = vpop.xlane.xlu1 %5229  ;;  %v5169_v12 = vpop.xlane.xlu0 %5168 }
 0x35d   :  { %v5333_v48 = vadd.f32 1e-05, %v5317_v8  ;;  %v5286_v25 = vmul.f32 0.013888889, %v5230_v17  ;;  %v9865_v41 = vmul.f32 0.013888889, %v5169_v12 }
 0x35f   :  { %v5318_v18 = vsub.f32 %v5286_v25, %v5302_v30  ;;  %7567 = vrsqrt.f32 %v5333_v48  ;;  %v5303_v36 = vmul.f32 %v9865_v41, %v9865_v41  ;;  %v5398_v25 = vld [vmem:[%s10106_s3 + $0x18] sm:$0xff] }
 0x360   :  { %v5172_v6 = vpop.xlane.xlu1 %5171  ;;  %v5233_v61 = vpop.xlane.xlu0 %5232 }
 0x361   :  { %v5334_v49 = vadd.f32 1e-05, %v5318_v18  ;;  %v9870_v35 = vmul.f32 0.013888889, %v5172_v6  ;;  %v5287_v47 = vmul.f32 0.013888889, %v5233_v61 }
 0x363   :  { %v7564_v21 = vpop.eup %7563  ;;  %7569 = vrsqrt.f32 %v5334_v49  ;;  %v5304_v52 = vmul.f32 %v9870_v35, %v9870_v35  ;;  %v5319_v44 = vsub.f32 %v5287_v47, %v5303_v36 }
 0x364   :  { %v5380_v27 = vmul.f32 %v7564_v21, %v5364_v3  ;;  %v5236_v63 = vpop.xlane.xlu1 %5235  ;;  %v5175_v10 = vpop.xlane.xlu0 %5174 }
 0x365   :  { %v7566_v53 = vpop.eup %7565  ;;  %v5288_v24 = vmul.f32 0.013888889, %v5236_v63  ;;  %v5335_v5 = vadd.f32 1e-05, %v5319_v44  ;;  %v9887_v31 = vmul.f32 0.013888889, %v5175_v10 }
 0x366   :  { %v5412_v58 = vmul.f32 %v5380_v27, %v5268_v62  ;;  %5450 = vperm.xlu1 %7306, %v5380_v27   ;;  %v5379_v9 = vmul.f32 %v7566_v53, %v5363_v43  ;;  %v5397_v27 = vld [vmem:[%s10106_s3 + $0x10] sm:$0xff]  ;;  %v5368_v63 = vld [vmem:[%s10105_s2 + $0x28] sm:$0xff] }
 0x367   :  { %v5320_v37 = vsub.f32 %v5288_v24, %v5304_v52  ;;  %v5305_v30 = vmul.f32 %v9887_v31, %v9887_v31 }
 0x368   :  { %v5178_v16 = vpop.xlane.xlu1 %5177  ;;  %5445 = vperm.xlu0 %7305, %v5379_v9   ;;  %v5239_v59 = vpop.xlane.xlu0 %5238  ;;  %v5411_v38 = vmul.f32 %v5379_v9, %v5267_v20  ;;  %v5428_v62 = vsub.f32 %v5396_v57, %v5412_v58 }
 0x369   :  { %v5336_v29 = vadd.f32 1e-05, %v5320_v37  ;;  %v9885_v33 = vmul.f32 0.013888889, %v5178_v16  ;;  %v7568_v51 = vpop.eup %7567  ;;  %v5289_v15 = vmul.f32 0.013888889, %v5239_v59 }
 0x36a   :  { %v5427_v40 = vsub.f32 %v5395_v14, %v5411_v38  ;;  %v5381_v17 = vmul.f32 %v7568_v51, %v5365_v54  ;;  %v5400_v16 = vld [vmem:[%s10106_s3 + $0x28] sm:$0xff]  ;;  %v5367_v59 = vld [vmem:[%s10105_s2 + $0x20] sm:$0xff] }
 0x36b   :  { %7571 = vrsqrt.f32 %v5336_v29  ;;  %v5306_v0 = vmul.f32 %v9885_v33, %v9885_v33  ;;  %v5321_v61 = vsub.f32 %v5289_v15, %v5305_v30 }
 0x36c   :  { %v5242_v2 = vpop.xlane.xlu1 %5241  ;;  %5546 = vperm.xlu0 %7305, %v5428_v62   ;;  %5541 = vperm.xlu1 %7306, %v5427_v40   ;;  %v5181_v20 = vpop.xlane.xlu0 %5180  ;;  %7573 = vrsqrt.f32 %v5335_v5  ;;  %v5413_v36 = vmul.f32 %v5381_v17, %v9857_v26 }
 0x36d   :  { %v7570_v50 = vpop.eup %7569  ;;  %v5290_v8 = vmul.f32 0.013888889, %v5242_v2  ;;  %v9906_v43 = vmul.f32 0.013888889, %v5181_v20  ;;  %v5337_v52 = vadd.f32 1e-05, %v5321_v61 }
 0x36e   :  { %v5382_v12 = vmul.f32 %v7570_v50, %v5366_v19  ;;  %v5429_v58 = vsub.f32 %v5397_v27, %v5413_v36  ;;  %v5370_v20 = vld [vmem:[%s10105_s2 + $0x38] sm:$0xff] }
 0x36f   :  { %v5322_v48 = vsub.f32 %v5290_v8, %v5306_v0  ;;  %v5307_v57 = vmul.f32 %v9906_v43, %v9906_v43 }
 0x370   :  { %v5184_v18 = vpop.xlane.xlu1 %5183  ;;  %5455 = vperm.xlu1 %7306, %v5381_v17   ;;  %v5245_v3 = vpop.xlane.xlu0 %5244  ;;  %v5414_v6 = vmul.f32 %v5382_v12, %v9861_v28 }
 0x371   :  { %v5338_v49 = vadd.f32 1e-05, %v5322_v48  ;;  %v9903_v47 = vmul.f32 0.013888889, %v5184_v18  ;;  %v5291_v44 = vmul.f32 0.013888889, %v5245_v3 }
 0x372   :  { %v5430_v21 = vsub.f32 %v5398_v25, %v5414_v6  ;;  %v5402_v3 = vld [vmem:[%s10106_s3 + $0x38] sm:$0xff]  ;;  %v5399_v6 = vld [vmem:[%s10106_s3 + $0x20] sm:$0xff] }
 0x373   :  { %7575 = vrsqrt.f32 %v5338_v49  ;;  %v5308_v26 = vmul.f32 %v9903_v47, %v9903_v47  ;;  %v5323_v62 = vsub.f32 %v5291_v44, %v5307_v57 }
 0x374   :  { %v5248_v10 = vpop.xlane.xlu1 %5247  ;;  %5556 = vperm.xlu0 %7305, %v5430_v21   ;;  %5460 = vperm.xlu1 %7306, %v5382_v12   ;;  %v5187_v28 = vpop.xlane.xlu0 %5186  ;;  %7577 = vrsqrt.f32 %v5337_v52  ;;  %v5372_v52 = vld [vmem:[%s10105_s2 + $0x48] sm:$0xff] }
 0x375   :  { %v7572_v53 = vpop.eup %7571  ;;  %v5292_v24 = vmul.f32 0.013888889, %v5248_v10  ;;  %v9927_v2 = vmul.f32 0.013888889, %v5187_v28 }
 0x376   :  { %v5384_v9 = vmul.f32 %v7572_v53, %v5368_v63  ;;  %v7574_v37 = vpop.eup %7573 }
 0x377   :  { %v5324_v14 = vsub.f32 %v5292_v24, %v5308_v26  ;;  %v5383_v19 = vmul.f32 %v7574_v37, %v5367_v59  ;;  %v5309_v25 = vmul.f32 %v9927_v2, %v9927_v2  ;;  %v5369_v26 = vld [vmem:[%s10105_s2 + $0x30] sm:$0xff] }
 0x378   :  { %v5190_v38 = vpop.xlane.xlu1 %5189  ;;  %5551 = vperm.xlu1 %7306, %v5429_v58   ;;  %v5251_v5 = vpop.xlane.xlu0 %5250  ;;  %v5416_v29 = vmul.f32 %v5384_v9, %v9870_v35  ;;  %v5339_v35 = vadd.f32 1e-05, %v5323_v62 }
 0x379   :  { %v5340_v40 = vadd.f32 1e-05, %v5324_v14  ;;  %v9925_v51 = vmul.f32 0.013888889, %v5190_v38  ;;  %v5293_v17 = vmul.f32 0.013888889, %v5251_v5  ;;  %v5415_v48 = vmul.f32 %v5383_v19, %v9865_v41 }
 0x37a   :  { %v5432_v54 = vsub.f32 %v5400_v16, %v5416_v29  ;;  %v5404_v5 = vld [vmem:[%s10106_s3 + $0x48] sm:$0xff] }
 0x37b   :  { %7579 = vrsqrt.f32 %v5340_v40  ;;  %v5310_v8 = vmul.f32 %v9925_v51, %v9925_v51  ;;  %v5325_v36 = vsub.f32 %v5293_v17, %v5309_v25  ;;  %v5431_v10 = vsub.f32 %v5399_v6, %v5415_v48  ;;  %v5371_v17 = vld [vmem:[%s10105_s2 + $0x40] sm:$0xff] }
 0x37c   :  { %v5254_v50 = vpop.xlane.xlu1 %5253  ;;  %5566 = vperm.xlu0 %7305, %v5432_v54   ;;  %5465 = vperm.xlu1 %7306, %v5383_v19   ;;  %v5193_v0 = vpop.xlane.xlu0 %5192  ;;  %7581 = vrsqrt.f32 %v5339_v35 }
 0x37d   :  { %v7576_v15 = vpop.eup %7575  ;;  %v5294_v12 = vmul.f32 0.013888889, %v5254_v50  ;;  %v9946_v53 = vmul.f32 0.013888889, %v5193_v0  ;;  %v5341_v58 = vadd.f32 1e-05, %v5325_v36 }
 0x37e   :  { %v5386_v30 = vmul.f32 %v7576_v15, %v5370_v20  ;;  %v7578_v28 = vpop.eup %7577 }
 0x37f   :  { %v5326_v18 = vsub.f32 %v5294_v12, %v5310_v8  ;;  %v5385_v16 = vmul.f32 %v7578_v28, %v5369_v26  ;;  %v5311_v59 = vmul.f32 %v9946_v53, %v9946_v53  ;;  %v5374_v8 = vld [vmem:[%s10105_s2 + $0x58] sm:$0xff] }
 0x380   :  { %v5196_v61 = vpop.xlane.xlu1 %5195  ;;  %5470 = vperm.xlu1 %7306, %v5384_v9   ;;  %v5257_v49 = vpop.xlane.xlu0 %5256  ;;  %v5418_v21 = vmul.f32 %v5386_v30, %v9885_v33 }
 0x381   :  { %v5342_v41 = vadd.f32 1e-05, %v5326_v18  ;;  %v9944_v27 = vmul.f32 0.013888889, %v5196_v61  ;;  %v5295_v37 = vmul.f32 0.013888889, %v5257_v49  ;;  %v5417_v0 = vmul.f32 %v5385_v16, %v9887_v31 }
 0x382   :  { %v5434_v63 = vsub.f32 %v5402_v3, %v5418_v21 }
 0x383   :  { %7583 = vrsqrt.f32 %v5342_v41  ;;  %v5312_v9 = vmul.f32 %v9944_v27, %v9944_v27  ;;  %v5327_v40 = vsub.f32 %v5295_v37, %v5311_v59  ;;  %v5406_v41 = vld [vmem:[%s10106_s3 + $0x58] sm:$0xff] }
 0x384   :  { %v5260_v33 = vpop.xlane.xlu1 %5259  ;;  %5576 = vperm.xlu0 %7305, %v5434_v63   ;;  %5561 = vperm.xlu1 %7306, %v5431_v10   ;;  %v5199_v44 = vpop.xlane.xlu0 %5198  ;;  %7585 = vrsqrt.f32 %v5341_v58 }
 0x385   :  { %v7580_v24 = vpop.eup %7579  ;;  %v5296_v57 = vmul.f32 0.013888889, %v5260_v33  ;;  %v9965_v35 = vmul.f32 0.013888889, %v5199_v44  ;;  %v5343_v48 = vadd.f32 1e-05, %v5327_v40 }
 0x386   :  { %v5388_v14 = vmul.f32 %v7580_v24, %v5372_v52  ;;  %v7582_v15 = vpop.eup %7581  ;;  %v5376_v33 = vld [vmem:[%s10105_s2 + $0x68] sm:$0xff]  ;;  %v5403_v44 = vld [vmem:[%s10106_s3 + $0x40] sm:$0xff] }
 0x387   :  { %v5328_v38 = vsub.f32 %v5296_v57, %v5312_v9  ;;  %v5387_v49 = vmul.f32 %v7582_v15, %v5371_v17  ;;  %v5313_v21 = vmul.f32 %v9965_v35, %v9965_v35  ;;  %v5408_v57 = vld [vmem:[%s10106_s3 + $0x68] sm:$0xff]  ;;  %v5377_v17 = vld [vmem:[%s10105_s2 + $0x70] sm:$0xff] }
 0x388   :  { %v5202_v29 = vpop.xlane.xlu1 %5201  ;;  %5490 = vperm.xlu0 %7305, %v5388_v14   ;;  %5475 = vperm.xlu1 %7306, %v5385_v16   ;;  %v5420_v62 = vmul.f32 %v5388_v14, %v9903_v47  ;;  %v5263_v20 = vpop.xlane.xlu0 %5262  ;;  %v5401_v47 = vld [vmem:[%s10106_s3 + $0x30] sm:$0xff] }
 0x389   :  { %v5344_v54 = vadd.f32 1e-05, %v5328_v38  ;;  %v9962_v19 = vmul.f32 0.013888889, %v5202_v29  ;;  %v5297_v18 = vmul.f32 0.013888889, %v5263_v20  ;;  %v5433_v61 = vsub.f32 %v5401_v47, %v5417_v0 }
 0x38a   :  { %v5436_v50 = vsub.f32 %v5404_v5, %v5420_v62  ;;  %v5419_v52 = vmul.f32 %v5387_v49, %v9906_v43  ;;  %v5378_v5 = vld [vmem:[%s10105_s2 + $0x78] sm:$0xff]  ;;  %v5405_v29 = vld [vmem:[%s10106_s3 + $0x50] sm:$0xff]  ;;  %v5375_v62 = vld [vmem:[%s10105_s2 + $0x60] sm:$0xff] }
 0x38b   :  { %7587 = vrsqrt.f32 %v5344_v54  ;;  %v5314_v25 = vmul.f32 %v9962_v19, %v9962_v19  ;;  %v5329_v63 = vsub.f32 %v5297_v18, %v5313_v21  ;;  %v5407_v47 = vld [vmem:[%s10106_s3 + $0x60] sm:$0xff] }
 0x38c   :  { %v5266_v12 = vpop.xlane.xlu1 %5265  ;;  %5586 = vperm.xlu0 %7305, %v5436_v50   ;;  %5480 = vperm.xlu1 %7306, %v5386_v30   ;;  %7589 = vrsqrt.f32 %v5343_v48  ;;  %v5435_v43 = vsub.f32 %v5403_v44, %v5419_v52 }
 0x38d   :  { %v7584_v31 = vpop.eup %7583  ;;  %v5298_v3 = vmul.f32 0.013888889, %v5266_v12  ;;  %v5345_v58 = vadd.f32 1e-05, %v5329_v63 }
 0x38e   :  { %v5390_v6 = vmul.f32 %v7584_v31, %v5374_v8  ;;  %v7586_v26 = vpop.eup %7585 }
 0x38f   :  { %v5330_v36 = vsub.f32 %v5298_v3, %v5314_v25 }
 0x390   :  { %5500 = vperm.xlu0 %7305, %v5390_v6   ;;  %5571 = vperm.xlu1 %7306, %v5433_v61   ;;  %v5422_v30 = vmul.f32 %v5390_v6, %v9925_v51  ;;  %v5373_v51 = vld [vmem:[%s10105_s2 + $0x50] sm:$0xff] }
 0x391   :  { %v5346_v10 = vadd.f32 1e-05, %v5330_v36  ;;  %v5389_v37 = vmul.f32 %v7586_v26, %v5373_v51 }
 0x392   :  { %v5438_v28 = vsub.f32 %v5406_v41, %v5422_v30 }
 0x393   :  { %7591 = vrsqrt.f32 %v5346_v10  ;;  %v5421_v59 = vmul.f32 %v5389_v37, %v9927_v2  ;;  %v5410_v2 = vld [vmem:[%s10106_s3 + $0x78] sm:$0xff] }
 0x394   :  { %5596 = vperm.xlu0 %7305, %v5438_v28   ;;  %5485 = vperm.xlu1 %7306, %v5387_v49   ;;  %7593 = vrsqrt.f32 %v5345_v58 }
 0x395   :  { %v7588_v24 = vpop.eup %7587  ;;  %v5437_v54 = vsub.f32 %v5405_v29, %v5421_v59 }
 0x396   :  { %v5392_v9 = vmul.f32 %v7588_v24, %v5376_v33  ;;  %v7590_v38 = vpop.eup %7589 }
 0x397   :  { %v5391_v20 = vmul.f32 %v7590_v38, %v5375_v62 }
 0x398   :  { %5510 = vperm.xlu0 %7305, %v5392_v9   ;;  %5581 = vperm.xlu1 %7306, %v5435_v43   ;;  %v5424_v14 = vmul.f32 %v5392_v9, %v9944_v27 }
 0x399   :  { %v5423_v15 = vmul.f32 %v5391_v20, %v9946_v53  ;;  %v5409_v53 = vld [vmem:[%s10106_s3 + $0x70] sm:$0xff] }
 0x39a   :  { %v5440_v16 = vsub.f32 %v5408_v57, %v5424_v14 }
 0x39b   :  { %v5439_v12 = vsub.f32 %v5407_v47, %v5423_v15 }
 0x39c   :  { %5606 = vperm.xlu0 %7305, %v5440_v16   ;;  %5495 = vperm.xlu1 %7306, %v5389_v37  }
 0x39d   :  { %v7592_v27 = vpop.eup %7591 }
 0x39e   :  { %v5394_v40 = vmul.f32 %v7592_v27, %v5378_v5  ;;  %v7594_v8 = vpop.eup %7593 }
 0x39f   :  { %v5393_v31 = vmul.f32 %v7594_v8, %v5377_v17 }
 0x3a0   :  { %5520 = vperm.xlu0 %7305, %v5394_v40   ;;  %5591 = vperm.xlu1 %7306, %v5437_v54   ;;  %v5426_v50 = vmul.f32 %v5394_v40, %v9962_v19 }
 0x3a1   :  { %v5425_v48 = vmul.f32 %v5393_v31, %v9965_v35 }
 0x3a2   :  { %v5442_v0 = vsub.f32 %v5410_v2, %v5426_v50 }
 0x3a3   :  { %v5441_v19 = vsub.f32 %v5409_v53, %v5425_v48 }
 0x3a4   :  { %5616 = vperm.xlu0 %7305, %v5442_v0   ;;  %5505 = vperm.xlu1 %7306, %v5391_v20  }
 0x3a8   :  { %5601 = vperm.xlu1 %7306, %v5439_v12  }
 0x3ac   :  { %5515 = vperm.xlu1 %7306, %v5393_v31  }
 0x3b0   :  { %5611 = vperm.xlu1 %7306, %v5441_v19  }
 0x3e5   :  { %v5451_v25 = vpop.permute.xlu1 %5450 }
 0x3e6   :  { %v5524_v3 = vmul.f32 %v5451_v25, %v9733_v39 }
 0x3e7   :  { %v5446_v18 = vpop.permute.xlu0 %5445 }
 0x3e8   :  { %v5523_v6 = vmul.f32 %v5446_v18, %v9730_v55 }
 0x3eb   :  { %v5542_v61 = vpop.permute.xlu1 %5541  ;;  %v5547_v49 = vpop.permute.xlu0 %5546 }
 0x3ec   :  { %v5619_v21 = vadd.f32 %v5542_v61, %v5523_v6  ;;  %v5620_v36 = vadd.f32 %v5547_v49, %v5524_v3 }
 0x3ee   :  { %v5635_v41 = vmax.f32 %v5619_v21, 0.0  ;;  %v5636_v30 = vmax.f32 %v5620_v36, 0.0 }
 0x3ef   :  { %v5456_v35 = vpop.permute.xlu1 %5455 }
 0x3f0   :  { %v6264_v63 = vpack.c.bf16 %v5635_v41, %v5635_v41  ;;  %v6265_v10 = vpack.c.bf16 %v5636_v30, %v5636_v30  ;;  %v5525_v52 = vmul.f32 %v5456_v35, %v9746_v56 }
 0x3f2   :  { %5716 = vst.msk [vmem:[%s10107_s4] sm:$0xf] %vm5715_vm1, %v6264_v63  ;;  %5717 = vst.msk [vmem:[%s10107_s4 + $0x4] sm:$0xf] %vm5715_vm1, %v6265_v10 }
 0x3f3   :  { %v5461_v55 = vpop.permute.xlu1 %5460  ;;  %v5557_v28 = vpop.permute.xlu0 %5556 }
 0x3f4   :  { %v5526_v39 = vmul.f32 %v5461_v55, %v9748_v34 }
 0x3f6   :  { %v5622_v26 = vadd.f32 %v5557_v28, %v5526_v39 }
 0x3f7   :  { %v5552_v33 = vpop.permute.xlu1 %5551 }
 0x3f8   :  { %v5638_v44 = vmax.f32 %v5622_v26, 0.0  ;;  %v5621_v51 = vadd.f32 %v5552_v33, %v5525_v52 }
 0x3fa   :  { %v6267_v24 = vpack.c.bf16 %v5638_v44, %v5638_v44  ;;  %v5637_v58 = vmax.f32 %v5621_v51, 0.0 }
 0x3fb   :  { %v5466_v9 = vpop.permute.xlu1 %5465  ;;  %v5567_v34 = vpop.permute.xlu0 %5566 }
 0x3fc   :  { %5719 = vst.msk [vmem:[%s10107_s4 + $0xc] sm:$0xf] %vm5715_vm1, %v6267_v24  ;;  %v6266_v43 = vpack.c.bf16 %v5637_v58, %v5637_v58  ;;  %v5527_v57 = vmul.f32 %v5466_v9, %v9762_v1 }
 0x3fe   :  { %5718 = vst.msk [vmem:[%s10107_s4 + $0x8] sm:$0xf] %vm5715_vm1, %v6266_v43 }
 0x3ff   :  { %v5471_v56 = vpop.permute.xlu1 %5470 }
 0x400   :  { %v5528_v37 = vmul.f32 %v5471_v56, %v9764_v32 }
 0x402   :  { %v5624_v14 = vadd.f32 %v5567_v34, %v5528_v37 }
 0x403   :  { %v5562_v16 = vpop.permute.xlu1 %5561  ;;  %v5577_v59 = vpop.permute.xlu0 %5576 }
 0x404   :  { %v5640_v38 = vmax.f32 %v5624_v14, 0.0  ;;  %v5623_v5 = vadd.f32 %v5562_v16, %v5527_v57 }
 0x406   :  { %v6269_v29 = vpack.c.bf16 %v5640_v38, %v5640_v38  ;;  %v5639_v62 = vmax.f32 %v5623_v5, 0.0 }
 0x407   :  { %v5476_v27 = vpop.permute.xlu1 %5475  ;;  %v5491_v40 = vpop.permute.xlu0 %5490 }
 0x408   :  { %5721 = vst.msk [vmem:[%s10107_s4 + $0x14] sm:$0xf] %vm5715_vm1, %v6269_v29  ;;  %v6268_v54 = vpack.c.bf16 %v5639_v62, %v5639_v62  ;;  %v5532_v1 = vmul.f32 %v5491_v40, %v9796_v13  ;;  %v5529_v0 = vmul.f32 %v5476_v27, %v9778_v11 }
 0x40a   :  { %5720 = vst.msk [vmem:[%s10107_s4 + $0x10] sm:$0xf] %vm5715_vm1, %v6268_v54 }
 0x40b   :  { %v5481_v32 = vpop.permute.xlu1 %5480  ;;  %v5587_v20 = vpop.permute.xlu0 %5586 }
 0x40c   :  { %v5530_v2 = vmul.f32 %v5481_v32, %v9780_v22  ;;  %v5628_v50 = vadd.f32 %v5587_v20, %v5532_v1 }
 0x40e   :  { %v5626_v15 = vadd.f32 %v5577_v59, %v5530_v2  ;;  %v5644_v8 = vmax.f32 %v5628_v50, 0.0 }
 0x40f   :  { %v5572_v47 = vpop.permute.xlu1 %5571  ;;  %v5501_v17 = vpop.permute.xlu0 %5500 }
 0x410   :  { %v5642_v12 = vmax.f32 %v5626_v15, 0.0  ;;  %v6273_v31 = vpack.c.bf16 %v5644_v8, %v5644_v8  ;;  %v5625_v48 = vadd.f32 %v5572_v47, %v5529_v0  ;;  %v5534_v19 = vmul.f32 %v5501_v17, %v9812_v60 }
 0x412   :  { %v6271_v53 = vpack.c.bf16 %v5642_v12, %v5642_v12  ;;  %5725 = vst.msk [vmem:[%s10107_s4 + $0x24] sm:$0xf] %vm5715_vm1, %v6273_v31  ;;  %v5641_v13 = vmax.f32 %v5625_v48, 0.0 }
 0x413   :  { %v5486_v22 = vpop.permute.xlu1 %5485  ;;  %v5597_v25 = vpop.permute.xlu0 %5596 }
 0x414   :  { %5723 = vst.msk [vmem:[%s10107_s4 + $0x1c] sm:$0xf] %vm5715_vm1, %v6271_v53  ;;  %v6270_v11 = vpack.c.bf16 %v5641_v13, %v5641_v13  ;;  %v5630_v18 = vadd.f32 %v5597_v25, %v5534_v19  ;;  %v5531_v3 = vmul.f32 %v5486_v22, %v9794_v46 }
 0x416   :  { %5722 = vst.msk [vmem:[%s10107_s4 + $0x18] sm:$0xf] %vm5715_vm1, %v6270_v11  ;;  %v5646_v6 = vmax.f32 %v5630_v18, 0.0 }
 0x417   :  { %v5582_v61 = vpop.permute.xlu1 %5581  ;;  %v5511_v49 = vpop.permute.xlu0 %5510 }
 0x418   :  { %v6275_v60 = vpack.c.bf16 %v5646_v6, %v5646_v6  ;;  %v5627_v21 = vadd.f32 %v5582_v61, %v5531_v3  ;;  %v5536_v41 = vmul.f32 %v5511_v49, %v9828_v45 }
 0x41a   :  { %5727 = vst.msk [vmem:[%s10107_s4 + $0x2c] sm:$0xf] %vm5715_vm1, %v6275_v60  ;;  %v5643_v36 = vmax.f32 %v5627_v21, 0.0 }
 0x41b   :  { %v5496_v30 = vpop.permute.xlu1 %5495  ;;  %v5607_v35 = vpop.permute.xlu0 %5606 }
 0x41c   :  { %v6272_v63 = vpack.c.bf16 %v5643_v36, %v5643_v36  ;;  %v5632_v10 = vadd.f32 %v5607_v35, %v5536_v41  ;;  %v5533_v46 = vmul.f32 %v5496_v30, %v9810_v4 }
 0x41e   :  { %5724 = vst.msk [vmem:[%s10107_s4 + $0x20] sm:$0xf] %vm5715_vm1, %v6272_v63  ;;  %v5648_v55 = vmax.f32 %v5632_v10, 0.0 }
 0x41f   :  { %v5592_v39 = vpop.permute.xlu1 %5591  ;;  %v5521_v28 = vpop.permute.xlu0 %5520 }
 0x420   :  { %v6277_v52 = vpack.c.bf16 %v5648_v55, %v5648_v55  ;;  %v5629_v26 = vadd.f32 %v5592_v39, %v5533_v46  ;;  %v5538_v33 = vmul.f32 %v5521_v28, %v9844_v7 }
 0x422   :  { %5729 = vst.msk [vmem:[%s10107_s4 + $0x34] sm:$0xf] %vm5715_vm1, %v6277_v52  ;;  %v5645_v45 = vmax.f32 %v5629_v26, 0.0 }
 0x423   :  { %v5506_v44 = vpop.permute.xlu1 %5505  ;;  %v5617_v51 = vpop.permute.xlu0 %5616 }
 0x424   :  { %v6274_v24 = vpack.c.bf16 %v5645_v45, %v5645_v45  ;;  %v5634_v58 = vadd.f32 %v5617_v51, %v5538_v33  ;;  %v5535_v4 = vmul.f32 %v5506_v44, %v9826_v42 }
 0x426   :  { %5726 = vst.msk [vmem:[%s10107_s4 + $0x28] sm:$0xf] %vm5715_vm1, %v6274_v24  ;;  %v5650_v9 = vmax.f32 %v5634_v58, 0.0 }
 0x427   :  { %v5602_v43 = vpop.permute.xlu1 %5601 }
 0x428   :  { %v6279_v34 = vpack.c.bf16 %v5650_v9, %v5650_v9  ;;  %v5631_v56 = vadd.f32 %v5602_v43, %v5535_v4 }
 0x42a   :  { %5731 = vst.msk [vmem:[%s10107_s4 + $0x3c] sm:$0xf] %vm5715_vm1, %v6279_v34  ;;  %v5647_v7 = vmax.f32 %v5631_v56, 0.0 }
 0x42b   :  { %v5516_v37 = vpop.permute.xlu1 %5515 }
 0x42c   :  { %v6276_v57 = vpack.c.bf16 %v5647_v7, %v5647_v7  ;;  %v5537_v14 = vmul.f32 %v5516_v37, %v9842_v23 }
 0x42e   :  { %5728 = vst.msk [vmem:[%s10107_s4 + $0x30] sm:$0xf] %vm5715_vm1, %v6276_v57 }
 0x42f   :  { %v5612_v42 = vpop.permute.xlu1 %5611 }
 0x430   :  { %v5633_v16 = vadd.f32 %v5612_v42, %v5537_v14 }
 0x432   :  { %v5649_v59 = vmax.f32 %v5633_v16, 0.0 }
 0x434   :  { %v6278_v38 = vpack.c.bf16 %v5649_v59, %v5649_v59 }
 0x436   :  { %5730 = vst.msk [vmem:[%s10107_s4 + $0x38] sm:$0xf] %vm5715_vm1, %v6278_v38 }

// kernel: vae_forward.10
= control target key start
LH: loop header
LB: loop body
LE: loop exit
PB: predicated region body
PF: predicated region fallthrough
CT: control target
= control target key end

     0   :  { %vm2373_vm0 = vcmask 670720   ;;  %vm2798_vm1 = vcmask 666624   ;;  %s4929_s0 = inlined_call_operand.vmem [shape: bf16[1152,338], index: 0, kind: input, shape index: {}]   ;;  %s4930_s1 = inlined_call_operand.vmem [shape: bf16[64,1152], index: 1, kind: input, shape index: {}]   ;;  %s4931_s2 = inlined_call_operand.vmem [shape: f32[64,1], index: 2, kind: input, shape index: {}]   ;;  %s4932_s3 = inlined_call_operand.vmem [shape: f32[64,1], index: 3, kind: input, shape index: {}]   ;;  %s4933_s4 = inlined_call_operand.vmem [shape: bf16[64,338], index: 4, kind: output, shape index: {}]  }
   0x1   :  { %v3365_v0 = vld [vmem:[%s4929_s0 + $0x4] ss:$12 sps:$4 sm:$0xff]   ;;  %v3369_v2 = vld [vmem:[%s4929_s0] ss:$12 sps:$4 sm:$0xff]   ;;  %v3371_v4 = vld [vmem:[%s4929_s0 + $0x1c] ss:$12 sps:$4 sm:$0xff]  }
   0x2   :  { %v3367_v1 = vld [vmem:[%s4929_s0 + $0x184] ss:$12 sps:$4 sm:$0xff]   ;;  %1682 = vmatprep.subr.bf16.mxu1 %v3365_v0  ;;  %v3370_v3 = vld [vmem:[%s4929_s0 + $0x180] ss:$12 sps:$4 sm:$0xff]   ;;  %v3373_v5 = vld [vmem:[%s4929_s0 + $0x19c] ss:$12 sps:$4 sm:$0xff]  }
   0x3   :  { %1755 = vmatprep.subr.bf16.mxu0 %v3367_v1  ;;  %1683 = vmatpush1.bf16.msra.mxu1 %v3369_v2  ;;  %v3375_v6 = vld [vmem:[%s4929_s0 + $0x18] ss:$12 sps:$4 sm:$0xff]   ;;  %v3377_v8 = vld [vmem:[%s4929_s0 + $0x34] ss:$12 sps:$4 sm:$0xff]   ;;  %v3381_v10 = vld [vmem:[%s4929_s0 + $0x30] ss:$12 sps:$4 sm:$0xff]  }
   0x4   :  { %1756 = vmatpush1.bf16.msra.mxu0 %v3370_v3  ;;  %1684 = vmatprep.subr.bf16.mxu1 %v3371_v4  ;;  %v3376_v7 = vld [vmem:[%s4929_s0 + $0x198] ss:$12 sps:$4 sm:$0xff]   ;;  %v3379_v9 = vld [vmem:[%s4929_s0 + $0x1b4] ss:$12 sps:$4 sm:$0xff]   ;;  %v3382_v11 = vld [vmem:[%s4929_s0 + $0x1b0] ss:$12 sps:$4 sm:$0xff]  }
   0x5   :  { %1757 = vmatprep.subr.bf16.mxu0 %v3373_v5  ;;  %v3383_v12 = vld [vmem:[%s4929_s0 + $0x4c] ss:$12 sps:$4 sm:$0xff]   ;;  %v3387_v14 = vld [vmem:[%s4929_s0 + $0x48] ss:$12 sps:$4 sm:$0xff]   ;;  %v3389_v16 = vld [vmem:[%s4929_s0 + $0x64] ss:$12 sps:$4 sm:$0xff]  }
   0x6   :  { %v3385_v13 = vld [vmem:[%s4929_s0 + $0x1cc] ss:$12 sps:$4 sm:$0xff]   ;;  %v3388_v15 = vld [vmem:[%s4929_s0 + $0x1c8] ss:$12 sps:$4 sm:$0xff]   ;;  %v3391_v17 = vld [vmem:[%s4929_s0 + $0x1e4] ss:$12 sps:$4 sm:$0xff]  }
   0x7   :  { %1685 = vmatpush1.bf16.msra.mxu1 %v3375_v6  ;;  %v3393_v18 = vld [vmem:[%s4929_s0 + $0x60] ss:$12 sps:$4 sm:$0xff]   ;;  %v3395_v20 = vld [vmem:[%s4929_s0 + $0x7c] ss:$12 sps:$4 sm:$0xff]   ;;  %v3399_v22 = vld [vmem:[%s4929_s0 + $0x78] ss:$12 sps:$4 sm:$0xff]  }
   0x8   :  { %1758 = vmatpush1.bf16.msra.mxu0 %v3376_v7  ;;  %1686 = vmatprep.subr.bf16.mxu1 %v3377_v8  ;;  %v3394_v19 = vld [vmem:[%s4929_s0 + $0x1e0] ss:$12 sps:$4 sm:$0xff]   ;;  %v3397_v21 = vld [vmem:[%s4929_s0 + $0x1fc] ss:$12 sps:$4 sm:$0xff]   ;;  %v3400_v23 = vld [vmem:[%s4929_s0 + $0x1f8] ss:$12 sps:$4 sm:$0xff]  }
   0x9   :  { %1759 = vmatprep.subr.bf16.mxu0 %v3379_v9  ;;  %v3401_v24 = vld [vmem:[%s4929_s0 + $0x94] ss:$12 sps:$4 sm:$0xff]   ;;  %v3405_v26 = vld [vmem:[%s4929_s0 + $0x90] ss:$12 sps:$4 sm:$0xff]   ;;  %v3407_v28 = vld [vmem:[%s4929_s0 + $0xac] ss:$12 sps:$4 sm:$0xff]  }
   0xa   :  { %v3403_v25 = vld [vmem:[%s4929_s0 + $0x214] ss:$12 sps:$4 sm:$0xff]   ;;  %v3406_v27 = vld [vmem:[%s4929_s0 + $0x210] ss:$12 sps:$4 sm:$0xff]   ;;  %v3409_v29 = vld [vmem:[%s4929_s0 + $0x22c] ss:$12 sps:$4 sm:$0xff]  }
   0xb   :  { %1687 = vmatpush1.bf16.msra.mxu1 %v3381_v10  ;;  %v3411_v30 = vld [vmem:[%s4929_s0 + $0xa8] ss:$12 sps:$4 sm:$0xff]   ;;  %v3413_v32 = vld [vmem:[%s4929_s0 + $0xc4] ss:$12 sps:$4 sm:$0xff]   ;;  %v3417_v34 = vld [vmem:[%s4929_s0 + $0xc0] ss:$12 sps:$4 sm:$0xff]  }
   0xc   :  { %1760 = vmatpush1.bf16.msra.mxu0 %v3382_v11  ;;  %1688 = vmatprep.subr.bf16.mxu1 %v3383_v12  ;;  %v3412_v31 = vld [vmem:[%s4929_s0 + $0x228] ss:$12 sps:$4 sm:$0xff]   ;;  %v3415_v33 = vld [vmem:[%s4929_s0 + $0x244] ss:$12 sps:$4 sm:$0xff]   ;;  %v3418_v35 = vld [vmem:[%s4929_s0 + $0x240] ss:$12 sps:$4 sm:$0xff]  }
   0xd   :  { %1761 = vmatprep.subr.bf16.mxu0 %v3385_v13  ;;  %v3419_v36 = vld [vmem:[%s4929_s0 + $0xdc] ss:$12 sps:$4 sm:$0xff]   ;;  %v3423_v38 = vld [vmem:[%s4929_s0 + $0xd8] ss:$12 sps:$4 sm:$0xff]   ;;  %v3425_v40 = vld [vmem:[%s4929_s0 + $0xf4] ss:$12 sps:$4 sm:$0xff]  }
   0xe   :  { %v3421_v37 = vld [vmem:[%s4929_s0 + $0x25c] ss:$12 sps:$4 sm:$0xff]   ;;  %v3424_v39 = vld [vmem:[%s4929_s0 + $0x258] ss:$12 sps:$4 sm:$0xff]   ;;  %v3427_v41 = vld [vmem:[%s4929_s0 + $0x274] ss:$12 sps:$4 sm:$0xff]  }
   0xf   :  { %1689 = vmatpush1.bf16.msra.mxu1 %v3387_v14  ;;  %v3429_v42 = vld [vmem:[%s4929_s0 + $0xf0] ss:$12 sps:$4 sm:$0xff]   ;;  %v3431_v44 = vld [vmem:[%s4929_s0 + $0x10c] ss:$12 sps:$4 sm:$0xff]   ;;  %v3435_v46 = vld [vmem:[%s4929_s0 + $0x108] ss:$12 sps:$4 sm:$0xff]  }
  0x10   :  { %1762 = vmatpush1.bf16.msra.mxu0 %v3388_v15  ;;  %1690 = vmatprep.subr.bf16.mxu1 %v3389_v16  ;;  %v3430_v43 = vld [vmem:[%s4929_s0 + $0x270] ss:$12 sps:$4 sm:$0xff]   ;;  %v3433_v45 = vld [vmem:[%s4929_s0 + $0x28c] ss:$12 sps:$4 sm:$0xff]   ;;  %v3436_v47 = vld [vmem:[%s4929_s0 + $0x288] ss:$12 sps:$4 sm:$0xff]  }
  0x11   :  { %1763 = vmatprep.subr.bf16.mxu0 %v3391_v17  ;;  %v3437_v48 = vld [vmem:[%s4929_s0 + $0x124] ss:$12 sps:$4 sm:$0xff]   ;;  %v3441_v52 = vld [vmem:[%s4929_s0 + $0x120] ss:$12 sps:$4 sm:$0xff]   ;;  %v3443_v54 = vld [vmem:[%s4929_s0 + $0x13c] ss:$12 sps:$4 sm:$0xff]  }
  0x12   :  { %v3897_v49 = vld [vmem:[%s4930_s1 + $0x4] ss:$36 sps:$4 sm:$0xff]   ;;  %v3905_v51 = vld [vmem:[%s4930_s1 + $0xc] ss:$36 sps:$4 sm:$0xff]   ;;  %v3449_v58 = vld [vmem:[%s4929_s0 + $0x154] ss:$12 sps:$4 sm:$0xff]  }
  0x13   :  { %1691 = vmatpush1.bf16.msra.mxu1 %v3393_v18  ;;  %v3439_v50 = vld [vmem:[%s4929_s0 + $0x2a4] ss:$12 sps:$4 sm:$0xff]   ;;  %1714 = vmatprep.mubr.bf16.mxu1 %v3897_v49  ;;  %v3442_v53 = vld [vmem:[%s4929_s0 + $0x2a0] ss:$12 sps:$4 sm:$0xff]   ;;  %v3445_v55 = vld [vmem:[%s4929_s0 + $0x2bc] ss:$12 sps:$4 sm:$0xff]  }
  0x14   :  { %1764 = vmatpush1.bf16.msra.mxu0 %v3394_v19  ;;  %1692 = vmatprep.subr.bf16.mxu1 %v3395_v20  ;;  %v3447_v56 = vld [vmem:[%s4929_s0 + $0x138] ss:$12 sps:$4 sm:$0xff]   ;;  %v3451_v59 = vld [vmem:[%s4929_s0 + $0x2d4] ss:$12 sps:$4 sm:$0xff]   ;;  %v3453_v60 = vld [vmem:[%s4929_s0 + $0x150] ss:$12 sps:$4 sm:$0xff]  }
  0x15   :  { %1765 = vmatprep.subr.bf16.mxu0 %v3397_v21  ;;  %1787 = vmatprep.mubr.bf16.mxu0 %v3905_v51  ;;  %v3448_v57 = vld [vmem:[%s4929_s0 + $0x2b8] ss:$12 sps:$4 sm:$0xff]   ;;  %v3454_v61 = vld [vmem:[%s4929_s0 + $0x2d0] ss:$12 sps:$4 sm:$0xff]   ;;  %v3459_v0 = vld [vmem:[%s4929_s0 + $0x168] ss:$12 sps:$4 sm:$0xff]  }
  0x16   :  { %v3455_v62 = vld [vmem:[%s4929_s0 + $0x16c] ss:$12 sps:$4 sm:$0xff]   ;;  %v3460_v1 = vld [vmem:[%s4929_s0 + $0x2e8] ss:$12 sps:$4 sm:$0xff]   ;;  %v3469_v2 = vld [vmem:[%s4929_s0 + $0x304] ss:$12 sps:$4 sm:$0xff]  }
  0x17   :  { %1693 = vmatpush1.bf16.msra.mxu1 %v3399_v22  ;;  %v3457_v63 = vld [vmem:[%s4929_s0 + $0x2ec] ss:$12 sps:$4 sm:$0xff]   ;;  %v3470_v3 = vld [vmem:[%s4929_s0 + $0xc8] ss:$12 sps:$4 sm:$0xff]   ;;  %v3960_v4 = vld [vmem:[%s4930_s1] ss:$36 sps:$4 sm:$0xff]  }
  0x18   :  { %1766 = vmatpush1.bf16.msra.mxu0 %v3400_v23  ;;  %1694 = vmatprep.subr.bf16.mxu1 %v3401_v24  ;;  %v3965_v5 = vld [vmem:[%s4930_s1 + $0x8] ss:$36 sps:$4 sm:$0xff]   ;;  %v3472_v10 = vld [vmem:[%s4929_s0 + $0x318] ss:$12 sps:$4 sm:$0xff]   ;;  %v3482_v13 = vld [vmem:[%s4929_s0 + $0x334] ss:$12 sps:$4 sm:$0xff]  }
  0x19   :  { %1767 = vmatprep.subr.bf16.mxu0 %v3403_v25  ;;  %v3467_v6 = vld [vmem:[%s4929_s0 + $0x300] ss:$12 sps:$4 sm:$0xff]   ;;  %v3471_v7 = vld [vmem:[%s4929_s0 + $0x8] ss:$12 sps:$4 sm:$0xff]   ;;  %v3483_v14 = vld [vmem:[%s4929_s0 + $0xf8] ss:$12 sps:$4 sm:$0xff]  }
  0x1a   :  { %v3474_v8 = vld [vmem:[%s4929_s0 + $0x31c] ss:$12 sps:$4 sm:$0xff]   ;;  %v3475_v9 = vld [vmem:[%s4929_s0 + $0xe0] ss:$12 sps:$4 sm:$0xff]   ;;  %v3484_v17 = vld [vmem:[%s4929_s0 + $0x38] ss:$12 sps:$4 sm:$0xff]  }
  0x1b   :  { %1695 = vmatpush1.bf16.msra.mxu1 %v3405_v26  ;;  %v3985_v11 = vld [vmem:[%s4930_s1 + $0x4c] ss:$36 sps:$4 sm:$0xff]   ;;  %v3485_v20 = vld [vmem:[%s4929_s0 + $0x348] ss:$12 sps:$4 sm:$0xff]  }
  0x1c   :  { %1768 = vmatpush1.bf16.msra.mxu0 %v3406_v27  ;;  %1696 = vmatprep.subr.bf16.mxu1 %v3407_v28  ;;  %v3476_v12 = vld [vmem:[%s4929_s0 + $0x20] ss:$12 sps:$4 sm:$0xff]   ;;  %v3480_v16 = vld [vmem:[%s4929_s0 + $0x330] ss:$12 sps:$4 sm:$0xff]   ;;  %v4022_v21 = vld [vmem:[%s4930_s1 + $0x94] ss:$36 sps:$4 sm:$0xff]  }
  0x1d   :  { %1769 = vmatprep.subr.bf16.mxu0 %v3409_v29  ;;  %v4002_v15 = vld [vmem:[%s4930_s1 + $0x48] ss:$36 sps:$4 sm:$0xff]   ;;  %v3488_v19 = vld [vmem:[%s4929_s0 + $0x110] ss:$12 sps:$4 sm:$0xff]  }
  0x1e   :  { %v3487_v18 = vld [vmem:[%s4929_s0 + $0x34c] ss:$12 sps:$4 sm:$0xff]   ;;  %v3489_v22 = vld [vmem:[%s4929_s0 + $0x50] ss:$12 sps:$4 sm:$0xff]   ;;  %v3496_v24 = vld [vmem:[%s4929_s0 + $0x128] ss:$12 sps:$4 sm:$0xff]  }
  0x1f   :  { %1697 = vmatpush1.bf16.msra.mxu1 %v3411_v30  ;;  %v3495_v23 = vld [vmem:[%s4929_s0 + $0x364] ss:$12 sps:$4 sm:$0xff]   ;;  %v3493_v26 = vld [vmem:[%s4929_s0 + $0x360] ss:$12 sps:$4 sm:$0xff]   ;;  %v3497_v27 = vld [vmem:[%s4929_s0 + $0x68] ss:$12 sps:$4 sm:$0xff]  }
  0x20   :  { %1770 = vmatpush1.bf16.msra.mxu0 %v3412_v31  ;;  %1698 = vmatprep.subr.bf16.mxu1 %v3413_v32  ;;  %v4038_v25 = vld [vmem:[%s4930_s1 + $0x90] ss:$36 sps:$4 sm:$0xff]   ;;  %v3500_v28 = vld [vmem:[%s4929_s0 + $0x37c] ss:$12 sps:$4 sm:$0xff]   ;;  %v3501_v29 = vld [vmem:[%s4929_s0 + $0x140] ss:$12 sps:$4 sm:$0xff]  }
  0x21   :  { %1771 = vmatprep.subr.bf16.mxu0 %v3415_v33  ;;  %v3498_v30 = vld [vmem:[%s4929_s0 + $0x378] ss:$12 sps:$4 sm:$0xff]   ;;  %v4058_v31 = vld [vmem:[%s4930_s1 + $0xdc] ss:$36 sps:$4 sm:$0xff]  }
  0x22   :  { %v4064_v32 = vld [vmem:[%s4930_s1 + $0x54] ss:$36 sps:$4 sm:$0xff]   ;;  %v3502_v33 = vld [vmem:[%s4929_s0 + $0x80] ss:$12 sps:$4 sm:$0xff]  }
  0x23   :  { %1699 = vmatpush1.bf16.msra.mxu1 %v3417_v34  ;;  %v3508_v34 = vld [vmem:[%s4929_s0 + $0x394] ss:$12 sps:$4 sm:$0xff]  }
  0x24   :  { %1772 = vmatpush1.bf16.msra.mxu0 %v3418_v35  ;;  %1700 = vmatprep.subr.bf16.mxu1 %v3419_v36  ;;  %v4075_v35 = vld [vmem:[%s4930_s1 + $0xd8] ss:$36 sps:$4 sm:$0xff]  }
  0x25   :  { %1773 = vmatprep.subr.bf16.mxu0 %v3421_v37  ;;  %v3509_v36 = vld [vmem:[%s4929_s0 + $0x158] ss:$12 sps:$4 sm:$0xff]   ;;  %v4085_v37 = vld [vmem:[%s4930_s1 + $0x50] ss:$36 sps:$4 sm:$0xff]  }
  0x27   :  { %1701 = vmatpush1.bf16.msra.mxu1 %v3423_v38  ;;  %v3506_v38 = vld [vmem:[%s4929_s0 + $0x390] ss:$12 sps:$4 sm:$0xff]  }
  0x28   :  { %1774 = vmatpush1.bf16.msra.mxu0 %v3424_v39  ;;  %1702 = vmatprep.subr.bf16.mxu1 %v3425_v40  ;;  %v3510_v39 = vld [vmem:[%s4929_s0 + $0x98] ss:$12 sps:$4 sm:$0xff]  }
  0x29   :  { %1775 = vmatprep.subr.bf16.mxu0 %v3427_v41  ;;  %v3513_v40 = vld [vmem:[%s4929_s0 + $0x3ac] ss:$12 sps:$4 sm:$0xff]   ;;  %v3514_v41 = vld [vmem:[%s4929_s0 + $0x170] ss:$12 sps:$4 sm:$0xff]  }
  0x2b   :  { %1703 = vmatpush1.bf16.msra.mxu1 %v3429_v42  ;;  %v3511_v42 = vld [vmem:[%s4929_s0 + $0x3a8] ss:$12 sps:$4 sm:$0xff]  }
  0x2c   :  { %1776 = vmatpush1.bf16.msra.mxu0 %v3430_v43  ;;  %1704 = vmatprep.subr.bf16.mxu1 %v3431_v44  ;;  %v4107_v43 = vld [vmem:[%s4930_s1 + $0x9c] ss:$36 sps:$4 sm:$0xff]  }
  0x2d   :  { %1777 = vmatprep.subr.bf16.mxu0 %v3433_v45  ;;  %v3515_v44 = vld [vmem:[%s4929_s0 + $0xb0] ss:$12 sps:$4 sm:$0xff]  }
  0x2e   :  { %v3518_v45 = vld [vmem:[%s4929_s0 + $0x3c4] ss:$12 sps:$4 sm:$0xff]  }
  0x2f   :  { %1705 = vmatpush1.bf16.msra.mxu1 %v3435_v46  ;;  %v3519_v46 = vld [vmem:[%s4929_s0 + $0x248] ss:$12 sps:$4 sm:$0xff]  }
  0x30   :  { %1778 = vmatpush1.bf16.msra.mxu0 %v3436_v47  ;;  %1706 = vmatprep.subr.bf16.mxu1 %v3437_v48  ;;  %v4123_v47 = vld [vmem:[%s4930_s1 + $0x98] ss:$36 sps:$4 sm:$0xff]   ;;  %v3516_v48 = vld [vmem:[%s4929_s0 + $0x3c0] ss:$12 sps:$4 sm:$0xff]  }
  0x31   :  { %1779 = vmatprep.subr.bf16.mxu0 %v3439_v50  ;;  %v3520_v50 = vld [vmem:[%s4929_s0 + $0x188] ss:$12 sps:$4 sm:$0xff]  }
  0x33   :  { %1707 = vmatpush1.bf16.msra.mxu1 %v3441_v52  ;;  %v3524_v52 = vld [vmem:[%s4929_s0 + $0x260] ss:$12 sps:$4 sm:$0xff]  }
  0x34   :  { %1780 = vmatpush1.bf16.msra.mxu0 %v3442_v53  ;;  %1708 = vmatprep.subr.bf16.mxu1 %v3443_v54  ;;  %v3521_v53 = vld [vmem:[%s4929_s0 + $0x3d8] ss:$12 sps:$4 sm:$0xff]  }
  0x35   :  { %1781 = vmatprep.subr.bf16.mxu0 %v3445_v55  ;;  %v4145_v54 = vld [vmem:[%s4930_s1 + $0xe4] ss:$36 sps:$4 sm:$0xff]   ;;  %v3721_v55 = vmov 0  }
  0x36   :  { %3364 = vset.pattern.permute.xlu1 %v3721_v55  ;;  %3363 = vset.pattern.permute.xlu0 %v3721_v55 }
  0x37   :  { %1709 = vmatpush1.bf16.msra.mxu1 %v3447_v56  ;;  %v3525_v56 = vld [vmem:[%s4929_s0 + $0x1a0] ss:$12 sps:$4 sm:$0xff]  }
  0x38   :  { %1782 = vmatpush1.bf16.msra.mxu0 %v3448_v57  ;;  %1710 = vmatprep.subr.bf16.mxu1 %v3449_v58  ;;  %v3530_v57 = vld [vmem:[%s4929_s0 + $0x3f4] ss:$12 sps:$4 sm:$0xff]   ;;  %v3531_v58 = vld [vmem:[%s4929_s0 + $0x278] ss:$12 sps:$4 sm:$0xff]  }
  0x39   :  { %1783 = vmatprep.subr.bf16.mxu0 %v3451_v59  ;;  %v4162_v59 = vld [vmem:[%s4930_s1 + $0xe0] ss:$36 sps:$4 sm:$0xff]  }
  0x3b   :  { %1711 = vmatpush1.bf16.msra.mxu1 %v3453_v60  ;;  %v3528_v60 = vld [vmem:[%s4929_s0 + $0x3f0] ss:$12 sps:$4 sm:$0xff]  }
  0x3c   :  { %1784 = vmatpush1.bf16.msra.mxu0 %v3454_v61  ;;  %1712 = vmatprep.subr.bf16.mxu1 %v3455_v62  ;;  %v3533_v61 = vld [vmem:[%s4929_s0 + $0x1b8] ss:$12 sps:$4 sm:$0xff]  }
  0x3d   :  { %1785 = vmatprep.subr.bf16.mxu0 %v3457_v63  ;;  %v3536_v62 = vld [vmem:[%s4929_s0 + $0x40c] ss:$12 sps:$4 sm:$0xff]   ;;  %v3537_v63 = vld [vmem:[%s4929_s0 + $0x290] ss:$12 sps:$4 sm:$0xff]  }
  0x3f   :  { %1713 = vmatpush1.bf16.msra.mxu1 %v3459_v0  ;;  %v3534_v0 = vld [vmem:[%s4929_s0 + $0x408] ss:$12 sps:$4 sm:$0xff]  }
  0x40   :  { %1786 = vmatpush1.bf16.msra.mxu0 %v3460_v1  ;;  %3102 = vmatprep.subr.bf16.mxu1 %v3470_v3  ;;  %v3538_v1 = vld [vmem:[%s4929_s0 + $0x1d0] ss:$12 sps:$4 sm:$0xff]  }
  0x41   :  { %1828 = vmatprep.subr.bf16.mxu0 %v3469_v2  ;;  %v4188_v2 = vld [vmem:[%s4930_s1 + $0x14] ss:$36 sps:$4 sm:$0xff]   ;;  %v3543_v3 = vld [vmem:[%s4929_s0 + $0x424] ss:$12 sps:$4 sm:$0xff]  }
  0x42   :  { %1715 = vmatmul.mubr.bf16.vlgmr.msra.gmra.mrb[0].mxu1 %v3960_v4 }
  0x43   :  { %1788 = vmatmul.mubr.bf16.vlgmr.msra.gmra.mrb[0].mxu0 %v3965_v5  ;;  %3103 = vmatpush3.bf16.msra.mxu1 %v3471_v7  ;;  %v3546_v7 = vld [vmem:[%s4929_s0 + $0x1e8] ss:$12 sps:$4 sm:$0xff]  }
  0x44   :  { %1829 = vmatpush1.bf16.msra.mxu0 %v3467_v6  ;;  %3104 = vmatprep.subr.bf16.mxu1 %v3475_v9  ;;  %v3541_v6 = vld [vmem:[%s4929_s0 + $0x420] ss:$12 sps:$4 sm:$0xff]  }
  0x45   :  { %1830 = vmatprep.subr.bf16.mxu0 %v3474_v8  ;;  %1724 = vmatprep.mubr.bf16.mxu1 %v3985_v11  ;;  %v3549_v8 = vld [vmem:[%s4929_s0 + $0x43c] ss:$12 sps:$4 sm:$0xff]   ;;  %v3550_v9 = vld [vmem:[%s4929_s0 + $0x2c0] ss:$12 sps:$4 sm:$0xff]  }
  0x46   :  { %1797 = vmatprep.mubr.bf16.mxu0 %v4064_v32 }
  0x47   :  { %3105 = vmatpush3.bf16.msra.mxu1 %v3476_v12  ;;  %v3556_v12 = vld [vmem:[%s4929_s0 + $0x454] ss:$12 sps:$4 sm:$0xff]  }
  0x48   :  { %1831 = vmatpush1.bf16.msra.mxu0 %v3472_v10  ;;  %3106 = vmatprep.subr.bf16.mxu1 %v3483_v14  ;;  %v3547_v10 = vld [vmem:[%s4929_s0 + $0x438] ss:$12 sps:$4 sm:$0xff]   ;;  %v3554_v14 = vld [vmem:[%s4929_s0 + $0x450] ss:$12 sps:$4 sm:$0xff]  }
  0x49   :  { %1832 = vmatprep.subr.bf16.mxu0 %v3482_v13  ;;  %v3557_v13 = vld [vmem:[%s4929_s0 + $0x2d8] ss:$12 sps:$4 sm:$0xff]  }
  0x4a   :  { %1725 = vmatmul.mubr.bf16.gmra.mrb[4].mxu1 %v4002_v15 }
  0x4b   :  { %3107 = vmatpush3.bf16.msra.mxu1 %v3484_v17  ;;  %1734 = vmatprep.mubr.bf16.mxu1 %v4022_v21  ;;  %v3563_v17 = vld [vmem:[%s4929_s0 + $0x2f0] ss:$12 sps:$4 sm:$0xff]  }
  0x4c   :  { %1833 = vmatpush1.bf16.msra.mxu0 %v3480_v16  ;;  %3108 = vmatprep.subr.bf16.mxu1 %v3488_v19  ;;  %v3562_v16 = vld [vmem:[%s4929_s0 + $0x46c] ss:$12 sps:$4 sm:$0xff]   ;;  %v3564_v19 = vld [vmem:[%s4929_s0 + $0x230] ss:$12 sps:$4 sm:$0xff]  }
  0x4d   :  { %1834 = vmatprep.subr.bf16.mxu0 %v3487_v18  ;;  %1798 = vmatmul.mubr.bf16.gmra.mrb[4].mxu0 %v4085_v37  ;;  %v3560_v18 = vld [vmem:[%s4929_s0 + $0x468] ss:$12 sps:$4 sm:$0xff]  }
  0x4e   :  { %1807 = vmatprep.mubr.bf16.mxu0 %v4107_v43 }
  0x4f   :  { %3109 = vmatpush3.bf16.msra.mxu1 %v3489_v22  ;;  %v3571_v22 = vld [vmem:[%s4929_s0 + $0x3c8] ss:$12 sps:$4 sm:$0xff]  }
  0x50   :  { %1835 = vmatpush1.bf16.msra.mxu0 %v3485_v20  ;;  %3110 = vmatprep.subr.bf16.mxu1 %v3496_v24  ;;  %v4246_v20 = vld [vmem:[%s4930_s1 + $0x10] ss:$36 sps:$4 sm:$0xff]  }
  0x51   :  { %1836 = vmatprep.subr.bf16.mxu0 %v3495_v23  ;;  %v3568_v23 = vld [vmem:[%s4929_s0 + $0x480] ss:$12 sps:$4 sm:$0xff]   ;;  %v3572_v24 = vld [vmem:[%s4929_s0 + $0x308] ss:$12 sps:$4 sm:$0xff]  }
  0x52   :  { %1735 = vmatmul.mubr.bf16.gmra.mrb[8].mxu1 %v4038_v25 }
  0x53   :  { %3111 = vmatpush3.bf16.msra.mxu1 %v3497_v27  ;;  %1744 = vmatprep.mubr.bf16.mxu1 %v4058_v31  ;;  %v3577_v27 = vld [vmem:[%s4929_s0 + $0x320] ss:$12 sps:$4 sm:$0xff]  }
  0x54   :  { %1837 = vmatpush1.bf16.msra.mxu0 %v3493_v26  ;;  %3112 = vmatprep.subr.bf16.mxu1 %v3501_v29  ;;  %v3573_v26 = vld [vmem:[%s4929_s0 + $0x498] ss:$12 sps:$4 sm:$0xff]   ;;  %v3578_v29 = vld [vmem:[%s4929_s0 + $0x4b0] ss:$12 sps:$4 sm:$0xff]  }
  0x55   :  { %1838 = vmatprep.subr.bf16.mxu0 %v3500_v28  ;;  %1808 = vmatmul.mubr.bf16.gmra.mrb[8].mxu0 %v4123_v47  ;;  %v3580_v28 = vld [vmem:[%s4929_s0 + $0x4b4] ss:$12 sps:$4 sm:$0xff]  }
  0x56   :  { %1817 = vmatprep.mubr.bf16.mxu0 %v4145_v54 }
  0x57   :  { %3113 = vmatpush3.bf16.msra.mxu1 %v3502_v33  ;;  %v3583_v33 = vld [vmem:[%s4929_s0 + $0x4c8] ss:$12 sps:$4 sm:$0xff]  }
  0x58   :  { %1839 = vmatpush1.bf16.msra.mxu0 %v3498_v30  ;;  %3114 = vmatprep.subr.bf16.mxu1 %v3509_v36  ;;  %v3582_v30 = vld [vmem:[%s4929_s0 + $0x338] ss:$12 sps:$4 sm:$0xff]   ;;  %v3591_v36 = vld [vmem:[%s4929_s0 + $0x428] ss:$12 sps:$4 sm:$0xff]  }
  0x59   :  { %1840 = vmatprep.subr.bf16.mxu0 %v3508_v34  ;;  %v3587_v34 = vld [vmem:[%s4929_s0 + $0x350] ss:$12 sps:$4 sm:$0xff]  }
  0x5a   :  { %1745 = vmatmul.mubr.bf16.gmra.mrb[12].mxu1 %v4075_v35 }
  0x5b   :  { %3115 = vmatpush3.bf16.msra.mxu1 %v3510_v39  ;;  %2079 = vmatprep.mubr.bf16.mxu1 %v3897_v49  ;;  %v3523_v49 = vld [vmem:[%s4929_s0 + $0x3dc] ss:$12 sps:$4 sm:$0xff]  }
  0x5c   :  { %1841 = vmatpush1.bf16.msra.mxu0 %v3506_v38  ;;  %3116 = vmatprep.subr.bf16.mxu1 %v3514_v41  ;;  %v4314_v38 = vld [vmem:[%s4930_s1 + $0x5c] ss:$36 sps:$4 sm:$0xff]   ;;  %v3592_v39 = vld [vmem:[%s4929_s0 + $0x368] ss:$12 sps:$4 sm:$0xff]  }
  0x5d   :  { %1842 = vmatprep.subr.bf16.mxu0 %v3513_v40  ;;  %1818 = vmatmul.mubr.bf16.gmra.mrb[12].mxu0 %v4162_v59  ;;  %v4322_v40 = vld [vmem:[%s4930_s1 + $0x58] ss:$36 sps:$4 sm:$0xff]  }
  0x5e   :  { %1860 = vmatprep.mubr.bf16.mxu0 %v4188_v2  ;;  %v3595_v41 = vld [vmem:[%s4929_s0 + $0x4fc] ss:$12 sps:$4 sm:$0xff]  }
  0x5f   :  { %3117 = vmatpush3.bf16.msra.mxu1 %v3515_v44  ;;  %v3597_v44 = vld [vmem:[%s4929_s0 + $0x380] ss:$12 sps:$4 sm:$0xff]  }
  0x60   :  { %1843 = vmatpush1.bf16.msra.mxu0 %v3511_v42  ;;  %3142 = vmatprep.subr.bf16.mxu1 %v3519_v46  ;;  %v3596_v42 = vld [vmem:[%s4929_s0 + $0x440] ss:$12 sps:$4 sm:$0xff]   ;;  %v3601_v46 = vld [vmem:[%s4929_s0 + $0x458] ss:$12 sps:$4 sm:$0xff]  }
  0x61   :  { %1844 = vmatprep.subr.bf16.mxu0 %v3518_v45  ;;  %v3600_v45 = vld [vmem:[%s4929_s0 + $0x514] ss:$12 sps:$4 sm:$0xff]  }
  0x62   :  { %2080 = vmatmul.mubr.bf16.vlgmr.msra.gmra.mrb[16].mxu1 %v3960_v4  ;;  %v3544_v4 = vld [vmem:[%s4929_s0 + $0x2a8] ss:$12 sps:$4 sm:$0xff]  }
  0x63   :  { %3143 = vmatpush3.bf16.msra.mxu1 %v3520_v50  ;;  %2087 = vmatprep.mubr.bf16.mxu1 %v3985_v11  ;;  %v3551_v11 = vld [vmem:[%s4929_s0 + $0x200] ss:$12 sps:$4 sm:$0xff]   ;;  %v3602_v50 = vld [vmem:[%s4929_s0 + $0x398] ss:$12 sps:$4 sm:$0xff]  }
  0x64   :  { %1845 = vmatpush1.bf16.msra.mxu0 %v3516_v48  ;;  %3144 = vmatprep.subr.bf16.mxu1 %v3524_v52  ;;  %v3631_v48 = vld [vmem:[%s4930_s1 + $0xa4] ss:$36 sps:$4 sm:$0xff]   ;;  %v3605_v52 = vld [vmem:[%s4929_s0 + $0x52c] ss:$12 sps:$4 sm:$0xff]  }
  0x65   :  { %1846 = vmatprep.subr.bf16.mxu0 %v3523_v49  ;;  %v4358_v49 = vld [vmem:[%s4930_s1 + $0xa0] ss:$36 sps:$4 sm:$0xff]  }
  0x67   :  { %3145 = vmatpush3.bf16.msra.mxu1 %v3525_v56  ;;  %v3607_v56 = vld [vmem:[%s4929_s0 + $0x3b0] ss:$12 sps:$4 sm:$0xff]  }
  0x68   :  { %1847 = vmatpush1.bf16.msra.mxu0 %v3521_v53  ;;  %3146 = vmatprep.subr.bf16.mxu1 %v3531_v58  ;;  %v3606_v53 = vld [vmem:[%s4929_s0 + $0x470] ss:$12 sps:$4 sm:$0xff]   ;;  %v3611_v58 = vld [vmem:[%s4929_s0 + $0x548] ss:$12 sps:$4 sm:$0xff]  }
  0x69   :  { %1848 = vmatprep.subr.bf16.mxu0 %v3530_v57  ;;  %v3610_v57 = vld [vmem:[%s4929_s0 + $0x544] ss:$12 sps:$4 sm:$0xff]  }
  0x6a   :  { %2088 = vmatmul.mubr.bf16.gmra.mrb[20].mxu1 %v4002_v15  ;;  %v3559_v15 = vld [vmem:[%s4929_s0 + $0x218] ss:$12 sps:$4 sm:$0xff]  }
  0x6b   :  { %3147 = vmatpush3.bf16.msra.mxu1 %v3533_v61  ;;  %2095 = vmatprep.mubr.bf16.mxu1 %v4022_v21  ;;  %v3570_v21 = vld [vmem:[%s4929_s0 + $0x484] ss:$12 sps:$4 sm:$0xff]   ;;  %v3612_v61 = vld [vmem:[%s4929_s0 + $0x488] ss:$12 sps:$4 sm:$0xff]  }
  0x6c   :  { %1849 = vmatpush1.bf16.msra.mxu0 %v3528_v60  ;;  %3148 = vmatprep.subr.bf16.mxu1 %v3537_v63  ;;  %v3644_v60 = vld [vmem:[%s4930_s1 + $0xec] ss:$36 sps:$4 sm:$0xff]   ;;  %v3615_v63 = vld [vmem:[%s4929_s0 + $0x55c] ss:$12 sps:$4 sm:$0xff]  }
  0x6d   :  { %1850 = vmatprep.subr.bf16.mxu0 %v3536_v62  ;;  %v4393_v62 = vld [vmem:[%s4930_s1 + $0xe8] ss:$36 sps:$4 sm:$0xff]  }
  0x6f   :  { %3149 = vmatpush3.bf16.msra.mxu1 %v3538_v1  ;;  %v3613_v1 = vld [vmem:[%s4929_s0 + $0x558] ss:$12 sps:$4 sm:$0xff]  }
  0x70   :  { %1851 = vmatpush1.bf16.msra.mxu0 %v3534_v0  ;;  %3150 = vmatprep.subr.bf16.mxu1 %v3544_v4  ;;  %v3616_v0 = vld [vmem:[%s4929_s0 + $0x560] ss:$12 sps:$4 sm:$0xff]   ;;  %v3624_v4 = vld [vmem:[%s4929_s0 + $0x578] ss:$12 sps:$4 sm:$0xff]  }
  0x71   :  { %1852 = vmatprep.subr.bf16.mxu0 %v3543_v3  ;;  %v3623_v3 = vld [vmem:[%s4929_s0 + $0x574] ss:$12 sps:$4 sm:$0xff]  }
  0x72   :  { %2096 = vmatmul.mubr.bf16.gmra.mrb[24].mxu1 %v4038_v25  ;;  %v3575_v25 = vld [vmem:[%s4929_s0 + $0x49c] ss:$12 sps:$4 sm:$0xff]  }
  0x73   :  { %3151 = vmatpush3.bf16.msra.mxu1 %v3546_v7  ;;  %2103 = vmatprep.mubr.bf16.mxu1 %v4058_v31  ;;  %v3585_v31 = vld [vmem:[%s4929_s0 + $0x4cc] ss:$12 sps:$4 sm:$0xff]   ;;  %v3621_v7 = vld [vmem:[%s4929_s0 + $0x570] ss:$12 sps:$4 sm:$0xff]  }
  0x74   :  { %1853 = vmatpush1.bf16.msra.mxu0 %v3541_v6  ;;  %3152 = vmatprep.subr.bf16.mxu1 %v3550_v9  ;;  %v3659_v6 = vld [vmem:[%s4930_s1 + $0x1c] ss:$36 sps:$4 sm:$0xff]   ;;  %v3628_v9 = vld [vmem:[%s4929_s0 + $0x58c] ss:$12 sps:$4 sm:$0xff]  }
  0x75   :  { %1854 = vmatprep.subr.bf16.mxu0 %v3549_v8  ;;  %v3625_v8 = vld [vmem:[%s4929_s0 + $0x4b8] ss:$12 sps:$4 sm:$0xff]  }
  0x77   :  { %3153 = vmatpush3.bf16.msra.mxu1 %v3551_v11  ;;  %v3626_v11 = vld [vmem:[%s4929_s0 + $0x588] ss:$12 sps:$4 sm:$0xff]  }
  0x78   :  { %1855 = vmatpush1.bf16.msra.mxu0 %v3547_v10  ;;  %3154 = vmatprep.subr.bf16.mxu1 %v3557_v13  ;;  %v3629_v10 = vld [vmem:[%s4929_s0 + $0x590] ss:$12 sps:$4 sm:$0xff]  }
  0x79   :  { %1856 = vmatprep.subr.bf16.mxu0 %v3556_v12  ;;  %v3630_v12 = vld [vmem:[%s4929_s0 + $0x4d0] ss:$12 sps:$4 sm:$0xff]  }
  0x7a   :  { %2104 = vmatmul.mubr.bf16.gmra.mrb[28].mxu1 %v4075_v35  ;;  %v3590_v35 = vld [vmem:[%s4929_s0 + $0x4e4] ss:$12 sps:$4 sm:$0xff]  }
  0x7b   :  { %3155 = vmatpush3.bf16.msra.mxu1 %v3559_v15  ;;  %2144 = vmatprep.mubr.bf16.mxu1 %v3905_v51  ;;  %v3576_v51 = vld [vmem:[%s4929_s0 + $0x3e0] ss:$12 sps:$4 sm:$0xff]   ;;  %v3636_v13 = vld [vmem:[%s4929_s0 + $0x5a4] ss:$12 sps:$4 sm:$0xff]  }
  0x7c   :  { %1857 = vmatpush1.bf16.msra.mxu0 %v3554_v14  ;;  %3156 = vmatprep.subr.bf16.mxu1 %v3563_v17  ;;  %v3637_v14 = vld [vmem:[%s4929_s0 + $0x5a8] ss:$12 sps:$4 sm:$0xff]   ;;  %v3634_v15 = vld [vmem:[%s4929_s0 + $0x5a0] ss:$12 sps:$4 sm:$0xff]  }
  0x7d   :  { %1858 = vmatprep.subr.bf16.mxu0 %v3562_v16  ;;  %v3638_v16 = vld [vmem:[%s4929_s0 + $0x4e8] ss:$12 sps:$4 sm:$0xff]  }
  0x7e   :  { %v3641_v17 = vld [vmem:[%s4929_s0 + $0x5bc] ss:$12 sps:$4 sm:$0xff]  }
  0x7f   :  { %3157 = vmatpush3.bf16.msra.mxu1 %v3564_v19  ;;  %v3639_v19 = vld [vmem:[%s4929_s0 + $0x5b8] ss:$12 sps:$4 sm:$0xff]  }
  0x80   :  { %1859 = vmatpush1.bf16.msra.mxu0 %v3560_v18  ;;  %3182 = vmatprep.subr.bf16.mxu1 %v3571_v22  ;;  %v3642_v18 = vld [vmem:[%s4929_s0 + $0x5c0] ss:$12 sps:$4 sm:$0xff]   ;;  %v3650_v22 = vld [vmem:[%s4929_s0 + $0x5d8] ss:$12 sps:$4 sm:$0xff]  }
  0x81   :  { %1901 = vmatprep.subr.bf16.mxu0 %v3570_v21  ;;  %v3649_v21 = vld [vmem:[%s4929_s0 + $0x5d4] ss:$12 sps:$4 sm:$0xff]  }
  0x82   :  { %2145 = vmatmul.mubr.bf16.vlgmr.msra.gmra.mrb[32].mxu1 %v3965_v5  ;;  %v3581_v5 = vld [vmem:[%s4929_s0 + $0x3f8] ss:$12 sps:$4 sm:$0xff]  }
  0x83   :  { %1861 = vmatmul.mubr.bf16.vlgmr.msra.gmra.mrb[0].mxu0 %v4246_v20  ;;  %3183 = vmatpush3.bf16.msra.mxu1 %v3572_v24  ;;  %v3651_v24 = vld [vmem:[%s4929_s0 + $0x518] ss:$12 sps:$4 sm:$0xff]  }
  0x84   :  { %1902 = vmatpush1.bf16.msra.mxu0 %v3568_v23  ;;  %3184 = vmatprep.subr.bf16.mxu1 %v3576_v51  ;;  %v3647_v23 = vld [vmem:[%s4929_s0 + $0x5d0] ss:$12 sps:$4 sm:$0xff]  }
  0x85   :  { %1903 = vmatprep.subr.bf16.mxu0 %v3575_v25  ;;  %2152 = vmatprep.mubr.bf16.mxu1 %v4064_v32  ;;  %v3586_v32 = vld [vmem:[%s4929_s0 + $0x410] ss:$12 sps:$4 sm:$0xff]   ;;  %v3654_v25 = vld [vmem:[%s4929_s0 + $0x5ec] ss:$12 sps:$4 sm:$0xff]  }
  0x86   :  { %1870 = vmatprep.mubr.bf16.mxu0 %v4314_v38  ;;  %v3655_v51 = vld [vmem:[%s4929_s0 + $0x5f0] ss:$12 sps:$4 sm:$0xff]  }
  0x87   :  { %3185 = vmatpush3.bf16.msra.mxu1 %v3577_v27  ;;  %v3656_v27 = vld [vmem:[%s4929_s0 + $0x530] ss:$12 sps:$4 sm:$0xff]  }
  0x88   :  { %1904 = vmatpush1.bf16.msra.mxu0 %v3573_v26  ;;  %3186 = vmatprep.subr.bf16.mxu1 %v3581_v5  ;;  %v3652_v26 = vld [vmem:[%s4929_s0 + $0x5e8] ss:$12 sps:$4 sm:$0xff]  }
  0x89   :  { %1905 = vmatprep.subr.bf16.mxu0 %v3580_v28  ;;  %v3662_v28 = vld [vmem:[%s4929_s0 + $0x604] ss:$12 sps:$4 sm:$0xff]   ;;  %v3663_v5 = vld [vmem:[%s4929_s0 + $0x608] ss:$12 sps:$4 sm:$0xff]  }
  0x8a   :  { %2153 = vmatmul.mubr.bf16.gmra.mrb[36].mxu1 %v4085_v37  ;;  %v3588_v37 = vld [vmem:[%s4929_s0 + $0x4e0] ss:$12 sps:$4 sm:$0xff]  }
  0x8b   :  { %3187 = vmatpush3.bf16.msra.mxu1 %v3582_v30  ;;  %2160 = vmatprep.mubr.bf16.mxu1 %v4107_v43  ;;  %v3593_v43 = vld [vmem:[%s4929_s0 + $0x4f8] ss:$12 sps:$4 sm:$0xff]   ;;  %v3660_v30 = vld [vmem:[%s4929_s0 + $0x600] ss:$12 sps:$4 sm:$0xff]  }
  0x8c   :  { %1906 = vmatpush1.bf16.msra.mxu0 %v3578_v29  ;;  %3188 = vmatprep.subr.bf16.mxu1 %v3586_v32  ;;  %v3657_v29 = vld [vmem:[%s4930_s1 + $0x18] ss:$36 sps:$4 sm:$0xff]   ;;  %v3667_v32 = vld [vmem:[%s4929_s0 + $0x620] ss:$12 sps:$4 sm:$0xff]  }
  0x8d   :  { %1907 = vmatprep.subr.bf16.mxu0 %v3585_v31  ;;  %1871 = vmatmul.mubr.bf16.gmra.mrb[4].mxu0 %v4322_v40  ;;  %v3666_v31 = vld [vmem:[%s4929_s0 + $0x61c] ss:$12 sps:$4 sm:$0xff]  }
  0x8e   :  { %1880 = vmatprep.mubr.bf16.mxu0 %v3631_v48 }
  0x8f   :  { %3189 = vmatpush3.bf16.msra.mxu1 %v3587_v34  ;;  %v3664_v34 = vld [vmem:[%s4929_s0 + $0x618] ss:$12 sps:$4 sm:$0xff]  }
  0x90   :  { %1908 = vmatpush1.bf16.msra.mxu0 %v3583_v33  ;;  %3190 = vmatprep.subr.bf16.mxu1 %v3591_v36  ;;  %v3668_v33 = vld [vmem:[%s4930_s1 + $0x64] ss:$36 sps:$4 sm:$0xff]  }
  0x91   :  { %1909 = vmatprep.subr.bf16.mxu0 %v3590_v35  ;;  %v3673_v35 = vld [vmem:[%s4929_s0 + $0x634] ss:$12 sps:$4 sm:$0xff]   ;;  %v3674_v36 = vld [vmem:[%s4929_s0 + $0x638] ss:$12 sps:$4 sm:$0xff]  }
  0x92   :  { %2161 = vmatmul.mubr.bf16.gmra.mrb[40].mxu1 %v4123_v47  ;;  %v3598_v47 = vld [vmem:[%s4929_s0 + $0x510] ss:$12 sps:$4 sm:$0xff]  }
  0x93   :  { %3191 = vmatpush3.bf16.msra.mxu1 %v3592_v39  ;;  %2168 = vmatprep.mubr.bf16.mxu1 %v4145_v54  ;;  %v3603_v54 = vld [vmem:[%s4929_s0 + $0x528] ss:$12 sps:$4 sm:$0xff]   ;;  %v3677_v39 = vld [vmem:[%s4929_s0 + $0x64c] ss:$12 sps:$4 sm:$0xff]  }
  0x94   :  { %1910 = vmatpush1.bf16.msra.mxu0 %v3588_v37  ;;  %3192 = vmatprep.subr.bf16.mxu1 %v3596_v42  ;;  %v3670_v37 = vld [vmem:[%s4930_s1 + $0x60] ss:$36 sps:$4 sm:$0xff]   ;;  %v3675_v42 = vld [vmem:[%s4929_s0 + $0x648] ss:$12 sps:$4 sm:$0xff]  }
  0x95   :  { %1911 = vmatprep.subr.bf16.mxu0 %v3595_v41  ;;  %1881 = vmatmul.mubr.bf16.gmra.mrb[8].mxu0 %v4358_v49  ;;  %v3679_v41 = vld [vmem:[%s4930_s1 + $0xac] ss:$36 sps:$4 sm:$0xff]  }
  0x96   :  { %1890 = vmatprep.mubr.bf16.mxu0 %v3644_v60 }
  0x97   :  { %3193 = vmatpush3.bf16.msra.mxu1 %v3597_v44  ;;  %v3685_v44 = vld [vmem:[%s4929_s0 + $0x668] ss:$12 sps:$4 sm:$0xff]  }
  0x98   :  { %1912 = vmatpush1.bf16.msra.mxu0 %v3593_v43  ;;  %3194 = vmatprep.subr.bf16.mxu1 %v3601_v46  ;;  %v3684_v43 = vld [vmem:[%s4929_s0 + $0x664] ss:$12 sps:$4 sm:$0xff]   ;;  %v3682_v46 = vld [vmem:[%s4929_s0 + $0x660] ss:$12 sps:$4 sm:$0xff]  }
  0x99   :  { %1913 = vmatprep.subr.bf16.mxu0 %v3600_v45  ;;  %v3681_v45 = vld [vmem:[%s4930_s1 + $0xa8] ss:$36 sps:$4 sm:$0xff]  }
  0x9a   :  { %2169 = vmatmul.mubr.bf16.gmra.mrb[44].mxu1 %v4162_v59  ;;  %v3608_v59 = vld [vmem:[%s4929_s0 + $0x540] ss:$12 sps:$4 sm:$0xff]  }
  0x9b   :  { %3195 = vmatpush3.bf16.msra.mxu1 %v3602_v50  ;;  %2209 = vmatprep.mubr.bf16.mxu1 %v4188_v2  ;;  %v3617_v2 = vld [vmem:[%s4929_s0 + $0x4a0] ss:$12 sps:$4 sm:$0xff]   ;;  %v3690_v50 = vld [vmem:[%s4930_s1 + $0xf4] ss:$36 sps:$4 sm:$0xff]  }
  0x9c   :  { %1914 = vmatpush1.bf16.msra.mxu0 %v3598_v47  ;;  %3196 = vmatprep.subr.bf16.mxu1 %v3606_v53  ;;  %v3688_v47 = vld [vmem:[%s4929_s0 + $0x67c] ss:$12 sps:$4 sm:$0xff]   ;;  %v3696_v53 = vld [vmem:[%s4929_s0 + $0x698] ss:$12 sps:$4 sm:$0xff]  }
  0x9d   :  { %1915 = vmatprep.subr.bf16.mxu0 %v3605_v52  ;;  %1891 = vmatmul.mubr.bf16.gmra.mrb[12].mxu0 %v4393_v62  ;;  %v3695_v52 = vld [vmem:[%s4929_s0 + $0x694] ss:$12 sps:$4 sm:$0xff]  }
  0x9e   :  { %1933 = vmatprep.mubr.bf16.mxu0 %v3659_v6 }
  0x9f   :  { %3197 = vmatpush3.bf16.msra.mxu1 %v3607_v56  ;;  %v3693_v56 = vld [vmem:[%s4929_s0 + $0x690] ss:$12 sps:$4 sm:$0xff]  }
  0xa0   :  { %1916 = vmatpush1.bf16.msra.mxu0 %v3603_v54  ;;  %3222 = vmatprep.subr.bf16.mxu1 %v3611_v58  ;;  %v3692_v54 = vld [vmem:[%s4930_s1 + $0xf0] ss:$36 sps:$4 sm:$0xff]  }
  0xa1   :  { %1917 = vmatprep.subr.bf16.mxu0 %v3610_v57  ;;  %v3699_v57 = vld [vmem:[%s4929_s0 + $0x6ac] ss:$12 sps:$4 sm:$0xff]   ;;  %v3700_v58 = vld [vmem:[%s4929_s0 + $0x6b0] ss:$12 sps:$4 sm:$0xff]  }
  0xa2   :  { %2210 = vmatmul.mubr.bf16.vlgmr.msra.gmra.mrb[48].mxu1 %v4246_v20  ;;  %v3643_v20 = vld [vmem:[%s4929_s0 + $0x500] ss:$12 sps:$4 sm:$0xff]  }
  0xa3   :  { %3223 = vmatpush3.bf16.msra.mxu1 %v3612_v61  ;;  %2217 = vmatprep.mubr.bf16.mxu1 %v4314_v38  ;;  %v3671_v38 = vld [vmem:[%s4929_s0 + $0x630] ss:$12 sps:$4 sm:$0xff]   ;;  %v3702_v61 = vld [vmem:[%s4930_s1 + $0x68] ss:$36 sps:$4 sm:$0xff]  }
  0xa4   :  { %1918 = vmatpush1.bf16.msra.mxu0 %v3608_v59  ;;  %3224 = vmatprep.subr.bf16.mxu1 %v3616_v0  ;;  %v3701_v59 = vld [vmem:[%s4930_s1 + $0x20] ss:$36 sps:$4 sm:$0xff]  }
  0xa5   :  { %1919 = vmatprep.subr.bf16.mxu0 %v3615_v63  ;;  %v3704_v63 = vld [vmem:[%s4930_s1 + $0xf8] ss:$36 sps:$4 sm:$0xff]  }
  0xa7   :  { %3225 = vmatpush3.bf16.msra.mxu1 %v3617_v2 }
  0xa8   :  { %1920 = vmatpush1.bf16.msra.mxu0 %v3613_v1  ;;  %3226 = vmatprep.subr.bf16.mxu1 %v3624_v4 }
  0xa9   :  { %1921 = vmatprep.subr.bf16.mxu0 %v3623_v3 }
  0xaa   :  { %2218 = vmatmul.mubr.bf16.gmra.mrb[52].mxu1 %v4322_v40  ;;  %v3678_v40 = vld [vmem:[%s4929_s0 + $0x650] ss:$12 sps:$4 sm:$0xff]  }
  0xab   :  { %3227 = vmatpush3.bf16.msra.mxu1 %v3625_v8  ;;  %2225 = vmatprep.mubr.bf16.mxu1 %v3631_v48  ;;  %v3689_v48 = vld [vmem:[%s4929_s0 + $0x680] ss:$12 sps:$4 sm:$0xff]  }
  0xac   :  { %1922 = vmatpush1.bf16.msra.mxu0 %v3621_v7  ;;  %3228 = vmatprep.subr.bf16.mxu1 %v3629_v10 }
  0xad   :  { %1923 = vmatprep.subr.bf16.mxu0 %v3628_v9 }
  0xaf   :  { %3229 = vmatpush3.bf16.msra.mxu1 %v3630_v12 }
  0xb0   :  { %1924 = vmatpush1.bf16.msra.mxu0 %v3626_v11  ;;  %3230 = vmatprep.subr.bf16.mxu1 %v3637_v14 }
  0xb1   :  { %1925 = vmatprep.subr.bf16.mxu0 %v3636_v13 }
  0xb2   :  { %2226 = vmatmul.mubr.bf16.gmra.mrb[56].mxu1 %v4358_v49  ;;  %v3686_v49 = vld [vmem:[%s4929_s0 + $0x678] ss:$12 sps:$4 sm:$0xff]  }
  0xb3   :  { %3231 = vmatpush3.bf16.msra.mxu1 %v3638_v16  ;;  %2233 = vmatprep.mubr.bf16.mxu1 %v3644_v60  ;;  %v3697_v60 = vld [vmem:[%s4929_s0 + $0x6a8] ss:$12 sps:$4 sm:$0xff]  }
  0xb4   :  { %1926 = vmatpush1.bf16.msra.mxu0 %v3634_v15  ;;  %3232 = vmatprep.subr.bf16.mxu1 %v3642_v18 }
  0xb5   :  { %1927 = vmatprep.subr.bf16.mxu0 %v3641_v17 }
  0xb7   :  { %3233 = vmatpush3.bf16.msra.mxu1 %v3643_v20 }
  0xb8   :  { %1928 = vmatpush1.bf16.msra.mxu0 %v3639_v19  ;;  %3234 = vmatprep.subr.bf16.mxu1 %v3650_v22 }
  0xb9   :  { %1929 = vmatprep.subr.bf16.mxu0 %v3649_v21 }
  0xba   :  { %2234 = vmatmul.mubr.bf16.gmra.mrb[60].mxu1 %v4393_v62  ;;  %v3703_v62 = vld [vmem:[%s4930_s1 + $0xb0] ss:$36 sps:$4 sm:$0xff]  }
  0xbb   :  { %3235 = vmatpush3.bf16.msra.mxu1 %v3651_v24  ;;  %2274 = vmatprep.mubr.bf16.mxu1 %v3659_v6 }
  0xbc   :  { %1930 = vmatpush1.bf16.msra.mxu0 %v3647_v23  ;;  %3236 = vmatprep.subr.bf16.mxu1 %v3655_v51 }
  0xbd   :  { %1931 = vmatprep.subr.bf16.mxu0 %v3654_v25 }
  0xbf   :  { %3237 = vmatpush3.bf16.msra.mxu1 %v3656_v27 }
  0xc0   :  { %1932 = vmatpush1.bf16.msra.mxu0 %v3652_v26  ;;  %3274 = vmatprep.subr.bf16.mxu1 %v3663_v5 }
  0xc1   :  { %1974 = vmatprep.subr.bf16.mxu0 %v3662_v28 }
  0xc2   :  { %2275 = vmatmul.mubr.bf16.vlgmr.msra.gmra.mrb[64].mxu1 %v3657_v29 }
  0xc3   :  { %1934 = vmatmul.mubr.bf16.vlgmr.msra.gmra.mrb[0].mxu0 %v3657_v29  ;;  %3275 = vmatpush3.bf16.msra.mxu1 %v3663_v5 }
  0xc4   :  { %1975 = vmatpush1.bf16.msra.mxu0 %v3660_v30  ;;  %3276 = vmatprep.subr.bf16.mxu1 %v3667_v32 }
  0xc5   :  { %1976 = vmatprep.subr.bf16.mxu0 %v3666_v31  ;;  %1943 = vmatprep.mubr.bf16.mxu0 %v3668_v33 }
  0xc6   :  { %2282 = vmatprep.mubr.bf16.mxu1 %v3668_v33 }
  0xc7   :  { %3277 = vmatpush3.bf16.msra.mxu1 %v3667_v32 }
  0xc8   :  { %1977 = vmatpush1.bf16.msra.mxu0 %v3664_v34  ;;  %3278 = vmatprep.subr.bf16.mxu1 %v3674_v36 }
  0xc9   :  { %1978 = vmatprep.subr.bf16.mxu0 %v3673_v35 }
  0xca   :  { %2283 = vmatmul.mubr.bf16.gmra.mrb[68].mxu1 %v3670_v37 }
  0xcb   :  { %1944 = vmatmul.mubr.bf16.gmra.mrb[4].mxu0 %v3670_v37  ;;  %3279 = vmatpush3.bf16.msra.mxu1 %v3674_v36 }
  0xcc   :  { %1979 = vmatpush1.bf16.msra.mxu0 %v3671_v38  ;;  %3280 = vmatprep.subr.bf16.mxu1 %v3678_v40 }
  0xcd   :  { %1980 = vmatprep.subr.bf16.mxu0 %v3677_v39  ;;  %1953 = vmatprep.mubr.bf16.mxu0 %v3679_v41 }
  0xce   :  { %2290 = vmatprep.mubr.bf16.mxu1 %v3679_v41 }
  0xcf   :  { %3281 = vmatpush3.bf16.msra.mxu1 %v3678_v40 }
  0xd0   :  { %1981 = vmatpush1.bf16.msra.mxu0 %v3675_v42  ;;  %3282 = vmatprep.subr.bf16.mxu1 %v3685_v44 }
  0xd1   :  { %1982 = vmatprep.subr.bf16.mxu0 %v3684_v43 }
  0xd2   :  { %2291 = vmatmul.mubr.bf16.gmra.mrb[72].mxu1 %v3681_v45 }
  0xd3   :  { %1954 = vmatmul.mubr.bf16.gmra.mrb[8].mxu0 %v3681_v45  ;;  %3283 = vmatpush3.bf16.msra.mxu1 %v3685_v44 }
  0xd4   :  { %1983 = vmatpush1.bf16.msra.mxu0 %v3682_v46  ;;  %3284 = vmatprep.subr.bf16.mxu1 %v3689_v48 }
  0xd5   :  { %1984 = vmatprep.subr.bf16.mxu0 %v3688_v47  ;;  %1963 = vmatprep.mubr.bf16.mxu0 %v3690_v50 }
  0xd6   :  { %2298 = vmatprep.mubr.bf16.mxu1 %v3690_v50 }
  0xd7   :  { %3285 = vmatpush3.bf16.msra.mxu1 %v3689_v48 }
  0xd8   :  { %1985 = vmatpush1.bf16.msra.mxu0 %v3686_v49  ;;  %3286 = vmatprep.subr.bf16.mxu1 %v3696_v53 }
  0xd9   :  { %1986 = vmatprep.subr.bf16.mxu0 %v3695_v52 }
  0xda   :  { %2299 = vmatmul.mubr.bf16.gmra.mrb[76].mxu1 %v3692_v54 }
  0xdb   :  { %1964 = vmatmul.mubr.bf16.gmra.mrb[12].mxu0 %v3692_v54  ;;  %3287 = vmatpush3.bf16.msra.mxu1 %v3696_v53 }
  0xdc   :  { %1987 = vmatpush1.bf16.msra.mxu0 %v3693_v56  ;;  %3288 = vmatprep.subr.bf16.mxu1 %v3700_v58 }
  0xdd   :  { %1988 = vmatprep.subr.bf16.mxu0 %v3699_v57  ;;  %2006 = vmatprep.mubr.bf16.mxu0 %v3721_v55 }
  0xde   :  { %3290 = vmatprep.mubr.bf16.mxu1 %v3701_v59 }
  0xdf   :  { %3289 = vmatpush3.bf16.msra.mxu1 %v3700_v58 }
  0xe0   :  { %1989 = vmatpush1.bf16.msra.mxu0 %v3697_v60 }
  0xe2   :  { %3291 = vmatmul.mubr.bf16.vlgmr.msra.gmra.mrb[80].mxu1 %v3702_v61 }
  0xe3   :  { %2007 = vmatmul.mubr.bf16.vlgmr.msra.gmra.mrb[0].mxu0 %v3701_v59  ;;  %3294 = vmatprep.mubr.bf16.mxu1 %v3703_v62 }
  0xe4   :  { %2016 = vmatprep.mubr.bf16.mxu0 %v3721_v55 }
  0xea   :  { %3295 = vmatmul.mubr.bf16.gmra.mrb[84].mxu1 %v3704_v63 }
  0xeb   :  { %2017 = vmatmul.mubr.bf16.gmra.mrb[4].mxu0 %v3702_v61 }
  0xec   :  { %2026 = vmatprep.mubr.bf16.mxu0 %v3721_v55 }
  0xf3   :  { %2027 = vmatmul.mubr.bf16.gmra.mrb[8].mxu0 %v3703_v62 }
  0xf4   :  { %2036 = vmatprep.mubr.bf16.mxu0 %v3721_v55 }
  0xfb   :  { %2037 = vmatmul.mubr.bf16.gmra.mrb[12].mxu0 %v3704_v63 }
 0x115   :  { %v4597_v0 = vpop.f32.mrb[0].mxu1 }
 0x116   :  { %v4599_v1 = vpop.f32.mrb[1].mxu1 }
 0x117   :  { %v4601_v2 = vpop.f32.mrb[2].mxu1 }
 0x118   :  { %v4603_v3 = vpop.f32.mrb[3].mxu1 }
 0x11d   :  { %v4605_v4 = vpop.f32.mrb[4].mxu1 }
 0x11e   :  { %v4607_v6 = vpop.f32.mrb[5].mxu1 }
 0x11f   :  { %v4609_v7 = vpop.f32.mrb[6].mxu1 }
 0x120   :  { %v4611_v8 = vpop.f32.mrb[7].mxu1 }
 0x125   :  { %v4613_v9 = vpop.f32.mrb[8].mxu1 }
 0x126   :  { %v4615_v55 = vpop.f32.mrb[9].mxu1 }
 0x127   :  { %v4617_v10 = vpop.f32.mrb[10].mxu1 }
 0x128   :  { %v4619_v11 = vpop.f32.mrb[11].mxu1 }
 0x12d   :  { %v4621_v12 = vpop.f32.mrb[12].mxu1 }
 0x12e   :  { %v4623_v13 = vpop.f32.mrb[13].mxu1 }
 0x12f   :  { %v4625_v14 = vpop.f32.mrb[14].mxu1 }
 0x130   :  { %v4627_v15 = vpop.f32.mrb[15].mxu1 }
 0x135   :  { %v3118_v16 = vpop.f32.mrb[16].mxu1 }
 0x136   :  { %v3119_v17 = vpop.f32.mrb[17].mxu1 }
 0x137   :  { %v3120_v18 = vadd.f32 %v3119_v17, %v3118_v16  ;;  %v3121_v19 = vpop.f32.mrb[18].mxu1 }
 0x138   :  { %v3122_v20 = vpop.f32.mrb[19].mxu1 }
 0x139   :  { %v3123_v21 = vadd.f32 %v3122_v20, %v3121_v19 }
 0x13d   :  { %v3124_v22 = vpop.f32.mrb[20].mxu1 }
 0x13e   :  { %v3125_v23 = vpop.f32.mrb[21].mxu1 }
 0x13f   :  { %v3126_v24 = vadd.f32 %v3125_v23, %v3124_v22  ;;  %v3127_v25 = vpop.f32.mrb[22].mxu1 }
 0x140   :  { %v3128_v51 = vpop.f32.mrb[23].mxu1 }
 0x141   :  { %v3129_v26 = vadd.f32 %v3128_v51, %v3127_v25 }
 0x145   :  { %v3130_v27 = vpop.f32.mrb[24].mxu1 }
 0x146   :  { %v3131_v28 = vpop.f32.mrb[25].mxu1 }
 0x147   :  { %v3132_v5 = vadd.f32 %v3131_v28, %v3130_v27  ;;  %v3133_v29 = vpop.f32.mrb[26].mxu1 }
 0x148   :  { %v3134_v30 = vpop.f32.mrb[27].mxu1 }
 0x149   :  { %v3135_v31 = vadd.f32 %v3134_v30, %v3133_v29 }
 0x14d   :  { %v3136_v32 = vpop.f32.mrb[28].mxu1 }
 0x14e   :  { %v3137_v33 = vpop.f32.mrb[29].mxu1 }
 0x14f   :  { %v3138_v34 = vadd.f32 %v3137_v33, %v3136_v32  ;;  %v3139_v35 = vpop.f32.mrb[30].mxu1 }
 0x150   :  { %v3140_v36 = vpop.f32.mrb[31].mxu1 }
 0x151   :  { %v3141_v37 = vadd.f32 %v3140_v36, %v3139_v35 }
 0x155   :  { %v3158_v38 = vpop.f32.mrb[32].mxu1 }
 0x156   :  { %v3159_v39 = vpop.f32.mrb[33].mxu1 }
 0x157   :  { %v3160_v40 = vadd.f32 %v3159_v39, %v3158_v38  ;;  %v3161_v41 = vpop.f32.mrb[34].mxu1 }
 0x158   :  { %v3162_v42 = vpop.f32.mrb[35].mxu1 }
 0x159   :  { %v2147_v43 = vadd.f32 %v3160_v40, %v3120_v18  ;;  %v3163_v44 = vadd.f32 %v3162_v42, %v3161_v41 }
 0x15b   :  { %v2150_v45 = vadd.f32 %v3163_v44, %v3123_v21 }
 0x15d   :  { %v3164_v46 = vpop.f32.mrb[36].mxu1 }
 0x15e   :  { %v3165_v47 = vpop.f32.mrb[37].mxu1 }
 0x15f   :  { %v3166_v48 = vadd.f32 %v3165_v47, %v3164_v46  ;;  %v3167_v50 = vpop.f32.mrb[38].mxu1 }
 0x160   :  { %v3168_v49 = vpop.f32.mrb[39].mxu1 }
 0x161   :  { %v2155_v52 = vadd.f32 %v3166_v48, %v3126_v24  ;;  %v3169_v53 = vadd.f32 %v3168_v49, %v3167_v50 }
 0x163   :  { %v2158_v54 = vadd.f32 %v3169_v53, %v3129_v26 }
 0x165   :  { %v3170_v56 = vpop.f32.mrb[40].mxu1 }
 0x166   :  { %v3171_v57 = vpop.f32.mrb[41].mxu1 }
 0x167   :  { %v3172_v58 = vadd.f32 %v3171_v57, %v3170_v56  ;;  %v3173_v59 = vpop.f32.mrb[42].mxu1 }
 0x168   :  { %v3174_v60 = vpop.f32.mrb[43].mxu1 }
 0x169   :  { %v2163_v61 = vadd.f32 %v3172_v58, %v3132_v5  ;;  %v3175_v62 = vadd.f32 %v3174_v60, %v3173_v59 }
 0x16b   :  { %v2166_v63 = vadd.f32 %v3175_v62, %v3135_v31 }
 0x16d   :  { %v3176_v16 = vpop.f32.mrb[44].mxu1 }
 0x16e   :  { %v3177_v17 = vpop.f32.mrb[45].mxu1 }
 0x16f   :  { %v3178_v18 = vadd.f32 %v3177_v17, %v3176_v16  ;;  %v3179_v19 = vpop.f32.mrb[46].mxu1 }
 0x170   :  { %v3180_v20 = vpop.f32.mrb[47].mxu1 }
 0x171   :  { %v2171_v21 = vadd.f32 %v3178_v18, %v3138_v34  ;;  %v3181_v22 = vadd.f32 %v3180_v20, %v3179_v19 }
 0x173   :  { %v2174_v23 = vadd.f32 %v3181_v22, %v3141_v37 }
 0x175   :  { %v3198_v25 = vpop.f32.mrb[48].mxu1 }
 0x176   :  { %v3199_v24 = vpop.f32.mrb[49].mxu1 }
 0x177   :  { %v3200_v51 = vadd.f32 %v3199_v24, %v3198_v25  ;;  %v3201_v26 = vpop.f32.mrb[50].mxu1 }
 0x178   :  { %v3202_v27 = vpop.f32.mrb[51].mxu1 }
 0x179   :  { %v2212_v28 = vadd.f32 %v3200_v51, %v2147_v43  ;;  %v3203_v29 = vadd.f32 %v3202_v27, %v3201_v26 }
 0x17b   :  { %v2215_v30 = vadd.f32 %v3203_v29, %v2150_v45 }
 0x17d   :  { %v3204_v32 = vpop.f32.mrb[52].mxu1 }
 0x17e   :  { %v3205_v5 = vpop.f32.mrb[53].mxu1 }
 0x17f   :  { %v3206_v33 = vadd.f32 %v3205_v5, %v3204_v32  ;;  %v3207_v31 = vpop.f32.mrb[54].mxu1 }
 0x180   :  { %v3208_v35 = vpop.f32.mrb[55].mxu1 }
 0x181   :  { %v2220_v36 = vadd.f32 %v3206_v33, %v2155_v52  ;;  %v3209_v38 = vadd.f32 %v3208_v35, %v3207_v31 }
 0x183   :  { %v2223_v39 = vadd.f32 %v3209_v38, %v2158_v54 }
 0x185   :  { %v3210_v40 = vpop.f32.mrb[56].mxu1 }
 0x186   :  { %v3211_v34 = vpop.f32.mrb[57].mxu1 }
 0x187   :  { %v3212_v41 = vadd.f32 %v3211_v34, %v3210_v40  ;;  %v3213_v37 = vpop.f32.mrb[58].mxu1 }
 0x188   :  { %v3214_v42 = vpop.f32.mrb[59].mxu1 }
 0x189   :  { %v2228_v44 = vadd.f32 %v3212_v41, %v2163_v61  ;;  %v3215_v46 = vadd.f32 %v3214_v42, %v3213_v37 }
 0x18b   :  { %v2231_v47 = vadd.f32 %v3215_v46, %v2166_v63 }
 0x18d   :  { %v3216_v48 = vpop.f32.mrb[60].mxu1 }
 0x18e   :  { %v3217_v43 = vpop.f32.mrb[61].mxu1 }
 0x18f   :  { %v3218_v50 = vadd.f32 %v3217_v43, %v3216_v48  ;;  %v3219_v45 = vpop.f32.mrb[62].mxu1 }
 0x190   :  { %v3220_v49 = vpop.f32.mrb[63].mxu1 }
 0x191   :  { %v2236_v53 = vadd.f32 %v3218_v50, %v2171_v21  ;;  %v3221_v56 = vadd.f32 %v3220_v49, %v3219_v45 }
 0x193   :  { %v2239_v57 = vadd.f32 %v3221_v56, %v2174_v23 }
 0x195   :  { %v3238_v58 = vpop.f32.mrb[64].mxu1 }
 0x196   :  { %v3239_v52 = vpop.f32.mrb[65].mxu1 }
 0x197   :  { %v3240_v59 = vadd.f32 %v3239_v52, %v3238_v58  ;;  %v3241_v54 = vpop.f32.mrb[66].mxu1 }
 0x198   :  { %v3242_v60 = vpop.f32.mrb[67].mxu1 }
 0x199   :  { %v3243_v62 = vadd.f32 %v3242_v60, %v3241_v54  ;;  %v2277_v16 = vadd.f32 %v3240_v59, %v2212_v28 }
 0x19b   :  { %v2280_v17 = vadd.f32 %v3243_v62, %v2215_v30 }
 0x19d   :  { %v3244_v18 = vpop.f32.mrb[68].mxu1 }
 0x19e   :  { %v3245_v61 = vpop.f32.mrb[69].mxu1 }
 0x19f   :  { %v3246_v19 = vadd.f32 %v3245_v61, %v3244_v18  ;;  %v3247_v63 = vpop.f32.mrb[70].mxu1 }
 0x1a0   :  { %v3248_v20 = vpop.f32.mrb[71].mxu1 }
 0x1a1   :  { %v3249_v22 = vadd.f32 %v3248_v20, %v3247_v63  ;;  %v2285_v25 = vadd.f32 %v3246_v19, %v2220_v36 }
 0x1a3   :  { %v2288_v24 = vadd.f32 %v3249_v22, %v2223_v39 }
 0x1a5   :  { %v3250_v51 = vpop.f32.mrb[72].mxu1 }
 0x1a6   :  { %v3251_v21 = vpop.f32.mrb[73].mxu1 }
 0x1a7   :  { %v3252_v26 = vadd.f32 %v3251_v21, %v3250_v51  ;;  %v3253_v23 = vpop.f32.mrb[74].mxu1 }
 0x1a8   :  { %v3254_v27 = vpop.f32.mrb[75].mxu1 }
 0x1a9   :  { %v3255_v29 = vadd.f32 %v3254_v27, %v3253_v23  ;;  %v2293_v32 = vadd.f32 %v3252_v26, %v2228_v44 }
 0x1ab   :  { %v2296_v5 = vadd.f32 %v3255_v29, %v2231_v47 }
 0x1ad   :  { %v3256_v33 = vpop.f32.mrb[76].mxu1 }
 0x1ae   :  { %v3257_v31 = vpop.f32.mrb[77].mxu1 }
 0x1af   :  { %v3258_v28 = vadd.f32 %v3257_v31, %v3256_v33  ;;  %v3259_v30 = vpop.f32.mrb[78].mxu1 }
 0x1b0   :  { %v3260_v35 = vpop.f32.mrb[79].mxu1 }
 0x1b1   :  { %v3261_v38 = vadd.f32 %v3260_v35, %v3259_v30  ;;  %v2301_v40 = vadd.f32 %v3258_v28, %v2236_v53 }
 0x1b3   :  { %v2304_v34 = vadd.f32 %v3261_v38, %v2239_v57 }
 0x1b5   :  { %v3292_v37 = vpop.f32.mrb[80].mxu1 }
 0x1b6   :  { %v2008_v41 = vpop.f32.mrb[0].mxu0  ;;  %v4632_v39 = vadd.f32 %v3292_v37, %v2285_v25  ;;  %v2341_v46 = vpop.f32.mrb[81].mxu1 }
 0x1b7   :  { %v4630_v36 = vadd.f32 %v2008_v41, %v4597_v0  ;;  %v2010_v42 = vpop.f32.mrb[1].mxu0  ;;  %v4637_v47 = vadd.f32 %v2341_v46, %v2277_v16  ;;  %v3293_v43 = vpop.f32.mrb[82].mxu1 }
 0x1b8   :  { %v4635_v44 = vadd.f32 %v2010_v42, %v4599_v1  ;;  %v2012_v48 = vpop.f32.mrb[2].mxu0  ;;  %v4642_v45 = vadd.f32 %v3293_v43, %v2288_v24  ;;  %v2344_v0 = vpop.f32.mrb[83].mxu1 }
 0x1b9   :  { %v4640_v50 = vadd.f32 %v2012_v48, %v4601_v2  ;;  %v2014_v49 = vpop.f32.mrb[3].mxu0  ;;  %v4647_v56 = vadd.f32 %v2344_v0, %v2280_v17  ;;  %v2413_v57 = vmul.f32 %v4630_v36, %v4630_v36  ;;  %v2374_v2 = vsel %vm2373_vm0, %v4637_v47, 0.0 }
 0x1ba   :  { %v4645_v53 = vadd.f32 %v2014_v49, %v4603_v3  ;;  %v2372_v1 = vadd.f32 %v4635_v44, %v4630_v36  ;;  %v2414_v58 = vmul.f32 %v4635_v44, %v4635_v44  ;;  %v2415_v16 = vmul.f32 %v4637_v47, %v4637_v47 }
 0x1bb   :  { %v2416_v52 = vmul.f32 %v4640_v50, %v4640_v50  ;;  %v2418_v54 = vmul.f32 %v4647_v56, %v4647_v56  ;;  %v2379_v62 = vsel %vm2373_vm0, %v4647_v56, 0.0 }
 0x1bc   :  { %v2375_v59 = vadd.f32 %v2374_v2, %v2372_v1  ;;  %v2417_v3 = vmul.f32 %v4645_v53, %v4645_v53  ;;  %v2378_v60 = vadd.f32 %v4645_v53, %v4640_v50  ;;  %v2437_v24 = vadd.f32 %v2414_v58, %v2413_v57 }
 0x1bd   :  { %v3296_v18 = vpop.f32.mrb[84].mxu1  ;;  %v2443_v19 = vsel %vm2373_vm0, %v2418_v54, 0.0  ;;  %v2438_v35 = vsel %vm2373_vm0, %v2415_v16, 0.0  ;;  %v2389_v58 = vsel %vm2373_vm0, %v4642_v45, 0.0 }
 0x1be   :  { %v2018_v17 = vpop.f32.mrb[4].mxu0  ;;  %2376 = vadd.xlane.f32.xlu0 %v2375_v59  ;;  %v2442_v61 = vadd.f32 %v2417_v3, %v2416_v52  ;;  %v4673_v20 = vadd.f32 %v3296_v18, %v2301_v40  ;;  %v2357_v25 = vpop.f32.mrb[85].mxu1  ;;  %v2380_v29 = vadd.f32 %v2379_v62, %v2378_v60  ;;  %v2421_v40 = vmul.f32 %v4632_v39, %v4632_v39 }
 0x1bf   :  { %v4671_v63 = vadd.f32 %v2018_v17, %v4605_v4  ;;  %v2020_v22 = vpop.f32.mrb[5].mxu0  ;;  %v4678_v21 = vadd.f32 %v2357_v25, %v2293_v32  ;;  %v3297_v23 = vpop.f32.mrb[86].mxu1  ;;  %v2439_v41 = vadd.f32 %v2438_v35, %v2437_v24  ;;  %v2424_v52 = vmul.f32 %v4642_v45, %v4642_v45 }
 0x1c0   :  { %v4676_v51 = vadd.f32 %v2020_v22, %v4607_v6  ;;  %v2022_v26 = vpop.f32.mrb[6].mxu0  ;;  %v2444_v27 = vadd.f32 %v2443_v19, %v2442_v61  ;;  %v4685_v31 = vadd.f32 %v3297_v23, %v2304_v34  ;;  %v2360_v30 = vpop.f32.mrb[87].mxu1  ;;  %v2384_v34 = vsel %vm2373_vm0, %v4632_v39, 0.0 }
 0x1c1   :  { %v2419_v33 = vmul.f32 %v4671_v63, %v4671_v63  ;;  %v4683_v4 = vadd.f32 %v2022_v26, %v4609_v7  ;;  %v2024_v28 = vpop.f32.mrb[7].mxu0  ;;  %v4693_v38 = vadd.f32 %v2360_v30, %v2296_v5  ;;  %v2448_v0 = vsel %vm2373_vm0, %v2421_v40, 0.0 }
 0x1c2   :  { %v2420_v6 = vmul.f32 %v4676_v51, %v4676_v51  ;;  %v4691_v32 = vadd.f32 %v2024_v28, %v4611_v8  ;;  %2445 = vadd.xlane.f32.xlu1 %v2444_v27  ;;  %2381 = vadd.xlane.f32.xlu0 %v2380_v29  ;;  %v2383_v7 = vadd.f32 %v4676_v51, %v4671_v63  ;;  %v2394_v17 = vsel %vm2373_vm0, %v4678_v21, 0.0 }
 0x1c3   :  { %v2422_v42 = vmul.f32 %v4683_v4, %v4683_v4  ;;  %v2453_v18 = vsel %vm2373_vm0, %v2424_v52, 0.0  ;;  %v2399_v30 = vsel %vm2373_vm0, %v4693_v38, 0.0  ;;  %v2409_v52 = vsel %vm2373_vm0, %v4685_v31, 0.0 }
 0x1c4   :  { %v2447_v37 = vadd.f32 %v2420_v6, %v2419_v33  ;;  %v2423_v8 = vmul.f32 %v4691_v32, %v4691_v32  ;;  %v2385_v5 = vadd.f32 %v2384_v34, %v2383_v7  ;;  %v2388_v46 = vadd.f32 %v4691_v32, %v4683_v4 }
 0x1c5   :  { %v2430_v6 = vmul.f32 %v4693_v38, %v4693_v38 }
 0x1c6   :  { %v2028_v48 = vpop.f32.mrb[8].mxu0  ;;  %2440 = vadd.xlane.f32.xlu0 %v2439_v41  ;;  %2386 = vadd.xlane.f32.xlu1 %v2385_v5  ;;  %v2449_v2 = vadd.f32 %v2448_v0, %v2447_v37  ;;  %v2390_v54 = vadd.f32 %v2389_v58, %v2388_v46  ;;  %v2452_v60 = vadd.f32 %v2423_v8, %v2422_v42  ;;  %v2404_v8 = vsel %vm2373_vm0, %v4673_v20, 0.0 }
 0x1c7   :  { %v4708_v43 = vadd.f32 %v2028_v48, %v4613_v9  ;;  %v2030_v49 = vpop.f32.mrb[9].mxu0  ;;  %v2463_v5 = vsel %vm2373_vm0, %v2430_v6, 0.0 }
 0x1c8   :  { %v4712_v1 = vadd.f32 %v2030_v49, %v4615_v55  ;;  %v2032_v57 = vpop.f32.mrb[10].mxu0  ;;  %v2454_v25 = vadd.f32 %v2453_v18, %v2452_v60 }
 0x1c9   :  { %v2425_v59 = vmul.f32 %v4708_v43, %v4708_v43  ;;  %v4721_v9 = vadd.f32 %v2032_v57, %v4617_v10  ;;  %v2034_v3 = vpop.f32.mrb[11].mxu0  ;;  %v2427_v10 = vmul.f32 %v4678_v21, %v4678_v21 }
 0x1ca   :  { %v2426_v55 = vmul.f32 %v4712_v1, %v4712_v1  ;;  %v4726_v62 = vadd.f32 %v2034_v3, %v4619_v11  ;;  %2450 = vadd.xlane.f32.xlu0 %v2449_v2  ;;  %v2393_v16 = vadd.f32 %v4712_v1, %v4708_v43  ;;  %2391 = vadd.xlane.f32.xlu1 %v2390_v54 }
 0x1cb   :  { %v2428_v22 = vmul.f32 %v4721_v9, %v4721_v9  ;;  %v2458_v29 = vsel %vm2373_vm0, %v2427_v10, 0.0 }
 0x1cc   :  { %v2395_v61 = vadd.f32 %v2394_v17, %v2393_v16  ;;  %v2457_v19 = vadd.f32 %v2426_v55, %v2425_v59  ;;  %v2429_v11 = vmul.f32 %v4726_v62, %v4726_v62  ;;  %v2398_v24 = vadd.f32 %v4726_v62, %v4721_v9 }
 0x1cd   :  { %v2436_v59 = vmul.f32 %v4685_v31, %v4685_v31 }
 0x1ce   :  { %v2038_v26 = vpop.f32.mrb[12].mxu0  ;;  %2396 = vadd.xlane.f32.xlu0 %v2395_v61  ;;  %2455 = vadd.xlane.f32.xlu1 %v2454_v25  ;;  %v2459_v35 = vadd.f32 %v2458_v29, %v2457_v19  ;;  %v2400_v34 = vadd.f32 %v2399_v30, %v2398_v24  ;;  %v2462_v41 = vadd.f32 %v2429_v11, %v2428_v22 }
 0x1cf   :  { %v4742_v23 = vadd.f32 %v2038_v26, %v4621_v12  ;;  %v2040_v27 = vpop.f32.mrb[13].mxu0  ;;  %v2473_v60 = vsel %vm2373_vm0, %v2436_v59, 0.0 }
 0x1d0   :  { %v4746_v33 = vadd.f32 %v2040_v27, %v4623_v13  ;;  %v2042_v28 = vpop.f32.mrb[14].mxu0  ;;  %v2464_v0 = vadd.f32 %v2463_v5, %v2462_v41 }
 0x1d1   :  { %v2431_v7 = vmul.f32 %v4742_v23, %v4742_v23  ;;  %v4755_v12 = vadd.f32 %v2042_v28, %v4625_v14  ;;  %v2044_v40 = vpop.f32.mrb[15].mxu0  ;;  %v2433_v14 = vmul.f32 %v4673_v20, %v4673_v20 }
 0x1d2   :  { %v2432_v13 = vmul.f32 %v4746_v33, %v4746_v33  ;;  %v4760_v37 = vadd.f32 %v2044_v40, %v4627_v15  ;;  %2460 = vadd.xlane.f32.xlu0 %v2459_v35  ;;  %v2403_v42 = vadd.f32 %v4746_v33, %v4742_v23  ;;  %2401 = vadd.xlane.f32.xlu1 %v2400_v34 }
 0x1d3   :  { %v2434_v49 = vmul.f32 %v4755_v12, %v4755_v12  ;;  %v2468_v58 = vsel %vm2373_vm0, %v2433_v14, 0.0 }
 0x1d4   :  { %v2405_v46 = vadd.f32 %v2404_v8, %v2403_v42  ;;  %v2467_v48 = vadd.f32 %v2432_v13, %v2431_v7  ;;  %v2435_v15 = vmul.f32 %v4760_v37, %v4760_v37  ;;  %v2408_v57 = vadd.f32 %v4760_v37, %v4755_v12 }
 0x1d6   :  { %2406 = vadd.xlane.f32.xlu0 %v2405_v46  ;;  %2465 = vadd.xlane.f32.xlu1 %v2464_v0  ;;  %v2469_v2 = vadd.f32 %v2468_v58, %v2467_v48  ;;  %v2410_v3 = vadd.f32 %v2409_v52, %v2408_v57  ;;  %v2472_v54 = vadd.f32 %v2435_v15, %v2434_v49  ;;  %v2526_v0 = vld [vmem:[%s4931_s2 + $0x8] sm:$0xff] }
 0x1d8   :  { %v2474_v55 = vadd.f32 %v2473_v60, %v2472_v54  ;;  %v2525_v54 = vld [vmem:[%s4931_s2] sm:$0xff] }
 0x1da   :  { %2470 = vadd.xlane.f32.xlu0 %v2469_v2  ;;  %2411 = vadd.xlane.f32.xlu1 %v2410_v3 }
 0x1de   :  { %2475 = vadd.xlane.f32.xlu1 %v2474_v55 }
 0x24b   :  { %v2377_v16 = vpop.xlane.xlu0 %2376 }
 0x24c   :  { %v2477_v18 = vmul.f32 0.00295858, %v2377_v16 }
 0x24e   :  { %v2493_v25 = vmul.f32 %v2477_v18, %v2477_v18 }
 0x24f   :  { %v2446_v17 = vpop.xlane.xlu1 %2445  ;;  %v2382_v10 = vpop.xlane.xlu0 %2381 }
 0x250   :  { %v2478_v61 = vmul.f32 0.00295858, %v2382_v10  ;;  %v2486_v19 = vmul.f32 0.00295858, %v2446_v17 }
 0x252   :  { %v2494_v22 = vmul.f32 %v2478_v61, %v2478_v61 }
 0x253   :  { %v2441_v11 = vpop.xlane.xlu0 %2440  ;;  %v2387_v26 = vpop.xlane.xlu1 %2386 }
 0x254   :  { %v2502_v24 = vsub.f32 %v2486_v19, %v2494_v22  ;;  %v2485_v27 = vmul.f32 0.00295858, %v2441_v11  ;;  %v4781_v29 = vmul.f32 0.00295858, %v2387_v26  ;;  %v2541_v26 = vld [vmem:[%s4932_s3] sm:$0xff] }
 0x256   :  { %v2510_v28 = vadd.f32 1e-05, %v2502_v24  ;;  %v2501_v30 = vsub.f32 %v2485_v27, %v2493_v25  ;;  %v2495_v6 = vmul.f32 %v4781_v29, %v4781_v29  ;;  %v2542_v24 = vld [vmem:[%s4932_s3 + $0x8] sm:$0xff] }
 0x257   :  { %v2451_v35 = vpop.xlane.xlu0 %2450  ;;  %v2392_v40 = vpop.xlane.xlu1 %2391 }
 0x258   :  { %3705 = vrsqrt.f32 %v2510_v28  ;;  %v2509_v7 = vadd.f32 1e-05, %v2501_v30  ;;  %v2487_v34 = vmul.f32 0.00295858, %v2451_v35  ;;  %v4785_v41 = vmul.f32 0.00295858, %v2392_v40 }
 0x25a   :  { %3707 = vrsqrt.f32 %v2509_v7  ;;  %v2503_v13 = vsub.f32 %v2487_v34, %v2495_v6  ;;  %v2496_v5 = vmul.f32 %v4785_v41, %v4785_v41 }
 0x25b   :  { %v2397_v42 = vpop.xlane.xlu0 %2396  ;;  %v2456_v14 = vpop.xlane.xlu1 %2455 }
 0x25c   :  { %v2511_v8 = vadd.f32 1e-05, %v2503_v13  ;;  %v2488_v46 = vmul.f32 0.00295858, %v2456_v14  ;;  %v4789_v48 = vmul.f32 0.00295858, %v2397_v42 }
 0x25e   :  { %v2504_v49 = vsub.f32 %v2488_v46, %v2496_v5  ;;  %3709 = vrsqrt.f32 %v2511_v8  ;;  %v2497_v3 = vmul.f32 %v4789_v48, %v4789_v48  ;;  %v2527_v8 = vld [vmem:[%s4931_s2 + $0x10] sm:$0xff] }
 0x25f   :  { %v2461_v15 = vpop.xlane.xlu0 %2460  ;;  %v2402_v57 = vpop.xlane.xlu1 %2401 }
 0x260   :  { %v2489_v58 = vmul.f32 0.00295858, %v2461_v15  ;;  %v2512_v2 = vadd.f32 1e-05, %v2504_v49  ;;  %v4794_v52 = vmul.f32 0.00295858, %v2402_v57 }
 0x262   :  { %v3706_v59 = vpop.eup %3705  ;;  %3711 = vrsqrt.f32 %v2512_v2  ;;  %v2505_v17 = vsub.f32 %v2489_v58, %v2497_v3  ;;  %v2498_v22 = vmul.f32 %v4794_v52, %v4794_v52 }
 0x263   :  { %v2534_v60 = vmul.f32 %v3706_v59, %v2526_v0  ;;  %v2407_v55 = vpop.xlane.xlu0 %2406  ;;  %v2466_v10 = vpop.xlane.xlu1 %2465  ;;  %v2544_v59 = vld [vmem:[%s4932_s3 + $0x18] sm:$0xff] }
 0x264   :  { %v3708_v16 = vpop.eup %3707  ;;  %v2490_v11 = vmul.f32 0.00295858, %v2466_v10  ;;  %v2513_v30 = vadd.f32 1e-05, %v2505_v17  ;;  %v2483_v42 = vmul.f32 0.00295858, %v2407_v55 }
 0x265   :  { %v2550_v19 = vmul.f32 %v2534_v60, %v2478_v61  ;;  %2572 = vperm.xlu1 %3364, %v2534_v60   ;;  %v2533_v25 = vmul.f32 %v3708_v16, %v2525_v54  ;;  %v2543_v17 = vld [vmem:[%s4932_s3 + $0x10] sm:$0xff]  ;;  %v2530_v10 = vld [vmem:[%s4931_s2 + $0x28] sm:$0xff] }
 0x266   :  { %v2506_v27 = vsub.f32 %v2490_v11, %v2498_v22  ;;  %v2499_v57 = vmul.f32 %v2483_v42, %v2483_v42 }
 0x267   :  { %2567 = vperm.xlu0 %3363, %v2533_v25   ;;  %v2549_v28 = vmul.f32 %v2533_v25, %v2477_v18  ;;  %v2412_v35 = vpop.xlane.xlu1 %2411  ;;  %v2471_v6 = vpop.xlane.xlu0 %2470  ;;  %v2558_v40 = vsub.f32 %v2542_v24, %v2550_v19  ;;  %v2528_v18 = vld [vmem:[%s4931_s2 + $0x18] sm:$0xff]  ;;  %v2546_v24 = vld [vmem:[%s4932_s3 + $0x28] sm:$0xff] }
 0x268   :  { %v2514_v61 = vadd.f32 1e-05, %v2506_v27  ;;  %v2484_v7 = vmul.f32 0.00295858, %v2412_v35  ;;  %v3710_v13 = vpop.eup %3709  ;;  %v2491_v14 = vmul.f32 0.00295858, %v2471_v6 }
 0x269   :  { %v2557_v34 = vsub.f32 %v2541_v26, %v2549_v28  ;;  %v2535_v0 = vmul.f32 %v3710_v13, %v2527_v8  ;;  %v2545_v6 = vld [vmem:[%s4932_s3 + $0x20] sm:$0xff] }
 0x26a   :  { %3713 = vrsqrt.f32 %v2514_v61  ;;  %v2500_v49 = vmul.f32 %v2484_v7, %v2484_v7  ;;  %v2507_v3 = vsub.f32 %v2491_v14, %v2499_v57  ;;  %v2531_v14 = vld [vmem:[%s4931_s2 + $0x30] sm:$0xff] }
 0x26b   :  { %2636 = vperm.xlu0 %3363, %v2558_v40   ;;  %2631 = vperm.xlu1 %3364, %v2557_v34   ;;  %3715 = vrsqrt.f32 %v2513_v30  ;;  %v2476_v5 = vpop.xlane.xlu1 %2475  ;;  %v2551_v55 = vmul.f32 %v2535_v0, %v4781_v29  ;;  %v2529_v29 = vld [vmem:[%s4931_s2 + $0x20] sm:$0xff]  ;;  %v2532_v30 = vld [vmem:[%s4931_s2 + $0x38] sm:$0xff] }
 0x26c   :  { %v3712_v46 = vpop.eup %3711  ;;  %v2492_v15 = vmul.f32 0.00295858, %v2476_v5  ;;  %v2515_v19 = vadd.f32 1e-05, %v2507_v3 }
 0x26d   :  { %v2536_v58 = vmul.f32 %v3712_v46, %v2528_v18  ;;  %v2559_v11 = vsub.f32 %v2543_v17, %v2551_v55  ;;  %v2547_v46 = vld [vmem:[%s4932_s3 + $0x30] sm:$0xff] }
 0x26e   :  { %v2508_v2 = vsub.f32 %v2492_v15, %v2500_v49 }
 0x26f   :  { %2577 = vperm.xlu1 %3364, %v2535_v0   ;;  %v2552_v54 = vmul.f32 %v2536_v58, %v4785_v41 }
 0x270   :  { %v2516_v60 = vadd.f32 1e-05, %v2508_v2 }
 0x271   :  { %v2560_v16 = vsub.f32 %v2544_v59, %v2552_v54 }
 0x272   :  { %3717 = vrsqrt.f32 %v2516_v60 }
 0x273   :  { %2582 = vperm.xlu1 %3364, %v2536_v58   ;;  %2646 = vperm.xlu0 %3363, %v2560_v16   ;;  %3719 = vrsqrt.f32 %v2515_v19 }
 0x274   :  { %v3714_v22 = vpop.eup %3713 }
 0x275   :  { %v3716_v25 = vpop.eup %3715  ;;  %v2538_v41 = vmul.f32 %v3714_v22, %v2530_v10 }
 0x276   :  { %v2537_v27 = vmul.f32 %v3716_v25, %v2529_v29 }
 0x277   :  { %2641 = vperm.xlu1 %3364, %v2559_v11   ;;  %v2554_v26 = vmul.f32 %v2538_v41, %v4794_v52  ;;  %v2548_v52 = vld [vmem:[%s4932_s3 + $0x38] sm:$0xff] }
 0x278   :  { %v2553_v61 = vmul.f32 %v2537_v27, %v4789_v48 }
 0x279   :  { %v2562_v28 = vsub.f32 %v2546_v24, %v2554_v26 }
 0x27a   :  { %v2561_v13 = vsub.f32 %v2545_v6, %v2553_v61 }
 0x27b   :  { %2587 = vperm.xlu1 %3364, %v2537_v27   ;;  %2656 = vperm.xlu0 %3363, %v2562_v28  }
 0x27c   :  { %v3718_v35 = vpop.eup %3717 }
 0x27d   :  { %v2540_v40 = vmul.f32 %v3718_v35, %v2532_v30  ;;  %v3720_v8 = vpop.eup %3719 }
 0x27e   :  { %v2539_v48 = vmul.f32 %v3720_v8, %v2531_v14 }
 0x27f   :  { %2592 = vperm.xlu1 %3364, %v2538_v41   ;;  %v2556_v34 = vmul.f32 %v2540_v40, %v2484_v7 }
 0x280   :  { %v2555_v5 = vmul.f32 %v2539_v48, %v2483_v42 }
 0x281   :  { %v2564_v18 = vsub.f32 %v2548_v52, %v2556_v34 }
 0x282   :  { %v2563_v49 = vsub.f32 %v2547_v46, %v2555_v5 }
 0x283   :  { %2651 = vperm.xlu1 %3364, %v2561_v13   ;;  %2666 = vperm.xlu0 %3363, %v2564_v18  }
 0x287   :  { %2597 = vperm.xlu1 %3364, %v2539_v48  }
 0x28b   :  { %2602 = vperm.xlu1 %3364, %v2540_v40  }
 0x28f   :  { %2661 = vperm.xlu1 %3364, %v2563_v49  }
 0x2e4   :  { %v2573_v7 = vpop.permute.xlu1 %2572 }
 0x2e5   :  { %v2608_v0 = vmul.f32 %v4640_v50, %v2573_v7  ;;  %v2609_v57 = vmul.f32 %v4645_v53, %v2573_v7  ;;  %v2610_v58 = vmul.f32 %v2573_v7, %v4647_v56 }
 0x2e6   :  { %v2568_v15 = vpop.permute.xlu0 %2567 }
 0x2e7   :  { %v2605_v2 = vmul.f32 %v4630_v36, %v2568_v15  ;;  %v2606_v59 = vmul.f32 %v4635_v44, %v2568_v15  ;;  %v2607_v42 = vmul.f32 %v2568_v15, %v4637_v47 }
 0x2ea   :  { %v2637_v3 = vpop.permute.xlu0 %2636  ;;  %v2632_v54 = vpop.permute.xlu1 %2631 }
 0x2eb   :  { %v2672_v60 = vadd.f32 %v2637_v3, %v2608_v0  ;;  %v2673_v55 = vadd.f32 %v2637_v3, %v2609_v57  ;;  %v2674_v16 = vadd.f32 %v2637_v3, %v2610_v58  ;;  %v2669_v17 = vadd.f32 %v2632_v54, %v2605_v2 }
 0x2ec   :  { %v2670_v10 = vadd.f32 %v2632_v54, %v2606_v59  ;;  %v2671_v19 = vadd.f32 %v2632_v54, %v2607_v42 }
 0x2ed   :  { %v2696_v22 = vmax.f32 %v2672_v60, 0.0  ;;  %v2697_v50 = vmax.f32 %v2673_v55, 0.0  ;;  %v2698_v11 = vmax.f32 %v2674_v16, 0.0  ;;  %v2693_v53 = vmax.f32 %v2669_v17, 0.0 }
 0x2ee   :  { %v2694_v56 = vmax.f32 %v2670_v10, 0.0  ;;  %v2695_v25 = vmax.f32 %v2671_v19, 0.0  ;;  %v2578_v36 = vpop.permute.xlu1 %2577 }
 0x2ef   :  { %v3088_v41 = vpack.c.bf16 %v2697_v50, %v2696_v22  ;;  %v3089_v44 = vpack.c.bf16 %v2698_v11, %v2698_v11  ;;  %v2611_v35 = vmul.f32 %v4671_v63, %v2578_v36  ;;  %v2612_v52 = vmul.f32 %v4676_v51, %v2578_v36 }
 0x2f0   :  { %v3086_v29 = vpack.c.bf16 %v2694_v56, %v2693_v53  ;;  %v3087_v47 = vpack.c.bf16 %v2695_v25, %v2695_v25  ;;  %v2613_v34 = vmul.f32 %v2578_v36, %v4632_v39 }
 0x2f1   :  { %2800 = vst [vmem:[%s4933_s4 + $0xc] sm:$0xff] %v3088_v41  ;;  %2801 = vst.msk [vmem:[%s4933_s4 + $0x14] sm:$0xf] %vm2798_vm1, %v3089_v44 }
 0x2f2   :  { %2797 = vst [vmem:[%s4933_s4] sm:$0xff] %v3086_v29  ;;  %2799 = vst.msk [vmem:[%s4933_s4 + $0x8] sm:$0xf] %vm2798_vm1, %v3087_v47  ;;  %v2583_v24 = vpop.permute.xlu1 %2582  ;;  %v2647_v30 = vpop.permute.xlu0 %2646 }
 0x2f3   :  { %v2614_v26 = vmul.f32 %v4683_v4, %v2583_v24  ;;  %v2615_v27 = vmul.f32 %v4691_v32, %v2583_v24  ;;  %v2616_v28 = vmul.f32 %v2583_v24, %v4642_v45 }
 0x2f5   :  { %v2678_v61 = vadd.f32 %v2647_v30, %v2614_v26  ;;  %v2679_v6 = vadd.f32 %v2647_v30, %v2615_v27  ;;  %v2680_v40 = vadd.f32 %v2647_v30, %v2616_v28 }
 0x2f6   :  { %v2642_v13 = vpop.permute.xlu1 %2641 }
 0x2f7   :  { %v2702_v8 = vmax.f32 %v2678_v61, 0.0  ;;  %v2703_v18 = vmax.f32 %v2679_v6, 0.0  ;;  %v2704_v14 = vmax.f32 %v2680_v40, 0.0  ;;  %v2675_v48 = vadd.f32 %v2642_v13, %v2611_v35 }
 0x2f8   :  { %v2676_v4 = vadd.f32 %v2642_v13, %v2612_v52  ;;  %v2677_v5 = vadd.f32 %v2642_v13, %v2613_v34 }
 0x2f9   :  { %v3092_v32 = vpack.c.bf16 %v2703_v18, %v2702_v8  ;;  %v3093_v46 = vpack.c.bf16 %v2704_v14, %v2704_v14  ;;  %v2699_v45 = vmax.f32 %v2675_v48, 0.0 }
 0x2fa   :  { %v2700_v49 = vmax.f32 %v2676_v4, 0.0  ;;  %v2701_v7 = vmax.f32 %v2677_v5, 0.0  ;;  %v2588_v63 = vpop.permute.xlu1 %2587  ;;  %v2657_v2 = vpop.permute.xlu0 %2656 }
 0x2fb   :  { %2804 = vst [vmem:[%s4933_s4 + $0x24] sm:$0xff] %v3092_v32  ;;  %2805 = vst.msk [vmem:[%s4933_s4 + $0x2c] sm:$0xf] %vm2798_vm1, %v3093_v46  ;;  %v2617_v59 = vmul.f32 %v4708_v43, %v2588_v63  ;;  %v2618_v60 = vmul.f32 %v4712_v1, %v2588_v63  ;;  %v2619_v55 = vmul.f32 %v2588_v63, %v4678_v21 }
 0x2fc   :  { %v3090_v39 = vpack.c.bf16 %v2700_v49, %v2699_v45  ;;  %v3091_v51 = vpack.c.bf16 %v2701_v7, %v2701_v7 }
 0x2fe   :  { %2802 = vst [vmem:[%s4933_s4 + $0x18] sm:$0xff] %v3090_v39  ;;  %2803 = vst.msk [vmem:[%s4933_s4 + $0x20] sm:$0xf] %vm2798_vm1, %v3091_v51  ;;  %v2593_v15 = vpop.permute.xlu1 %2592 }
 0x2ff   :  { %v2620_v0 = vmul.f32 %v4721_v9, %v2593_v15  ;;  %v2621_v57 = vmul.f32 %v4726_v62, %v2593_v15  ;;  %v2622_v58 = vmul.f32 %v2593_v15, %v4693_v38 }
 0x301   :  { %v2684_v42 = vadd.f32 %v2657_v2, %v2620_v0  ;;  %v2685_v3 = vadd.f32 %v2657_v2, %v2621_v57  ;;  %v2686_v54 = vadd.f32 %v2657_v2, %v2622_v58 }
 0x302   :  { %v2652_v16 = vpop.permute.xlu1 %2651  ;;  %v2667_v29 = vpop.permute.xlu0 %2666 }
 0x303   :  { %v2708_v17 = vmax.f32 %v2684_v42, 0.0  ;;  %v2709_v10 = vmax.f32 %v2685_v3, 0.0  ;;  %v2710_v19 = vmax.f32 %v2686_v54, 0.0  ;;  %v2681_v22 = vadd.f32 %v2652_v16, %v2617_v59 }
 0x304   :  { %v2682_v9 = vadd.f32 %v2652_v16, %v2618_v60  ;;  %v2683_v50 = vadd.f32 %v2652_v16, %v2619_v55 }
 0x305   :  { %v3096_v62 = vpack.c.bf16 %v2709_v10, %v2708_v17  ;;  %v3097_v11 = vpack.c.bf16 %v2710_v19, %v2710_v19  ;;  %v2705_v38 = vmax.f32 %v2681_v22, 0.0 }
 0x306   :  { %v2706_v53 = vmax.f32 %v2682_v9, 0.0  ;;  %v2707_v56 = vmax.f32 %v2683_v50, 0.0  ;;  %v2598_v43 = vpop.permute.xlu1 %2597 }
 0x307   :  { %2808 = vst [vmem:[%s4933_s4 + $0x3c] sm:$0xff] %v3096_v62  ;;  %2809 = vst.msk [vmem:[%s4933_s4 + $0x44] sm:$0xf] %vm2798_vm1, %v3097_v11  ;;  %v2623_v47 = vmul.f32 %v4742_v23, %v2598_v43  ;;  %v2624_v28 = vmul.f32 %v4746_v33, %v2598_v43  ;;  %v2625_v30 = vmul.f32 %v2598_v43, %v4673_v20 }
 0x308   :  { %v3094_v21 = vpack.c.bf16 %v2706_v53, %v2705_v38  ;;  %v3095_v1 = vpack.c.bf16 %v2707_v56, %v2707_v56 }
 0x30a   :  { %2806 = vst [vmem:[%s4933_s4 + $0x30] sm:$0xff] %v3094_v21  ;;  %2807 = vst.msk [vmem:[%s4933_s4 + $0x38] sm:$0xf] %vm2798_vm1, %v3095_v1  ;;  %v2603_v25 = vpop.permute.xlu1 %2602 }
 0x30b   :  { %v2626_v36 = vmul.f32 %v4755_v12, %v2603_v25  ;;  %v2627_v41 = vmul.f32 %v4760_v37, %v2603_v25  ;;  %v2628_v44 = vmul.f32 %v2603_v25, %v4685_v31 }
 0x30d   :  { %v2690_v24 = vadd.f32 %v2667_v29, %v2626_v36  ;;  %v2691_v26 = vadd.f32 %v2667_v29, %v2627_v41  ;;  %v2692_v27 = vadd.f32 %v2667_v29, %v2628_v44 }
 0x30e   :  { %v2662_v35 = vpop.permute.xlu1 %2661 }
 0x30f   :  { %v2714_v61 = vmax.f32 %v2690_v24, 0.0  ;;  %v2715_v6 = vmax.f32 %v2691_v26, 0.0  ;;  %v2716_v40 = vmax.f32 %v2692_v27, 0.0  ;;  %v2687_v52 = vadd.f32 %v2662_v35, %v2623_v47 }
 0x310   :  { %v2688_v12 = vadd.f32 %v2662_v35, %v2624_v28  ;;  %v2689_v34 = vadd.f32 %v2662_v35, %v2625_v30 }
 0x311   :  { %v3100_v37 = vpack.c.bf16 %v2715_v6, %v2714_v61  ;;  %v3101_v13 = vpack.c.bf16 %v2716_v40, %v2716_v40  ;;  %v2711_v31 = vmax.f32 %v2687_v52, 0.0 }
 0x312   :  { %v2712_v8 = vmax.f32 %v2688_v12, 0.0  ;;  %v2713_v18 = vmax.f32 %v2689_v34, 0.0 }
 0x313   :  { %2812 = vst [vmem:[%s4933_s4 + $0x54] sm:$0xff] %v3100_v37  ;;  %2813 = vst.msk [vmem:[%s4933_s4 + $0x5c] sm:$0xf] %vm2798_vm1, %v3101_v13 }
 0x314   :  { %v3098_v20 = vpack.c.bf16 %v2712_v8, %v2711_v31  ;;  %v3099_v23 = vpack.c.bf16 %v2713_v18, %v2713_v18 }
 0x316   :  { %2810 = vst [vmem:[%s4933_s4 + $0x48] sm:$0xff] %v3098_v20  ;;  %2811 = vst.msk [vmem:[%s4933_s4 + $0x50] sm:$0xf] %vm2798_vm1, %v3099_v23 }

// kernel: vae_forward.11
= control target key start
LH: loop header
LB: loop body
LE: loop exit
PB: predicated region body
PF: predicated region fallthrough
CT: control target
= control target key end

     0   :  { %v920_v36 = vlaneseq  ;;  %v8830_v37 = vmov 1966171168   ;;  %s11499_s0 = inlined_call_operand.vmem [shape: bf16[1024,1568], index: 0, kind: input, shape index: {}]   ;;  %s11500_s1 = inlined_call_operand.vmem [shape: bf16[1,1024], index: 1, kind: input, shape index: {}]   ;;  %s11501_s2 = inlined_call_operand.<no memory space> [shape: f32[1,1], index: 2, kind: input, shape index: {}]   ;;  %s11502_s3 = inlined_call_operand.vmem [shape: f32[1,1568], index: 3, kind: output, shape index: {}]  }
   0x1   :  { %v7561_v0 = vld [vmem:[%s11499_s0 + $0x4] ss:$52 sps:$4 sm:$0xff]   ;;  %v7563_v1 = vld [vmem:[%s11499_s0 + $0xc] ss:$52 sps:$4 sm:$0xff]   ;;  %v7566_v3 = vld [vmem:[%s11499_s0 + $0x8] ss:$52 sps:$4 sm:$0xff]   ;;  %v927_v38 = vunpack.c.l.s4 %v8830_v37 }
   0x2   :  { %5206 = vmatprep.subr.bf16.mxu0 %v7561_v0  ;;  %v7565_v2 = vld [vmem:[%s11499_s0] ss:$52 sps:$4 sm:$0xff]   ;;  %5370 = vmatprep.subr.bf16.mxu1 %v7563_v1  ;;  %v7571_v6 = vld [vmem:[%s11499_s0 + $0x68] ss:$52 sps:$4 sm:$0xff]   ;;  %v7572_v7 = vld [vmem:[%s11499_s0 + $0x70] ss:$52 sps:$4 sm:$0xff]  }
   0x3   :  { %v7567_v4 = vld [vmem:[%s11499_s0 + $0x6c] ss:$52 sps:$4 sm:$0xff]   ;;  %5207 = vmatpush1.bf16.msra.mxu0 %v7565_v2  ;;  %5371 = vmatpush1.bf16.msra.mxu1 %v7566_v3  ;;  %v7569_v5 = vld [vmem:[%s11499_s0 + $0x74] ss:$52 sps:$4 sm:$0xff]   ;;  %v7575_v9 = vld [vmem:[%s11499_s0 + $0xdc] ss:$52 sps:$4 sm:$0xff]   ;;  %v928_v43 = vunpack.c.0.s8 %v927_v38 }
   0x4   :  { %5208 = vmatprep.subr.bf16.mxu0 %v7567_v4  ;;  %5372 = vmatprep.subr.bf16.mxu1 %v7569_v5  ;;  %v7573_v8 = vld [vmem:[%s11499_s0 + $0xd4] ss:$52 sps:$4 sm:$0xff]   ;;  %v7577_v10 = vld [vmem:[%s11499_s0 + $0xd0] ss:$52 sps:$4 sm:$0xff]   ;;  %v7578_v11 = vld [vmem:[%s11499_s0 + $0xd8] ss:$52 sps:$4 sm:$0xff]  }
   0x5   :  { %v7579_v12 = vld [vmem:[%s11499_s0 + $0x13c] ss:$52 sps:$4 sm:$0xff]   ;;  %v7581_v13 = vld [vmem:[%s11499_s0 + $0x144] ss:$52 sps:$4 sm:$0xff]   ;;  %v7584_v15 = vld [vmem:[%s11499_s0 + $0x140] ss:$52 sps:$4 sm:$0xff]  }
   0x6   :  { %v7583_v14 = vld [vmem:[%s11499_s0 + $0x138] ss:$52 sps:$4 sm:$0xff]   ;;  %v7589_v18 = vld [vmem:[%s11499_s0 + $0x1a0] ss:$52 sps:$4 sm:$0xff]   ;;  %v7590_v19 = vld [vmem:[%s11499_s0 + $0x1a8] ss:$52 sps:$4 sm:$0xff]  }
   0x7   :  { %5209 = vmatpush1.bf16.msra.mxu0 %v7571_v6  ;;  %5373 = vmatpush1.bf16.msra.mxu1 %v7572_v7  ;;  %v7585_v16 = vld [vmem:[%s11499_s0 + $0x1a4] ss:$52 sps:$4 sm:$0xff]   ;;  %v7587_v17 = vld [vmem:[%s11499_s0 + $0x1ac] ss:$52 sps:$4 sm:$0xff]   ;;  %v7593_v21 = vld [vmem:[%s11499_s0 + $0x214] ss:$52 sps:$4 sm:$0xff]  }
   0x8   :  { %5210 = vmatprep.subr.bf16.mxu0 %v7573_v8  ;;  %5374 = vmatprep.subr.bf16.mxu1 %v7575_v9  ;;  %v7591_v20 = vld [vmem:[%s11499_s0 + $0x20c] ss:$52 sps:$4 sm:$0xff]   ;;  %v7595_v22 = vld [vmem:[%s11499_s0 + $0x208] ss:$52 sps:$4 sm:$0xff]   ;;  %v7596_v23 = vld [vmem:[%s11499_s0 + $0x210] ss:$52 sps:$4 sm:$0xff]  }
   0x9   :  { %v7597_v24 = vld [vmem:[%s11499_s0 + $0x274] ss:$52 sps:$4 sm:$0xff]   ;;  %v7599_v25 = vld [vmem:[%s11499_s0 + $0x27c] ss:$52 sps:$4 sm:$0xff]   ;;  %v7602_v27 = vld [vmem:[%s11499_s0 + $0x278] ss:$52 sps:$4 sm:$0xff]  }
   0xa   :  { %v7601_v26 = vld [vmem:[%s11499_s0 + $0x270] ss:$52 sps:$4 sm:$0xff]   ;;  %v7607_v30 = vld [vmem:[%s11499_s0 + $0x2d8] ss:$52 sps:$4 sm:$0xff]   ;;  %v7608_v31 = vld [vmem:[%s11499_s0 + $0x2e0] ss:$52 sps:$4 sm:$0xff]  }
   0xb   :  { %5211 = vmatpush1.bf16.msra.mxu0 %v7577_v10  ;;  %5375 = vmatpush1.bf16.msra.mxu1 %v7578_v11  ;;  %v7603_v28 = vld [vmem:[%s11499_s0 + $0x2dc] ss:$52 sps:$4 sm:$0xff]   ;;  %v7605_v29 = vld [vmem:[%s11499_s0 + $0x2e4] ss:$52 sps:$4 sm:$0xff]   ;;  %v7611_v33 = vld [vmem:[%s11499_s0 + $0x34c] ss:$52 sps:$4 sm:$0xff]  }
   0xc   :  { %5212 = vmatprep.subr.bf16.mxu0 %v7579_v12  ;;  %5376 = vmatprep.subr.bf16.mxu1 %v7581_v13  ;;  %v7609_v32 = vld [vmem:[%s11499_s0 + $0x344] ss:$52 sps:$4 sm:$0xff]   ;;  %v7613_v34 = vld [vmem:[%s11499_s0 + $0x340] ss:$52 sps:$4 sm:$0xff]   ;;  %v7614_v35 = vld [vmem:[%s11499_s0 + $0x348] ss:$52 sps:$4 sm:$0xff]  }
   0xd   :  { %v7615_v39 = vld [vmem:[%s11499_s0 + $0x3ac] ss:$52 sps:$4 sm:$0xff]   ;;  %v7617_v40 = vld [vmem:[%s11499_s0 + $0x3b4] ss:$52 sps:$4 sm:$0xff]   ;;  %v8970_v42 = vshrl.u32 %v920_v36, 7  ;;  %vm6534_vm0 = vcmp.lt.s32.totalorder %v920_v36, 544 }
   0xe   :  { %v7619_v41 = vld [vmem:[%s11499_s0 + $0x3a8] ss:$52 sps:$4 sm:$0xff]   ;;  %v7620_v44 = vld [vmem:[%s11499_s0 + $0x3b0] ss:$52 sps:$4 sm:$0xff]   ;;  %v7626_v48 = vld [vmem:[%s11499_s0 + $0x418] ss:$52 sps:$4 sm:$0xff]  }
   0xf   :  { %5213 = vmatpush1.bf16.msra.mxu0 %v7583_v14  ;;  %5377 = vmatpush1.bf16.msra.mxu1 %v7584_v15  ;;  %v7621_v45 = vld [vmem:[%s11499_s0 + $0x414] ss:$52 sps:$4 sm:$0xff]   ;;  %v7623_v46 = vld [vmem:[%s11499_s0 + $0x41c] ss:$52 sps:$4 sm:$0xff]   ;;  %v8988_v49 = vsub.s32 %v928_v43, %v8970_v42  ;;  %v7629_v51 = vld [vmem:[%s11499_s0 + $0x484] ss:$52 sps:$4 sm:$0xff]  }
  0x10   :  { %5214 = vmatprep.subr.bf16.mxu0 %v7585_v16  ;;  %5378 = vmatprep.subr.bf16.mxu1 %v7587_v17  ;;  %v7625_v47 = vld [vmem:[%s11499_s0 + $0x410] ss:$52 sps:$4 sm:$0xff]   ;;  %v7631_v53 = vld [vmem:[%s11499_s0 + $0x478] ss:$52 sps:$4 sm:$0xff]   ;;  %v7632_v55 = vld [vmem:[%s11499_s0 + $0x480] ss:$52 sps:$4 sm:$0xff]  }
  0x11   :  { %v7627_v50 = vld [vmem:[%s11499_s0 + $0x47c] ss:$52 sps:$4 sm:$0xff]   ;;  %v8999_v52 = vld [vmem:[%s11500_s1] sm:$0xff]  ;;  %v7641_v63 = vld [vmem:[%s11499_s0 + $0x554] ss:$52 sps:$4 sm:$0xff]  }
  0x12   :  { %v932_v54 = vrot.slane %v8999_v52, %v8988_v49  ;;  %v7633_v56 = vld [vmem:[%s11499_s0 + $0x4e4] ss:$52 sps:$4 sm:$0xff]   ;;  %v7635_v57 = vld [vmem:[%s11499_s0 + $0x4ec] ss:$52 sps:$4 sm:$0xff]   ;;  %v7638_v61 = vld [vmem:[%s11499_s0 + $0x4e8] ss:$52 sps:$4 sm:$0xff]  }
  0x13   :  { %5215 = vmatpush1.bf16.msra.mxu0 %v7589_v18  ;;  %5379 = vmatpush1.bf16.msra.mxu1 %v7590_v19  ;;  %v7637_v59 = vld [vmem:[%s11499_s0 + $0x4e0] ss:$52 sps:$4 sm:$0xff]   ;;  %v7643_v0 = vld [vmem:[%s11499_s0 + $0x548] ss:$52 sps:$4 sm:$0xff]   ;;  %v7644_v1 = vld [vmem:[%s11499_s0 + $0x550] ss:$52 sps:$4 sm:$0xff]  }
  0x14   :  { %5216 = vmatprep.subr.bf16.mxu0 %v7591_v20  ;;  %5380 = vmatprep.subr.bf16.mxu1 %v7593_v21  ;;  %v940_v58 = vcombine.high %v932_v54, %v932_v54  ;;  %v7639_v62 = vld [vmem:[%s11499_s0 + $0x54c] ss:$52 sps:$4 sm:$0xff]   ;;  %v7645_v2 = vld [vmem:[%s11499_s0 + $0x5b4] ss:$52 sps:$4 sm:$0xff]   ;;  %v7647_v3 = vld [vmem:[%s11499_s0 + $0x5bc] ss:$52 sps:$4 sm:$0xff]   ;;  %v9072_v13 = vrot.slane %v932_v54, %v8988_v49 }
  0x15   :  { %v7649_v4 = vld [vmem:[%s11499_s0 + $0x5b0] ss:$52 sps:$4 sm:$0xff]   ;;  %v7650_v5 = vld [vmem:[%s11499_s0 + $0x5b8] ss:$52 sps:$4 sm:$0xff]   ;;  %v7656_v9 = vld [vmem:[%s11499_s0 + $0x620] ss:$52 sps:$4 sm:$0xff]  }
  0x16   :  { %v9019_v60 = vrot.slane %v940_v58, %v8988_v49  ;;  %v7651_v6 = vld [vmem:[%s11499_s0 + $0x61c] ss:$52 sps:$4 sm:$0xff]   ;;  %v7653_v7 = vld [vmem:[%s11499_s0 + $0x624] ss:$52 sps:$4 sm:$0xff]   ;;  %v7662_v11 = vld [vmem:[%s11499_s0 + $0x68c] ss:$52 sps:$4 sm:$0xff]  }
  0x17   :  { %5217 = vmatpush1.bf16.msra.mxu0 %v7595_v22  ;;  %5381 = vmatpush1.bf16.msra.mxu1 %v7596_v23  ;;  %v7655_v8 = vld [vmem:[%s11499_s0 + $0x618] ss:$52 sps:$4 sm:$0xff]   ;;  %v7657_v12 = vld [vmem:[%s11499_s0 + $0x680] ss:$52 sps:$4 sm:$0xff]   ;;  %v7660_v14 = vld [vmem:[%s11499_s0 + $0x688] ss:$52 sps:$4 sm:$0xff]  }
  0x18   :  { %5218 = vmatprep.subr.bf16.mxu0 %v7597_v24  ;;  %5382 = vmatprep.subr.bf16.mxu1 %v7599_v25  ;;  %v7659_v10 = vld [vmem:[%s11499_s0 + $0x684] ss:$52 sps:$4 sm:$0xff]   ;;  %v7665_v15 = vld [vmem:[%s11499_s0 + $0x6ec] ss:$52 sps:$4 sm:$0xff]   ;;  %v7668_v16 = vld [vmem:[%s11499_s0 + $0x6f4] ss:$52 sps:$4 sm:$0xff]   ;;  %v9085_v17 = vcombine.high %v9019_v60, %v9019_v60 }
  0x19   :  { %5238 = vmatprep.mubr.bf16.mxu0 %v9019_v60  ;;  %5402 = vmatprep.mubr.bf16.mxu1 %v9019_v60  ;;  %v7663_v18 = vld [vmem:[%s11499_s0 + $0x6e8] ss:$52 sps:$4 sm:$0xff]   ;;  %v7666_v19 = vld [vmem:[%s11499_s0 + $0x6f0] ss:$52 sps:$4 sm:$0xff]   ;;  %v7672_v23 = vld [vmem:[%s11499_s0 + $0x758] ss:$52 sps:$4 sm:$0xff]  }
  0x1a   :  { %v7671_v20 = vld [vmem:[%s11499_s0 + $0x754] ss:$52 sps:$4 sm:$0xff]   ;;  %v7674_v21 = vld [vmem:[%s11499_s0 + $0x75c] ss:$52 sps:$4 sm:$0xff]   ;;  %v7680_v25 = vld [vmem:[%s11499_s0 + $0x7c4] ss:$52 sps:$4 sm:$0xff]  }
  0x1b   :  { %5219 = vmatpush1.bf16.msra.mxu0 %v7601_v26  ;;  %5383 = vmatpush1.bf16.msra.mxu1 %v7602_v27  ;;  %v7669_v22 = vld [vmem:[%s11499_s0 + $0x750] ss:$52 sps:$4 sm:$0xff]   ;;  %v7675_v26 = vld [vmem:[%s11499_s0 + $0x7b8] ss:$52 sps:$4 sm:$0xff]   ;;  %v7678_v27 = vld [vmem:[%s11499_s0 + $0x7c0] ss:$52 sps:$4 sm:$0xff]  }
  0x1c   :  { %5220 = vmatprep.subr.bf16.mxu0 %v7603_v28  ;;  %5384 = vmatprep.subr.bf16.mxu1 %v7605_v29  ;;  %v7677_v24 = vld [vmem:[%s11499_s0 + $0x7bc] ss:$52 sps:$4 sm:$0xff]   ;;  %v7683_v28 = vld [vmem:[%s11499_s0 + $0x824] ss:$52 sps:$4 sm:$0xff]   ;;  %v7686_v29 = vld [vmem:[%s11499_s0 + $0x82c] ss:$52 sps:$4 sm:$0xff]  }
  0x1d   :  { %v7695_v37 = vld [vmem:[%s11499_s0 + $0x8f4] ss:$52 sps:$4 sm:$0xff]   ;;  %v7698_v38 = vld [vmem:[%s11499_s0 + $0x8fc] ss:$52 sps:$4 sm:$0xff]   ;;  %v7704_v43 = vld [vmem:[%s11499_s0 + $0x964] ss:$52 sps:$4 sm:$0xff]  }
  0x1e   :  { %v7711_v54 = vld [vmem:[%s11499_s0 + $0xa28] ss:$52 sps:$4 sm:$0xff]   ;;  %v7717_v58 = vld [vmem:[%s11499_s0 + $0xa90] ss:$52 sps:$4 sm:$0xff]  }
  0x1f   :  { %5221 = vmatpush1.bf16.msra.mxu0 %v7607_v30  ;;  %5385 = vmatpush1.bf16.msra.mxu1 %v7608_v31  ;;  %v7681_v30 = vld [vmem:[%s11499_s0 + $0x820] ss:$52 sps:$4 sm:$0xff]   ;;  %v7684_v31 = vld [vmem:[%s11499_s0 + $0x828] ss:$52 sps:$4 sm:$0xff]  }
  0x20   :  { %5222 = vmatprep.subr.bf16.mxu0 %v7609_v32  ;;  %5386 = vmatprep.subr.bf16.mxu1 %v7611_v33  ;;  %v7689_v32 = vld [vmem:[%s11499_s0 + $0x88c] ss:$52 sps:$4 sm:$0xff]   ;;  %v7692_v33 = vld [vmem:[%s11499_s0 + $0x894] ss:$52 sps:$4 sm:$0xff]  }
  0x23   :  { %5223 = vmatpush1.bf16.msra.mxu0 %v7613_v34  ;;  %5387 = vmatpush1.bf16.msra.mxu1 %v7614_v35  ;;  %v7687_v34 = vld [vmem:[%s11499_s0 + $0x888] ss:$52 sps:$4 sm:$0xff]   ;;  %v7690_v35 = vld [vmem:[%s11499_s0 + $0x890] ss:$52 sps:$4 sm:$0xff]  }
  0x24   :  { %5224 = vmatprep.subr.bf16.mxu0 %v7615_v39  ;;  %5388 = vmatprep.subr.bf16.mxu1 %v7617_v40  ;;  %v7693_v39 = vld [vmem:[%s11499_s0 + $0x8f0] ss:$52 sps:$4 sm:$0xff]   ;;  %v7696_v40 = vld [vmem:[%s11499_s0 + $0x8f8] ss:$52 sps:$4 sm:$0xff]  }
  0x27   :  { %5225 = vmatpush1.bf16.msra.mxu0 %v7619_v41  ;;  %5389 = vmatpush1.bf16.msra.mxu1 %v7620_v44  ;;  %v7701_v41 = vld [vmem:[%s11499_s0 + $0x95c] ss:$52 sps:$4 sm:$0xff]   ;;  %v7699_v44 = vld [vmem:[%s11499_s0 + $0x958] ss:$52 sps:$4 sm:$0xff]  }
  0x28   :  { %5226 = vmatprep.subr.bf16.mxu0 %v7621_v45  ;;  %5390 = vmatprep.subr.bf16.mxu1 %v7623_v46  ;;  %v7702_v45 = vld [vmem:[%s11499_s0 + $0x960] ss:$52 sps:$4 sm:$0xff]   ;;  %v7707_v46 = vld [vmem:[%s11499_s0 + $0x9c4] ss:$52 sps:$4 sm:$0xff]  }
  0x2b   :  { %5227 = vmatpush1.bf16.msra.mxu0 %v7625_v47  ;;  %5391 = vmatpush1.bf16.msra.mxu1 %v7626_v48  ;;  %v7710_v47 = vld [vmem:[%s11499_s0 + $0x9cc] ss:$52 sps:$4 sm:$0xff]  }
  0x2c   :  { %5228 = vmatprep.subr.bf16.mxu0 %v7627_v50  ;;  %5392 = vmatprep.subr.bf16.mxu1 %v7629_v51  ;;  %v7705_v48 = vld [vmem:[%s11499_s0 + $0x9c0] ss:$52 sps:$4 sm:$0xff]   ;;  %v7708_v50 = vld [vmem:[%s11499_s0 + $0x9c8] ss:$52 sps:$4 sm:$0xff]  }
  0x2d   :  { %v7713_v51 = vld [vmem:[%s11499_s0 + $0xa2c] ss:$52 sps:$4 sm:$0xff]  }
  0x2f   :  { %5229 = vmatpush1.bf16.msra.mxu0 %v7631_v53  ;;  %5393 = vmatpush1.bf16.msra.mxu1 %v7632_v55  ;;  %v7716_v53 = vld [vmem:[%s11499_s0 + $0xa34] ss:$52 sps:$4 sm:$0xff]   ;;  %v7714_v55 = vld [vmem:[%s11499_s0 + $0xa30] ss:$52 sps:$4 sm:$0xff]  }
  0x30   :  { %5230 = vmatprep.subr.bf16.mxu0 %v7633_v56  ;;  %5394 = vmatprep.subr.bf16.mxu1 %v7635_v57  ;;  %v7719_v56 = vld [vmem:[%s11499_s0 + $0xa94] ss:$52 sps:$4 sm:$0xff]   ;;  %v7722_v57 = vld [vmem:[%s11499_s0 + $0xa9c] ss:$52 sps:$4 sm:$0xff]  }
  0x33   :  { %5231 = vmatpush1.bf16.msra.mxu0 %v7637_v59  ;;  %5395 = vmatpush1.bf16.msra.mxu1 %v7638_v61  ;;  %v7720_v59 = vld [vmem:[%s11499_s0 + $0xa98] ss:$52 sps:$4 sm:$0xff]   ;;  %v7725_v61 = vld [vmem:[%s11499_s0 + $0xafc] ss:$52 sps:$4 sm:$0xff]  }
  0x34   :  { %5232 = vmatprep.subr.bf16.mxu0 %v7639_v62  ;;  %5396 = vmatprep.subr.bf16.mxu1 %v7641_v63  ;;  %v7728_v62 = vld [vmem:[%s11499_s0 + $0xb04] ss:$52 sps:$4 sm:$0xff]  }
  0x35   :  { %v7723_v63 = vld [vmem:[%s11499_s0 + $0xaf8] ss:$52 sps:$4 sm:$0xff]  }
  0x37   :  { %5233 = vmatpush1.bf16.msra.mxu0 %v7643_v0  ;;  %5397 = vmatpush1.bf16.msra.mxu1 %v7644_v1  ;;  %v7726_v0 = vld [vmem:[%s11499_s0 + $0xb00] ss:$52 sps:$4 sm:$0xff]   ;;  %v7731_v1 = vld [vmem:[%s11499_s0 + $0xb64] ss:$52 sps:$4 sm:$0xff]  }
  0x38   :  { %5234 = vmatprep.subr.bf16.mxu0 %v7645_v2  ;;  %5398 = vmatprep.subr.bf16.mxu1 %v7647_v3  ;;  %v7734_v2 = vld [vmem:[%s11499_s0 + $0xb6c] ss:$52 sps:$4 sm:$0xff]  }
  0x39   :  { %v7729_v3 = vld [vmem:[%s11499_s0 + $0xb60] ss:$52 sps:$4 sm:$0xff]  }
  0x3b   :  { %5235 = vmatpush1.bf16.msra.mxu0 %v7649_v4  ;;  %5399 = vmatpush1.bf16.msra.mxu1 %v7650_v5  ;;  %v7732_v4 = vld [vmem:[%s11499_s0 + $0xb68] ss:$52 sps:$4 sm:$0xff]   ;;  %v7737_v5 = vld [vmem:[%s11499_s0 + $0xbcc] ss:$52 sps:$4 sm:$0xff]  }
  0x3c   :  { %5236 = vmatprep.subr.bf16.mxu0 %v7651_v6  ;;  %5400 = vmatprep.subr.bf16.mxu1 %v7653_v7  ;;  %v7740_v6 = vld [vmem:[%s11499_s0 + $0xbd4] ss:$52 sps:$4 sm:$0xff]  }
  0x3d   :  { %v7735_v7 = vld [vmem:[%s11499_s0 + $0xbc8] ss:$52 sps:$4 sm:$0xff]  }
  0x3f   :  { %5237 = vmatpush1.bf16.msra.mxu0 %v7655_v8  ;;  %5401 = vmatpush1.bf16.msra.mxu1 %v7656_v9  ;;  %v7738_v8 = vld [vmem:[%s11499_s0 + $0xbd0] ss:$52 sps:$4 sm:$0xff]   ;;  %v7743_v9 = vld [vmem:[%s11499_s0 + $0xc34] ss:$52 sps:$4 sm:$0xff]  }
  0x40   :  { %5247 = vmatprep.subr.bf16.mxu0 %v7659_v10  ;;  %5411 = vmatprep.subr.bf16.mxu1 %v7662_v11  ;;  %v7746_v10 = vld [vmem:[%s11499_s0 + $0xc3c] ss:$52 sps:$4 sm:$0xff]   ;;  %v925_v11 = vcombine.high %v8999_v52, %v8999_v52  ;;  %v7752_v52 = vld [vmem:[%s11499_s0 + $0xca4] ss:$52 sps:$4 sm:$0xff]  }
  0x42   :  { %5239 = vmatmul.mubr.bf16.vlgmr.msra.gmra.mrb[0].mxu0 %v9072_v13  ;;  %5403 = vmatmul.mubr.bf16.vlgmr.msra.gmra.mrb[0].mxu1 %v9072_v13 }
  0x43   :  { %5248 = vmatpush1.bf16.msra.mxu0 %v7657_v12  ;;  %5412 = vmatpush1.bf16.msra.mxu1 %v7660_v14  ;;  %v7741_v12 = vld [vmem:[%s11499_s0 + $0xc30] ss:$52 sps:$4 sm:$0xff]   ;;  %v7744_v14 = vld [vmem:[%s11499_s0 + $0xc38] ss:$52 sps:$4 sm:$0xff]  }
  0x44   :  { %5249 = vmatprep.subr.bf16.mxu0 %v7665_v15  ;;  %5413 = vmatprep.subr.bf16.mxu1 %v7668_v16  ;;  %v7749_v15 = vld [vmem:[%s11499_s0 + $0xc9c] ss:$52 sps:$4 sm:$0xff]   ;;  %v9262_v16 = vrot.slane %v925_v11, %v8988_v49  ;;  %v7822_v11 = vld [vmem:[%s11499_s0 + $0x1180] ss:$52 sps:$4 sm:$0xff]  }
  0x45   :  { %5279 = vmatprep.mubr.bf16.mxu0 %v9085_v17  ;;  %5443 = vmatprep.mubr.bf16.mxu1 %v9085_v17 }
  0x47   :  { %5250 = vmatpush1.bf16.msra.mxu0 %v7663_v18  ;;  %5414 = vmatpush1.bf16.msra.mxu1 %v7666_v19  ;;  %v7747_v18 = vld [vmem:[%s11499_s0 + $0xc98] ss:$52 sps:$4 sm:$0xff]   ;;  %v7750_v19 = vld [vmem:[%s11499_s0 + $0xca0] ss:$52 sps:$4 sm:$0xff]  }
  0x48   :  { %5251 = vmatprep.subr.bf16.mxu0 %v7671_v20  ;;  %5415 = vmatprep.subr.bf16.mxu1 %v7674_v21  ;;  %v7755_v20 = vld [vmem:[%s11499_s0 + $0xd04] ss:$52 sps:$4 sm:$0xff]   ;;  %v7758_v21 = vld [vmem:[%s11499_s0 + $0xd0c] ss:$52 sps:$4 sm:$0xff]  }
  0x4b   :  { %5252 = vmatpush1.bf16.msra.mxu0 %v7669_v22  ;;  %5416 = vmatpush1.bf16.msra.mxu1 %v7672_v23  ;;  %v941_v22 = vcombine.high %v9262_v16, %v9262_v16  ;;  %v7753_v23 = vld [vmem:[%s11499_s0 + $0xd00] ss:$52 sps:$4 sm:$0xff]  }
  0x4c   :  { %5253 = vmatprep.subr.bf16.mxu0 %v7677_v24  ;;  %5417 = vmatprep.subr.bf16.mxu1 %v7680_v25  ;;  %v9283_v24 = vcombine.high %v9072_v13, %v9072_v13  ;;  %v7756_v25 = vld [vmem:[%s11499_s0 + $0xd08] ss:$52 sps:$4 sm:$0xff]  }
  0x4f   :  { %5254 = vmatpush1.bf16.msra.mxu0 %v7675_v26  ;;  %5418 = vmatpush1.bf16.msra.mxu1 %v7678_v27  ;;  %v7761_v26 = vld [vmem:[%s11499_s0 + $0xd6c] ss:$52 sps:$4 sm:$0xff]   ;;  %v7764_v27 = vld [vmem:[%s11499_s0 + $0xd74] ss:$52 sps:$4 sm:$0xff]  }
  0x50   :  { %5255 = vmatprep.subr.bf16.mxu0 %v7683_v28  ;;  %5419 = vmatprep.subr.bf16.mxu1 %v7686_v29  ;;  %v9295_v28 = vrot.slane %v941_v22, %v8988_v49  ;;  %v7759_v29 = vld [vmem:[%s11499_s0 + $0xd68] ss:$52 sps:$4 sm:$0xff]  }
  0x51   :  { %v7839_v22 = vld [vmem:[%s11499_s0 + $0x12b4] ss:$52 sps:$4 sm:$0xff]  }
  0x53   :  { %5256 = vmatpush1.bf16.msra.mxu0 %v7681_v30  ;;  %5420 = vmatpush1.bf16.msra.mxu1 %v7684_v31  ;;  %v7762_v30 = vld [vmem:[%s11499_s0 + $0xd70] ss:$52 sps:$4 sm:$0xff]   ;;  %v7767_v31 = vld [vmem:[%s11499_s0 + $0xdd4] ss:$52 sps:$4 sm:$0xff]  }
  0x54   :  { %5257 = vmatprep.subr.bf16.mxu0 %v7689_v32  ;;  %5421 = vmatprep.subr.bf16.mxu1 %v7692_v33  ;;  %v7770_v32 = vld [vmem:[%s11499_s0 + $0xddc] ss:$52 sps:$4 sm:$0xff]  }
  0x55   :  { %v7765_v33 = vld [vmem:[%s11499_s0 + $0xdd0] ss:$52 sps:$4 sm:$0xff]  }
  0x57   :  { %5258 = vmatpush1.bf16.msra.mxu0 %v7687_v34  ;;  %5422 = vmatpush1.bf16.msra.mxu1 %v7690_v35  ;;  %v7768_v34 = vld [vmem:[%s11499_s0 + $0xdd8] ss:$52 sps:$4 sm:$0xff]   ;;  %v7773_v35 = vld [vmem:[%s11499_s0 + $0xe3c] ss:$52 sps:$4 sm:$0xff]  }
  0x58   :  { %5259 = vmatprep.subr.bf16.mxu0 %v7695_v37  ;;  %5423 = vmatprep.subr.bf16.mxu1 %v7698_v38  ;;  %v7776_v37 = vld [vmem:[%s11499_s0 + $0xe44] ss:$52 sps:$4 sm:$0xff]  }
  0x59   :  { %v7771_v38 = vld [vmem:[%s11499_s0 + $0xe38] ss:$52 sps:$4 sm:$0xff]  }
  0x5b   :  { %5260 = vmatpush1.bf16.msra.mxu0 %v7693_v39  ;;  %5424 = vmatpush1.bf16.msra.mxu1 %v7696_v40  ;;  %v7774_v39 = vld [vmem:[%s11499_s0 + $0xe40] ss:$52 sps:$4 sm:$0xff]   ;;  %v7779_v40 = vld [vmem:[%s11499_s0 + $0xea4] ss:$52 sps:$4 sm:$0xff]  }
  0x5c   :  { %5261 = vmatprep.subr.bf16.mxu0 %v7701_v41  ;;  %5425 = vmatprep.subr.bf16.mxu1 %v7704_v43  ;;  %v7782_v41 = vld [vmem:[%s11499_s0 + $0xeac] ss:$52 sps:$4 sm:$0xff]  }
  0x5d   :  { %v7777_v43 = vld [vmem:[%s11499_s0 + $0xea0] ss:$52 sps:$4 sm:$0xff]  }
  0x5f   :  { %5262 = vmatpush1.bf16.msra.mxu0 %v7699_v44  ;;  %5426 = vmatpush1.bf16.msra.mxu1 %v7702_v45  ;;  %v7780_v44 = vld [vmem:[%s11499_s0 + $0xea8] ss:$52 sps:$4 sm:$0xff]   ;;  %v7785_v45 = vld [vmem:[%s11499_s0 + $0xf0c] ss:$52 sps:$4 sm:$0xff]  }
  0x60   :  { %5263 = vmatprep.subr.bf16.mxu0 %v7707_v46  ;;  %5427 = vmatprep.subr.bf16.mxu1 %v7710_v47  ;;  %v7788_v46 = vld [vmem:[%s11499_s0 + $0xf14] ss:$52 sps:$4 sm:$0xff]  }
  0x61   :  { %v7783_v47 = vld [vmem:[%s11499_s0 + $0xf08] ss:$52 sps:$4 sm:$0xff]  }
  0x63   :  { %5264 = vmatpush1.bf16.msra.mxu0 %v7705_v48  ;;  %5428 = vmatpush1.bf16.msra.mxu1 %v7708_v50  ;;  %v7786_v48 = vld [vmem:[%s11499_s0 + $0xf10] ss:$52 sps:$4 sm:$0xff]   ;;  %v7791_v50 = vld [vmem:[%s11499_s0 + $0xf74] ss:$52 sps:$4 sm:$0xff]  }
  0x64   :  { %5265 = vmatprep.subr.bf16.mxu0 %v7713_v51  ;;  %5429 = vmatprep.subr.bf16.mxu1 %v7716_v53  ;;  %v7794_v51 = vld [vmem:[%s11499_s0 + $0xf7c] ss:$52 sps:$4 sm:$0xff]  }
  0x65   :  { %v7789_v53 = vld [vmem:[%s11499_s0 + $0xf70] ss:$52 sps:$4 sm:$0xff]  }
  0x67   :  { %5266 = vmatpush1.bf16.msra.mxu0 %v7711_v54  ;;  %5430 = vmatpush1.bf16.msra.mxu1 %v7714_v55  ;;  %v7792_v54 = vld [vmem:[%s11499_s0 + $0xf78] ss:$52 sps:$4 sm:$0xff]   ;;  %v7797_v55 = vld [vmem:[%s11499_s0 + $0xfdc] ss:$52 sps:$4 sm:$0xff]  }
  0x68   :  { %5267 = vmatprep.subr.bf16.mxu0 %v7719_v56  ;;  %5431 = vmatprep.subr.bf16.mxu1 %v7722_v57  ;;  %v7800_v56 = vld [vmem:[%s11499_s0 + $0xfe4] ss:$52 sps:$4 sm:$0xff]  }
  0x69   :  { %v7795_v57 = vld [vmem:[%s11499_s0 + $0xfd8] ss:$52 sps:$4 sm:$0xff]  }
  0x6b   :  { %5268 = vmatpush1.bf16.msra.mxu0 %v7717_v58  ;;  %5432 = vmatpush1.bf16.msra.mxu1 %v7720_v59  ;;  %v7798_v58 = vld [vmem:[%s11499_s0 + $0xfe0] ss:$52 sps:$4 sm:$0xff]   ;;  %v7803_v59 = vld [vmem:[%s11499_s0 + $0x1044] ss:$52 sps:$4 sm:$0xff]  }
  0x6c   :  { %5269 = vmatprep.subr.bf16.mxu0 %v7725_v61  ;;  %5433 = vmatprep.subr.bf16.mxu1 %v7728_v62  ;;  %v7806_v61 = vld [vmem:[%s11499_s0 + $0x104c] ss:$52 sps:$4 sm:$0xff]  }
  0x6d   :  { %v7801_v62 = vld [vmem:[%s11499_s0 + $0x1040] ss:$52 sps:$4 sm:$0xff]  }
  0x6f   :  { %5270 = vmatpush1.bf16.msra.mxu0 %v7723_v63  ;;  %5434 = vmatpush1.bf16.msra.mxu1 %v7726_v0  ;;  %v7804_v63 = vld [vmem:[%s11499_s0 + $0x1048] ss:$52 sps:$4 sm:$0xff]   ;;  %v7809_v0 = vld [vmem:[%s11499_s0 + $0x10ac] ss:$52 sps:$4 sm:$0xff]  }
  0x70   :  { %5271 = vmatprep.subr.bf16.mxu0 %v7731_v1  ;;  %5435 = vmatprep.subr.bf16.mxu1 %v7734_v2  ;;  %v7812_v1 = vld [vmem:[%s11499_s0 + $0x10b4] ss:$52 sps:$4 sm:$0xff]  }
  0x71   :  { %v7807_v2 = vld [vmem:[%s11499_s0 + $0x10a8] ss:$52 sps:$4 sm:$0xff]  }
  0x73   :  { %5272 = vmatpush1.bf16.msra.mxu0 %v7729_v3  ;;  %5436 = vmatpush1.bf16.msra.mxu1 %v7732_v4  ;;  %v7810_v3 = vld [vmem:[%s11499_s0 + $0x10b0] ss:$52 sps:$4 sm:$0xff]   ;;  %v7815_v4 = vld [vmem:[%s11499_s0 + $0x1114] ss:$52 sps:$4 sm:$0xff]  }
  0x74   :  { %5273 = vmatprep.subr.bf16.mxu0 %v7737_v5  ;;  %5437 = vmatprep.subr.bf16.mxu1 %v7740_v6  ;;  %v7818_v5 = vld [vmem:[%s11499_s0 + $0x111c] ss:$52 sps:$4 sm:$0xff]  }
  0x75   :  { %v7813_v6 = vld [vmem:[%s11499_s0 + $0x1110] ss:$52 sps:$4 sm:$0xff]  }
  0x77   :  { %5274 = vmatpush1.bf16.msra.mxu0 %v7735_v7  ;;  %5438 = vmatpush1.bf16.msra.mxu1 %v7738_v8  ;;  %v7816_v7 = vld [vmem:[%s11499_s0 + $0x1118] ss:$52 sps:$4 sm:$0xff]   ;;  %v7821_v8 = vld [vmem:[%s11499_s0 + $0x117c] ss:$52 sps:$4 sm:$0xff]  }
  0x78   :  { %5275 = vmatprep.subr.bf16.mxu0 %v7743_v9  ;;  %5439 = vmatprep.subr.bf16.mxu1 %v7746_v10  ;;  %v7824_v9 = vld [vmem:[%s11499_s0 + $0x1184] ss:$52 sps:$4 sm:$0xff]  }
  0x79   :  { %v7819_v10 = vld [vmem:[%s11499_s0 + $0x1178] ss:$52 sps:$4 sm:$0xff]  }
  0x7b   :  { %5276 = vmatpush1.bf16.msra.mxu0 %v7741_v12  ;;  %5440 = vmatpush1.bf16.msra.mxu1 %v7744_v14  ;;  %v7827_v12 = vld [vmem:[%s11499_s0 + $0x11e4] ss:$52 sps:$4 sm:$0xff]   ;;  %v7830_v14 = vld [vmem:[%s11499_s0 + $0x11ec] ss:$52 sps:$4 sm:$0xff]  }
  0x7c   :  { %5277 = vmatprep.subr.bf16.mxu0 %v7749_v15  ;;  %5441 = vmatprep.subr.bf16.mxu1 %v7752_v52  ;;  %v7825_v15 = vld [vmem:[%s11499_s0 + $0x11e0] ss:$52 sps:$4 sm:$0xff]   ;;  %v7828_v52 = vld [vmem:[%s11499_s0 + $0x11e8] ss:$52 sps:$4 sm:$0xff]  }
  0x7f   :  { %5278 = vmatpush1.bf16.msra.mxu0 %v7747_v18  ;;  %5442 = vmatpush1.bf16.msra.mxu1 %v7750_v19  ;;  %v7833_v18 = vld [vmem:[%s11499_s0 + $0x124c] ss:$52 sps:$4 sm:$0xff]   ;;  %v7836_v19 = vld [vmem:[%s11499_s0 + $0x1254] ss:$52 sps:$4 sm:$0xff]  }
  0x80   :  { %5288 = vmatprep.subr.bf16.mxu0 %v7755_v20  ;;  %5452 = vmatprep.subr.bf16.mxu1 %v7758_v21  ;;  %v7831_v20 = vld [vmem:[%s11499_s0 + $0x1248] ss:$52 sps:$4 sm:$0xff]   ;;  %v7834_v21 = vld [vmem:[%s11499_s0 + $0x1250] ss:$52 sps:$4 sm:$0xff]  }
  0x82   :  { %5280 = vmatmul.mubr.bf16.vlgmr.msra.gmra.mrb[0].mxu0 %v9283_v24  ;;  %5444 = vmatmul.mubr.bf16.vlgmr.msra.gmra.mrb[0].mxu1 %v9283_v24 }
  0x83   :  { %5289 = vmatpush1.bf16.msra.mxu0 %v7753_v23  ;;  %5453 = vmatpush1.bf16.msra.mxu1 %v7756_v25  ;;  %v7842_v23 = vld [vmem:[%s11499_s0 + $0x12bc] ss:$52 sps:$4 sm:$0xff]  }
  0x84   :  { %5290 = vmatprep.subr.bf16.mxu0 %v7761_v26  ;;  %5454 = vmatprep.subr.bf16.mxu1 %v7764_v27  ;;  %v7837_v25 = vld [vmem:[%s11499_s0 + $0x12b0] ss:$52 sps:$4 sm:$0xff]   ;;  %v7840_v26 = vld [vmem:[%s11499_s0 + $0x12b8] ss:$52 sps:$4 sm:$0xff]  }
  0x85   :  { %5320 = vmatprep.mubr.bf16.mxu0 %v9295_v28  ;;  %5484 = vmatprep.mubr.bf16.mxu1 %v9295_v28  ;;  %v7845_v27 = vld [vmem:[%s11499_s0 + $0x131c] ss:$52 sps:$4 sm:$0xff]  }
  0x87   :  { %5291 = vmatpush1.bf16.msra.mxu0 %v7759_v29  ;;  %5455 = vmatpush1.bf16.msra.mxu1 %v7762_v30  ;;  %v7848_v29 = vld [vmem:[%s11499_s0 + $0x1324] ss:$52 sps:$4 sm:$0xff]  }
  0x88   :  { %5292 = vmatprep.subr.bf16.mxu0 %v7767_v31  ;;  %5456 = vmatprep.subr.bf16.mxu1 %v7770_v32  ;;  %v7843_v30 = vld [vmem:[%s11499_s0 + $0x1318] ss:$52 sps:$4 sm:$0xff]   ;;  %v7846_v31 = vld [vmem:[%s11499_s0 + $0x1320] ss:$52 sps:$4 sm:$0xff]  }
  0x89   :  { %v7852_v32 = vld [vmem:[%s11499_s0 + $0x1384] ss:$52 sps:$4 sm:$0xff]  }
  0x8b   :  { %5293 = vmatpush1.bf16.msra.mxu0 %v7765_v33  ;;  %5457 = vmatpush1.bf16.msra.mxu1 %v7768_v34  ;;  %v7855_v33 = vld [vmem:[%s11499_s0 + $0x138c] ss:$52 sps:$4 sm:$0xff]  }
  0x8c   :  { %5294 = vmatprep.subr.bf16.mxu0 %v7773_v35  ;;  %5458 = vmatprep.subr.bf16.mxu1 %v7776_v37  ;;  %v7850_v34 = vld [vmem:[%s11499_s0 + $0x1380] ss:$52 sps:$4 sm:$0xff]   ;;  %v9486_v35 = vrot.slane %v9262_v16, %v8988_v49  ;;  %v7853_v37 = vld [vmem:[%s11499_s0 + $0x1388] ss:$52 sps:$4 sm:$0xff]   ;;  %v9499_v16 = vcombine.high %v9295_v28, %v9295_v28 }
  0x8f   :  { %5295 = vmatpush1.bf16.msra.mxu0 %v7771_v38  ;;  %5459 = vmatpush1.bf16.msra.mxu1 %v7774_v39  ;;  %v7858_v38 = vld [vmem:[%s11499_s0 + $0x13ec] ss:$52 sps:$4 sm:$0xff]   ;;  %v7861_v39 = vld [vmem:[%s11499_s0 + $0x13f4] ss:$52 sps:$4 sm:$0xff]  }
  0x90   :  { %5296 = vmatprep.subr.bf16.mxu0 %v7779_v40  ;;  %5460 = vmatprep.subr.bf16.mxu1 %v7782_v41  ;;  %v7856_v40 = vld [vmem:[%s11499_s0 + $0x13e8] ss:$52 sps:$4 sm:$0xff]   ;;  %v7859_v41 = vld [vmem:[%s11499_s0 + $0x13f0] ss:$52 sps:$4 sm:$0xff]  }
  0x93   :  { %5297 = vmatpush1.bf16.msra.mxu0 %v7777_v43  ;;  %5461 = vmatpush1.bf16.msra.mxu1 %v7780_v44  ;;  %v7864_v43 = vld [vmem:[%s11499_s0 + $0x1454] ss:$52 sps:$4 sm:$0xff]   ;;  %v7867_v44 = vld [vmem:[%s11499_s0 + $0x145c] ss:$52 sps:$4 sm:$0xff]  }
  0x94   :  { %5298 = vmatprep.subr.bf16.mxu0 %v7785_v45  ;;  %5462 = vmatprep.subr.bf16.mxu1 %v7788_v46  ;;  %v7862_v45 = vld [vmem:[%s11499_s0 + $0x1450] ss:$52 sps:$4 sm:$0xff]   ;;  %v7865_v46 = vld [vmem:[%s11499_s0 + $0x1458] ss:$52 sps:$4 sm:$0xff]  }
  0x97   :  { %5299 = vmatpush1.bf16.msra.mxu0 %v7783_v47  ;;  %5463 = vmatpush1.bf16.msra.mxu1 %v7786_v48  ;;  %v7870_v47 = vld [vmem:[%s11499_s0 + $0x14bc] ss:$52 sps:$4 sm:$0xff]   ;;  %v7873_v48 = vld [vmem:[%s11499_s0 + $0x14c4] ss:$52 sps:$4 sm:$0xff]  }
  0x98   :  { %5300 = vmatprep.subr.bf16.mxu0 %v7791_v50  ;;  %5464 = vmatprep.subr.bf16.mxu1 %v7794_v51  ;;  %v7868_v50 = vld [vmem:[%s11499_s0 + $0x14b8] ss:$52 sps:$4 sm:$0xff]   ;;  %v7871_v51 = vld [vmem:[%s11499_s0 + $0x14c0] ss:$52 sps:$4 sm:$0xff]  }
  0x9b   :  { %5301 = vmatpush1.bf16.msra.mxu0 %v7789_v53  ;;  %5465 = vmatpush1.bf16.msra.mxu1 %v7792_v54  ;;  %v8_v53 = vstv %s11501_s2  ;;  %v7876_v54 = vld [vmem:[%s11499_s0 + $0x1524] ss:$52 sps:$4 sm:$0xff]  }
  0x9c   :  { %5302 = vmatprep.subr.bf16.mxu0 %v7797_v55  ;;  %5466 = vmatprep.subr.bf16.mxu1 %v7800_v56  ;;  %v7879_v55 = vld [vmem:[%s11499_s0 + $0x152c] ss:$52 sps:$4 sm:$0xff]   ;;  %9 = vst [vmem:[#allocation2] sm:$0x1] %v8_v53  ;;  %v7946_v53 = vld [vmem:[%s11499_s0 + $0x10] ss:$52 sps:$4 sm:$0xff]  }
  0x9d   :  { %v7874_v56 = vld [vmem:[%s11499_s0 + $0x1520] ss:$52 sps:$4 sm:$0xff]  }
  0x9f   :  { %5303 = vmatpush1.bf16.msra.mxu0 %v7795_v57  ;;  %5467 = vmatpush1.bf16.msra.mxu1 %v7798_v58  ;;  %v7877_v57 = vld [vmem:[%s11499_s0 + $0x1528] ss:$52 sps:$4 sm:$0xff]   ;;  %v7882_v58 = vld [vmem:[%s11499_s0 + $0x158c] ss:$52 sps:$4 sm:$0xff]  }
  0xa0   :  { %5304 = vmatprep.subr.bf16.mxu0 %v7803_v59  ;;  %5468 = vmatprep.subr.bf16.mxu1 %v7806_v61  ;;  %v7885_v59 = vld [vmem:[%s11499_s0 + $0x1594] ss:$52 sps:$4 sm:$0xff]   ;;  %v8831_v61 = vmov 0  }
  0xa1   :  { %7560 = vset.pattern.permute.xlu0 %v8831_v61  ;;  %v7963_v61 = vld [vmem:[%s11499_s0 + $0xec] ss:$52 sps:$4 sm:$0xff]  }
  0xa3   :  { %5305 = vmatpush1.bf16.msra.mxu0 %v7801_v62  ;;  %5469 = vmatpush1.bf16.msra.mxu1 %v7804_v63  ;;  %v7880_v62 = vld [vmem:[%s11499_s0 + $0x1588] ss:$52 sps:$4 sm:$0xff]   ;;  %v7883_v63 = vld [vmem:[%s11499_s0 + $0x1590] ss:$52 sps:$4 sm:$0xff]  }
  0xa4   :  { %5306 = vmatprep.subr.bf16.mxu0 %v7809_v0  ;;  %5470 = vmatprep.subr.bf16.mxu1 %v7812_v1  ;;  %v7888_v0 = vld [vmem:[%s11499_s0 + $0x15f4] ss:$52 sps:$4 sm:$0xff]   ;;  %v7891_v1 = vld [vmem:[%s11499_s0 + $0x15fc] ss:$52 sps:$4 sm:$0xff]  }
  0xa7   :  { %5307 = vmatpush1.bf16.msra.mxu0 %v7807_v2  ;;  %5471 = vmatpush1.bf16.msra.mxu1 %v7810_v3  ;;  %v7886_v2 = vld [vmem:[%s11499_s0 + $0x15f0] ss:$52 sps:$4 sm:$0xff]   ;;  %v7889_v3 = vld [vmem:[%s11499_s0 + $0x15f8] ss:$52 sps:$4 sm:$0xff]  }
  0xa8   :  { %5308 = vmatprep.subr.bf16.mxu0 %v7815_v4  ;;  %5472 = vmatprep.subr.bf16.mxu1 %v7818_v5  ;;  %v7894_v4 = vld [vmem:[%s11499_s0 + $0x165c] ss:$52 sps:$4 sm:$0xff]   ;;  %v7897_v5 = vld [vmem:[%s11499_s0 + $0x1664] ss:$52 sps:$4 sm:$0xff]  }
  0xab   :  { %5309 = vmatpush1.bf16.msra.mxu0 %v7813_v6  ;;  %5473 = vmatpush1.bf16.msra.mxu1 %v7816_v7  ;;  %v7892_v6 = vld [vmem:[%s11499_s0 + $0x1658] ss:$52 sps:$4 sm:$0xff]   ;;  %v7895_v7 = vld [vmem:[%s11499_s0 + $0x1660] ss:$52 sps:$4 sm:$0xff]  }
  0xac   :  { %5310 = vmatprep.subr.bf16.mxu0 %v7821_v8  ;;  %5474 = vmatprep.subr.bf16.mxu1 %v7824_v9  ;;  %v7900_v8 = vld [vmem:[%s11499_s0 + $0x16c4] ss:$52 sps:$4 sm:$0xff]   ;;  %v7903_v9 = vld [vmem:[%s11499_s0 + $0x16cc] ss:$52 sps:$4 sm:$0xff]  }
  0xaf   :  { %5311 = vmatpush1.bf16.msra.mxu0 %v7819_v10  ;;  %5475 = vmatpush1.bf16.msra.mxu1 %v7822_v11  ;;  %v7898_v10 = vld [vmem:[%s11499_s0 + $0x16c0] ss:$52 sps:$4 sm:$0xff]   ;;  %v7901_v11 = vld [vmem:[%s11499_s0 + $0x16c8] ss:$52 sps:$4 sm:$0xff]  }
  0xb0   :  { %5312 = vmatprep.subr.bf16.mxu0 %v7827_v12  ;;  %5476 = vmatprep.subr.bf16.mxu1 %v7830_v14  ;;  %v7906_v12 = vld [vmem:[%s11499_s0 + $0x172c] ss:$52 sps:$4 sm:$0xff]   ;;  %v7909_v14 = vld [vmem:[%s11499_s0 + $0x1734] ss:$52 sps:$4 sm:$0xff]  }
  0xb3   :  { %5313 = vmatpush1.bf16.msra.mxu0 %v7825_v15  ;;  %5477 = vmatpush1.bf16.msra.mxu1 %v7828_v52  ;;  %v914_v15 = vld [vmem:[#allocation2] sm:$0x1]  ;;  %v7904_v52 = vld [vmem:[%s11499_s0 + $0x1728] ss:$52 sps:$4 sm:$0xff]  }
  0xb4   :  { %5314 = vmatprep.subr.bf16.mxu0 %v7833_v18  ;;  %5478 = vmatprep.subr.bf16.mxu1 %v7836_v19  ;;  %v7907_v18 = vld [vmem:[%s11499_s0 + $0x1730] ss:$52 sps:$4 sm:$0xff]   ;;  %v7912_v19 = vld [vmem:[%s11499_s0 + $0x1794] ss:$52 sps:$4 sm:$0xff]  }
  0xb5   :  { %917 = vperm.xlu0 %7560, %v914_v15   ;;  %v7982_v15 = vld [vmem:[%s11499_s0 + $0x280] ss:$52 sps:$4 sm:$0xff]  }
  0xb7   :  { %5315 = vmatpush1.bf16.msra.mxu0 %v7831_v20  ;;  %5479 = vmatpush1.bf16.msra.mxu1 %v7834_v21  ;;  %v7915_v20 = vld [vmem:[%s11499_s0 + $0x179c] ss:$52 sps:$4 sm:$0xff]  }
  0xb8   :  { %5316 = vmatprep.subr.bf16.mxu0 %v7839_v22  ;;  %5480 = vmatprep.subr.bf16.mxu1 %v7842_v23  ;;  %v7910_v21 = vld [vmem:[%s11499_s0 + $0x1790] ss:$52 sps:$4 sm:$0xff]   ;;  %v7913_v22 = vld [vmem:[%s11499_s0 + $0x1798] ss:$52 sps:$4 sm:$0xff]  }
  0xb9   :  { %v7918_v23 = vld [vmem:[%s11499_s0 + $0x17fc] ss:$52 sps:$4 sm:$0xff]  }
  0xbb   :  { %5317 = vmatpush1.bf16.msra.mxu0 %v7837_v25  ;;  %5481 = vmatpush1.bf16.msra.mxu1 %v7840_v26  ;;  %v7921_v25 = vld [vmem:[%s11499_s0 + $0x1804] ss:$52 sps:$4 sm:$0xff]  }
  0xbc   :  { %5318 = vmatprep.subr.bf16.mxu0 %v7845_v27  ;;  %5482 = vmatprep.subr.bf16.mxu1 %v7848_v29  ;;  %v7916_v26 = vld [vmem:[%s11499_s0 + $0x17f8] ss:$52 sps:$4 sm:$0xff]   ;;  %v7919_v27 = vld [vmem:[%s11499_s0 + $0x1800] ss:$52 sps:$4 sm:$0xff]  }
  0xbd   :  { %v7924_v29 = vld [vmem:[%s11499_s0 + $0x1864] ss:$52 sps:$4 sm:$0xff]  }
  0xbf   :  { %5319 = vmatpush1.bf16.msra.mxu0 %v7843_v30  ;;  %5483 = vmatpush1.bf16.msra.mxu1 %v7846_v31  ;;  %v7927_v30 = vld [vmem:[%s11499_s0 + $0x186c] ss:$52 sps:$4 sm:$0xff]  }
  0xc0   :  { %5329 = vmatprep.subr.bf16.mxu0 %v7852_v32  ;;  %5493 = vmatprep.subr.bf16.mxu1 %v7855_v33  ;;  %v7922_v31 = vld [vmem:[%s11499_s0 + $0x1860] ss:$52 sps:$4 sm:$0xff]   ;;  %v7925_v32 = vld [vmem:[%s11499_s0 + $0x1868] ss:$52 sps:$4 sm:$0xff]  }
  0xc1   :  { %v7930_v33 = vld [vmem:[%s11499_s0 + $0x18cc] ss:$52 sps:$4 sm:$0xff]  }
  0xc2   :  { %5321 = vmatmul.mubr.bf16.vlgmr.msra.gmra.mrb[0].mxu0 %v9486_v35  ;;  %5485 = vmatmul.mubr.bf16.vlgmr.msra.gmra.mrb[0].mxu1 %v9486_v35 }
  0xc3   :  { %5330 = vmatpush1.bf16.msra.mxu0 %v7850_v34  ;;  %5494 = vmatpush1.bf16.msra.mxu1 %v7853_v37  ;;  %v7933_v34 = vld [vmem:[%s11499_s0 + $0x18d4] ss:$52 sps:$4 sm:$0xff]  }
  0xc4   :  { %5331 = vmatprep.subr.bf16.mxu0 %v7858_v38  ;;  %5495 = vmatprep.subr.bf16.mxu1 %v7861_v39  ;;  %v7928_v37 = vld [vmem:[%s11499_s0 + $0x18c8] ss:$52 sps:$4 sm:$0xff]   ;;  %v7931_v38 = vld [vmem:[%s11499_s0 + $0x18d0] ss:$52 sps:$4 sm:$0xff]  }
  0xc5   :  { %5361 = vmatprep.mubr.bf16.mxu0 %v9499_v16  ;;  %5525 = vmatprep.mubr.bf16.mxu1 %v9499_v16  ;;  %v7936_v39 = vld [vmem:[%s11499_s0 + $0x1934] ss:$52 sps:$4 sm:$0xff]  }
  0xc7   :  { %5332 = vmatpush1.bf16.msra.mxu0 %v7856_v40  ;;  %5496 = vmatpush1.bf16.msra.mxu1 %v7859_v41  ;;  %v7939_v40 = vld [vmem:[%s11499_s0 + $0x193c] ss:$52 sps:$4 sm:$0xff]  }
  0xc8   :  { %5333 = vmatprep.subr.bf16.mxu0 %v7864_v43  ;;  %5497 = vmatprep.subr.bf16.mxu1 %v7867_v44  ;;  %v7934_v41 = vld [vmem:[%s11499_s0 + $0x1930] ss:$52 sps:$4 sm:$0xff]   ;;  %v7937_v43 = vld [vmem:[%s11499_s0 + $0x1938] ss:$52 sps:$4 sm:$0xff]  }
  0xc9   :  { %v7942_v44 = vld [vmem:[%s11499_s0 + $0x199c] ss:$52 sps:$4 sm:$0xff]  }
  0xcb   :  { %5334 = vmatpush1.bf16.msra.mxu0 %v7862_v45  ;;  %5498 = vmatpush1.bf16.msra.mxu1 %v7865_v46  ;;  %v7945_v45 = vld [vmem:[%s11499_s0 + $0x19a4] ss:$52 sps:$4 sm:$0xff]  }
  0xcc   :  { %5335 = vmatprep.subr.bf16.mxu0 %v7870_v47  ;;  %5499 = vmatprep.subr.bf16.mxu1 %v7873_v48  ;;  %v7940_v46 = vld [vmem:[%s11499_s0 + $0x1998] ss:$52 sps:$4 sm:$0xff]   ;;  %v7943_v47 = vld [vmem:[%s11499_s0 + $0x19a0] ss:$52 sps:$4 sm:$0xff]  }
  0xcd   :  { %v7948_v48 = vld [vmem:[%s11499_s0 + $0x14] ss:$52 sps:$4 sm:$0xff]  }
  0xcf   :  { %5336 = vmatpush1.bf16.msra.mxu0 %v7868_v50  ;;  %5500 = vmatpush1.bf16.msra.mxu1 %v7871_v51  ;;  %v7951_v50 = vld [vmem:[%s11499_s0 + $0x1c] ss:$52 sps:$4 sm:$0xff]   ;;  %v9690_v51 = vcombine.high %v9486_v35, %v9486_v35 }
  0xd0   :  { %5337 = vmatprep.subr.bf16.mxu0 %v7876_v54  ;;  %5501 = vmatprep.subr.bf16.mxu1 %v7879_v55  ;;  %v7949_v54 = vld [vmem:[%s11499_s0 + $0x18] ss:$52 sps:$4 sm:$0xff]   ;;  %v7954_v55 = vld [vmem:[%s11499_s0 + $0x7c] ss:$52 sps:$4 sm:$0xff]  }
  0xd3   :  { %5338 = vmatpush1.bf16.msra.mxu0 %v7874_v56  ;;  %5502 = vmatpush1.bf16.msra.mxu1 %v7877_v57  ;;  %v7957_v56 = vld [vmem:[%s11499_s0 + $0x84] ss:$52 sps:$4 sm:$0xff]  }
  0xd4   :  { %5339 = vmatprep.subr.bf16.mxu0 %v7882_v58  ;;  %5503 = vmatprep.subr.bf16.mxu1 %v7885_v59  ;;  %v7952_v57 = vld [vmem:[%s11499_s0 + $0x78] ss:$52 sps:$4 sm:$0xff]   ;;  %v7955_v58 = vld [vmem:[%s11499_s0 + $0x80] ss:$52 sps:$4 sm:$0xff]  }
  0xd5   :  { %v7960_v59 = vld [vmem:[%s11499_s0 + $0xe4] ss:$52 sps:$4 sm:$0xff]  }
  0xd7   :  { %5340 = vmatpush1.bf16.msra.mxu0 %v7880_v62  ;;  %5504 = vmatpush1.bf16.msra.mxu1 %v7883_v63  ;;  %v7958_v62 = vld [vmem:[%s11499_s0 + $0xe0] ss:$52 sps:$4 sm:$0xff]   ;;  %v7961_v63 = vld [vmem:[%s11499_s0 + $0xe8] ss:$52 sps:$4 sm:$0xff]  }
  0xd8   :  { %5341 = vmatprep.subr.bf16.mxu0 %v7888_v0  ;;  %5505 = vmatprep.subr.bf16.mxu1 %v7891_v1  ;;  %v7966_v0 = vld [vmem:[%s11499_s0 + $0x14c] ss:$52 sps:$4 sm:$0xff]   ;;  %v7969_v1 = vld [vmem:[%s11499_s0 + $0x154] ss:$52 sps:$4 sm:$0xff]  }
  0xdb   :  { %5342 = vmatpush1.bf16.msra.mxu0 %v7886_v2  ;;  %5506 = vmatpush1.bf16.msra.mxu1 %v7889_v3  ;;  %v7964_v2 = vld [vmem:[%s11499_s0 + $0x148] ss:$52 sps:$4 sm:$0xff]   ;;  %v7967_v3 = vld [vmem:[%s11499_s0 + $0x150] ss:$52 sps:$4 sm:$0xff]  }
  0xdc   :  { %5343 = vmatprep.subr.bf16.mxu0 %v7894_v4  ;;  %5507 = vmatprep.subr.bf16.mxu1 %v7897_v5  ;;  %v7972_v4 = vld [vmem:[%s11499_s0 + $0x1b4] ss:$52 sps:$4 sm:$0xff]   ;;  %v7975_v5 = vld [vmem:[%s11499_s0 + $0x1bc] ss:$52 sps:$4 sm:$0xff]  }
  0xdf   :  { %5344 = vmatpush1.bf16.msra.mxu0 %v7892_v6  ;;  %5508 = vmatpush1.bf16.msra.mxu1 %v7895_v7  ;;  %v7970_v6 = vld [vmem:[%s11499_s0 + $0x1b0] ss:$52 sps:$4 sm:$0xff]   ;;  %v7973_v7 = vld [vmem:[%s11499_s0 + $0x1b8] ss:$52 sps:$4 sm:$0xff]  }
  0xe0   :  { %5345 = vmatprep.subr.bf16.mxu0 %v7900_v8  ;;  %5509 = vmatprep.subr.bf16.mxu1 %v7903_v9  ;;  %v7978_v8 = vld [vmem:[%s11499_s0 + $0x21c] ss:$52 sps:$4 sm:$0xff]   ;;  %v7981_v9 = vld [vmem:[%s11499_s0 + $0x224] ss:$52 sps:$4 sm:$0xff]  }
  0xe3   :  { %5346 = vmatpush1.bf16.msra.mxu0 %v7898_v10  ;;  %5510 = vmatpush1.bf16.msra.mxu1 %v7901_v11  ;;  %v7976_v10 = vld [vmem:[%s11499_s0 + $0x218] ss:$52 sps:$4 sm:$0xff]   ;;  %v7979_v11 = vld [vmem:[%s11499_s0 + $0x220] ss:$52 sps:$4 sm:$0xff]  }
  0xe4   :  { %5347 = vmatprep.subr.bf16.mxu0 %v7906_v12  ;;  %5511 = vmatprep.subr.bf16.mxu1 %v7909_v14  ;;  %v7984_v12 = vld [vmem:[%s11499_s0 + $0x284] ss:$52 sps:$4 sm:$0xff]   ;;  %v7987_v14 = vld [vmem:[%s11499_s0 + $0x28c] ss:$52 sps:$4 sm:$0xff]  }
  0xe7   :  { %5348 = vmatpush1.bf16.msra.mxu0 %v7904_v52  ;;  %5512 = vmatpush1.bf16.msra.mxu1 %v7907_v18  ;;  %v7985_v52 = vld [vmem:[%s11499_s0 + $0x288] ss:$52 sps:$4 sm:$0xff]   ;;  %v7990_v18 = vld [vmem:[%s11499_s0 + $0x2ec] ss:$52 sps:$4 sm:$0xff]  }
  0xe8   :  { %5349 = vmatprep.subr.bf16.mxu0 %v7912_v19  ;;  %5513 = vmatprep.subr.bf16.mxu1 %v7915_v20  ;;  %v7993_v19 = vld [vmem:[%s11499_s0 + $0x2f4] ss:$52 sps:$4 sm:$0xff]  }
  0xe9   :  { %v7988_v20 = vld [vmem:[%s11499_s0 + $0x2e8] ss:$52 sps:$4 sm:$0xff]  }
  0xeb   :  { %5350 = vmatpush1.bf16.msra.mxu0 %v7910_v21  ;;  %5514 = vmatpush1.bf16.msra.mxu1 %v7913_v22  ;;  %v7991_v21 = vld [vmem:[%s11499_s0 + $0x2f0] ss:$52 sps:$4 sm:$0xff]   ;;  %v7996_v22 = vld [vmem:[%s11499_s0 + $0x354] ss:$52 sps:$4 sm:$0xff]  }
  0xec   :  { %5351 = vmatprep.subr.bf16.mxu0 %v7918_v23  ;;  %5515 = vmatprep.subr.bf16.mxu1 %v7921_v25  ;;  %v7999_v23 = vld [vmem:[%s11499_s0 + $0x35c] ss:$52 sps:$4 sm:$0xff]  }
  0xed   :  { %v7994_v25 = vld [vmem:[%s11499_s0 + $0x350] ss:$52 sps:$4 sm:$0xff]  }
  0xef   :  { %5352 = vmatpush1.bf16.msra.mxu0 %v7916_v26  ;;  %5516 = vmatpush1.bf16.msra.mxu1 %v7919_v27  ;;  %v7997_v26 = vld [vmem:[%s11499_s0 + $0x358] ss:$52 sps:$4 sm:$0xff]   ;;  %v8002_v27 = vld [vmem:[%s11499_s0 + $0x3bc] ss:$52 sps:$4 sm:$0xff]  }
  0xf0   :  { %5353 = vmatprep.subr.bf16.mxu0 %v7924_v29  ;;  %5517 = vmatprep.subr.bf16.mxu1 %v7927_v30  ;;  %v8005_v29 = vld [vmem:[%s11499_s0 + $0x3c4] ss:$52 sps:$4 sm:$0xff]  }
  0xf1   :  { %v8000_v30 = vld [vmem:[%s11499_s0 + $0x3b8] ss:$52 sps:$4 sm:$0xff]  }
  0xf3   :  { %5354 = vmatpush1.bf16.msra.mxu0 %v7922_v31  ;;  %5518 = vmatpush1.bf16.msra.mxu1 %v7925_v32  ;;  %v8003_v31 = vld [vmem:[%s11499_s0 + $0x3c0] ss:$52 sps:$4 sm:$0xff]   ;;  %v8008_v32 = vld [vmem:[%s11499_s0 + $0x424] ss:$52 sps:$4 sm:$0xff]  }
  0xf4   :  { %5355 = vmatprep.subr.bf16.mxu0 %v7930_v33  ;;  %5519 = vmatprep.subr.bf16.mxu1 %v7933_v34  ;;  %v8011_v33 = vld [vmem:[%s11499_s0 + $0x42c] ss:$52 sps:$4 sm:$0xff]  }
  0xf5   :  { %v8006_v34 = vld [vmem:[%s11499_s0 + $0x420] ss:$52 sps:$4 sm:$0xff]  }
  0xf7   :  { %5356 = vmatpush1.bf16.msra.mxu0 %v7928_v37  ;;  %5520 = vmatpush1.bf16.msra.mxu1 %v7931_v38  ;;  %v8009_v37 = vld [vmem:[%s11499_s0 + $0x428] ss:$52 sps:$4 sm:$0xff]   ;;  %v8014_v38 = vld [vmem:[%s11499_s0 + $0x48c] ss:$52 sps:$4 sm:$0xff]  }
  0xf8   :  { %5357 = vmatprep.subr.bf16.mxu0 %v7936_v39  ;;  %5521 = vmatprep.subr.bf16.mxu1 %v7939_v40  ;;  %v8017_v39 = vld [vmem:[%s11499_s0 + $0x494] ss:$52 sps:$4 sm:$0xff]  }
  0xf9   :  { %v8012_v40 = vld [vmem:[%s11499_s0 + $0x488] ss:$52 sps:$4 sm:$0xff]  }
  0xfb   :  { %5358 = vmatpush1.bf16.msra.mxu0 %v7934_v41  ;;  %5522 = vmatpush1.bf16.msra.mxu1 %v7937_v43  ;;  %v8015_v41 = vld [vmem:[%s11499_s0 + $0x490] ss:$52 sps:$4 sm:$0xff]   ;;  %v8020_v43 = vld [vmem:[%s11499_s0 + $0x4f4] ss:$52 sps:$4 sm:$0xff]  }
  0xfc   :  { %5359 = vmatprep.subr.bf16.mxu0 %v7942_v44  ;;  %5523 = vmatprep.subr.bf16.mxu1 %v7945_v45  ;;  %v8023_v44 = vld [vmem:[%s11499_s0 + $0x4fc] ss:$52 sps:$4 sm:$0xff]  }
  0xfd   :  { %v8018_v45 = vld [vmem:[%s11499_s0 + $0x4f0] ss:$52 sps:$4 sm:$0xff]  }
  0xff   :  { %5360 = vmatpush1.bf16.msra.mxu0 %v7940_v46  ;;  %5524 = vmatpush1.bf16.msra.mxu1 %v7943_v47  ;;  %v8021_v46 = vld [vmem:[%s11499_s0 + $0x4f8] ss:$52 sps:$4 sm:$0xff]   ;;  %v8026_v47 = vld [vmem:[%s11499_s0 + $0x55c] ss:$52 sps:$4 sm:$0xff]  }
 0x100   :  { %5534 = vmatprep.subr.bf16.mxu0 %v7948_v48  ;;  %5698 = vmatprep.subr.bf16.mxu1 %v7951_v50  ;;  %v8029_v48 = vld [vmem:[%s11499_s0 + $0x564] ss:$52 sps:$4 sm:$0xff]  }
 0x101   :  { %v8024_v50 = vld [vmem:[%s11499_s0 + $0x558] ss:$52 sps:$4 sm:$0xff]  }
 0x102   :  { %5362 = vmatmul.mubr.bf16.vlgmr.msra.gmra.mrb[0].mxu0 %v9690_v51  ;;  %5526 = vmatmul.mubr.bf16.vlgmr.msra.gmra.mrb[0].mxu1 %v9690_v51 }
 0x103   :  { %5535 = vmatpush1.bf16.msra.mxu0 %v7946_v53  ;;  %5699 = vmatpush1.bf16.msra.mxu1 %v7949_v54  ;;  %v8027_v53 = vld [vmem:[%s11499_s0 + $0x560] ss:$52 sps:$4 sm:$0xff]   ;;  %v8032_v54 = vld [vmem:[%s11499_s0 + $0x5c4] ss:$52 sps:$4 sm:$0xff]  }
 0x104   :  { %5536 = vmatprep.subr.bf16.mxu0 %v7954_v55  ;;  %5700 = vmatprep.subr.bf16.mxu1 %v7957_v56  ;;  %v8035_v55 = vld [vmem:[%s11499_s0 + $0x5cc] ss:$52 sps:$4 sm:$0xff]  }
 0x105   :  { %5566 = vmatprep.mubr.bf16.mxu0 %v9019_v60  ;;  %5730 = vmatprep.mubr.bf16.mxu1 %v9019_v60  ;;  %v8030_v56 = vld [vmem:[%s11499_s0 + $0x5c0] ss:$52 sps:$4 sm:$0xff]  }
 0x107   :  { %5537 = vmatpush1.bf16.msra.mxu0 %v7952_v57  ;;  %5701 = vmatpush1.bf16.msra.mxu1 %v7955_v58  ;;  %v8033_v57 = vld [vmem:[%s11499_s0 + $0x5c8] ss:$52 sps:$4 sm:$0xff]   ;;  %v8038_v58 = vld [vmem:[%s11499_s0 + $0x62c] ss:$52 sps:$4 sm:$0xff]  }
 0x108   :  { %5538 = vmatprep.subr.bf16.mxu0 %v7960_v59  ;;  %5702 = vmatprep.subr.bf16.mxu1 %v7963_v61  ;;  %v8041_v59 = vld [vmem:[%s11499_s0 + $0x634] ss:$52 sps:$4 sm:$0xff]  }
 0x109   :  { %v8036_v61 = vld [vmem:[%s11499_s0 + $0x628] ss:$52 sps:$4 sm:$0xff]  }
 0x10b   :  { %5539 = vmatpush1.bf16.msra.mxu0 %v7958_v62  ;;  %5703 = vmatpush1.bf16.msra.mxu1 %v7961_v63  ;;  %v8039_v62 = vld [vmem:[%s11499_s0 + $0x630] ss:$52 sps:$4 sm:$0xff]   ;;  %v8044_v63 = vld [vmem:[%s11499_s0 + $0x694] ss:$52 sps:$4 sm:$0xff]  }
 0x10c   :  { %5540 = vmatprep.subr.bf16.mxu0 %v7966_v0  ;;  %5704 = vmatprep.subr.bf16.mxu1 %v7969_v1  ;;  %v8047_v0 = vld [vmem:[%s11499_s0 + $0x69c] ss:$52 sps:$4 sm:$0xff]  }
 0x10d   :  { %v8042_v1 = vld [vmem:[%s11499_s0 + $0x690] ss:$52 sps:$4 sm:$0xff]  }
 0x10f   :  { %5541 = vmatpush1.bf16.msra.mxu0 %v7964_v2  ;;  %5705 = vmatpush1.bf16.msra.mxu1 %v7967_v3  ;;  %v8045_v2 = vld [vmem:[%s11499_s0 + $0x698] ss:$52 sps:$4 sm:$0xff]   ;;  %v8050_v3 = vld [vmem:[%s11499_s0 + $0x6fc] ss:$52 sps:$4 sm:$0xff]  }
 0x110   :  { %5542 = vmatprep.subr.bf16.mxu0 %v7972_v4  ;;  %5706 = vmatprep.subr.bf16.mxu1 %v7975_v5  ;;  %v8053_v4 = vld [vmem:[%s11499_s0 + $0x704] ss:$52 sps:$4 sm:$0xff]  }
 0x111   :  { %v8048_v5 = vld [vmem:[%s11499_s0 + $0x6f8] ss:$52 sps:$4 sm:$0xff]  }
 0x113   :  { %5543 = vmatpush1.bf16.msra.mxu0 %v7970_v6  ;;  %5707 = vmatpush1.bf16.msra.mxu1 %v7973_v7  ;;  %v8051_v6 = vld [vmem:[%s11499_s0 + $0x700] ss:$52 sps:$4 sm:$0xff]   ;;  %v8056_v7 = vld [vmem:[%s11499_s0 + $0x764] ss:$52 sps:$4 sm:$0xff]  }
 0x114   :  { %5544 = vmatprep.subr.bf16.mxu0 %v7978_v8  ;;  %5708 = vmatprep.subr.bf16.mxu1 %v7981_v9  ;;  %v8059_v8 = vld [vmem:[%s11499_s0 + $0x76c] ss:$52 sps:$4 sm:$0xff]  }
 0x115   :  { %v8054_v9 = vld [vmem:[%s11499_s0 + $0x760] ss:$52 sps:$4 sm:$0xff]  }
 0x117   :  { %5545 = vmatpush1.bf16.msra.mxu0 %v7976_v10  ;;  %5709 = vmatpush1.bf16.msra.mxu1 %v7979_v11  ;;  %v8057_v10 = vld [vmem:[%s11499_s0 + $0x768] ss:$52 sps:$4 sm:$0xff]   ;;  %v8062_v11 = vld [vmem:[%s11499_s0 + $0x7cc] ss:$52 sps:$4 sm:$0xff]  }
 0x118   :  { %5546 = vmatprep.subr.bf16.mxu0 %v7984_v12  ;;  %5710 = vmatprep.subr.bf16.mxu1 %v7987_v14  ;;  %v8065_v12 = vld [vmem:[%s11499_s0 + $0x7d4] ss:$52 sps:$4 sm:$0xff]  }
 0x119   :  { %v8060_v14 = vld [vmem:[%s11499_s0 + $0x7c8] ss:$52 sps:$4 sm:$0xff]  }
 0x11b   :  { %5547 = vmatpush1.bf16.msra.mxu0 %v7982_v15  ;;  %5711 = vmatpush1.bf16.msra.mxu1 %v7985_v52  ;;  %v8063_v15 = vld [vmem:[%s11499_s0 + $0x7d0] ss:$52 sps:$4 sm:$0xff]   ;;  %v8068_v52 = vld [vmem:[%s11499_s0 + $0x834] ss:$52 sps:$4 sm:$0xff]  }
 0x11c   :  { %5548 = vmatprep.subr.bf16.mxu0 %v7990_v18  ;;  %5712 = vmatprep.subr.bf16.mxu1 %v7993_v19  ;;  %v8071_v18 = vld [vmem:[%s11499_s0 + $0x83c] ss:$52 sps:$4 sm:$0xff]  }
 0x11d   :  { %v8066_v19 = vld [vmem:[%s11499_s0 + $0x830] ss:$52 sps:$4 sm:$0xff]  }
 0x11f   :  { %5549 = vmatpush1.bf16.msra.mxu0 %v7988_v20  ;;  %5713 = vmatpush1.bf16.msra.mxu1 %v7991_v21  ;;  %v8069_v20 = vld [vmem:[%s11499_s0 + $0x838] ss:$52 sps:$4 sm:$0xff]   ;;  %v8074_v21 = vld [vmem:[%s11499_s0 + $0x89c] ss:$52 sps:$4 sm:$0xff]  }
 0x120   :  { %5550 = vmatprep.subr.bf16.mxu0 %v7996_v22  ;;  %5714 = vmatprep.subr.bf16.mxu1 %v7999_v23  ;;  %v8077_v22 = vld [vmem:[%s11499_s0 + $0x8a4] ss:$52 sps:$4 sm:$0xff]  }
 0x121   :  { %v8072_v23 = vld [vmem:[%s11499_s0 + $0x898] ss:$52 sps:$4 sm:$0xff]  }
 0x123   :  { %5551 = vmatpush1.bf16.msra.mxu0 %v7994_v25  ;;  %5715 = vmatpush1.bf16.msra.mxu1 %v7997_v26  ;;  %v8075_v25 = vld [vmem:[%s11499_s0 + $0x8a0] ss:$52 sps:$4 sm:$0xff]   ;;  %v8080_v26 = vld [vmem:[%s11499_s0 + $0x904] ss:$52 sps:$4 sm:$0xff]  }
 0x124   :  { %5552 = vmatprep.subr.bf16.mxu0 %v8002_v27  ;;  %5716 = vmatprep.subr.bf16.mxu1 %v8005_v29  ;;  %v8083_v27 = vld [vmem:[%s11499_s0 + $0x90c] ss:$52 sps:$4 sm:$0xff]  }
 0x125   :  { %v8078_v29 = vld [vmem:[%s11499_s0 + $0x900] ss:$52 sps:$4 sm:$0xff]  }
 0x127   :  { %5553 = vmatpush1.bf16.msra.mxu0 %v8000_v30  ;;  %5717 = vmatpush1.bf16.msra.mxu1 %v8003_v31  ;;  %v8081_v30 = vld [vmem:[%s11499_s0 + $0x908] ss:$52 sps:$4 sm:$0xff]   ;;  %v8086_v31 = vld [vmem:[%s11499_s0 + $0x96c] ss:$52 sps:$4 sm:$0xff]  }
 0x128   :  { %5554 = vmatprep.subr.bf16.mxu0 %v8008_v32  ;;  %5718 = vmatprep.subr.bf16.mxu1 %v8011_v33  ;;  %v8089_v32 = vld [vmem:[%s11499_s0 + $0x974] ss:$52 sps:$4 sm:$0xff]  }
 0x129   :  { %v8084_v33 = vld [vmem:[%s11499_s0 + $0x968] ss:$52 sps:$4 sm:$0xff]  }
 0x12b   :  { %5555 = vmatpush1.bf16.msra.mxu0 %v8006_v34  ;;  %5719 = vmatpush1.bf16.msra.mxu1 %v8009_v37  ;;  %v8087_v34 = vld [vmem:[%s11499_s0 + $0x970] ss:$52 sps:$4 sm:$0xff]   ;;  %v8092_v37 = vld [vmem:[%s11499_s0 + $0x9d4] ss:$52 sps:$4 sm:$0xff]  }
 0x12c   :  { %5556 = vmatprep.subr.bf16.mxu0 %v8014_v38  ;;  %5720 = vmatprep.subr.bf16.mxu1 %v8017_v39  ;;  %v8095_v38 = vld [vmem:[%s11499_s0 + $0x9dc] ss:$52 sps:$4 sm:$0xff]  }
 0x12d   :  { %v8090_v39 = vld [vmem:[%s11499_s0 + $0x9d0] ss:$52 sps:$4 sm:$0xff]  }
 0x12f   :  { %5557 = vmatpush1.bf16.msra.mxu0 %v8012_v40  ;;  %5721 = vmatpush1.bf16.msra.mxu1 %v8015_v41  ;;  %v8093_v40 = vld [vmem:[%s11499_s0 + $0x9d8] ss:$52 sps:$4 sm:$0xff]   ;;  %v8098_v41 = vld [vmem:[%s11499_s0 + $0xa3c] ss:$52 sps:$4 sm:$0xff]  }
 0x130   :  { %5558 = vmatprep.subr.bf16.mxu0 %v8020_v43  ;;  %5722 = vmatprep.subr.bf16.mxu1 %v8023_v44  ;;  %v8101_v43 = vld [vmem:[%s11499_s0 + $0xa44] ss:$52 sps:$4 sm:$0xff]  }
 0x131   :  { %v8096_v44 = vld [vmem:[%s11499_s0 + $0xa38] ss:$52 sps:$4 sm:$0xff]  }
 0x133   :  { %5559 = vmatpush1.bf16.msra.mxu0 %v8018_v45  ;;  %5723 = vmatpush1.bf16.msra.mxu1 %v8021_v46  ;;  %v8099_v45 = vld [vmem:[%s11499_s0 + $0xa40] ss:$52 sps:$4 sm:$0xff]   ;;  %v8104_v46 = vld [vmem:[%s11499_s0 + $0xaa4] ss:$52 sps:$4 sm:$0xff]  }
 0x134   :  { %5560 = vmatprep.subr.bf16.mxu0 %v8026_v47  ;;  %5724 = vmatprep.subr.bf16.mxu1 %v8029_v48  ;;  %v8107_v47 = vld [vmem:[%s11499_s0 + $0xaac] ss:$52 sps:$4 sm:$0xff]  }
 0x135   :  { %v8102_v48 = vld [vmem:[%s11499_s0 + $0xaa0] ss:$52 sps:$4 sm:$0xff]  }
 0x137   :  { %5561 = vmatpush1.bf16.msra.mxu0 %v8024_v50  ;;  %5725 = vmatpush1.bf16.msra.mxu1 %v8027_v53  ;;  %v8105_v50 = vld [vmem:[%s11499_s0 + $0xaa8] ss:$52 sps:$4 sm:$0xff]   ;;  %v8110_v53 = vld [vmem:[%s11499_s0 + $0xb0c] ss:$52 sps:$4 sm:$0xff]  }
 0x138   :  { %5562 = vmatprep.subr.bf16.mxu0 %v8032_v54  ;;  %5726 = vmatprep.subr.bf16.mxu1 %v8035_v55  ;;  %v8113_v54 = vld [vmem:[%s11499_s0 + $0xb14] ss:$52 sps:$4 sm:$0xff]  }
 0x139   :  { %v8108_v55 = vld [vmem:[%s11499_s0 + $0xb08] ss:$52 sps:$4 sm:$0xff]  }
 0x13b   :  { %5563 = vmatpush1.bf16.msra.mxu0 %v8030_v56  ;;  %5727 = vmatpush1.bf16.msra.mxu1 %v8033_v57  ;;  %v8111_v56 = vld [vmem:[%s11499_s0 + $0xb10] ss:$52 sps:$4 sm:$0xff]   ;;  %v8116_v57 = vld [vmem:[%s11499_s0 + $0xb74] ss:$52 sps:$4 sm:$0xff]  }
 0x13c   :  { %5564 = vmatprep.subr.bf16.mxu0 %v8038_v58  ;;  %5728 = vmatprep.subr.bf16.mxu1 %v8041_v59  ;;  %v8119_v58 = vld [vmem:[%s11499_s0 + $0xb7c] ss:$52 sps:$4 sm:$0xff]  }
 0x13d   :  { %v8114_v59 = vld [vmem:[%s11499_s0 + $0xb70] ss:$52 sps:$4 sm:$0xff]  }
 0x13f   :  { %5565 = vmatpush1.bf16.msra.mxu0 %v8036_v61  ;;  %5729 = vmatpush1.bf16.msra.mxu1 %v8039_v62  ;;  %v8117_v61 = vld [vmem:[%s11499_s0 + $0xb78] ss:$52 sps:$4 sm:$0xff]   ;;  %v8122_v62 = vld [vmem:[%s11499_s0 + $0xbdc] ss:$52 sps:$4 sm:$0xff]  }
 0x140   :  { %5575 = vmatprep.subr.bf16.mxu0 %v8044_v63  ;;  %5739 = vmatprep.subr.bf16.mxu1 %v8047_v0  ;;  %v8125_v63 = vld [vmem:[%s11499_s0 + $0xbe4] ss:$52 sps:$4 sm:$0xff]  }
 0x141   :  { %v8120_v0 = vld [vmem:[%s11499_s0 + $0xbd8] ss:$52 sps:$4 sm:$0xff]  }
 0x142   :  { %5567 = vmatmul.mubr.bf16.vlgmr.msra.gmra.mrb[4].mxu0 %v9072_v13  ;;  %5731 = vmatmul.mubr.bf16.vlgmr.msra.gmra.mrb[4].mxu1 %v9072_v13 }
 0x143   :  { %5576 = vmatpush1.bf16.msra.mxu0 %v8042_v1  ;;  %5740 = vmatpush1.bf16.msra.mxu1 %v8045_v2  ;;  %v8123_v1 = vld [vmem:[%s11499_s0 + $0xbe0] ss:$52 sps:$4 sm:$0xff]   ;;  %v8128_v2 = vld [vmem:[%s11499_s0 + $0xc44] ss:$52 sps:$4 sm:$0xff]  }
 0x144   :  { %5577 = vmatprep.subr.bf16.mxu0 %v8050_v3  ;;  %5741 = vmatprep.subr.bf16.mxu1 %v8053_v4  ;;  %v8131_v3 = vld [vmem:[%s11499_s0 + $0xc4c] ss:$52 sps:$4 sm:$0xff]  }
 0x145   :  { %5607 = vmatprep.mubr.bf16.mxu0 %v9085_v17  ;;  %5771 = vmatprep.mubr.bf16.mxu1 %v9085_v17  ;;  %v8126_v4 = vld [vmem:[%s11499_s0 + $0xc40] ss:$52 sps:$4 sm:$0xff]  }
 0x147   :  { %5578 = vmatpush1.bf16.msra.mxu0 %v8048_v5  ;;  %5742 = vmatpush1.bf16.msra.mxu1 %v8051_v6  ;;  %v8129_v5 = vld [vmem:[%s11499_s0 + $0xc48] ss:$52 sps:$4 sm:$0xff]   ;;  %v8134_v6 = vld [vmem:[%s11499_s0 + $0xcac] ss:$52 sps:$4 sm:$0xff]  }
 0x148   :  { %5579 = vmatprep.subr.bf16.mxu0 %v8056_v7  ;;  %5743 = vmatprep.subr.bf16.mxu1 %v8059_v8  ;;  %v8137_v7 = vld [vmem:[%s11499_s0 + $0xcb4] ss:$52 sps:$4 sm:$0xff]  }
 0x149   :  { %v8132_v8 = vld [vmem:[%s11499_s0 + $0xca8] ss:$52 sps:$4 sm:$0xff]  }
 0x14b   :  { %5580 = vmatpush1.bf16.msra.mxu0 %v8054_v9  ;;  %5744 = vmatpush1.bf16.msra.mxu1 %v8057_v10  ;;  %v8135_v9 = vld [vmem:[%s11499_s0 + $0xcb0] ss:$52 sps:$4 sm:$0xff]   ;;  %v8140_v10 = vld [vmem:[%s11499_s0 + $0xd14] ss:$52 sps:$4 sm:$0xff]  }
 0x14c   :  { %5581 = vmatprep.subr.bf16.mxu0 %v8062_v11  ;;  %5745 = vmatprep.subr.bf16.mxu1 %v8065_v12  ;;  %v8143_v11 = vld [vmem:[%s11499_s0 + $0xd1c] ss:$52 sps:$4 sm:$0xff]  }
 0x14d   :  { %v8138_v12 = vld [vmem:[%s11499_s0 + $0xd10] ss:$52 sps:$4 sm:$0xff]  }
 0x14f   :  { %5582 = vmatpush1.bf16.msra.mxu0 %v8060_v14  ;;  %5746 = vmatpush1.bf16.msra.mxu1 %v8063_v15  ;;  %v8141_v14 = vld [vmem:[%s11499_s0 + $0xd18] ss:$52 sps:$4 sm:$0xff]   ;;  %v8146_v15 = vld [vmem:[%s11499_s0 + $0xd7c] ss:$52 sps:$4 sm:$0xff]  }
 0x150   :  { %5583 = vmatprep.subr.bf16.mxu0 %v8068_v52  ;;  %5747 = vmatprep.subr.bf16.mxu1 %v8071_v18  ;;  %v8149_v52 = vld [vmem:[%s11499_s0 + $0xd84] ss:$52 sps:$4 sm:$0xff]  }
 0x151   :  { %v8144_v18 = vld [vmem:[%s11499_s0 + $0xd78] ss:$52 sps:$4 sm:$0xff]  }
 0x153   :  { %5584 = vmatpush1.bf16.msra.mxu0 %v8066_v19  ;;  %5748 = vmatpush1.bf16.msra.mxu1 %v8069_v20  ;;  %v8147_v19 = vld [vmem:[%s11499_s0 + $0xd80] ss:$52 sps:$4 sm:$0xff]   ;;  %v8152_v20 = vld [vmem:[%s11499_s0 + $0xde4] ss:$52 sps:$4 sm:$0xff]  }
 0x154   :  { %5585 = vmatprep.subr.bf16.mxu0 %v8074_v21  ;;  %5749 = vmatprep.subr.bf16.mxu1 %v8077_v22  ;;  %v8155_v21 = vld [vmem:[%s11499_s0 + $0xdec] ss:$52 sps:$4 sm:$0xff]  }
 0x155   :  { %v8150_v22 = vld [vmem:[%s11499_s0 + $0xde0] ss:$52 sps:$4 sm:$0xff]  }
 0x157   :  { %5586 = vmatpush1.bf16.msra.mxu0 %v8072_v23  ;;  %5750 = vmatpush1.bf16.msra.mxu1 %v8075_v25  ;;  %v8153_v23 = vld [vmem:[%s11499_s0 + $0xde8] ss:$52 sps:$4 sm:$0xff]   ;;  %v8158_v25 = vld [vmem:[%s11499_s0 + $0xe4c] ss:$52 sps:$4 sm:$0xff]  }
 0x158   :  { %5587 = vmatprep.subr.bf16.mxu0 %v8080_v26  ;;  %5751 = vmatprep.subr.bf16.mxu1 %v8083_v27  ;;  %v8161_v26 = vld [vmem:[%s11499_s0 + $0xe54] ss:$52 sps:$4 sm:$0xff]  }
 0x159   :  { %v8156_v27 = vld [vmem:[%s11499_s0 + $0xe48] ss:$52 sps:$4 sm:$0xff]  }
 0x15b   :  { %5588 = vmatpush1.bf16.msra.mxu0 %v8078_v29  ;;  %5752 = vmatpush1.bf16.msra.mxu1 %v8081_v30  ;;  %v8159_v29 = vld [vmem:[%s11499_s0 + $0xe50] ss:$52 sps:$4 sm:$0xff]   ;;  %v8164_v30 = vld [vmem:[%s11499_s0 + $0xeb4] ss:$52 sps:$4 sm:$0xff]  }
 0x15c   :  { %5589 = vmatprep.subr.bf16.mxu0 %v8086_v31  ;;  %5753 = vmatprep.subr.bf16.mxu1 %v8089_v32  ;;  %v8167_v31 = vld [vmem:[%s11499_s0 + $0xebc] ss:$52 sps:$4 sm:$0xff]  }
 0x15d   :  { %v8162_v32 = vld [vmem:[%s11499_s0 + $0xeb0] ss:$52 sps:$4 sm:$0xff]  }
 0x15f   :  { %5590 = vmatpush1.bf16.msra.mxu0 %v8084_v33  ;;  %5754 = vmatpush1.bf16.msra.mxu1 %v8087_v34  ;;  %v8165_v33 = vld [vmem:[%s11499_s0 + $0xeb8] ss:$52 sps:$4 sm:$0xff]   ;;  %v8170_v34 = vld [vmem:[%s11499_s0 + $0xf1c] ss:$52 sps:$4 sm:$0xff]  }
 0x160   :  { %5591 = vmatprep.subr.bf16.mxu0 %v8092_v37  ;;  %5755 = vmatprep.subr.bf16.mxu1 %v8095_v38  ;;  %v8173_v37 = vld [vmem:[%s11499_s0 + $0xf24] ss:$52 sps:$4 sm:$0xff]  }
 0x161   :  { %v8168_v38 = vld [vmem:[%s11499_s0 + $0xf18] ss:$52 sps:$4 sm:$0xff]  }
 0x163   :  { %5592 = vmatpush1.bf16.msra.mxu0 %v8090_v39  ;;  %5756 = vmatpush1.bf16.msra.mxu1 %v8093_v40  ;;  %v8171_v39 = vld [vmem:[%s11499_s0 + $0xf20] ss:$52 sps:$4 sm:$0xff]   ;;  %v8176_v40 = vld [vmem:[%s11499_s0 + $0xf84] ss:$52 sps:$4 sm:$0xff]  }
 0x164   :  { %5593 = vmatprep.subr.bf16.mxu0 %v8098_v41  ;;  %5757 = vmatprep.subr.bf16.mxu1 %v8101_v43  ;;  %v8179_v41 = vld [vmem:[%s11499_s0 + $0xf8c] ss:$52 sps:$4 sm:$0xff]  }
 0x165   :  { %v8174_v43 = vld [vmem:[%s11499_s0 + $0xf80] ss:$52 sps:$4 sm:$0xff]  }
 0x167   :  { %5594 = vmatpush1.bf16.msra.mxu0 %v8096_v44  ;;  %5758 = vmatpush1.bf16.msra.mxu1 %v8099_v45  ;;  %v8177_v44 = vld [vmem:[%s11499_s0 + $0xf88] ss:$52 sps:$4 sm:$0xff]   ;;  %v8182_v45 = vld [vmem:[%s11499_s0 + $0xfec] ss:$52 sps:$4 sm:$0xff]  }
 0x168   :  { %5595 = vmatprep.subr.bf16.mxu0 %v8104_v46  ;;  %5759 = vmatprep.subr.bf16.mxu1 %v8107_v47  ;;  %v8185_v46 = vld [vmem:[%s11499_s0 + $0xff4] ss:$52 sps:$4 sm:$0xff]  }
 0x169   :  { %v8180_v47 = vld [vmem:[%s11499_s0 + $0xfe8] ss:$52 sps:$4 sm:$0xff]  }
 0x16b   :  { %5596 = vmatpush1.bf16.msra.mxu0 %v8102_v48  ;;  %5760 = vmatpush1.bf16.msra.mxu1 %v8105_v50  ;;  %v8183_v48 = vld [vmem:[%s11499_s0 + $0xff0] ss:$52 sps:$4 sm:$0xff]   ;;  %v8188_v50 = vld [vmem:[%s11499_s0 + $0x1054] ss:$52 sps:$4 sm:$0xff]  }
 0x16c   :  { %5597 = vmatprep.subr.bf16.mxu0 %v8110_v53  ;;  %5761 = vmatprep.subr.bf16.mxu1 %v8113_v54  ;;  %v8191_v53 = vld [vmem:[%s11499_s0 + $0x105c] ss:$52 sps:$4 sm:$0xff]  }
 0x16d   :  { %v8186_v54 = vld [vmem:[%s11499_s0 + $0x1050] ss:$52 sps:$4 sm:$0xff]  }
 0x16f   :  { %5598 = vmatpush1.bf16.msra.mxu0 %v8108_v55  ;;  %5762 = vmatpush1.bf16.msra.mxu1 %v8111_v56  ;;  %v8189_v55 = vld [vmem:[%s11499_s0 + $0x1058] ss:$52 sps:$4 sm:$0xff]   ;;  %v8194_v56 = vld [vmem:[%s11499_s0 + $0x10bc] ss:$52 sps:$4 sm:$0xff]  }
 0x170   :  { %5599 = vmatprep.subr.bf16.mxu0 %v8116_v57  ;;  %5763 = vmatprep.subr.bf16.mxu1 %v8119_v58  ;;  %v8197_v57 = vld [vmem:[%s11499_s0 + $0x10c4] ss:$52 sps:$4 sm:$0xff]  }
 0x171   :  { %v8192_v58 = vld [vmem:[%s11499_s0 + $0x10b8] ss:$52 sps:$4 sm:$0xff]  }
 0x173   :  { %5600 = vmatpush1.bf16.msra.mxu0 %v8114_v59  ;;  %5764 = vmatpush1.bf16.msra.mxu1 %v8117_v61  ;;  %v8195_v59 = vld [vmem:[%s11499_s0 + $0x10c0] ss:$52 sps:$4 sm:$0xff]   ;;  %v8200_v61 = vld [vmem:[%s11499_s0 + $0x1124] ss:$52 sps:$4 sm:$0xff]  }
 0x174   :  { %5601 = vmatprep.subr.bf16.mxu0 %v8122_v62  ;;  %5765 = vmatprep.subr.bf16.mxu1 %v8125_v63  ;;  %v8203_v62 = vld [vmem:[%s11499_s0 + $0x112c] ss:$52 sps:$4 sm:$0xff]  }
 0x175   :  { %v8198_v63 = vld [vmem:[%s11499_s0 + $0x1120] ss:$52 sps:$4 sm:$0xff]  }
 0x177   :  { %5602 = vmatpush1.bf16.msra.mxu0 %v8120_v0  ;;  %5766 = vmatpush1.bf16.msra.mxu1 %v8123_v1  ;;  %v8201_v0 = vld [vmem:[%s11499_s0 + $0x1128] ss:$52 sps:$4 sm:$0xff]   ;;  %v8206_v1 = vld [vmem:[%s11499_s0 + $0x118c] ss:$52 sps:$4 sm:$0xff]  }
 0x178   :  { %5603 = vmatprep.subr.bf16.mxu0 %v8128_v2  ;;  %5767 = vmatprep.subr.bf16.mxu1 %v8131_v3  ;;  %v8209_v2 = vld [vmem:[%s11499_s0 + $0x1194] ss:$52 sps:$4 sm:$0xff]  }
 0x179   :  { %v8204_v3 = vld [vmem:[%s11499_s0 + $0x1188] ss:$52 sps:$4 sm:$0xff]  }
 0x17b   :  { %5604 = vmatpush1.bf16.msra.mxu0 %v8126_v4  ;;  %5768 = vmatpush1.bf16.msra.mxu1 %v8129_v5  ;;  %v8207_v4 = vld [vmem:[%s11499_s0 + $0x1190] ss:$52 sps:$4 sm:$0xff]   ;;  %v8212_v5 = vld [vmem:[%s11499_s0 + $0x11f4] ss:$52 sps:$4 sm:$0xff]  }
 0x17c   :  { %5605 = vmatprep.subr.bf16.mxu0 %v8134_v6  ;;  %5769 = vmatprep.subr.bf16.mxu1 %v8137_v7  ;;  %v8215_v6 = vld [vmem:[%s11499_s0 + $0x11fc] ss:$52 sps:$4 sm:$0xff]  }
 0x17d   :  { %v8210_v7 = vld [vmem:[%s11499_s0 + $0x11f0] ss:$52 sps:$4 sm:$0xff]  }
 0x17f   :  { %5606 = vmatpush1.bf16.msra.mxu0 %v8132_v8  ;;  %5770 = vmatpush1.bf16.msra.mxu1 %v8135_v9  ;;  %v8213_v8 = vld [vmem:[%s11499_s0 + $0x11f8] ss:$52 sps:$4 sm:$0xff]   ;;  %v8218_v9 = vld [vmem:[%s11499_s0 + $0x125c] ss:$52 sps:$4 sm:$0xff]  }
 0x180   :  { %5616 = vmatprep.subr.bf16.mxu0 %v8140_v10  ;;  %5780 = vmatprep.subr.bf16.mxu1 %v8143_v11  ;;  %v8221_v10 = vld [vmem:[%s11499_s0 + $0x1264] ss:$52 sps:$4 sm:$0xff]  }
 0x181   :  { %v8216_v11 = vld [vmem:[%s11499_s0 + $0x1258] ss:$52 sps:$4 sm:$0xff]  }
 0x182   :  { %5608 = vmatmul.mubr.bf16.vlgmr.msra.gmra.mrb[4].mxu0 %v9283_v24  ;;  %5772 = vmatmul.mubr.bf16.vlgmr.msra.gmra.mrb[4].mxu1 %v9283_v24 }
 0x183   :  { %5617 = vmatpush1.bf16.msra.mxu0 %v8138_v12  ;;  %5781 = vmatpush1.bf16.msra.mxu1 %v8141_v14  ;;  %v8219_v12 = vld [vmem:[%s11499_s0 + $0x1260] ss:$52 sps:$4 sm:$0xff]   ;;  %v8224_v14 = vld [vmem:[%s11499_s0 + $0x12c4] ss:$52 sps:$4 sm:$0xff]  }
 0x184   :  { %5618 = vmatprep.subr.bf16.mxu0 %v8146_v15  ;;  %5782 = vmatprep.subr.bf16.mxu1 %v8149_v52  ;;  %v8227_v15 = vld [vmem:[%s11499_s0 + $0x12cc] ss:$52 sps:$4 sm:$0xff]  }
 0x185   :  { %5648 = vmatprep.mubr.bf16.mxu0 %v9295_v28  ;;  %5812 = vmatprep.mubr.bf16.mxu1 %v9295_v28  ;;  %v8222_v52 = vld [vmem:[%s11499_s0 + $0x12c0] ss:$52 sps:$4 sm:$0xff]  }
 0x187   :  { %5619 = vmatpush1.bf16.msra.mxu0 %v8144_v18  ;;  %5783 = vmatpush1.bf16.msra.mxu1 %v8147_v19  ;;  %v8225_v18 = vld [vmem:[%s11499_s0 + $0x12c8] ss:$52 sps:$4 sm:$0xff]   ;;  %v8230_v19 = vld [vmem:[%s11499_s0 + $0x132c] ss:$52 sps:$4 sm:$0xff]  }
 0x188   :  { %5620 = vmatprep.subr.bf16.mxu0 %v8152_v20  ;;  %5784 = vmatprep.subr.bf16.mxu1 %v8155_v21  ;;  %v8233_v20 = vld [vmem:[%s11499_s0 + $0x1334] ss:$52 sps:$4 sm:$0xff]  }
 0x189   :  { %v8228_v21 = vld [vmem:[%s11499_s0 + $0x1328] ss:$52 sps:$4 sm:$0xff]  }
 0x18b   :  { %5621 = vmatpush1.bf16.msra.mxu0 %v8150_v22  ;;  %5785 = vmatpush1.bf16.msra.mxu1 %v8153_v23  ;;  %v8231_v22 = vld [vmem:[%s11499_s0 + $0x1330] ss:$52 sps:$4 sm:$0xff]   ;;  %v8236_v23 = vld [vmem:[%s11499_s0 + $0x1394] ss:$52 sps:$4 sm:$0xff]  }
 0x18c   :  { %5622 = vmatprep.subr.bf16.mxu0 %v8158_v25  ;;  %5786 = vmatprep.subr.bf16.mxu1 %v8161_v26  ;;  %v8239_v25 = vld [vmem:[%s11499_s0 + $0x139c] ss:$52 sps:$4 sm:$0xff]  }
 0x18d   :  { %v8234_v26 = vld [vmem:[%s11499_s0 + $0x1390] ss:$52 sps:$4 sm:$0xff]  }
 0x18f   :  { %5623 = vmatpush1.bf16.msra.mxu0 %v8156_v27  ;;  %5787 = vmatpush1.bf16.msra.mxu1 %v8159_v29  ;;  %v8237_v27 = vld [vmem:[%s11499_s0 + $0x1398] ss:$52 sps:$4 sm:$0xff]   ;;  %v8242_v29 = vld [vmem:[%s11499_s0 + $0x13fc] ss:$52 sps:$4 sm:$0xff]  }
 0x190   :  { %5624 = vmatprep.subr.bf16.mxu0 %v8164_v30  ;;  %5788 = vmatprep.subr.bf16.mxu1 %v8167_v31  ;;  %v8245_v30 = vld [vmem:[%s11499_s0 + $0x1404] ss:$52 sps:$4 sm:$0xff]  }
 0x191   :  { %v8240_v31 = vld [vmem:[%s11499_s0 + $0x13f8] ss:$52 sps:$4 sm:$0xff]  }
 0x193   :  { %5625 = vmatpush1.bf16.msra.mxu0 %v8162_v32  ;;  %5789 = vmatpush1.bf16.msra.mxu1 %v8165_v33  ;;  %v8243_v32 = vld [vmem:[%s11499_s0 + $0x1400] ss:$52 sps:$4 sm:$0xff]   ;;  %v8248_v33 = vld [vmem:[%s11499_s0 + $0x1464] ss:$52 sps:$4 sm:$0xff]  }
 0x194   :  { %5626 = vmatprep.subr.bf16.mxu0 %v8170_v34  ;;  %5790 = vmatprep.subr.bf16.mxu1 %v8173_v37  ;;  %v8251_v34 = vld [vmem:[%s11499_s0 + $0x146c] ss:$52 sps:$4 sm:$0xff]  }
 0x195   :  { %v8246_v37 = vld [vmem:[%s11499_s0 + $0x1460] ss:$52 sps:$4 sm:$0xff]  }
 0x197   :  { %5627 = vmatpush1.bf16.msra.mxu0 %v8168_v38  ;;  %5791 = vmatpush1.bf16.msra.mxu1 %v8171_v39  ;;  %v8249_v38 = vld [vmem:[%s11499_s0 + $0x1468] ss:$52 sps:$4 sm:$0xff]   ;;  %v8254_v39 = vld [vmem:[%s11499_s0 + $0x14cc] ss:$52 sps:$4 sm:$0xff]  }
 0x198   :  { %5628 = vmatprep.subr.bf16.mxu0 %v8176_v40  ;;  %5792 = vmatprep.subr.bf16.mxu1 %v8179_v41  ;;  %v8257_v40 = vld [vmem:[%s11499_s0 + $0x14d4] ss:$52 sps:$4 sm:$0xff]  }
 0x199   :  { %v8252_v41 = vld [vmem:[%s11499_s0 + $0x14c8] ss:$52 sps:$4 sm:$0xff]  }
 0x19b   :  { %5629 = vmatpush1.bf16.msra.mxu0 %v8174_v43  ;;  %5793 = vmatpush1.bf16.msra.mxu1 %v8177_v44  ;;  %v8255_v43 = vld [vmem:[%s11499_s0 + $0x14d0] ss:$52 sps:$4 sm:$0xff]   ;;  %v8260_v44 = vld [vmem:[%s11499_s0 + $0x1534] ss:$52 sps:$4 sm:$0xff]  }
 0x19c   :  { %5630 = vmatprep.subr.bf16.mxu0 %v8182_v45  ;;  %5794 = vmatprep.subr.bf16.mxu1 %v8185_v46  ;;  %v8263_v45 = vld [vmem:[%s11499_s0 + $0x153c] ss:$52 sps:$4 sm:$0xff]   ;;  %v922_v46 = vsub.s32 0, %v8970_v42  ;;  %v8269_v42 = vld [vmem:[%s11499_s0 + $0x15a4] ss:$52 sps:$4 sm:$0xff]  }
 0x19f   :  { %5631 = vmatpush1.bf16.msra.mxu0 %v8180_v47  ;;  %5795 = vmatpush1.bf16.msra.mxu1 %v8183_v48  ;;  %v8258_v47 = vld [vmem:[%s11499_s0 + $0x1530] ss:$52 sps:$4 sm:$0xff]   ;;  %v8261_v48 = vld [vmem:[%s11499_s0 + $0x1538] ss:$52 sps:$4 sm:$0xff]  }
 0x1a0   :  { %5632 = vmatprep.subr.bf16.mxu0 %v8188_v50  ;;  %5796 = vmatprep.subr.bf16.mxu1 %v8191_v53  ;;  %v918_v50 = vpop.permute.xlu0 %917  ;;  %v8266_v53 = vld [vmem:[%s11499_s0 + $0x159c] ss:$52 sps:$4 sm:$0xff]  }
 0x1a3   :  { %5633 = vmatpush1.bf16.msra.mxu0 %v8186_v54  ;;  %5797 = vmatpush1.bf16.msra.mxu1 %v8189_v55  ;;  %v10345_v54 = vrot.slane %v918_v50, %v922_v46  ;;  %v8264_v55 = vld [vmem:[%s11499_s0 + $0x1598] ss:$52 sps:$4 sm:$0xff]   ;;  %v8305_v46 = vld [vmem:[%s11499_s0 + $0x1814] ss:$52 sps:$4 sm:$0xff]  }
 0x1a4   :  { %5634 = vmatprep.subr.bf16.mxu0 %v8194_v56  ;;  %5798 = vmatprep.subr.bf16.mxu1 %v8197_v57  ;;  %v8267_v56 = vld [vmem:[%s11499_s0 + $0x15a0] ss:$52 sps:$4 sm:$0xff]   ;;  %v8272_v57 = vld [vmem:[%s11499_s0 + $0x1604] ss:$52 sps:$4 sm:$0xff]  }
 0x1a5   :  { %v8308_v50 = vld [vmem:[%s11499_s0 + $0x1874] ss:$52 sps:$4 sm:$0xff]  }
 0x1a7   :  { %5635 = vmatpush1.bf16.msra.mxu0 %v8192_v58  ;;  %5799 = vmatpush1.bf16.msra.mxu1 %v8195_v59  ;;  %v8275_v58 = vld [vmem:[%s11499_s0 + $0x160c] ss:$52 sps:$4 sm:$0xff]  }
 0x1a8   :  { %5636 = vmatprep.subr.bf16.mxu0 %v8200_v61  ;;  %5800 = vmatprep.subr.bf16.mxu1 %v8203_v62  ;;  %v8270_v62 = vld [vmem:[%s11499_s0 + $0x1600] ss:$52 sps:$4 sm:$0xff]  }
 0x1ab   :  { %5637 = vmatpush1.bf16.msra.mxu0 %v8198_v63  ;;  %5801 = vmatpush1.bf16.msra.mxu1 %v8201_v0  ;;  %v8273_v63 = vld [vmem:[%s11499_s0 + $0x1608] ss:$52 sps:$4 sm:$0xff]  }
 0x1ac   :  { %5638 = vmatprep.subr.bf16.mxu0 %v8206_v1  ;;  %5802 = vmatprep.subr.bf16.mxu1 %v8209_v2 }
 0x1af   :  { %5639 = vmatpush1.bf16.msra.mxu0 %v8204_v3  ;;  %5803 = vmatpush1.bf16.msra.mxu1 %v8207_v4 }
 0x1b0   :  { %5640 = vmatprep.subr.bf16.mxu0 %v8212_v5  ;;  %5804 = vmatprep.subr.bf16.mxu1 %v8215_v6 }
 0x1b3   :  { %5641 = vmatpush1.bf16.msra.mxu0 %v8210_v7  ;;  %5805 = vmatpush1.bf16.msra.mxu1 %v8213_v8  ;;  %v8278_v8 = vld [vmem:[%s11499_s0 + $0x166c] ss:$52 sps:$4 sm:$0xff]  }
 0x1b4   :  { %5642 = vmatprep.subr.bf16.mxu0 %v8218_v9  ;;  %5806 = vmatprep.subr.bf16.mxu1 %v8221_v10  ;;  %v8281_v9 = vld [vmem:[%s11499_s0 + $0x1674] ss:$52 sps:$4 sm:$0xff]  }
 0x1b7   :  { %5643 = vmatpush1.bf16.msra.mxu0 %v8216_v11  ;;  %5807 = vmatpush1.bf16.msra.mxu1 %v8219_v12 }
 0x1b8   :  { %5644 = vmatprep.subr.bf16.mxu0 %v8224_v14  ;;  %5808 = vmatprep.subr.bf16.mxu1 %v8227_v15 }
 0x1bb   :  { %5645 = vmatpush1.bf16.msra.mxu0 %v8222_v52  ;;  %5809 = vmatpush1.bf16.msra.mxu1 %v8225_v18  ;;  %v8276_v18 = vld [vmem:[%s11499_s0 + $0x1668] ss:$52 sps:$4 sm:$0xff]  }
 0x1bc   :  { %5646 = vmatprep.subr.bf16.mxu0 %v8230_v19  ;;  %5810 = vmatprep.subr.bf16.mxu1 %v8233_v20  ;;  %v8279_v19 = vld [vmem:[%s11499_s0 + $0x1670] ss:$52 sps:$4 sm:$0xff]   ;;  %v8284_v20 = vld [vmem:[%s11499_s0 + $0x16d4] ss:$52 sps:$4 sm:$0xff]  }
 0x1bf   :  { %5647 = vmatpush1.bf16.msra.mxu0 %v8228_v21  ;;  %5811 = vmatpush1.bf16.msra.mxu1 %v8231_v22  ;;  %v8287_v21 = vld [vmem:[%s11499_s0 + $0x16dc] ss:$52 sps:$4 sm:$0xff]  }
 0x1c0   :  { %5657 = vmatprep.subr.bf16.mxu0 %v8236_v23  ;;  %5821 = vmatprep.subr.bf16.mxu1 %v8239_v25  ;;  %v8282_v22 = vld [vmem:[%s11499_s0 + $0x16d0] ss:$52 sps:$4 sm:$0xff]   ;;  %v8285_v23 = vld [vmem:[%s11499_s0 + $0x16d8] ss:$52 sps:$4 sm:$0xff]  }
 0x1c1   :  { %v8290_v25 = vld [vmem:[%s11499_s0 + $0x173c] ss:$52 sps:$4 sm:$0xff]  }
 0x1c2   :  { %5649 = vmatmul.mubr.bf16.vlgmr.msra.gmra.mrb[4].mxu0 %v9486_v35  ;;  %5813 = vmatmul.mubr.bf16.vlgmr.msra.gmra.mrb[4].mxu1 %v9486_v35 }
 0x1c3   :  { %5658 = vmatpush1.bf16.msra.mxu0 %v8234_v26  ;;  %5822 = vmatpush1.bf16.msra.mxu1 %v8237_v27  ;;  %v8293_v26 = vld [vmem:[%s11499_s0 + $0x1744] ss:$52 sps:$4 sm:$0xff]  }
 0x1c4   :  { %5659 = vmatprep.subr.bf16.mxu0 %v8242_v29  ;;  %5823 = vmatprep.subr.bf16.mxu1 %v8245_v30  ;;  %v8288_v27 = vld [vmem:[%s11499_s0 + $0x1738] ss:$52 sps:$4 sm:$0xff]   ;;  %v8291_v29 = vld [vmem:[%s11499_s0 + $0x1740] ss:$52 sps:$4 sm:$0xff]  }
 0x1c5   :  { %5689 = vmatprep.mubr.bf16.mxu0 %v9499_v16  ;;  %5853 = vmatprep.mubr.bf16.mxu1 %v9499_v16 }
 0x1c7   :  { %5660 = vmatpush1.bf16.msra.mxu0 %v8240_v31  ;;  %5824 = vmatpush1.bf16.msra.mxu1 %v8243_v32  ;;  %v8296_v31 = vld [vmem:[%s11499_s0 + $0x17a4] ss:$52 sps:$4 sm:$0xff]   ;;  %v8299_v32 = vld [vmem:[%s11499_s0 + $0x17ac] ss:$52 sps:$4 sm:$0xff]  }
 0x1c8   :  { %5661 = vmatprep.subr.bf16.mxu0 %v8248_v33  ;;  %5825 = vmatprep.subr.bf16.mxu1 %v8251_v34 }
 0x1cb   :  { %5662 = vmatpush1.bf16.msra.mxu0 %v8246_v37  ;;  %5826 = vmatpush1.bf16.msra.mxu1 %v8249_v38 }
 0x1cc   :  { %5663 = vmatprep.subr.bf16.mxu0 %v8254_v39  ;;  %5827 = vmatprep.subr.bf16.mxu1 %v8257_v40 }
 0x1cf   :  { %5664 = vmatpush1.bf16.msra.mxu0 %v8252_v41  ;;  %5828 = vmatpush1.bf16.msra.mxu1 %v8255_v43  ;;  %v8294_v41 = vld [vmem:[%s11499_s0 + $0x17a0] ss:$52 sps:$4 sm:$0xff]   ;;  %v8297_v43 = vld [vmem:[%s11499_s0 + $0x17a8] ss:$52 sps:$4 sm:$0xff]  }
 0x1d0   :  { %5665 = vmatprep.subr.bf16.mxu0 %v8260_v44  ;;  %5829 = vmatprep.subr.bf16.mxu1 %v8263_v45  ;;  %v8302_v45 = vld [vmem:[%s11499_s0 + $0x180c] ss:$52 sps:$4 sm:$0xff]  }
 0x1d3   :  { %5666 = vmatpush1.bf16.msra.mxu0 %v8258_v47  ;;  %5830 = vmatpush1.bf16.msra.mxu1 %v8261_v48  ;;  %v8300_v47 = vld [vmem:[%s11499_s0 + $0x1808] ss:$52 sps:$4 sm:$0xff]   ;;  %v8303_v48 = vld [vmem:[%s11499_s0 + $0x1810] ss:$52 sps:$4 sm:$0xff]  }
 0x1d4   :  { %5667 = vmatprep.subr.bf16.mxu0 %v8266_v53  ;;  %5831 = vmatprep.subr.bf16.mxu1 %v8269_v42  ;;  %v8311_v53 = vld [vmem:[%s11499_s0 + $0x187c] ss:$52 sps:$4 sm:$0xff]  }
 0x1d5   :  { %v5363_v59 = vpop.f32.mrb[0].mxu0  ;;  %v5527_v61 = vpop.f32.mrb[0].mxu1  ;;  %v8306_v42 = vld [vmem:[%s11499_s0 + $0x1870] ss:$52 sps:$4 sm:$0xff]  }
 0x1d6   :  { %v7474_v0 = vadd.f32 %v5363_v59, %v10345_v54  ;;  %v7476_v1 = vadd.f32 %v5527_v61, %v10345_v54  ;;  %v5365_v2 = vpop.f32.mrb[1].mxu0  ;;  %v5529_v3 = vpop.f32.mrb[1].mxu1 }
 0x1d7   :  { %v7475_v4 = vadd.f32 %v5365_v2, %v10345_v54  ;;  %v7477_v5 = vadd.f32 %v5529_v3, %v10345_v54  ;;  %v5367_v6 = vpop.f32.mrb[2].mxu0  ;;  %v5531_v7 = vpop.f32.mrb[2].mxu1  ;;  %5668 = vmatpush1.bf16.msra.mxu0 %v8264_v55  ;;  %5832 = vmatpush1.bf16.msra.mxu1 %v8267_v56  ;;  %v8309_v55 = vld [vmem:[%s11499_s0 + $0x1878] ss:$52 sps:$4 sm:$0xff]   ;;  %v8314_v56 = vld [vmem:[%s11499_s0 + $0x18dc] ss:$52 sps:$4 sm:$0xff]  }
 0x1d8   :  { %v7373_v10 = vmul.f32 -1.442695, %v7474_v0  ;;  %v7375_v11 = vmul.f32 -1.442695, %v7476_v1  ;;  %v5368_v12 = vpop.f32.mrb[3].mxu0  ;;  %v5532_v14 = vpop.f32.mrb[3].mxu1  ;;  %5669 = vmatprep.subr.bf16.mxu0 %v8272_v57  ;;  %5833 = vmatprep.subr.bf16.mxu1 %v8275_v58 }
 0x1d9   :  { %v7374_v15 = vmul.f32 -1.442695, %v7475_v4  ;;  %v7376_v52 = vmul.f32 -1.442695, %v7477_v5  ;;  %v8317_v57 = vld [vmem:[%s11499_s0 + $0x18e4] ss:$52 sps:$4 sm:$0xff]  }
 0x1da   :  { %8778 = vpow2.f32 %v7373_v10  ;;  %v8320_v2 = vld [vmem:[%s11499_s0 + $0x1944] ss:$52 sps:$4 sm:$0xff]   ;;  %v8323_v3 = vld [vmem:[%s11499_s0 + $0x194c] ss:$52 sps:$4 sm:$0xff]   ;;  %v8329_v10 = vld [vmem:[%s11499_s0 + $0x19b4] ss:$52 sps:$4 sm:$0xff]  }
 0x1db   :  { %8780 = vpow2.f32 %v7375_v11  ;;  %5670 = vmatpush1.bf16.msra.mxu0 %v8270_v62  ;;  %5834 = vmatpush1.bf16.msra.mxu1 %v8273_v63  ;;  %v8312_v62 = vld [vmem:[%s11499_s0 + $0x18d8] ss:$52 sps:$4 sm:$0xff]   ;;  %v8315_v63 = vld [vmem:[%s11499_s0 + $0x18e0] ss:$52 sps:$4 sm:$0xff]   ;;  %v8324_v12 = vld [vmem:[%s11499_s0 + $0x19a8] ss:$52 sps:$4 sm:$0xff]  }
 0x1dc   :  { %8782 = vpow2.f32 %v7374_v15  ;;  %5671 = vmatprep.subr.bf16.mxu0 %v8278_v8  ;;  %5835 = vmatprep.subr.bf16.mxu1 %v8281_v9  ;;  %v8318_v7 = vld [vmem:[%s11499_s0 + $0x1940] ss:$52 sps:$4 sm:$0xff]   ;;  %v8321_v8 = vld [vmem:[%s11499_s0 + $0x1948] ss:$52 sps:$4 sm:$0xff]   ;;  %v8327_v14 = vld [vmem:[%s11499_s0 + $0x19b0] ss:$52 sps:$4 sm:$0xff]  }
 0x1dd   :  { %8784 = vpow2.f32 %v7376_v52  ;;  %v8326_v9 = vld [vmem:[%s11499_s0 + $0x19ac] ss:$52 sps:$4 sm:$0xff]   ;;  %v8332_v15 = vld [vmem:[%s11499_s0 + $0x24] ss:$52 sps:$4 sm:$0xff]  }
 0x1de   :  { %v8335_v52 = vld [vmem:[%s11499_s0 + $0x2c] ss:$52 sps:$4 sm:$0xff]  }
 0x1df   :  { %5672 = vmatpush1.bf16.msra.mxu0 %v8276_v18  ;;  %5836 = vmatpush1.bf16.msra.mxu1 %v8279_v19  ;;  %v8330_v18 = vld [vmem:[%s11499_s0 + $0x20] ss:$52 sps:$4 sm:$0xff]   ;;  %v8333_v19 = vld [vmem:[%s11499_s0 + $0x28] ss:$52 sps:$4 sm:$0xff]  }
 0x1e0   :  { %5673 = vmatprep.subr.bf16.mxu0 %v8284_v20  ;;  %5837 = vmatprep.subr.bf16.mxu1 %v8287_v21  ;;  %v8338_v20 = vld [vmem:[%s11499_s0 + $0x8c] ss:$52 sps:$4 sm:$0xff]   ;;  %v8341_v21 = vld [vmem:[%s11499_s0 + $0x94] ss:$52 sps:$4 sm:$0xff]  }
 0x1e3   :  { %5674 = vmatpush1.bf16.msra.mxu0 %v8282_v22  ;;  %5838 = vmatpush1.bf16.msra.mxu1 %v8285_v23  ;;  %v8336_v22 = vld [vmem:[%s11499_s0 + $0x88] ss:$52 sps:$4 sm:$0xff]   ;;  %v8339_v23 = vld [vmem:[%s11499_s0 + $0x90] ss:$52 sps:$4 sm:$0xff]  }
 0x1e4   :  { %v8779_v30 = vpop.eup %8778  ;;  %5675 = vmatprep.subr.bf16.mxu0 %v8290_v25  ;;  %5839 = vmatprep.subr.bf16.mxu1 %v8293_v26  ;;  %v8344_v25 = vld [vmem:[%s11499_s0 + $0xf4] ss:$52 sps:$4 sm:$0xff]   ;;  %v8347_v26 = vld [vmem:[%s11499_s0 + $0xfc] ss:$52 sps:$4 sm:$0xff]  }
 0x1e5   :  { %v8781_v33 = vpop.eup %8780  ;;  %v6389_v34 = vadd.f32 1.0, %v8779_v30  ;;  %v8350_v30 = vld [vmem:[%s11499_s0 + $0x15c] ss:$52 sps:$4 sm:$0xff]  }
 0x1e6   :  { %v8783_v37 = vpop.eup %8782  ;;  %v6391_v38 = vadd.f32 1.0, %v8781_v33  ;;  %v8351_v33 = vld [vmem:[%s11499_s0 + $0x160] ss:$52 sps:$4 sm:$0xff]  }
 0x1e7   :  { %v8785_v39 = vpop.eup %8784  ;;  %8786 = vrcp.f32 %v6389_v34  ;;  %v6390_v40 = vadd.f32 1.0, %v8783_v37  ;;  %5676 = vmatpush1.bf16.msra.mxu0 %v8288_v27  ;;  %5840 = vmatpush1.bf16.msra.mxu1 %v8291_v29  ;;  %v8342_v27 = vld [vmem:[%s11499_s0 + $0xf0] ss:$52 sps:$4 sm:$0xff]   ;;  %v8345_v29 = vld [vmem:[%s11499_s0 + $0xf8] ss:$52 sps:$4 sm:$0xff]  }
 0x1e8   :  { %8788 = vrcp.f32 %v6391_v38  ;;  %v6392_v44 = vadd.f32 1.0, %v8785_v39  ;;  %5677 = vmatprep.subr.bf16.mxu0 %v8296_v31  ;;  %5841 = vmatprep.subr.bf16.mxu1 %v8299_v32  ;;  %v8353_v31 = vld [vmem:[%s11499_s0 + $0x164] ss:$52 sps:$4 sm:$0xff]   ;;  %v8359_v37 = vld [vmem:[%s11499_s0 + $0x1cc] ss:$52 sps:$4 sm:$0xff]  }
 0x1e9   :  { %8790 = vrcp.f32 %v6390_v40  ;;  %v8348_v32 = vld [vmem:[%s11499_s0 + $0x158] ss:$52 sps:$4 sm:$0xff]   ;;  %v8354_v38 = vld [vmem:[%s11499_s0 + $0x1c0] ss:$52 sps:$4 sm:$0xff]   ;;  %v8357_v39 = vld [vmem:[%s11499_s0 + $0x1c8] ss:$52 sps:$4 sm:$0xff]  }
 0x1ea   :  { %8792 = vrcp.f32 %v6392_v44  ;;  %v8356_v34 = vld [vmem:[%s11499_s0 + $0x1c4] ss:$52 sps:$4 sm:$0xff]   ;;  %v8362_v40 = vld [vmem:[%s11499_s0 + $0x22c] ss:$52 sps:$4 sm:$0xff]  }
 0x1eb   :  { %5678 = vmatpush1.bf16.msra.mxu0 %v8294_v41  ;;  %5842 = vmatpush1.bf16.msra.mxu1 %v8297_v43  ;;  %v8365_v41 = vld [vmem:[%s11499_s0 + $0x234] ss:$52 sps:$4 sm:$0xff]   ;;  %v8363_v44 = vld [vmem:[%s11499_s0 + $0x230] ss:$52 sps:$4 sm:$0xff]  }
 0x1ec   :  { %5679 = vmatprep.subr.bf16.mxu0 %v8302_v45  ;;  %5843 = vmatprep.subr.bf16.mxu1 %v8305_v46  ;;  %v8360_v43 = vld [vmem:[%s11499_s0 + $0x228] ss:$52 sps:$4 sm:$0xff]  }
 0x1ed   :  { %v8368_v45 = vld [vmem:[%s11499_s0 + $0x294] ss:$52 sps:$4 sm:$0xff]   ;;  %v8371_v46 = vld [vmem:[%s11499_s0 + $0x29c] ss:$52 sps:$4 sm:$0xff]  }
 0x1ef   :  { %5680 = vmatpush1.bf16.msra.mxu0 %v8300_v47  ;;  %5844 = vmatpush1.bf16.msra.mxu1 %v8303_v48  ;;  %v8366_v47 = vld [vmem:[%s11499_s0 + $0x290] ss:$52 sps:$4 sm:$0xff]   ;;  %v8369_v48 = vld [vmem:[%s11499_s0 + $0x298] ss:$52 sps:$4 sm:$0xff]  }
 0x1f0   :  { %5681 = vmatprep.subr.bf16.mxu0 %v8308_v50  ;;  %5845 = vmatprep.subr.bf16.mxu1 %v8311_v53  ;;  %v8374_v50 = vld [vmem:[%s11499_s0 + $0x2fc] ss:$52 sps:$4 sm:$0xff]   ;;  %v8377_v53 = vld [vmem:[%s11499_s0 + $0x304] ss:$52 sps:$4 sm:$0xff]  }
 0x1f1   :  { %v8787_v58 = vpop.eup %8786 }
 0x1f2   :  { %v8789_v59 = vpop.eup %8788 }
 0x1f3   :  { %v8791_v61 = vpop.eup %8790  ;;  %5682 = vmatpush1.bf16.msra.mxu0 %v8306_v42  ;;  %5846 = vmatpush1.bf16.msra.mxu1 %v8309_v55  ;;  %v8372_v42 = vld [vmem:[%s11499_s0 + $0x2f8] ss:$52 sps:$4 sm:$0xff]   ;;  %v8375_v55 = vld [vmem:[%s11499_s0 + $0x300] ss:$52 sps:$4 sm:$0xff]  }
 0x1f4   :  { %v8793_v0 = vpop.eup %8792  ;;  %v6441_v1 = vcombine.low %v8787_v58, %v8791_v61  ;;  %5683 = vmatprep.subr.bf16.mxu0 %v8314_v56  ;;  %5847 = vmatprep.subr.bf16.mxu1 %v8317_v57  ;;  %v8380_v56 = vld [vmem:[%s11499_s0 + $0x364] ss:$52 sps:$4 sm:$0xff]   ;;  %v8383_v57 = vld [vmem:[%s11499_s0 + $0x36c] ss:$52 sps:$4 sm:$0xff]  }
 0x1f5   :  { %v6442_v4 = vcombine.low %v8789_v59, %v8793_v0  ;;  %v8378_v58 = vld [vmem:[%s11499_s0 + $0x360] ss:$52 sps:$4 sm:$0xff]   ;;  %v8381_v59 = vld [vmem:[%s11499_s0 + $0x368] ss:$52 sps:$4 sm:$0xff]   ;;  %v8387_v0 = vld [vmem:[%s11499_s0 + $0x3d0] ss:$52 sps:$4 sm:$0xff]  }
 0x1f6   :  { %v10460_v5 = vrot.slane %v6441_v1, %v8988_v49  ;;  %v8386_v61 = vld [vmem:[%s11499_s0 + $0x3cc] ss:$52 sps:$4 sm:$0xff]   ;;  %v8392_v1 = vld [vmem:[%s11499_s0 + $0x434] ss:$52 sps:$4 sm:$0xff]  }
 0x1f7   :  { %v10463_v6 = vrot.slane %v6442_v4, %v8988_v49  ;;  %5684 = vmatpush1.bf16.msra.mxu0 %v8312_v62  ;;  %5848 = vmatpush1.bf16.msra.mxu1 %v8315_v63  ;;  %v8389_v62 = vld [vmem:[%s11499_s0 + $0x3d4] ss:$52 sps:$4 sm:$0xff]   ;;  %v8393_v4 = vld [vmem:[%s11499_s0 + $0x438] ss:$52 sps:$4 sm:$0xff]  }
 0x1f8   :  { %5685 = vmatprep.subr.bf16.mxu0 %v8320_v2  ;;  %5849 = vmatprep.subr.bf16.mxu1 %v8323_v3  ;;  %v8384_v63 = vld [vmem:[%s11499_s0 + $0x3c8] ss:$52 sps:$4 sm:$0xff]   ;;  %v8390_v3 = vld [vmem:[%s11499_s0 + $0x430] ss:$52 sps:$4 sm:$0xff]  }
 0x1f9   :  { %v6473_v11 = vcombine.low %v10460_v5, %v10463_v6  ;;  %v8395_v2 = vld [vmem:[%s11499_s0 + $0x43c] ss:$52 sps:$4 sm:$0xff]  }
 0x1fa   :  { %v8715_v5 = vld [vmem:[%s11499_s0 + $0x9f0] ss:$52 sps:$4 sm:$0xff]  }
 0x1fb   :  { %5686 = vmatpush1.bf16.msra.mxu0 %v8318_v7  ;;  %5850 = vmatpush1.bf16.msra.mxu1 %v8321_v8  ;;  %v8398_v7 = vld [vmem:[%s11499_s0 + $0x49c] ss:$52 sps:$4 sm:$0xff]   ;;  %v8401_v8 = vld [vmem:[%s11499_s0 + $0x4a4] ss:$52 sps:$4 sm:$0xff]  }
 0x1fc   :  { %5687 = vmatprep.subr.bf16.mxu0 %v8326_v9  ;;  %5851 = vmatprep.subr.bf16.mxu1 %v8329_v10  ;;  %v8396_v9 = vld [vmem:[%s11499_s0 + $0x498] ss:$52 sps:$4 sm:$0xff]   ;;  %v8399_v10 = vld [vmem:[%s11499_s0 + $0x4a0] ss:$52 sps:$4 sm:$0xff]  }
 0x1ff   :  { %5688 = vmatpush1.bf16.msra.mxu0 %v8324_v12  ;;  %5852 = vmatpush1.bf16.msra.mxu1 %v8327_v14  ;;  %v8404_v12 = vld [vmem:[%s11499_s0 + $0x504] ss:$52 sps:$4 sm:$0xff]   ;;  %v8407_v14 = vld [vmem:[%s11499_s0 + $0x50c] ss:$52 sps:$4 sm:$0xff]  }
 0x200   :  { %5862 = vmatprep.subr.bf16.mxu0 %v8332_v15  ;;  %6026 = vmatprep.subr.bf16.mxu1 %v8335_v52  ;;  %v8402_v15 = vld [vmem:[%s11499_s0 + $0x500] ss:$52 sps:$4 sm:$0xff]   ;;  %v8405_v52 = vld [vmem:[%s11499_s0 + $0x508] ss:$52 sps:$4 sm:$0xff]  }
 0x202   :  { %5690 = vmatmul.mubr.bf16.vlgmr.msra.gmra.mrb[4].mxu0 %v9690_v51  ;;  %5854 = vmatmul.mubr.bf16.vlgmr.msra.gmra.mrb[4].mxu1 %v9690_v51 }
 0x203   :  { %5863 = vmatpush1.bf16.msra.mxu0 %v8330_v18  ;;  %6027 = vmatpush1.bf16.msra.mxu1 %v8333_v19  ;;  %v8410_v18 = vld [vmem:[%s11499_s0 + $0x56c] ss:$52 sps:$4 sm:$0xff]   ;;  %v8413_v19 = vld [vmem:[%s11499_s0 + $0x574] ss:$52 sps:$4 sm:$0xff]  }
 0x204   :  { %5864 = vmatprep.subr.bf16.mxu0 %v8338_v20  ;;  %6028 = vmatprep.subr.bf16.mxu1 %v8341_v21  ;;  %v8408_v20 = vld [vmem:[%s11499_s0 + $0x568] ss:$52 sps:$4 sm:$0xff]   ;;  %v8411_v21 = vld [vmem:[%s11499_s0 + $0x570] ss:$52 sps:$4 sm:$0xff]  }
 0x205   :  { %5894 = vmatprep.mubr.bf16.mxu0 %v9019_v60  ;;  %6058 = vmatprep.mubr.bf16.mxu1 %v9019_v60 }
 0x207   :  { %5865 = vmatpush1.bf16.msra.mxu0 %v8336_v22  ;;  %6029 = vmatpush1.bf16.msra.mxu1 %v8339_v23  ;;  %v8416_v22 = vld [vmem:[%s11499_s0 + $0x5d4] ss:$52 sps:$4 sm:$0xff]   ;;  %v8419_v23 = vld [vmem:[%s11499_s0 + $0x5dc] ss:$52 sps:$4 sm:$0xff]  }
 0x208   :  { %5866 = vmatprep.subr.bf16.mxu0 %v8344_v25  ;;  %6030 = vmatprep.subr.bf16.mxu1 %v8347_v26  ;;  %v8414_v25 = vld [vmem:[%s11499_s0 + $0x5d0] ss:$52 sps:$4 sm:$0xff]   ;;  %v8417_v26 = vld [vmem:[%s11499_s0 + $0x5d8] ss:$52 sps:$4 sm:$0xff]  }
 0x20b   :  { %5867 = vmatpush1.bf16.msra.mxu0 %v8342_v27  ;;  %6031 = vmatpush1.bf16.msra.mxu1 %v8345_v29  ;;  %v8422_v27 = vld [vmem:[%s11499_s0 + $0x63c] ss:$52 sps:$4 sm:$0xff]   ;;  %v8425_v29 = vld [vmem:[%s11499_s0 + $0x644] ss:$52 sps:$4 sm:$0xff]  }
 0x20c   :  { %5868 = vmatprep.subr.bf16.mxu0 %v8350_v30  ;;  %6032 = vmatprep.subr.bf16.mxu1 %v8353_v31  ;;  %v8420_v30 = vld [vmem:[%s11499_s0 + $0x638] ss:$52 sps:$4 sm:$0xff]   ;;  %v8423_v31 = vld [vmem:[%s11499_s0 + $0x640] ss:$52 sps:$4 sm:$0xff]  }
 0x20f   :  { %5869 = vmatpush1.bf16.msra.mxu0 %v8348_v32  ;;  %6033 = vmatpush1.bf16.msra.mxu1 %v8351_v33  ;;  %v8428_v32 = vld [vmem:[%s11499_s0 + $0x6a4] ss:$52 sps:$4 sm:$0xff]   ;;  %v8431_v33 = vld [vmem:[%s11499_s0 + $0x6ac] ss:$52 sps:$4 sm:$0xff]  }
 0x210   :  { %5870 = vmatprep.subr.bf16.mxu0 %v8356_v34  ;;  %6034 = vmatprep.subr.bf16.mxu1 %v8359_v37  ;;  %v8426_v34 = vld [vmem:[%s11499_s0 + $0x6a0] ss:$52 sps:$4 sm:$0xff]   ;;  %v8429_v37 = vld [vmem:[%s11499_s0 + $0x6a8] ss:$52 sps:$4 sm:$0xff]  }
 0x213   :  { %5871 = vmatpush1.bf16.msra.mxu0 %v8354_v38  ;;  %6035 = vmatpush1.bf16.msra.mxu1 %v8357_v39  ;;  %v8434_v38 = vld [vmem:[%s11499_s0 + $0x70c] ss:$52 sps:$4 sm:$0xff]   ;;  %v8437_v39 = vld [vmem:[%s11499_s0 + $0x714] ss:$52 sps:$4 sm:$0xff]  }
 0x214   :  { %5872 = vmatprep.subr.bf16.mxu0 %v8362_v40  ;;  %6036 = vmatprep.subr.bf16.mxu1 %v8365_v41  ;;  %v8432_v40 = vld [vmem:[%s11499_s0 + $0x708] ss:$52 sps:$4 sm:$0xff]   ;;  %v8435_v41 = vld [vmem:[%s11499_s0 + $0x710] ss:$52 sps:$4 sm:$0xff]  }
 0x217   :  { %5873 = vmatpush1.bf16.msra.mxu0 %v8360_v43  ;;  %6037 = vmatpush1.bf16.msra.mxu1 %v8363_v44  ;;  %v8440_v43 = vld [vmem:[%s11499_s0 + $0x774] ss:$52 sps:$4 sm:$0xff]   ;;  %v8443_v44 = vld [vmem:[%s11499_s0 + $0x77c] ss:$52 sps:$4 sm:$0xff]  }
 0x218   :  { %5874 = vmatprep.subr.bf16.mxu0 %v8368_v45  ;;  %6038 = vmatprep.subr.bf16.mxu1 %v8371_v46  ;;  %v8438_v45 = vld [vmem:[%s11499_s0 + $0x770] ss:$52 sps:$4 sm:$0xff]   ;;  %v8441_v46 = vld [vmem:[%s11499_s0 + $0x778] ss:$52 sps:$4 sm:$0xff]  }
 0x21b   :  { %5875 = vmatpush1.bf16.msra.mxu0 %v8366_v47  ;;  %6039 = vmatpush1.bf16.msra.mxu1 %v8369_v48  ;;  %v8446_v47 = vld [vmem:[%s11499_s0 + $0x7dc] ss:$52 sps:$4 sm:$0xff]   ;;  %v8449_v48 = vld [vmem:[%s11499_s0 + $0x7e4] ss:$52 sps:$4 sm:$0xff]  }
 0x21c   :  { %5876 = vmatprep.subr.bf16.mxu0 %v8374_v50  ;;  %6040 = vmatprep.subr.bf16.mxu1 %v8377_v53  ;;  %v8444_v50 = vld [vmem:[%s11499_s0 + $0x7d8] ss:$52 sps:$4 sm:$0xff]   ;;  %v8447_v53 = vld [vmem:[%s11499_s0 + $0x7e0] ss:$52 sps:$4 sm:$0xff]  }
 0x21f   :  { %5877 = vmatpush1.bf16.msra.mxu0 %v8372_v42  ;;  %6041 = vmatpush1.bf16.msra.mxu1 %v8375_v55  ;;  %v8452_v42 = vld [vmem:[%s11499_s0 + $0x844] ss:$52 sps:$4 sm:$0xff]   ;;  %v8455_v55 = vld [vmem:[%s11499_s0 + $0x84c] ss:$52 sps:$4 sm:$0xff]  }
 0x220   :  { %5878 = vmatprep.subr.bf16.mxu0 %v8380_v56  ;;  %6042 = vmatprep.subr.bf16.mxu1 %v8383_v57  ;;  %v8450_v56 = vld [vmem:[%s11499_s0 + $0x840] ss:$52 sps:$4 sm:$0xff]   ;;  %v8453_v57 = vld [vmem:[%s11499_s0 + $0x848] ss:$52 sps:$4 sm:$0xff]  }
 0x223   :  { %5879 = vmatpush1.bf16.msra.mxu0 %v8378_v58  ;;  %6043 = vmatpush1.bf16.msra.mxu1 %v8381_v59  ;;  %v8458_v58 = vld [vmem:[%s11499_s0 + $0x8ac] ss:$52 sps:$4 sm:$0xff]   ;;  %v8461_v59 = vld [vmem:[%s11499_s0 + $0x8b4] ss:$52 sps:$4 sm:$0xff]  }
 0x224   :  { %5880 = vmatprep.subr.bf16.mxu0 %v8386_v61  ;;  %6044 = vmatprep.subr.bf16.mxu1 %v8389_v62  ;;  %v8456_v61 = vld [vmem:[%s11499_s0 + $0x8a8] ss:$52 sps:$4 sm:$0xff]   ;;  %v8459_v62 = vld [vmem:[%s11499_s0 + $0x8b0] ss:$52 sps:$4 sm:$0xff]  }
 0x227   :  { %5881 = vmatpush1.bf16.msra.mxu0 %v8384_v63  ;;  %6045 = vmatpush1.bf16.msra.mxu1 %v8387_v0  ;;  %v8464_v63 = vld [vmem:[%s11499_s0 + $0x914] ss:$52 sps:$4 sm:$0xff]   ;;  %v8467_v0 = vld [vmem:[%s11499_s0 + $0x91c] ss:$52 sps:$4 sm:$0xff]  }
 0x228   :  { %5882 = vmatprep.subr.bf16.mxu0 %v8392_v1  ;;  %6046 = vmatprep.subr.bf16.mxu1 %v8395_v2  ;;  %v8462_v1 = vld [vmem:[%s11499_s0 + $0x910] ss:$52 sps:$4 sm:$0xff]   ;;  %v8465_v2 = vld [vmem:[%s11499_s0 + $0x918] ss:$52 sps:$4 sm:$0xff]  }
 0x22b   :  { %5883 = vmatpush1.bf16.msra.mxu0 %v8390_v3  ;;  %6047 = vmatpush1.bf16.msra.mxu1 %v8393_v4  ;;  %v8470_v3 = vld [vmem:[%s11499_s0 + $0x97c] ss:$52 sps:$4 sm:$0xff]   ;;  %v8473_v4 = vld [vmem:[%s11499_s0 + $0x984] ss:$52 sps:$4 sm:$0xff]  }
 0x22c   :  { %5884 = vmatprep.subr.bf16.mxu0 %v8398_v7  ;;  %6048 = vmatprep.subr.bf16.mxu1 %v8401_v8  ;;  %v8468_v7 = vld [vmem:[%s11499_s0 + $0x978] ss:$52 sps:$4 sm:$0xff]   ;;  %v8471_v8 = vld [vmem:[%s11499_s0 + $0x980] ss:$52 sps:$4 sm:$0xff]  }
 0x22f   :  { %5885 = vmatpush1.bf16.msra.mxu0 %v8396_v9  ;;  %6049 = vmatpush1.bf16.msra.mxu1 %v8399_v10  ;;  %v8476_v9 = vld [vmem:[%s11499_s0 + $0x9e4] ss:$52 sps:$4 sm:$0xff]   ;;  %v8479_v10 = vld [vmem:[%s11499_s0 + $0x9ec] ss:$52 sps:$4 sm:$0xff]  }
 0x230   :  { %5886 = vmatprep.subr.bf16.mxu0 %v8404_v12  ;;  %6050 = vmatprep.subr.bf16.mxu1 %v8407_v14  ;;  %v8474_v12 = vld [vmem:[%s11499_s0 + $0x9e0] ss:$52 sps:$4 sm:$0xff]   ;;  %v8477_v14 = vld [vmem:[%s11499_s0 + $0x9e8] ss:$52 sps:$4 sm:$0xff]  }
 0x233   :  { %5887 = vmatpush1.bf16.msra.mxu0 %v8402_v15  ;;  %6051 = vmatpush1.bf16.msra.mxu1 %v8405_v52  ;;  %v8482_v15 = vld [vmem:[%s11499_s0 + $0xa4c] ss:$52 sps:$4 sm:$0xff]   ;;  %v8485_v52 = vld [vmem:[%s11499_s0 + $0xa54] ss:$52 sps:$4 sm:$0xff]  }
 0x234   :  { %5888 = vmatprep.subr.bf16.mxu0 %v8410_v18  ;;  %6052 = vmatprep.subr.bf16.mxu1 %v8413_v19  ;;  %v8480_v18 = vld [vmem:[%s11499_s0 + $0xa48] ss:$52 sps:$4 sm:$0xff]   ;;  %v8483_v19 = vld [vmem:[%s11499_s0 + $0xa50] ss:$52 sps:$4 sm:$0xff]  }
 0x237   :  { %5889 = vmatpush1.bf16.msra.mxu0 %v8408_v20  ;;  %6053 = vmatpush1.bf16.msra.mxu1 %v8411_v21  ;;  %v8488_v20 = vld [vmem:[%s11499_s0 + $0xab4] ss:$52 sps:$4 sm:$0xff]   ;;  %v8491_v21 = vld [vmem:[%s11499_s0 + $0xabc] ss:$52 sps:$4 sm:$0xff]  }
 0x238   :  { %5890 = vmatprep.subr.bf16.mxu0 %v8416_v22  ;;  %6054 = vmatprep.subr.bf16.mxu1 %v8419_v23  ;;  %v8486_v22 = vld [vmem:[%s11499_s0 + $0xab0] ss:$52 sps:$4 sm:$0xff]   ;;  %v8489_v23 = vld [vmem:[%s11499_s0 + $0xab8] ss:$52 sps:$4 sm:$0xff]  }
 0x23b   :  { %5891 = vmatpush1.bf16.msra.mxu0 %v8414_v25  ;;  %6055 = vmatpush1.bf16.msra.mxu1 %v8417_v26  ;;  %v8494_v25 = vld [vmem:[%s11499_s0 + $0xb1c] ss:$52 sps:$4 sm:$0xff]   ;;  %v8497_v26 = vld [vmem:[%s11499_s0 + $0xb24] ss:$52 sps:$4 sm:$0xff]  }
 0x23c   :  { %5892 = vmatprep.subr.bf16.mxu0 %v8422_v27  ;;  %6056 = vmatprep.subr.bf16.mxu1 %v8425_v29  ;;  %v8492_v27 = vld [vmem:[%s11499_s0 + $0xb18] ss:$52 sps:$4 sm:$0xff]   ;;  %v8495_v29 = vld [vmem:[%s11499_s0 + $0xb20] ss:$52 sps:$4 sm:$0xff]  }
 0x23f   :  { %5893 = vmatpush1.bf16.msra.mxu0 %v8420_v30  ;;  %6057 = vmatpush1.bf16.msra.mxu1 %v8423_v31  ;;  %v8500_v30 = vld [vmem:[%s11499_s0 + $0xb84] ss:$52 sps:$4 sm:$0xff]   ;;  %v8503_v31 = vld [vmem:[%s11499_s0 + $0xb8c] ss:$52 sps:$4 sm:$0xff]  }
 0x240   :  { %5903 = vmatprep.subr.bf16.mxu0 %v8428_v32  ;;  %6067 = vmatprep.subr.bf16.mxu1 %v8431_v33  ;;  %v8498_v32 = vld [vmem:[%s11499_s0 + $0xb80] ss:$52 sps:$4 sm:$0xff]   ;;  %v8501_v33 = vld [vmem:[%s11499_s0 + $0xb88] ss:$52 sps:$4 sm:$0xff]  }
 0x242   :  { %5895 = vmatmul.mubr.bf16.vlgmr.msra.gmra.mrb[8].mxu0 %v9072_v13  ;;  %6059 = vmatmul.mubr.bf16.vlgmr.msra.gmra.mrb[8].mxu1 %v9072_v13 }
 0x243   :  { %5904 = vmatpush1.bf16.msra.mxu0 %v8426_v34  ;;  %6068 = vmatpush1.bf16.msra.mxu1 %v8429_v37  ;;  %v8506_v34 = vld [vmem:[%s11499_s0 + $0xbec] ss:$52 sps:$4 sm:$0xff]   ;;  %v8509_v37 = vld [vmem:[%s11499_s0 + $0xbf4] ss:$52 sps:$4 sm:$0xff]  }
 0x244   :  { %5905 = vmatprep.subr.bf16.mxu0 %v8434_v38  ;;  %6069 = vmatprep.subr.bf16.mxu1 %v8437_v39  ;;  %v8504_v38 = vld [vmem:[%s11499_s0 + $0xbe8] ss:$52 sps:$4 sm:$0xff]   ;;  %v8507_v39 = vld [vmem:[%s11499_s0 + $0xbf0] ss:$52 sps:$4 sm:$0xff]  }
 0x245   :  { %5935 = vmatprep.mubr.bf16.mxu0 %v9085_v17  ;;  %6099 = vmatprep.mubr.bf16.mxu1 %v9085_v17 }
 0x247   :  { %5906 = vmatpush1.bf16.msra.mxu0 %v8432_v40  ;;  %6070 = vmatpush1.bf16.msra.mxu1 %v8435_v41  ;;  %v8512_v40 = vld [vmem:[%s11499_s0 + $0xc54] ss:$52 sps:$4 sm:$0xff]   ;;  %v8515_v41 = vld [vmem:[%s11499_s0 + $0xc5c] ss:$52 sps:$4 sm:$0xff]  }
 0x248   :  { %5907 = vmatprep.subr.bf16.mxu0 %v8440_v43  ;;  %6071 = vmatprep.subr.bf16.mxu1 %v8443_v44  ;;  %v8510_v43 = vld [vmem:[%s11499_s0 + $0xc50] ss:$52 sps:$4 sm:$0xff]   ;;  %v8513_v44 = vld [vmem:[%s11499_s0 + $0xc58] ss:$52 sps:$4 sm:$0xff]  }
 0x24b   :  { %5908 = vmatpush1.bf16.msra.mxu0 %v8438_v45  ;;  %6072 = vmatpush1.bf16.msra.mxu1 %v8441_v46  ;;  %v8518_v45 = vld [vmem:[%s11499_s0 + $0xcbc] ss:$52 sps:$4 sm:$0xff]   ;;  %v8521_v46 = vld [vmem:[%s11499_s0 + $0xcc4] ss:$52 sps:$4 sm:$0xff]  }
 0x24c   :  { %5909 = vmatprep.subr.bf16.mxu0 %v8446_v47  ;;  %6073 = vmatprep.subr.bf16.mxu1 %v8449_v48  ;;  %v8516_v47 = vld [vmem:[%s11499_s0 + $0xcb8] ss:$52 sps:$4 sm:$0xff]   ;;  %v8519_v48 = vld [vmem:[%s11499_s0 + $0xcc0] ss:$52 sps:$4 sm:$0xff]  }
 0x24f   :  { %5910 = vmatpush1.bf16.msra.mxu0 %v8444_v50  ;;  %6074 = vmatpush1.bf16.msra.mxu1 %v8447_v53  ;;  %v8524_v50 = vld [vmem:[%s11499_s0 + $0xd24] ss:$52 sps:$4 sm:$0xff]   ;;  %v8527_v53 = vld [vmem:[%s11499_s0 + $0xd2c] ss:$52 sps:$4 sm:$0xff]  }
 0x250   :  { %5911 = vmatprep.subr.bf16.mxu0 %v8452_v42  ;;  %6075 = vmatprep.subr.bf16.mxu1 %v8455_v55  ;;  %v8522_v42 = vld [vmem:[%s11499_s0 + $0xd20] ss:$52 sps:$4 sm:$0xff]   ;;  %v8525_v55 = vld [vmem:[%s11499_s0 + $0xd28] ss:$52 sps:$4 sm:$0xff]  }
 0x253   :  { %5912 = vmatpush1.bf16.msra.mxu0 %v8450_v56  ;;  %6076 = vmatpush1.bf16.msra.mxu1 %v8453_v57  ;;  %v8530_v56 = vld [vmem:[%s11499_s0 + $0xd8c] ss:$52 sps:$4 sm:$0xff]   ;;  %v8533_v57 = vld [vmem:[%s11499_s0 + $0xd94] ss:$52 sps:$4 sm:$0xff]  }
 0x254   :  { %5913 = vmatprep.subr.bf16.mxu0 %v8458_v58  ;;  %6077 = vmatprep.subr.bf16.mxu1 %v8461_v59  ;;  %v8528_v58 = vld [vmem:[%s11499_s0 + $0xd88] ss:$52 sps:$4 sm:$0xff]   ;;  %v8531_v59 = vld [vmem:[%s11499_s0 + $0xd90] ss:$52 sps:$4 sm:$0xff]  }
 0x257   :  { %5914 = vmatpush1.bf16.msra.mxu0 %v8456_v61  ;;  %6078 = vmatpush1.bf16.msra.mxu1 %v8459_v62  ;;  %v8536_v61 = vld [vmem:[%s11499_s0 + $0xdf4] ss:$52 sps:$4 sm:$0xff]   ;;  %v8539_v62 = vld [vmem:[%s11499_s0 + $0xdfc] ss:$52 sps:$4 sm:$0xff]  }
 0x258   :  { %5915 = vmatprep.subr.bf16.mxu0 %v8464_v63  ;;  %6079 = vmatprep.subr.bf16.mxu1 %v8467_v0  ;;  %v8534_v63 = vld [vmem:[%s11499_s0 + $0xdf0] ss:$52 sps:$4 sm:$0xff]   ;;  %v8537_v0 = vld [vmem:[%s11499_s0 + $0xdf8] ss:$52 sps:$4 sm:$0xff]  }
 0x25b   :  { %5916 = vmatpush1.bf16.msra.mxu0 %v8462_v1  ;;  %6080 = vmatpush1.bf16.msra.mxu1 %v8465_v2  ;;  %v8542_v1 = vld [vmem:[%s11499_s0 + $0xe5c] ss:$52 sps:$4 sm:$0xff]   ;;  %v8545_v2 = vld [vmem:[%s11499_s0 + $0xe64] ss:$52 sps:$4 sm:$0xff]  }
 0x25c   :  { %5917 = vmatprep.subr.bf16.mxu0 %v8470_v3  ;;  %6081 = vmatprep.subr.bf16.mxu1 %v8473_v4  ;;  %v8540_v3 = vld [vmem:[%s11499_s0 + $0xe58] ss:$52 sps:$4 sm:$0xff]   ;;  %v8543_v4 = vld [vmem:[%s11499_s0 + $0xe60] ss:$52 sps:$4 sm:$0xff]  }
 0x25f   :  { %5918 = vmatpush1.bf16.msra.mxu0 %v8468_v7  ;;  %6082 = vmatpush1.bf16.msra.mxu1 %v8471_v8  ;;  %v8548_v7 = vld [vmem:[%s11499_s0 + $0xec4] ss:$52 sps:$4 sm:$0xff]   ;;  %v8551_v8 = vld [vmem:[%s11499_s0 + $0xecc] ss:$52 sps:$4 sm:$0xff]  }
 0x260   :  { %5919 = vmatprep.subr.bf16.mxu0 %v8476_v9  ;;  %6083 = vmatprep.subr.bf16.mxu1 %v8479_v10  ;;  %v8546_v9 = vld [vmem:[%s11499_s0 + $0xec0] ss:$52 sps:$4 sm:$0xff]   ;;  %v8549_v10 = vld [vmem:[%s11499_s0 + $0xec8] ss:$52 sps:$4 sm:$0xff]  }
 0x263   :  { %5920 = vmatpush1.bf16.msra.mxu0 %v8474_v12  ;;  %6084 = vmatpush1.bf16.msra.mxu1 %v8477_v14  ;;  %v8554_v12 = vld [vmem:[%s11499_s0 + $0xf2c] ss:$52 sps:$4 sm:$0xff]   ;;  %v8557_v14 = vld [vmem:[%s11499_s0 + $0xf34] ss:$52 sps:$4 sm:$0xff]  }
 0x264   :  { %5921 = vmatprep.subr.bf16.mxu0 %v8482_v15  ;;  %6085 = vmatprep.subr.bf16.mxu1 %v8485_v52  ;;  %v8552_v15 = vld [vmem:[%s11499_s0 + $0xf28] ss:$52 sps:$4 sm:$0xff]   ;;  %v8555_v52 = vld [vmem:[%s11499_s0 + $0xf30] ss:$52 sps:$4 sm:$0xff]  }
 0x267   :  { %5922 = vmatpush1.bf16.msra.mxu0 %v8480_v18  ;;  %6086 = vmatpush1.bf16.msra.mxu1 %v8483_v19  ;;  %v8560_v18 = vld [vmem:[%s11499_s0 + $0xf94] ss:$52 sps:$4 sm:$0xff]   ;;  %v8563_v19 = vld [vmem:[%s11499_s0 + $0xf9c] ss:$52 sps:$4 sm:$0xff]  }
 0x268   :  { %5923 = vmatprep.subr.bf16.mxu0 %v8488_v20  ;;  %6087 = vmatprep.subr.bf16.mxu1 %v8491_v21  ;;  %v8558_v20 = vld [vmem:[%s11499_s0 + $0xf90] ss:$52 sps:$4 sm:$0xff]   ;;  %v8561_v21 = vld [vmem:[%s11499_s0 + $0xf98] ss:$52 sps:$4 sm:$0xff]  }
 0x26b   :  { %5924 = vmatpush1.bf16.msra.mxu0 %v8486_v22  ;;  %6088 = vmatpush1.bf16.msra.mxu1 %v8489_v23  ;;  %v8566_v22 = vld [vmem:[%s11499_s0 + $0xffc] ss:$52 sps:$4 sm:$0xff]   ;;  %v8569_v23 = vld [vmem:[%s11499_s0 + $0x1004] ss:$52 sps:$4 sm:$0xff]  }
 0x26c   :  { %5925 = vmatprep.subr.bf16.mxu0 %v8494_v25  ;;  %6089 = vmatprep.subr.bf16.mxu1 %v8497_v26  ;;  %v8564_v25 = vld [vmem:[%s11499_s0 + $0xff8] ss:$52 sps:$4 sm:$0xff]   ;;  %v8567_v26 = vld [vmem:[%s11499_s0 + $0x1000] ss:$52 sps:$4 sm:$0xff]  }
 0x26f   :  { %5926 = vmatpush1.bf16.msra.mxu0 %v8492_v27  ;;  %6090 = vmatpush1.bf16.msra.mxu1 %v8495_v29  ;;  %v8572_v27 = vld [vmem:[%s11499_s0 + $0x1064] ss:$52 sps:$4 sm:$0xff]   ;;  %v8575_v29 = vld [vmem:[%s11499_s0 + $0x106c] ss:$52 sps:$4 sm:$0xff]  }
 0x270   :  { %5927 = vmatprep.subr.bf16.mxu0 %v8500_v30  ;;  %6091 = vmatprep.subr.bf16.mxu1 %v8503_v31  ;;  %v8570_v30 = vld [vmem:[%s11499_s0 + $0x1060] ss:$52 sps:$4 sm:$0xff]   ;;  %v8573_v31 = vld [vmem:[%s11499_s0 + $0x1068] ss:$52 sps:$4 sm:$0xff]  }
 0x273   :  { %5928 = vmatpush1.bf16.msra.mxu0 %v8498_v32  ;;  %6092 = vmatpush1.bf16.msra.mxu1 %v8501_v33  ;;  %v8578_v32 = vld [vmem:[%s11499_s0 + $0x10cc] ss:$52 sps:$4 sm:$0xff]   ;;  %v8581_v33 = vld [vmem:[%s11499_s0 + $0x10d4] ss:$52 sps:$4 sm:$0xff]  }
 0x274   :  { %5929 = vmatprep.subr.bf16.mxu0 %v8506_v34  ;;  %6093 = vmatprep.subr.bf16.mxu1 %v8509_v37  ;;  %v8576_v34 = vld [vmem:[%s11499_s0 + $0x10c8] ss:$52 sps:$4 sm:$0xff]   ;;  %v8579_v37 = vld [vmem:[%s11499_s0 + $0x10d0] ss:$52 sps:$4 sm:$0xff]  }
 0x277   :  { %5930 = vmatpush1.bf16.msra.mxu0 %v8504_v38  ;;  %6094 = vmatpush1.bf16.msra.mxu1 %v8507_v39  ;;  %v8584_v38 = vld [vmem:[%s11499_s0 + $0x1134] ss:$52 sps:$4 sm:$0xff]   ;;  %v8587_v39 = vld [vmem:[%s11499_s0 + $0x113c] ss:$52 sps:$4 sm:$0xff]  }
 0x278   :  { %5931 = vmatprep.subr.bf16.mxu0 %v8512_v40  ;;  %6095 = vmatprep.subr.bf16.mxu1 %v8515_v41  ;;  %v8582_v40 = vld [vmem:[%s11499_s0 + $0x1130] ss:$52 sps:$4 sm:$0xff]   ;;  %v8585_v41 = vld [vmem:[%s11499_s0 + $0x1138] ss:$52 sps:$4 sm:$0xff]  }
 0x27b   :  { %5932 = vmatpush1.bf16.msra.mxu0 %v8510_v43  ;;  %6096 = vmatpush1.bf16.msra.mxu1 %v8513_v44  ;;  %v8590_v43 = vld [vmem:[%s11499_s0 + $0x119c] ss:$52 sps:$4 sm:$0xff]   ;;  %v8593_v44 = vld [vmem:[%s11499_s0 + $0x11a4] ss:$52 sps:$4 sm:$0xff]  }
 0x27c   :  { %5933 = vmatprep.subr.bf16.mxu0 %v8518_v45  ;;  %6097 = vmatprep.subr.bf16.mxu1 %v8521_v46  ;;  %v8588_v45 = vld [vmem:[%s11499_s0 + $0x1198] ss:$52 sps:$4 sm:$0xff]   ;;  %v8591_v46 = vld [vmem:[%s11499_s0 + $0x11a0] ss:$52 sps:$4 sm:$0xff]  }
 0x27f   :  { %5934 = vmatpush1.bf16.msra.mxu0 %v8516_v47  ;;  %6098 = vmatpush1.bf16.msra.mxu1 %v8519_v48  ;;  %v8596_v47 = vld [vmem:[%s11499_s0 + $0x1204] ss:$52 sps:$4 sm:$0xff]   ;;  %v8599_v48 = vld [vmem:[%s11499_s0 + $0x120c] ss:$52 sps:$4 sm:$0xff]  }
 0x280   :  { %5944 = vmatprep.subr.bf16.mxu0 %v8524_v50  ;;  %6108 = vmatprep.subr.bf16.mxu1 %v8527_v53  ;;  %v8594_v50 = vld [vmem:[%s11499_s0 + $0x1200] ss:$52 sps:$4 sm:$0xff]   ;;  %v8597_v53 = vld [vmem:[%s11499_s0 + $0x1208] ss:$52 sps:$4 sm:$0xff]  }
 0x282   :  { %5936 = vmatmul.mubr.bf16.vlgmr.msra.gmra.mrb[8].mxu0 %v9283_v24  ;;  %6100 = vmatmul.mubr.bf16.vlgmr.msra.gmra.mrb[8].mxu1 %v9283_v24 }
 0x283   :  { %5945 = vmatpush1.bf16.msra.mxu0 %v8522_v42  ;;  %6109 = vmatpush1.bf16.msra.mxu1 %v8525_v55  ;;  %v8602_v42 = vld [vmem:[%s11499_s0 + $0x126c] ss:$52 sps:$4 sm:$0xff]   ;;  %v8605_v55 = vld [vmem:[%s11499_s0 + $0x1274] ss:$52 sps:$4 sm:$0xff]  }
 0x284   :  { %5946 = vmatprep.subr.bf16.mxu0 %v8530_v56  ;;  %6110 = vmatprep.subr.bf16.mxu1 %v8533_v57  ;;  %v8600_v56 = vld [vmem:[%s11499_s0 + $0x1268] ss:$52 sps:$4 sm:$0xff]   ;;  %v8603_v57 = vld [vmem:[%s11499_s0 + $0x1270] ss:$52 sps:$4 sm:$0xff]  }
 0x285   :  { %5976 = vmatprep.mubr.bf16.mxu0 %v9295_v28  ;;  %6140 = vmatprep.mubr.bf16.mxu1 %v9295_v28 }
 0x287   :  { %5947 = vmatpush1.bf16.msra.mxu0 %v8528_v58  ;;  %6111 = vmatpush1.bf16.msra.mxu1 %v8531_v59  ;;  %v8608_v58 = vld [vmem:[%s11499_s0 + $0x12d4] ss:$52 sps:$4 sm:$0xff]   ;;  %v8611_v59 = vld [vmem:[%s11499_s0 + $0x12dc] ss:$52 sps:$4 sm:$0xff]  }
 0x288   :  { %5948 = vmatprep.subr.bf16.mxu0 %v8536_v61  ;;  %6112 = vmatprep.subr.bf16.mxu1 %v8539_v62  ;;  %v8606_v61 = vld [vmem:[%s11499_s0 + $0x12d0] ss:$52 sps:$4 sm:$0xff]   ;;  %v8609_v62 = vld [vmem:[%s11499_s0 + $0x12d8] ss:$52 sps:$4 sm:$0xff]  }
 0x28b   :  { %5949 = vmatpush1.bf16.msra.mxu0 %v8534_v63  ;;  %6113 = vmatpush1.bf16.msra.mxu1 %v8537_v0  ;;  %v8614_v63 = vld [vmem:[%s11499_s0 + $0x133c] ss:$52 sps:$4 sm:$0xff]   ;;  %v8617_v0 = vld [vmem:[%s11499_s0 + $0x1344] ss:$52 sps:$4 sm:$0xff]  }
 0x28c   :  { %5950 = vmatprep.subr.bf16.mxu0 %v8542_v1  ;;  %6114 = vmatprep.subr.bf16.mxu1 %v8545_v2  ;;  %v8612_v1 = vld [vmem:[%s11499_s0 + $0x1338] ss:$52 sps:$4 sm:$0xff]   ;;  %v8615_v2 = vld [vmem:[%s11499_s0 + $0x1340] ss:$52 sps:$4 sm:$0xff]  }
 0x28f   :  { %5951 = vmatpush1.bf16.msra.mxu0 %v8540_v3  ;;  %6115 = vmatpush1.bf16.msra.mxu1 %v8543_v4  ;;  %v8620_v3 = vld [vmem:[%s11499_s0 + $0x13a4] ss:$52 sps:$4 sm:$0xff]   ;;  %v8623_v4 = vld [vmem:[%s11499_s0 + $0x13ac] ss:$52 sps:$4 sm:$0xff]  }
 0x290   :  { %5952 = vmatprep.subr.bf16.mxu0 %v8548_v7  ;;  %6116 = vmatprep.subr.bf16.mxu1 %v8551_v8  ;;  %v8618_v7 = vld [vmem:[%s11499_s0 + $0x13a0] ss:$52 sps:$4 sm:$0xff]   ;;  %v8621_v8 = vld [vmem:[%s11499_s0 + $0x13a8] ss:$52 sps:$4 sm:$0xff]  }
 0x293   :  { %5953 = vmatpush1.bf16.msra.mxu0 %v8546_v9  ;;  %6117 = vmatpush1.bf16.msra.mxu1 %v8549_v10  ;;  %v8626_v9 = vld [vmem:[%s11499_s0 + $0x140c] ss:$52 sps:$4 sm:$0xff]   ;;  %v8629_v10 = vld [vmem:[%s11499_s0 + $0x1414] ss:$52 sps:$4 sm:$0xff]  }
 0x294   :  { %5954 = vmatprep.subr.bf16.mxu0 %v8554_v12  ;;  %6118 = vmatprep.subr.bf16.mxu1 %v8557_v14  ;;  %v8624_v12 = vld [vmem:[%s11499_s0 + $0x1408] ss:$52 sps:$4 sm:$0xff]   ;;  %v8627_v14 = vld [vmem:[%s11499_s0 + $0x1410] ss:$52 sps:$4 sm:$0xff]  }
 0x297   :  { %5955 = vmatpush1.bf16.msra.mxu0 %v8552_v15  ;;  %6119 = vmatpush1.bf16.msra.mxu1 %v8555_v52  ;;  %v8632_v15 = vld [vmem:[%s11499_s0 + $0x1474] ss:$52 sps:$4 sm:$0xff]   ;;  %v8635_v52 = vld [vmem:[%s11499_s0 + $0x147c] ss:$52 sps:$4 sm:$0xff]  }
 0x298   :  { %5956 = vmatprep.subr.bf16.mxu0 %v8560_v18  ;;  %6120 = vmatprep.subr.bf16.mxu1 %v8563_v19  ;;  %v8630_v18 = vld [vmem:[%s11499_s0 + $0x1470] ss:$52 sps:$4 sm:$0xff]   ;;  %v8633_v19 = vld [vmem:[%s11499_s0 + $0x1478] ss:$52 sps:$4 sm:$0xff]  }
 0x29b   :  { %5957 = vmatpush1.bf16.msra.mxu0 %v8558_v20  ;;  %6121 = vmatpush1.bf16.msra.mxu1 %v8561_v21  ;;  %v8638_v20 = vld [vmem:[%s11499_s0 + $0x14dc] ss:$52 sps:$4 sm:$0xff]   ;;  %v8641_v21 = vld [vmem:[%s11499_s0 + $0x14e4] ss:$52 sps:$4 sm:$0xff]  }
 0x29c   :  { %5958 = vmatprep.subr.bf16.mxu0 %v8566_v22  ;;  %6122 = vmatprep.subr.bf16.mxu1 %v8569_v23  ;;  %v8636_v22 = vld [vmem:[%s11499_s0 + $0x14d8] ss:$52 sps:$4 sm:$0xff]   ;;  %v8639_v23 = vld [vmem:[%s11499_s0 + $0x14e0] ss:$52 sps:$4 sm:$0xff]  }
 0x29f   :  { %5959 = vmatpush1.bf16.msra.mxu0 %v8564_v25  ;;  %6123 = vmatpush1.bf16.msra.mxu1 %v8567_v26  ;;  %v8644_v25 = vld [vmem:[%s11499_s0 + $0x1544] ss:$52 sps:$4 sm:$0xff]   ;;  %v8647_v26 = vld [vmem:[%s11499_s0 + $0x154c] ss:$52 sps:$4 sm:$0xff]  }
 0x2a0   :  { %5960 = vmatprep.subr.bf16.mxu0 %v8572_v27  ;;  %6124 = vmatprep.subr.bf16.mxu1 %v8575_v29  ;;  %v8642_v27 = vld [vmem:[%s11499_s0 + $0x1540] ss:$52 sps:$4 sm:$0xff]   ;;  %v8645_v29 = vld [vmem:[%s11499_s0 + $0x1548] ss:$52 sps:$4 sm:$0xff]  }
 0x2a3   :  { %5961 = vmatpush1.bf16.msra.mxu0 %v8570_v30  ;;  %6125 = vmatpush1.bf16.msra.mxu1 %v8573_v31  ;;  %v8650_v30 = vld [vmem:[%s11499_s0 + $0x15ac] ss:$52 sps:$4 sm:$0xff]   ;;  %v8653_v31 = vld [vmem:[%s11499_s0 + $0x15b4] ss:$52 sps:$4 sm:$0xff]  }
 0x2a4   :  { %5962 = vmatprep.subr.bf16.mxu0 %v8578_v32  ;;  %6126 = vmatprep.subr.bf16.mxu1 %v8581_v33  ;;  %v8648_v32 = vld [vmem:[%s11499_s0 + $0x15a8] ss:$52 sps:$4 sm:$0xff]   ;;  %v8651_v33 = vld [vmem:[%s11499_s0 + $0x15b0] ss:$52 sps:$4 sm:$0xff]  }
 0x2a7   :  { %5963 = vmatpush1.bf16.msra.mxu0 %v8576_v34  ;;  %6127 = vmatpush1.bf16.msra.mxu1 %v8579_v37  ;;  %v8656_v34 = vld [vmem:[%s11499_s0 + $0x1614] ss:$52 sps:$4 sm:$0xff]   ;;  %v8659_v37 = vld [vmem:[%s11499_s0 + $0x161c] ss:$52 sps:$4 sm:$0xff]  }
 0x2a8   :  { %5964 = vmatprep.subr.bf16.mxu0 %v8584_v38  ;;  %6128 = vmatprep.subr.bf16.mxu1 %v8587_v39 }
 0x2ab   :  { %5965 = vmatpush1.bf16.msra.mxu0 %v8582_v40  ;;  %6129 = vmatpush1.bf16.msra.mxu1 %v8585_v41 }
 0x2ac   :  { %5966 = vmatprep.subr.bf16.mxu0 %v8590_v43  ;;  %6130 = vmatprep.subr.bf16.mxu1 %v8593_v44 }
 0x2af   :  { %5967 = vmatpush1.bf16.msra.mxu0 %v8588_v45  ;;  %6131 = vmatpush1.bf16.msra.mxu1 %v8591_v46  ;;  %v8654_v45 = vld [vmem:[%s11499_s0 + $0x1610] ss:$52 sps:$4 sm:$0xff]   ;;  %v8657_v46 = vld [vmem:[%s11499_s0 + $0x1618] ss:$52 sps:$4 sm:$0xff]  }
 0x2b0   :  { %5968 = vmatprep.subr.bf16.mxu0 %v8596_v47  ;;  %6132 = vmatprep.subr.bf16.mxu1 %v8599_v48 }
 0x2b3   :  { %5969 = vmatpush1.bf16.msra.mxu0 %v8594_v50  ;;  %6133 = vmatpush1.bf16.msra.mxu1 %v8597_v53 }
 0x2b4   :  { %5970 = vmatprep.subr.bf16.mxu0 %v8602_v42  ;;  %6134 = vmatprep.subr.bf16.mxu1 %v8605_v55  ;;  %v8662_v42 = vld [vmem:[%s11499_s0 + $0x167c] ss:$52 sps:$4 sm:$0xff]   ;;  %v8665_v55 = vld [vmem:[%s11499_s0 + $0x1684] ss:$52 sps:$4 sm:$0xff]  }
 0x2b7   :  { %5971 = vmatpush1.bf16.msra.mxu0 %v8600_v56  ;;  %6135 = vmatpush1.bf16.msra.mxu1 %v8603_v57 }
 0x2b8   :  { %5972 = vmatprep.subr.bf16.mxu0 %v8608_v58  ;;  %6136 = vmatprep.subr.bf16.mxu1 %v8611_v59 }
 0x2bb   :  { %5973 = vmatpush1.bf16.msra.mxu0 %v8606_v61  ;;  %6137 = vmatpush1.bf16.msra.mxu1 %v8609_v62 }
 0x2bc   :  { %5974 = vmatprep.subr.bf16.mxu0 %v8614_v63  ;;  %6138 = vmatprep.subr.bf16.mxu1 %v8617_v0  ;;  %v8660_v63 = vld [vmem:[%s11499_s0 + $0x1678] ss:$52 sps:$4 sm:$0xff]   ;;  %v8663_v0 = vld [vmem:[%s11499_s0 + $0x1680] ss:$52 sps:$4 sm:$0xff]  }
 0x2bf   :  { %5975 = vmatpush1.bf16.msra.mxu0 %v8612_v1  ;;  %6139 = vmatpush1.bf16.msra.mxu1 %v8615_v2  ;;  %v8668_v1 = vld [vmem:[%s11499_s0 + $0x16e4] ss:$52 sps:$4 sm:$0xff]   ;;  %v8671_v2 = vld [vmem:[%s11499_s0 + $0x16ec] ss:$52 sps:$4 sm:$0xff]  }
 0x2c0   :  { %5985 = vmatprep.subr.bf16.mxu0 %v8620_v3  ;;  %6149 = vmatprep.subr.bf16.mxu1 %v8623_v4  ;;  %v8666_v3 = vld [vmem:[%s11499_s0 + $0x16e0] ss:$52 sps:$4 sm:$0xff]   ;;  %v8669_v4 = vld [vmem:[%s11499_s0 + $0x16e8] ss:$52 sps:$4 sm:$0xff]  }
 0x2c2   :  { %5977 = vmatmul.mubr.bf16.vlgmr.msra.gmra.mrb[8].mxu0 %v9486_v35  ;;  %6141 = vmatmul.mubr.bf16.vlgmr.msra.gmra.mrb[8].mxu1 %v9486_v35 }
 0x2c3   :  { %5986 = vmatpush1.bf16.msra.mxu0 %v8618_v7  ;;  %6150 = vmatpush1.bf16.msra.mxu1 %v8621_v8  ;;  %v8674_v7 = vld [vmem:[%s11499_s0 + $0x174c] ss:$52 sps:$4 sm:$0xff]   ;;  %v8677_v8 = vld [vmem:[%s11499_s0 + $0x1754] ss:$52 sps:$4 sm:$0xff]  }
 0x2c4   :  { %5987 = vmatprep.subr.bf16.mxu0 %v8626_v9  ;;  %6151 = vmatprep.subr.bf16.mxu1 %v8629_v10  ;;  %v8672_v9 = vld [vmem:[%s11499_s0 + $0x1748] ss:$52 sps:$4 sm:$0xff]   ;;  %v8675_v10 = vld [vmem:[%s11499_s0 + $0x1750] ss:$52 sps:$4 sm:$0xff]  }
 0x2c5   :  { %6017 = vmatprep.mubr.bf16.mxu0 %v9499_v16  ;;  %6181 = vmatprep.mubr.bf16.mxu1 %v9499_v16 }
 0x2c7   :  { %5988 = vmatpush1.bf16.msra.mxu0 %v8624_v12  ;;  %6152 = vmatpush1.bf16.msra.mxu1 %v8627_v14  ;;  %v8680_v14 = vld [vmem:[%s11499_s0 + $0x17b4] ss:$52 sps:$4 sm:$0xff]  }
 0x2c8   :  { %5989 = vmatprep.subr.bf16.mxu0 %v8632_v15  ;;  %6153 = vmatprep.subr.bf16.mxu1 %v8635_v52  ;;  %v8683_v15 = vld [vmem:[%s11499_s0 + $0x17bc] ss:$52 sps:$4 sm:$0xff]  }
 0x2cb   :  { %5990 = vmatpush1.bf16.msra.mxu0 %v8630_v18  ;;  %6154 = vmatpush1.bf16.msra.mxu1 %v8633_v19 }
 0x2cc   :  { %5991 = vmatprep.subr.bf16.mxu0 %v8638_v20  ;;  %6155 = vmatprep.subr.bf16.mxu1 %v8641_v21 }
 0x2cf   :  { %5992 = vmatpush1.bf16.msra.mxu0 %v8636_v22  ;;  %6156 = vmatpush1.bf16.msra.mxu1 %v8639_v23  ;;  %v8678_v23 = vld [vmem:[%s11499_s0 + $0x17b0] ss:$52 sps:$4 sm:$0xff]  }
 0x2d0   :  { %5993 = vmatprep.subr.bf16.mxu0 %v8644_v25  ;;  %6157 = vmatprep.subr.bf16.mxu1 %v8647_v26  ;;  %v8681_v25 = vld [vmem:[%s11499_s0 + $0x17b8] ss:$52 sps:$4 sm:$0xff]  }
 0x2d3   :  { %5994 = vmatpush1.bf16.msra.mxu0 %v8642_v27  ;;  %6158 = vmatpush1.bf16.msra.mxu1 %v8645_v29  ;;  %v8686_v27 = vld [vmem:[%s11499_s0 + $0x181c] ss:$52 sps:$4 sm:$0xff]   ;;  %v8689_v29 = vld [vmem:[%s11499_s0 + $0x1824] ss:$52 sps:$4 sm:$0xff]  }
 0x2d4   :  { %5995 = vmatprep.subr.bf16.mxu0 %v8650_v30  ;;  %6159 = vmatprep.subr.bf16.mxu1 %v8653_v31  ;;  %v8684_v30 = vld [vmem:[%s11499_s0 + $0x1818] ss:$52 sps:$4 sm:$0xff]   ;;  %v8687_v31 = vld [vmem:[%s11499_s0 + $0x1820] ss:$52 sps:$4 sm:$0xff]  }
 0x2d5   :  { %v5691_v38 = vpop.f32.mrb[4].mxu0  ;;  %v5855_v39 = vpop.f32.mrb[4].mxu1 }
 0x2d6   :  { %v7478_v40 = vadd.f32 %v5691_v38, %v10345_v54  ;;  %v7480_v41 = vadd.f32 %v5855_v39, %v10345_v54  ;;  %v5693_v43 = vpop.f32.mrb[5].mxu0  ;;  %v5857_v44 = vpop.f32.mrb[5].mxu1  ;;  %v8698_v38 = vld [vmem:[%s11499_s0 + $0x18ec] ss:$52 sps:$4 sm:$0xff]   ;;  %v8701_v39 = vld [vmem:[%s11499_s0 + $0x18f4] ss:$52 sps:$4 sm:$0xff]  }
 0x2d7   :  { %v7479_v47 = vadd.f32 %v5693_v43, %v10345_v54  ;;  %v7481_v48 = vadd.f32 %v5857_v44, %v10345_v54  ;;  %v5695_v50 = vpop.f32.mrb[6].mxu0  ;;  %v5859_v53 = vpop.f32.mrb[6].mxu1  ;;  %5996 = vmatpush1.bf16.msra.mxu0 %v8648_v32  ;;  %6160 = vmatpush1.bf16.msra.mxu1 %v8651_v33  ;;  %v8692_v32 = vld [vmem:[%s11499_s0 + $0x1884] ss:$52 sps:$4 sm:$0xff]   ;;  %v8695_v33 = vld [vmem:[%s11499_s0 + $0x188c] ss:$52 sps:$4 sm:$0xff]  }
 0x2d8   :  { %v7377_v56 = vmul.f32 -1.442695, %v7478_v40  ;;  %v7379_v57 = vmul.f32 -1.442695, %v7480_v41  ;;  %v5696_v58 = vpop.f32.mrb[7].mxu0  ;;  %v5860_v59 = vpop.f32.mrb[7].mxu1  ;;  %5997 = vmatprep.subr.bf16.mxu0 %v8656_v34  ;;  %6161 = vmatprep.subr.bf16.mxu1 %v8659_v37 }
 0x2d9   :  { %v7378_v61 = vmul.f32 -1.442695, %v7479_v47  ;;  %v7380_v62 = vmul.f32 -1.442695, %v7481_v48  ;;  %v8690_v34 = vld [vmem:[%s11499_s0 + $0x1880] ss:$52 sps:$4 sm:$0xff]  }
 0x2da   :  { %8794 = vpow2.f32 %v7377_v56  ;;  %v8693_v37 = vld [vmem:[%s11499_s0 + $0x1888] ss:$52 sps:$4 sm:$0xff]   ;;  %v8702_v56 = vld [vmem:[%s11499_s0 + $0x1950] ss:$52 sps:$4 sm:$0xff]  }
 0x2db   :  { %8796 = vpow2.f32 %v7379_v57  ;;  %5998 = vmatpush1.bf16.msra.mxu0 %v8654_v45  ;;  %6162 = vmatpush1.bf16.msra.mxu1 %v8657_v46  ;;  %v8696_v44 = vld [vmem:[%s11499_s0 + $0x18e8] ss:$52 sps:$4 sm:$0xff]   ;;  %v8699_v45 = vld [vmem:[%s11499_s0 + $0x18f0] ss:$52 sps:$4 sm:$0xff]   ;;  %v8705_v57 = vld [vmem:[%s11499_s0 + $0x1958] ss:$52 sps:$4 sm:$0xff]  }
 0x2dc   :  { %8798 = vpow2.f32 %v7378_v61  ;;  %5999 = vmatprep.subr.bf16.mxu0 %v8662_v42  ;;  %6163 = vmatprep.subr.bf16.mxu1 %v8665_v55  ;;  %v8704_v48 = vld [vmem:[%s11499_s0 + $0x1954] ss:$52 sps:$4 sm:$0xff]   ;;  %v8707_v50 = vld [vmem:[%s11499_s0 + $0x195c] ss:$52 sps:$4 sm:$0xff]   ;;  %v8713_v59 = vld [vmem:[%s11499_s0 + $0x19c4] ss:$52 sps:$4 sm:$0xff]  }
 0x2dd   :  { %8800 = vpow2.f32 %v7380_v62  ;;  %v8710_v58 = vld [vmem:[%s11499_s0 + $0x19bc] ss:$52 sps:$4 sm:$0xff]   ;;  %v6481_v62 = vrot.slane %v6473_v11, %v8988_v49 }
 0x2de   :  { %v8716_v11 = vld [vmem:[%s11499_s0 + $0x30] ss:$52 sps:$4 sm:$0xff]  }
 0x2df   :  { %6000 = vmatpush1.bf16.msra.mxu0 %v8660_v63  ;;  %6164 = vmatpush1.bf16.msra.mxu1 %v8663_v0  ;;  %v8708_v0 = vld [vmem:[%s11499_s0 + $0x19b8] ss:$52 sps:$4 sm:$0xff]  }
 0x2e0   :  { %6001 = vmatprep.subr.bf16.mxu0 %v8668_v1  ;;  %6165 = vmatprep.subr.bf16.mxu1 %v8671_v2  ;;  %v8711_v1 = vld [vmem:[%s11499_s0 + $0x19c0] ss:$52 sps:$4 sm:$0xff]   ;;  %v8714_v2 = vld [vmem:[%s11499_s0 + $0x370] ss:$52 sps:$4 sm:$0xff]  }
 0x2e3   :  { %6002 = vmatpush1.bf16.msra.mxu0 %v8666_v3  ;;  %6166 = vmatpush1.bf16.msra.mxu1 %v8669_v4  ;;  %v8717_v3 = vld [vmem:[%s11499_s0 + $0x6b0] ss:$52 sps:$4 sm:$0xff]   ;;  %v8718_v4 = vld [vmem:[%s11499_s0 + $0x3d8] ss:$52 sps:$4 sm:$0xff]  }
 0x2e4   :  { %v8795_v12 = vpop.eup %8794  ;;  %6003 = vmatprep.subr.bf16.mxu0 %v8674_v7  ;;  %6167 = vmatprep.subr.bf16.mxu1 %v8677_v8  ;;  %v8719_v7 = vld [vmem:[%s11499_s0 + $0xa58] ss:$52 sps:$4 sm:$0xff]  }
 0x2e5   :  { %v8797_v52 = vpop.eup %8796  ;;  %v6393_v18 = vadd.f32 1.0, %v8795_v12  ;;  %v8720_v8 = vld [vmem:[%s11499_s0 + $0x98] ss:$52 sps:$4 sm:$0xff]   ;;  %v8723_v12 = vld [vmem:[%s11499_s0 + $0xac0] ss:$52 sps:$4 sm:$0xff]  }
 0x2e6   :  { %v8799_v19 = vpop.eup %8798  ;;  %v6395_v20 = vadd.f32 1.0, %v8797_v52  ;;  %v8726_v52 = vld [vmem:[%s11499_s0 + $0x4a8] ss:$52 sps:$4 sm:$0xff]  }
 0x2e7   :  { %v8801_v21 = vpop.eup %8800  ;;  %8802 = vrcp.f32 %v6393_v18  ;;  %v6394_v22 = vadd.f32 1.0, %v8799_v19  ;;  %6004 = vmatpush1.bf16.msra.mxu0 %v8672_v9  ;;  %6168 = vmatpush1.bf16.msra.mxu1 %v8675_v10  ;;  %v8721_v9 = vld [vmem:[%s11499_s0 + $0x718] ss:$52 sps:$4 sm:$0xff]   ;;  %v8722_v10 = vld [vmem:[%s11499_s0 + $0x440] ss:$52 sps:$4 sm:$0xff]  }
 0x2e8   :  { %8804 = vrcp.f32 %v6395_v20  ;;  %v6396_v26 = vadd.f32 1.0, %v8801_v21  ;;  %6005 = vmatprep.subr.bf16.mxu0 %v8680_v14  ;;  %6169 = vmatprep.subr.bf16.mxu1 %v8683_v15  ;;  %v8724_v14 = vld [vmem:[%s11499_s0 + $0x100] ss:$52 sps:$4 sm:$0xff]   ;;  %v8729_v18 = vld [vmem:[%s11499_s0 + $0x7e8] ss:$52 sps:$4 sm:$0xff]  }
 0x2e9   :  { %8806 = vrcp.f32 %v6394_v22  ;;  %v8725_v15 = vld [vmem:[%s11499_s0 + $0x780] ss:$52 sps:$4 sm:$0xff]   ;;  %v8730_v19 = vld [vmem:[%s11499_s0 + $0x510] ss:$52 sps:$4 sm:$0xff]  }
 0x2ea   :  { %8808 = vrcp.f32 %v6396_v26  ;;  %v8731_v20 = vld [vmem:[%s11499_s0 + $0xb90] ss:$52 sps:$4 sm:$0xff]   ;;  %v8736_v26 = vld [vmem:[%s11499_s0 + $0x238] ss:$52 sps:$4 sm:$0xff]  }
 0x2eb   :  { %6006 = vmatpush1.bf16.msra.mxu0 %v8678_v23  ;;  %6170 = vmatpush1.bf16.msra.mxu1 %v8681_v25  ;;  %v8732_v21 = vld [vmem:[%s11499_s0 + $0x1d0] ss:$52 sps:$4 sm:$0xff]   ;;  %v8734_v23 = vld [vmem:[%s11499_s0 + $0x578] ss:$52 sps:$4 sm:$0xff]  }
 0x2ec   :  { %6007 = vmatprep.subr.bf16.mxu0 %v8686_v27  ;;  %6171 = vmatprep.subr.bf16.mxu1 %v8689_v29  ;;  %v8733_v22 = vld [vmem:[%s11499_s0 + $0x850] ss:$52 sps:$4 sm:$0xff]   ;;  %v8735_v25 = vld [vmem:[%s11499_s0 + $0xbf8] ss:$52 sps:$4 sm:$0xff]   ;;  %v8738_v29 = vld [vmem:[%s11499_s0 + $0x5e0] ss:$52 sps:$4 sm:$0xff]  }
 0x2ed   :  { %v8737_v27 = vld [vmem:[%s11499_s0 + $0x8b8] ss:$52 sps:$4 sm:$0xff]  }
 0x2ef   :  { %6008 = vmatpush1.bf16.msra.mxu0 %v8684_v30  ;;  %6172 = vmatpush1.bf16.msra.mxu1 %v8687_v31  ;;  %v8739_v30 = vld [vmem:[%s11499_s0 + $0xc60] ss:$52 sps:$4 sm:$0xff]  }
 0x2f0   :  { %6009 = vmatprep.subr.bf16.mxu0 %v8692_v32  ;;  %6173 = vmatprep.subr.bf16.mxu1 %v8695_v33  ;;  %v8740_v31 = vld [vmem:[%s11499_s0 + $0x2a0] ss:$52 sps:$4 sm:$0xff]   ;;  %v8742_v33 = vld [vmem:[%s11499_s0 + $0x648] ss:$52 sps:$4 sm:$0xff]  }
 0x2f1   :  { %v8803_v40 = vpop.eup %8802  ;;  %v8741_v32 = vld [vmem:[%s11499_s0 + $0x920] ss:$52 sps:$4 sm:$0xff]  }
 0x2f2   :  { %v8805_v41 = vpop.eup %8804 }
 0x2f3   :  { %v8807_v43 = vpop.eup %8806  ;;  %6010 = vmatpush1.bf16.msra.mxu0 %v8690_v34  ;;  %6174 = vmatpush1.bf16.msra.mxu1 %v8693_v37  ;;  %v8743_v34 = vld [vmem:[%s11499_s0 + $0xcc8] ss:$52 sps:$4 sm:$0xff]  }
 0x2f4   :  { %v8809_v46 = vpop.eup %8808  ;;  %v6443_v47 = vcombine.low %v8803_v40, %v8807_v43  ;;  %6011 = vmatprep.subr.bf16.mxu0 %v8698_v38  ;;  %6175 = vmatprep.subr.bf16.mxu1 %v8701_v39  ;;  %v8744_v37 = vld [vmem:[%s11499_s0 + $0x308] ss:$52 sps:$4 sm:$0xff]   ;;  %v8746_v39 = vld [vmem:[%s11499_s0 + $0x1070] ss:$52 sps:$4 sm:$0xff]  }
 0x2f5   :  { %v6444_v53 = vcombine.low %v8805_v41, %v8809_v46  ;;  %v8745_v38 = vld [vmem:[%s11499_s0 + $0x988] ss:$52 sps:$4 sm:$0xff]   ;;  %v8747_v40 = vld [vmem:[%s11499_s0 + $0x16f0] ss:$52 sps:$4 sm:$0xff]   ;;  %v8752_v46 = vld [vmem:[%s11499_s0 + $0xd98] ss:$52 sps:$4 sm:$0xff]  }
 0x2f6   :  { %v6465_v42 = vrot.slane %v6443_v47, %v8988_v49  ;;  %v8748_v41 = vld [vmem:[%s11499_s0 + $0xd30] ss:$52 sps:$4 sm:$0xff]   ;;  %v8753_v47 = vld [vmem:[%s11499_s0 + $0x1418] ss:$52 sps:$4 sm:$0xff]  }
 0x2f7   :  { %v6472_v55 = vrot.slane %v6444_v53, %v8988_v49  ;;  %6012 = vmatpush1.bf16.msra.mxu0 %v8696_v44  ;;  %6176 = vmatpush1.bf16.msra.mxu1 %v8699_v45  ;;  %v8749_v43 = vld [vmem:[%s11499_s0 + $0x13b0] ss:$52 sps:$4 sm:$0xff]   ;;  %v8750_v44 = vld [vmem:[%s11499_s0 + $0x10d8] ss:$52 sps:$4 sm:$0xff]   ;;  %v8758_v53 = vld [vmem:[%s11499_s0 + $0x11a8] ss:$52 sps:$4 sm:$0xff]  }
 0x2f8   :  { %6013 = vmatprep.subr.bf16.mxu0 %v8704_v48  ;;  %6177 = vmatprep.subr.bf16.mxu1 %v8707_v50  ;;  %v8751_v45 = vld [vmem:[%s11499_s0 + $0x1758] ss:$52 sps:$4 sm:$0xff]   ;;  %v8754_v48 = vld [vmem:[%s11499_s0 + $0x1140] ss:$52 sps:$4 sm:$0xff]  }
 0x2f9   :  { %v6474_v61 = vcombine.low %v6465_v42, %v6472_v55  ;;  %v8757_v50 = vld [vmem:[%s11499_s0 + $0x1480] ss:$52 sps:$4 sm:$0xff]   ;;  %v8761_v42 = vld [vmem:[%s11499_s0 + $0x14e8] ss:$52 sps:$4 sm:$0xff]   ;;  %v8762_v55 = vld [vmem:[%s11499_s0 + $0x1210] ss:$52 sps:$4 sm:$0xff]  }
 0x2fb   :  { %v6488_v63 = vrot.slane %v6474_v61, %v8988_v49  ;;  %6014 = vmatpush1.bf16.msra.mxu0 %v8702_v56  ;;  %6178 = vmatpush1.bf16.msra.mxu1 %v8705_v57  ;;  %v8763_v56 = vld [vmem:[%s11499_s0 + $0x1890] ss:$52 sps:$4 sm:$0xff]   ;;  %v8767_v61 = vld [vmem:[%s11499_s0 + $0x18f8] ss:$52 sps:$4 sm:$0xff]  }
 0x2fc   :  { %6015 = vmatprep.subr.bf16.mxu0 %v8710_v58  ;;  %6179 = vmatprep.subr.bf16.mxu1 %v8713_v59  ;;  %v8764_v57 = vld [vmem:[%s11499_s0 + $0xed0] ss:$52 sps:$4 sm:$0xff]   ;;  %v8766_v59 = vld [vmem:[%s11499_s0 + $0x1278] ss:$52 sps:$4 sm:$0xff]  }
 0x2fd   :  { %v6489_v6 = vcombine.low %v6481_v62, %v6488_v63  ;;  %v8765_v58 = vld [vmem:[%s11499_s0 + $0x1550] ss:$52 sps:$4 sm:$0xff]   ;;  %v8768_v62 = vld [vmem:[%s11499_s0 + $0xf38] ss:$52 sps:$4 sm:$0xff]  }
 0x2fe   :  { %v8769_v63 = vld [vmem:[%s11499_s0 + $0x15b8] ss:$52 sps:$4 sm:$0xff]  }
 0x2ff   :  { %6531 = vst [vmem:[%s11502_s3] sm:$0xff] %v6489_v6  ;;  %6016 = vmatpush1.bf16.msra.mxu0 %v8708_v0  ;;  %6180 = vmatpush1.bf16.msra.mxu1 %v8711_v1  ;;  %v8770_v0 = vld [vmem:[%s11499_s0 + $0x12e0] ss:$52 sps:$4 sm:$0xff]   ;;  %v8774_v6 = vld [vmem:[%s11499_s0 + $0x1348] ss:$52 sps:$4 sm:$0xff]  }
 0x300   :  { %7386 = vmatprep.subr.bf16.mxu0 %v8714_v2  ;;  %7408 = vmatprep.subr.bf16.mxu1 %v8715_v5  ;;  %v8771_v1 = vld [vmem:[%s11499_s0 + $0x1960] ss:$52 sps:$4 sm:$0xff]  }
 0x301   :  { %v8772_v2 = vld [vmem:[%s11499_s0 + $0xfa0] ss:$52 sps:$4 sm:$0xff]  }
 0x302   :  { %6018 = vmatmul.mubr.bf16.vlgmr.msra.gmra.mrb[8].mxu0 %v9690_v51  ;;  %6182 = vmatmul.mubr.bf16.vlgmr.msra.gmra.mrb[8].mxu1 %v9690_v51  ;;  %v8773_v5 = vld [vmem:[%s11499_s0 + $0x1620] ss:$52 sps:$4 sm:$0xff]  }
 0x303   :  { %7387 = vmatpush3.bf16.msra.mxu0 %v8716_v11  ;;  %7409 = vmatpush3.bf16.msra.mxu1 %v8717_v3  ;;  %v8775_v11 = vld [vmem:[%s11499_s0 + $0x19c8] ss:$52 sps:$4 sm:$0xff]  }
 0x304   :  { %7388 = vmatprep.subr.bf16.mxu0 %v8718_v4  ;;  %7410 = vmatprep.subr.bf16.mxu1 %v8719_v7  ;;  %v8776_v3 = vld [vmem:[%s11499_s0 + $0x1008] ss:$52 sps:$4 sm:$0xff]  }
 0x305   :  { %6222 = vmatprep.mubr.bf16.mxu0 %v9019_v60  ;;  %6262 = vmatprep.mubr.bf16.mxu1 %v9085_v17  ;;  %v8727_v60 = vld [vmem:[%s11499_s0 + $0xb28] ss:$52 sps:$4 sm:$0xff]  }
 0x306   :  { %v8728_v17 = vld [vmem:[%s11499_s0 + $0x168] ss:$52 sps:$4 sm:$0xff]  }
 0x307   :  { %7389 = vmatpush3.bf16.msra.mxu0 %v8720_v8  ;;  %7411 = vmatpush3.bf16.msra.mxu1 %v8721_v9  ;;  %v8777_v4 = vld [vmem:[%s11499_s0 + $0x1688] ss:$52 sps:$4 sm:$0xff]  }
 0x308   :  { %7390 = vmatprep.subr.bf16.mxu0 %v8722_v10  ;;  %7412 = vmatprep.subr.bf16.mxu1 %v8723_v12 }
 0x30b   :  { %7391 = vmatpush3.bf16.msra.mxu0 %v8724_v14  ;;  %7413 = vmatpush3.bf16.msra.mxu1 %v8725_v15 }
 0x30c   :  { %7392 = vmatprep.subr.bf16.mxu0 %v8726_v52  ;;  %7414 = vmatprep.subr.bf16.mxu1 %v8727_v60 }
 0x30f   :  { %7393 = vmatpush3.bf16.msra.mxu0 %v8728_v17  ;;  %7415 = vmatpush3.bf16.msra.mxu1 %v8729_v18 }
 0x310   :  { %7394 = vmatprep.subr.bf16.mxu0 %v8730_v19  ;;  %7416 = vmatprep.subr.bf16.mxu1 %v8731_v20 }
 0x313   :  { %7395 = vmatpush3.bf16.msra.mxu0 %v8732_v21  ;;  %7417 = vmatpush3.bf16.msra.mxu1 %v8733_v22 }
 0x314   :  { %7396 = vmatprep.subr.bf16.mxu0 %v8734_v23  ;;  %7418 = vmatprep.subr.bf16.mxu1 %v8735_v25 }
 0x317   :  { %7397 = vmatpush3.bf16.msra.mxu0 %v8736_v26  ;;  %7419 = vmatpush3.bf16.msra.mxu1 %v8737_v27 }
 0x318   :  { %7398 = vmatprep.subr.bf16.mxu0 %v8738_v29  ;;  %7420 = vmatprep.subr.bf16.mxu1 %v8739_v30 }
 0x31b   :  { %7399 = vmatpush3.bf16.msra.mxu0 %v8740_v31  ;;  %7421 = vmatpush3.bf16.msra.mxu1 %v8741_v32 }
 0x31c   :  { %7400 = vmatprep.subr.bf16.mxu0 %v8742_v33  ;;  %7422 = vmatprep.subr.bf16.mxu1 %v8743_v34 }
 0x31f   :  { %7401 = vmatpush3.bf16.msra.mxu0 %v8744_v37  ;;  %7423 = vmatpush3.bf16.msra.mxu1 %v8745_v38 }
 0x320   :  { %7430 = vmatprep.subr.bf16.mxu0 %v8746_v39  ;;  %7452 = vmatprep.subr.bf16.mxu1 %v8747_v40 }
 0x322   :  { %6223 = vmatmul.mubr.bf16.vlgmr.msra.gmra.mrb[12].mxu0 %v9072_v13  ;;  %6263 = vmatmul.mubr.bf16.vlgmr.msra.gmra.mrb[12].mxu1 %v9283_v24  ;;  %v8755_v13 = vld [vmem:[%s11499_s0 + $0x17c0] ss:$52 sps:$4 sm:$0xff]  }
 0x323   :  { %7431 = vmatpush3.bf16.msra.mxu0 %v8748_v41  ;;  %7453 = vmatpush3.bf16.msra.mxu1 %v8749_v43  ;;  %v8756_v24 = vld [vmem:[%s11499_s0 + $0xe00] ss:$52 sps:$4 sm:$0xff]  }
 0x324   :  { %7432 = vmatprep.subr.bf16.mxu0 %v8750_v44  ;;  %7454 = vmatprep.subr.bf16.mxu1 %v8751_v45 }
 0x325   :  { %6302 = vmatprep.mubr.bf16.mxu0 %v9295_v28  ;;  %6342 = vmatprep.mubr.bf16.mxu1 %v9499_v16  ;;  %v8759_v28 = vld [vmem:[%s11499_s0 + $0x1828] ss:$52 sps:$4 sm:$0xff]  }
 0x326   :  { %v8760_v16 = vld [vmem:[%s11499_s0 + $0xe68] ss:$52 sps:$4 sm:$0xff]  }
 0x327   :  { %7433 = vmatpush3.bf16.msra.mxu0 %v8752_v46  ;;  %7455 = vmatpush3.bf16.msra.mxu1 %v8753_v47 }
 0x328   :  { %7434 = vmatprep.subr.bf16.mxu0 %v8754_v48  ;;  %7456 = vmatprep.subr.bf16.mxu1 %v8755_v13 }
 0x32b   :  { %7435 = vmatpush3.bf16.msra.mxu0 %v8756_v24  ;;  %7457 = vmatpush3.bf16.msra.mxu1 %v8757_v50 }
 0x32c   :  { %7436 = vmatprep.subr.bf16.mxu0 %v8758_v53  ;;  %7458 = vmatprep.subr.bf16.mxu1 %v8759_v28 }
 0x32f   :  { %7437 = vmatpush3.bf16.msra.mxu0 %v8760_v16  ;;  %7459 = vmatpush3.bf16.msra.mxu1 %v8761_v42 }
 0x330   :  { %7438 = vmatprep.subr.bf16.mxu0 %v8762_v55  ;;  %7460 = vmatprep.subr.bf16.mxu1 %v8763_v56 }
 0x333   :  { %7439 = vmatpush3.bf16.msra.mxu0 %v8764_v57  ;;  %7461 = vmatpush3.bf16.msra.mxu1 %v8765_v58 }
 0x334   :  { %7440 = vmatprep.subr.bf16.mxu0 %v8766_v59  ;;  %7462 = vmatprep.subr.bf16.mxu1 %v8767_v61 }
 0x337   :  { %7441 = vmatpush3.bf16.msra.mxu0 %v8768_v62  ;;  %7463 = vmatpush3.bf16.msra.mxu1 %v8769_v63 }
 0x338   :  { %7442 = vmatprep.subr.bf16.mxu0 %v8770_v0  ;;  %7464 = vmatprep.subr.bf16.mxu1 %v8771_v1 }
 0x33b   :  { %7443 = vmatpush3.bf16.msra.mxu0 %v8772_v2  ;;  %7465 = vmatpush3.bf16.msra.mxu1 %v8773_v5 }
 0x33c   :  { %7444 = vmatprep.subr.bf16.mxu0 %v8774_v6  ;;  %7466 = vmatprep.subr.bf16.mxu1 %v8775_v11 }
 0x33f   :  { %7445 = vmatpush3.bf16.msra.mxu0 %v8776_v3  ;;  %7467 = vmatpush3.bf16.msra.mxu1 %v8777_v4 }
 0x342   :  { %6303 = vmatmul.mubr.bf16.vlgmr.msra.gmra.mrb[16].mxu0 %v9486_v35  ;;  %6343 = vmatmul.mubr.bf16.vlgmr.msra.gmra.mrb[16].mxu1 %v9690_v51 }
 0x3d5   :  { %v6019_v7 = vpop.f32.mrb[8].mxu0  ;;  %v6183_v8 = vpop.f32.mrb[8].mxu1 }
 0x3d6   :  { %v7482_v9 = vadd.f32 %v6019_v7, %v10345_v54  ;;  %v7484_v10 = vadd.f32 %v6183_v8, %v10345_v54  ;;  %v6021_v12 = vpop.f32.mrb[9].mxu0  ;;  %v6185_v14 = vpop.f32.mrb[9].mxu1 }
 0x3d7   :  { %v7483_v15 = vadd.f32 %v6021_v12, %v10345_v54  ;;  %v7485_v52 = vadd.f32 %v6185_v14, %v10345_v54  ;;  %v6023_v60 = vpop.f32.mrb[10].mxu0  ;;  %v6187_v17 = vpop.f32.mrb[10].mxu1 }
 0x3d8   :  { %v7381_v18 = vmul.f32 -1.442695, %v7482_v9  ;;  %v7383_v19 = vmul.f32 -1.442695, %v7484_v10  ;;  %v6024_v20 = vpop.f32.mrb[11].mxu0  ;;  %v6188_v35 = vpop.f32.mrb[11].mxu1 }
 0x3d9   :  { %v7382_v21 = vmul.f32 -1.442695, %v7483_v15  ;;  %v7384_v51 = vmul.f32 -1.442695, %v7485_v52 }
 0x3da   :  { %8810 = vpow2.f32 %v7381_v18 }
 0x3db   :  { %8812 = vpow2.f32 %v7383_v19 }
 0x3dc   :  { %8814 = vpow2.f32 %v7382_v21 }
 0x3dd   :  { %8816 = vpow2.f32 %v7384_v51 }
 0x3e4   :  { %v8811_v22 = vpop.eup %8810 }
 0x3e5   :  { %v8813_v23 = vpop.eup %8812  ;;  %v6397_v25 = vadd.f32 1.0, %v8811_v22 }
 0x3e6   :  { %v8815_v26 = vpop.eup %8814  ;;  %v6399_v27 = vadd.f32 1.0, %v8813_v23 }
 0x3e7   :  { %v8817_v29 = vpop.eup %8816  ;;  %8818 = vrcp.f32 %v6397_v25  ;;  %v6398_v30 = vadd.f32 1.0, %v8815_v26 }
 0x3e8   :  { %8820 = vrcp.f32 %v6399_v27  ;;  %v6400_v31 = vadd.f32 1.0, %v8817_v29 }
 0x3e9   :  { %8822 = vrcp.f32 %v6398_v30 }
 0x3ea   :  { %8824 = vrcp.f32 %v6400_v31 }
 0x3f1   :  { %v8819_v32 = vpop.eup %8818 }
 0x3f2   :  { %v8821_v33 = vpop.eup %8820 }
 0x3f3   :  { %v8823_v34 = vpop.eup %8822 }
 0x3f4   :  { %v8825_v37 = vpop.eup %8824  ;;  %v6490_v38 = vcombine.low %v8819_v32, %v8823_v34 }
 0x3f5   :  { %v6491_v39 = vcombine.low %v8821_v33, %v8825_v37  ;;  %v7402_v40 = vpop.f32.mrb[12].mxu0  ;;  %v7424_v41 = vpop.f32.mrb[12].mxu1 }
 0x3f6   :  { %v6498_v43 = vrot.slane %v6490_v38, %v8988_v49  ;;  %v7403_v44 = vpop.f32.mrb[13].mxu0  ;;  %v7425_v45 = vpop.f32.mrb[13].mxu1 }
 0x3f7   :  { %v6505_v46 = vrot.slane %v6491_v39, %v8988_v49  ;;  %v7404_v47 = vadd.f32 %v7403_v44, %v7402_v40  ;;  %v7426_v48 = vadd.f32 %v7425_v45, %v7424_v41  ;;  %v7405_v13 = vpop.f32.mrb[14].mxu0  ;;  %v7427_v24 = vpop.f32.mrb[14].mxu1 }
 0x3f8   :  { %v7406_v50 = vpop.f32.mrb[15].mxu0  ;;  %v7428_v53 = vpop.f32.mrb[15].mxu1 }
 0x3f9   :  { %v6513_v28 = vcombine.low %v6498_v43, %v6505_v46  ;;  %v6225_v16 = vadd.f32 %v7404_v47, %v10345_v54 }
 0x3fb   :  { %v6265_v42 = vadd.f32 %v7426_v48, %v6225_v16  ;;  %v6520_v7 = vrot.slane %v6513_v28, %v8988_v49 }
 0x415   :  { %v7446_v55 = vpop.f32.mrb[16].mxu0  ;;  %v7468_v56 = vpop.f32.mrb[16].mxu1 }
 0x416   :  { %v7447_v57 = vpop.f32.mrb[17].mxu0  ;;  %v7469_v58 = vpop.f32.mrb[17].mxu1 }
 0x417   :  { %v7448_v59 = vadd.f32 %v7447_v57, %v7446_v55  ;;  %v7470_v61 = vadd.f32 %v7469_v58, %v7468_v56  ;;  %v7449_v62 = vpop.f32.mrb[18].mxu0  ;;  %v7471_v63 = vpop.f32.mrb[18].mxu1 }
 0x418   :  { %v7450_v0 = vpop.f32.mrb[19].mxu0  ;;  %v7472_v1 = vpop.f32.mrb[19].mxu1 }
 0x419   :  { %v6305_v2 = vadd.f32 %v7448_v59, %v6265_v42 }
 0x41b   :  { %v6345_v5 = vadd.f32 %v7470_v61, %v6305_v2 }
 0x41d   :  { %v7385_v6 = vmul.f32 -1.442695, %v6345_v5 }
 0x41f   :  { %8826 = vpow2.f32 %v7385_v6 }
 0x429   :  { %v8827_v11 = vpop.eup %8826 }
 0x42a   :  { %v6401_v3 = vadd.f32 1.0, %v8827_v11 }
 0x42c   :  { %8828 = vrcp.f32 %v6401_v3 }
 0x436   :  { %v8829_v4 = vpop.eup %8828 }
 0x437   :  { %v6512_v54 = vrot.slane %v8829_v4, %v8988_v49 }
 0x439   :  { %v6527_v8 = vrot.slane %v6512_v54, %v8988_v49 }
 0x43b   :  { %v6528_v9 = vcombine.low %v6520_v7, %v6527_v8 }
 0x43d   :  { %6536 = vst.msk [vmem:[%s11502_s3 + $0x8] sm:$0x1f] %vm6534_vm0, %v6528_v9 }

</bundles_post_ra>
